<compile_context>
chip_gen: v7x
topology: tpu7x:2x2x1
jax: 0.10.0
libtpu: 0.0.40
codegen_flags: <defaults>
</compile_context>

<pallas_src>
import functools

import jax
import jax.numpy as jnp
import numpy as np
from jax.experimental import pallas as pl
from jax.experimental.pallas import tpu as pltpu

COMPUTE_DTYPE = jnp.bfloat16   # MXU input dtype (accumulation is always f32)
LRELU_SLOPE = 0.2
PACK = 16                      # bf16 sublane packing (rows per packed tile)


def _round_up(a, m):
    return -(-a // m) * m


# ----------------------------- Pallas kernel --------------------------------
def _rrdb_kernel(x_ref, *rest, nf, gc, H, W, npad, gpad):
    """Full RRDB (3 dense blocks + outer residual) for one image.

    Activation layout: channel-major (C, H*(W+2)) with the last two columns of
    every image row equal to zero (pad columns), so all 9 conv taps are static
    lane-offset slices of a zero-haloed flat buffer.
    """
    params = rest[:18]                     # [w0..w4, b_stacked] * 3
    o_ref = rest[18]
    acc_ref, patch_ref, halo_ref = rest[19:22]

    Wp = W + 2
    HWp = H * Wp
    OFF = Wp + 1                           # halo offset; tap starts in [0, 2Wp+2]
    C_TOT = nf + 4 * gc
    cdt = patch_ref.dtype

    # Hoisted once: multiplicative mask that zeroes the two pad columns of
    # every image row (applied once per source, not per tap).
    col = jax.lax.broadcasted_iota(jnp.int32, (1, HWp), 1) % Wp
    valid = (col < W).astype(jnp.float32)

    # Scratch persists across grid steps. The halo pad region and the padded
    # patch rows are never overwritten afterwards, so zero exactly once.
    @pl.when(pl.program_id(0) == 0)
    def _():
        halo_ref[...] = jnp.zeros_like(halo_ref)
        patch_ref[...] = jnp.zeros_like(patch_ref)

    def im2col(src_f32, c_src, c_pad):
        """Write one source (c_src, HWp) and emit its 9 shifted tap slices."""
        # one mask-mul + one f32->bf16 cast per source
        halo_ref[0:c_src, OFF:OFF + HWp] = (src_f32 * valid).astype(cdt)
        for t in range(9):                 # static unroll: 9 taps
            dy, dx = t // 3 - 1, t % 3 - 1
            s = OFF + dy * Wp + dx         # static slice start
            patch_ref[t * c_pad:t * c_pad + c_src, :] = halo_ref[0:c_src, s:s + HWp]
        # rows [t*c_pad + c_src, (t+1)*c_pad) carry stale-but-finite data;
        # the matching stacked-weight columns are zero, so they contribute 0.

    def rdb(x_in, ws, b_ref):
        """One ResidualDenseBlock_5C. x_in: (nf, HWp) f32."""
        b = b_ref[...]                     # (C_TOT, 1) f32, stacked biases

        # source 0 = x : contributes to conv1..conv5 -> whole accumulator
        im2col(x_in, nf, npad)
        acc_ref[...] = jnp.dot(ws[0][...], patch_ref[0:9 * npad, :],
                               preferred_element_type=jnp.float32)

        for k in range(1, 5):              # produce x1..x4, consume them
            lo, hi = (k - 1) * gc, k * gc
            a = acc_ref[lo:hi, :] + b[lo:hi, :]          # conv_k complete
            xk = jnp.where(a >= 0, a, LRELU_SLOPE * a)   # LeakyReLU (f32)
            im2col(xk, gc, gpad)
            # source k contributes to conv_{k+1}..conv5 -> contiguous suffix
            acc_ref[hi:C_TOT, :] += jnp.dot(ws[k][...], patch_ref[0:9 * gpad, :],
                                            preferred_element_type=jnp.float32)

        x5 = acc_ref[4 * gc:C_TOT, :] + b[4 * gc:C_TOT, :]   # no LeakyReLU
        return x5 * 0.2 + x_in             # RDB residual (f32)

    x0 = x_ref[0].astype(jnp.float32)      # (nf, HWp)
    h = rdb(x0, params[0:5], params[5])
    h = rdb(h, params[6:11], params[11])
    h = rdb(h, params[12:17], params[17])
    o_ref[0] = (h * 0.2 + x0).astype(o_ref.dtype)   # outer RRDB residual


# ------------------------------ pallas_call wrapper --------------------------
def _rrdb_pallas(x, packed, *, nf, gc, H, W):
    """x: (N, nf, H*(W+2)) padded-column layout. packed: 18 arrays."""
    N = x.shape[0]
    Wp = W + 2
    HWp = H * Wp
    npad = _round_up(nf, PACK)
    gpad = _round_up(gc, PACK)
    c_tot = nf + 4 * gc
    L = HWp + 2 * Wp + 2                   # flat spatial + zero halo

    kern = functools.partial(_rrdb_kernel, nf=nf, gc=gc, H=H, W=W,
                             npad=npad, gpad=gpad)

    act_spec = pl.BlockSpec((1, nf, HWp), lambda n: (n, 0, 0))

    def const_spec(a):
        return pl.BlockSpec(a.shape, lambda n: (0,) * a.ndim)

    in_specs = [act_spec] + [const_spec(a) for a in packed]

    cins = [nf + i * gc for i in range(5)]
    couts = [gc, gc, gc, gc, nf]
    flops = 3 * 2 * N * HWp * 9 * sum(ci * co for ci, co in zip(cins, couts))
    bytes_accessed = sum(int(a.size) * a.dtype.itemsize for a in [x] + list(packed))
    bytes_accessed += int(x.size) * x.dtype.itemsize   # output

    return pl.pallas_call(
        kern,
        out_shape=jax.ShapeDtypeStruct((N, nf, HWp), x.dtype),
        grid=(N,),
        in_specs=in_specs,
        out_specs=act_spec,
        scratch_shapes=[
            pltpu.VMEM((c_tot, HWp), jnp.float32),              # shared accumulator
            pltpu.VMEM((9 * max(npad, gpad), HWp), COMPUTE_DTYPE),  # per-source im2col
            pltpu.VMEM((max(nf, gc), L), COMPUTE_DTYPE),        # zero-haloed source
        ],
        compiler_params=pltpu.CompilerParams(
            dimension_semantics=("parallel",)),
        cost_estimate=pl.CostEstimate(flops=flops, transcendentals=0,
                                      bytes_accessed=bytes_accessed),
    )(x, *packed)


def rrdb_forward(x_nchw, packed, *, nf, gc):
    """RRDB.forward: NCHW in / NCHW out (PyTorch convention)."""
    N, C, H, W = x_nchw.shape
    Wp = W + 2
    xp = jnp.pad(x_nchw, ((0, 0), (0, 0), (0, 0), (0, 2)))   # 2 zero pad columns
    xp = xp.reshape(N, C, H * Wp)
    out = _rrdb_pallas(xp, packed, nf=nf, gc=gc, H=H, W=W)
    return out.reshape(N, C, H, Wp)[:, :, :, :W]


# --------------------------- parameters (PyTorch layout) ---------------------
def init_rrdb_params(key, nf, gc, dtype=jnp.float32):
    """Synthetic init mirroring mutil.initialize_weights(..., 0.1):
    kaiming-normal conv weights (OIHW) scaled by 0.1. Small random biases are
    used here (instead of zeros) purely to exercise the bias path in the test."""
    def conv_params(k, cin, cout):
        kw, kb = jax.random.split(k)
        std = (2.0 / (9 * cin)) ** 0.5
        w = jax.random.normal(kw, (cout, cin, 3, 3), dtype) * std * 0.1
        b = jax.random.normal(kb, (cout,), dtype) * 0.05
        return w, b

    params = []
    for _ in range(3):                            # RDB1, RDB2, RDB3
        cins = [nf, nf + gc, nf + 2 * gc, nf + 3 * gc, nf + 4 * gc]
        couts = [gc, gc, gc, gc, nf]
        block = []
        for cin, cout in zip(cins, couts):
            key, sub = jax.random.split(key)
            block.append(conv_params(sub, cin, cout))
        params.append(tuple(block))
    return tuple(params)


def pack_rrdb_params(raw_params, nf, gc, compute_dtype=COMPUTE_DTYPE):
    """Repack PyTorch OIHW weights into per-source row-stacked matrices.

    For source k (x: nf ch, x1..x4: gc ch) the matrix stacks (along rows, in
    conv order) the weight slice of every conv that consumes that source;
    columns are (tap-major, channel) with each tap block zero-padded to the
    bf16 sublane pack. Biases are stacked into one (nf+4*gc, 1) f32 vector.
    Returns the flat list [w0..w4, b] * 3 expected by the kernel.
    """
    npad = _round_up(nf, PACK)
    gpad = _round_up(gc, PACK)
    c_tot = nf + 4 * gc
    src_sizes = [nf, gc, gc, gc, gc]
    src_pads = [npad, gpad, gpad, gpad, gpad]

    def src_off(k):   # channel offset of source k inside conv j's input
        return 0 if k == 0 else nf + (k - 1) * gc

    packed = []
    for block in raw_params:                       # 3 RDBs
        ws = [w for (w, _) in block]
        bs = [b for (_, b) in block]
        for k in range(5):                         # one stacked matrix per source
            c_k, c_p = src_sizes[k], src_pads[k]
            rows = []
            for j in range(k, 5):                  # convs consuming source k
                w = ws[j]
                cout = w.shape[0]
                sl = w[:, src_off(k):src_off(k) + c_k, :, :]        # (cout,c_k,3,3)
                sl = jnp.transpose(sl, (0, 2, 3, 1)).reshape(cout, 9, c_k)
                sl = jnp.pad(sl, ((0, 0), (0, 0), (0, c_p - c_k)))  # tap-block pad
                rows.append(sl.reshape(cout, 9 * c_p))
            packed.append(jnp.concatenate(rows, axis=0).astype(compute_dtype))
        b_all = jnp.concatenate(bs, axis=0).reshape(c_tot, 1).astype(jnp.float32)
        packed.append(b_all)
    return packed


# ------------------------------ pure-JAX reference ---------------------------
def _ref_rrdb(x, params):
    def conv(h, w, b):
        y = jax.lax.conv_general_dilated(
            h, w, window_strides=(1, 1), padding=((1, 1), (1, 1)),
            dimension_numbers=("NCHW", "OIHW", "NCHW"))
        return y + b[None, :, None, None]

    lrelu = lambda t: jnp.where(t >= 0, t, LRELU_SLOPE * t)

    def rdb(h, blk):
        (w1, b1), (w2, b2), (w3, b3), (w4, b4), (w5, b5) = blk
        x1 = lrelu(conv(h, w1, b1))
        x2 = lrelu(conv(jnp.concatenate([h, x1], 1), w2, b2))
        x3 = lrelu(conv(jnp.concatenate([h, x1, x2], 1), w3, b3))
        x4 = lrelu(conv(jnp.concatenate([h, x1, x2, x3], 1), w4, b4))
        x5 = conv(jnp.concatenate([h, x1, x2, x3, x4], 1), w5, b5)
        return x5 * 0.2 + h

    out = x
    for blk in params:
        out = rdb(out, blk)
    return out * 0.2 + x


# ------------------------------------ main -----------------------------------
if __name__ == "__main__":
    # small shapes: nf=16, gc=8 (multiples of 8), H=W=16
    N, NF, GC, H, W = 2, 16, 8, 16, 16
    assert NF % 8 == 0 and GC % 8 == 0

    key = jax.random.PRNGKey(0)
    kx, kp = jax.random.split(key)
    x = jax.random.normal(kx, (N, NF, H, W), jnp.float32)     # NCHW like PyTorch
    raw_params = init_rrdb_params(kp, NF, GC)
    packed_params = pack_rrdb_params(raw_params, NF, GC)

    fwd = jax.jit(functools.partial(rrdb_forward, nf=NF, gc=GC))
    out = fwd(x, packed_params)
    jax.block_until_ready(out)
    assert out.shape == x.shape and out.dtype == x.dtype

    # numerical sanity check vs. plain-XLA reference (bf16 matmul inputs,
    # f32 accumulation -> loose-ish tolerance)
    ref = jax.jit(_ref_rrdb)(x, raw_params)
    np.testing.assert_allclose(np.asarray(out), np.asarray(ref),
                               atol=1e-2, rtol=1e-2)
    print("KERNEL_OK")
</pallas_src>

<mosaic_0001>
module attributes {stable_mosaic.version = 11 : i64} {
  func.func @_rrdb_kernel(%arg0: i32, %arg1: memref<1x16x288xf32, #tpu.memory_space<vmem>>, %arg2: memref<48x144xbf16, #tpu.memory_space<vmem>>, %arg3: memref<40x144xbf16, #tpu.memory_space<vmem>>, %arg4: memref<32x144xbf16, #tpu.memory_space<vmem>>, %arg5: memref<24x144xbf16, #tpu.memory_space<vmem>>, %arg6: memref<16x144xbf16, #tpu.memory_space<vmem>>, %arg7: memref<48x1xf32, #tpu.memory_space<vmem>>, %arg8: memref<48x144xbf16, #tpu.memory_space<vmem>>, %arg9: memref<40x144xbf16, #tpu.memory_space<vmem>>, %arg10: memref<32x144xbf16, #tpu.memory_space<vmem>>, %arg11: memref<24x144xbf16, #tpu.memory_space<vmem>>, %arg12: memref<16x144xbf16, #tpu.memory_space<vmem>>, %arg13: memref<48x1xf32, #tpu.memory_space<vmem>>, %arg14: memref<48x144xbf16, #tpu.memory_space<vmem>>, %arg15: memref<40x144xbf16, #tpu.memory_space<vmem>>, %arg16: memref<32x144xbf16, #tpu.memory_space<vmem>>, %arg17: memref<24x144xbf16, #tpu.memory_space<vmem>>, %arg18: memref<16x144xbf16, #tpu.memory_space<vmem>>, %arg19: memref<48x1xf32, #tpu.memory_space<vmem>>, %arg20: memref<1x16x288xf32, #tpu.memory_space<vmem>>, %arg21: memref<48x288xf32, #tpu.memory_space<vmem>>, %arg22: memref<144x288xbf16, #tpu.memory_space<vmem>>, %arg23: memref<16x326xbf16, #tpu.memory_space<vmem>>) attributes {dimension_semantics = [#tpu.dimension_semantics<parallel>], iteration_bounds = array<i64: 2>, scalar_prefetch = 0 : i64, scratch_operands = 3 : i64, tpu.core_type = #tpu.core_type<tc>, window_params = [{transform_indices = @transform_0, window_bounds = array<i64: 1, 16, 288>}, {pipeline_mode = #tpu.pipeline_mode<synchronous>, transform_indices = @transform_1, window_bounds = array<i64: 48, 144>}, {pipeline_mode = #tpu.pipeline_mode<synchronous>, transform_indices = @transform_2, window_bounds = array<i64: 40, 144>}, {pipeline_mode = #tpu.pipeline_mode<synchronous>, transform_indices = @transform_3, window_bounds = array<i64: 32, 144>}, {pipeline_mode = #tpu.pipeline_mode<synchronous>, transform_indices = @transform_4, window_bounds = array<i64: 24, 144>}, {pipeline_mode = #tpu.pipeline_mode<synchronous>, transform_indices = @transform_5, window_bounds = array<i64: 16, 144>}, {pipeline_mode = #tpu.pipeline_mode<synchronous>, transform_indices = @transform_6, window_bounds = array<i64: 48, 1>}, {pipeline_mode = #tpu.pipeline_mode<synchronous>, transform_indices = @transform_7, window_bounds = array<i64: 48, 144>}, {pipeline_mode = #tpu.pipeline_mode<synchronous>, transform_indices = @transform_8, window_bounds = array<i64: 40, 144>}, {pipeline_mode = #tpu.pipeline_mode<synchronous>, transform_indices = @transform_9, window_bounds = array<i64: 32, 144>}, {pipeline_mode = #tpu.pipeline_mode<synchronous>, transform_indices = @transform_10, window_bounds = array<i64: 24, 144>}, {pipeline_mode = #tpu.pipeline_mode<synchronous>, transform_indices = @transform_11, window_bounds = array<i64: 16, 144>}, {pipeline_mode = #tpu.pipeline_mode<synchronous>, transform_indices = @transform_12, window_bounds = array<i64: 48, 1>}, {pipeline_mode = #tpu.pipeline_mode<synchronous>, transform_indices = @transform_13, window_bounds = array<i64: 48, 144>}, {pipeline_mode = #tpu.pipeline_mode<synchronous>, transform_indices = @transform_14, window_bounds = array<i64: 40, 144>}, {pipeline_mode = #tpu.pipeline_mode<synchronous>, transform_indices = @transform_15, window_bounds = array<i64: 32, 144>}, {pipeline_mode = #tpu.pipeline_mode<synchronous>, transform_indices = @transform_16, window_bounds = array<i64: 24, 144>}, {pipeline_mode = #tpu.pipeline_mode<synchronous>, transform_indices = @transform_17, window_bounds = array<i64: 16, 144>}, {pipeline_mode = #tpu.pipeline_mode<synchronous>, transform_indices = @transform_18, window_bounds = array<i64: 48, 1>}, {transform_indices = @transform_19, window_bounds = array<i64: 1, 16, 288>}]} {
    %0 = tpu.iota {dimensions = array<i32: 1>} : vector<1x288xi32>
    %c18_i32 = arith.constant 18 : i32
    %c0_i32 = arith.constant 0 : i32
    %1 = arith.cmpi eq, %c18_i32, %c0_i32 : i32
    %c1_i32 = arith.constant 1 : i32
    %2 = arith.select %1, %c1_i32, %c18_i32 : i32
    %3 = vector.broadcast %2 : i32 to vector<1x288xi32>
    %4 = arith.remsi %0, %3 : vector<1x288xi32>
    %c0_i32_0 = arith.constant 0 : i32
    %5 = vector.broadcast %c0_i32_0 : i32 to vector<1x288xi32>
    %6 = arith.cmpi ne, %4, %5 : vector<1x288xi32>
    %c0_i32_1 = arith.constant 0 : i32
    %7 = vector.broadcast %c0_i32_1 : i32 to vector<1x288xi32>
    %8 = arith.cmpi slt, %4, %7 : vector<1x288xi32>
    %c0_i32_2 = arith.constant 0 : i32
    %9 = arith.cmpi slt, %2, %c0_i32_2 : i32
    %10 = vector.broadcast %9 : i1 to vector<1x288xi1>
    %11 = vector.broadcast %10 : vector<1x288xi1> to vector<1x288xi1>
    %12 = arith.xori %8, %11 : vector<1x288xi1>
    %13 = arith.andi %12, %6 : vector<1x288xi1>
    %14 = vector.broadcast %2 : i32 to vector<1x288xi32>
    %15 = arith.addi %4, %14 : vector<1x288xi32>
    %16 = arith.select %13, %15, %4 : vector<1x288xi1>, vector<1x288xi32>
    %c16_i32 = arith.constant 16 : i32
    %17 = vector.broadcast %c16_i32 : i32 to vector<1x288xi32>
    %18 = arith.cmpi slt, %16, %17 : vector<1x288xi32>
    %19 = arith.extui %18 : vector<1x288xi1> to vector<1x288xi32>
    %20 = arith.sitofp %19 : vector<1x288xi32> to vector<1x288xf32>
    %c0_i32_3 = arith.constant 0 : i32
    %21 = arith.cmpi eq, %arg0, %c0_i32_3 : i32
    %22 = arith.extui %21 : i1 to i32
    %c0_i32_4 = arith.constant 0 : i32
    %23 = arith.cmpi ne, %22, %c0_i32_4 : i32
    scf.if %23 {
      %cst_754 = arith.constant 0.000000e+00 : bf16
      %578 = vector.broadcast %cst_754 : bf16 to vector<16x326xbf16>
      %c0_755 = arith.constant 0 : index
      %c0_756 = arith.constant 0 : index
      %579 = vector.load %arg23[%c0_755, %c0_756] : memref<16x326xbf16, #tpu.memory_space<vmem>>, vector<16x326xbf16>
      tpu.vector_store %arg23[%c0_755, %c0_756], %578 {strides = array<i32>} : memref<16x326xbf16, #tpu.memory_space<vmem>>, vector<16x326xbf16>,
      %cst_757 = arith.constant 0.000000e+00 : bf16
      %580 = vector.broadcast %cst_757 : bf16 to vector<144x288xbf16>
      %c0_758 = arith.constant 0 : index
      %c0_759 = arith.constant 0 : index
      %581 = vector.load %arg22[%c0_758, %c0_759] : memref<144x288xbf16, #tpu.memory_space<vmem>>, vector<144x288xbf16>
      tpu.vector_store %arg22[%c0_758, %c0_759], %580 {strides = array<i32>} : memref<144x288xbf16, #tpu.memory_space<vmem>>, vector<144x288xbf16>,
    } else {
    }
    %c0 = arith.constant 0 : index
    %c0_5 = arith.constant 0 : index
    %c0_6 = arith.constant 0 : index
    %24 = vector.load %arg1[%c0, %c0_5, %c0_6] : memref<1x16x288xf32, #tpu.memory_space<vmem>>, vector<1x16x288xf32>
    %25 = vector.shape_cast %24 : vector<1x16x288xf32> to vector<16x288xf32>
    %c0_7 = arith.constant 0 : index
    %c0_8 = arith.constant 0 : index
    %26 = vector.load %arg7[%c0_7, %c0_8] : memref<48x1xf32, #tpu.memory_space<vmem>>, vector<48x1xf32>
    %27 = vector.broadcast %20 : vector<1x288xf32> to vector<16x288xf32>
    %28 = arith.mulf %25, %27 : vector<16x288xf32>
    %29 = arith.truncf %28 : vector<16x288xf32> to vector<16x288xbf16>
    %c0_9 = arith.constant 0 : index
    %c19 = arith.constant 19 : index
    %30 = vector.load %arg23[%c0_9, %c19] : memref<16x326xbf16, #tpu.memory_space<vmem>>, vector<16x288xbf16>
    tpu.vector_store %arg23[%c0_9, %c19], %29 {strides = array<i32>} : memref<16x326xbf16, #tpu.memory_space<vmem>>, vector<16x288xbf16>,
    %c0_10 = arith.constant 0 : index
    %c0_11 = arith.constant 0 : index
    %31 = vector.load %arg23[%c0_10, %c0_11] : memref<16x326xbf16, #tpu.memory_space<vmem>>, vector<16x288xbf16>
    %c0_12 = arith.constant 0 : index
    %c0_13 = arith.constant 0 : index
    %32 = vector.load %arg22[%c0_12, %c0_13] : memref<144x288xbf16, #tpu.memory_space<vmem>>, vector<16x288xbf16>
    tpu.vector_store %arg22[%c0_12, %c0_13], %31 {strides = array<i32>} : memref<144x288xbf16, #tpu.memory_space<vmem>>, vector<16x288xbf16>,
    %c0_14 = arith.constant 0 : index
    %c1 = arith.constant 1 : index
    %33 = vector.load %arg23[%c0_14, %c1] : memref<16x326xbf16, #tpu.memory_space<vmem>>, vector<16x288xbf16>
    %c16 = arith.constant 16 : index
    %c0_15 = arith.constant 0 : index
    %34 = vector.load %arg22[%c16, %c0_15] : memref<144x288xbf16, #tpu.memory_space<vmem>>, vector<16x288xbf16>
    tpu.vector_store %arg22[%c16, %c0_15], %33 {strides = array<i32>} : memref<144x288xbf16, #tpu.memory_space<vmem>>, vector<16x288xbf16>,
    %c0_16 = arith.constant 0 : index
    %c2 = arith.constant 2 : index
    %35 = vector.load %arg23[%c0_16, %c2] : memref<16x326xbf16, #tpu.memory_space<vmem>>, vector<16x288xbf16>
    %c32 = arith.constant 32 : index
    %c0_17 = arith.constant 0 : index
    %36 = vector.load %arg22[%c32, %c0_17] : memref<144x288xbf16, #tpu.memory_space<vmem>>, vector<16x288xbf16>
    tpu.vector_store %arg22[%c32, %c0_17], %35 {strides = array<i32>} : memref<144x288xbf16, #tpu.memory_space<vmem>>, vector<16x288xbf16>,
    %c0_18 = arith.constant 0 : index
    %c18 = arith.constant 18 : index
    %37 = vector.load %arg23[%c0_18, %c18] : memref<16x326xbf16, #tpu.memory_space<vmem>>, vector<16x288xbf16>
    %c48 = arith.constant 48 : index
    %c0_19 = arith.constant 0 : index
    %38 = vector.load %arg22[%c48, %c0_19] : memref<144x288xbf16, #tpu.memory_space<vmem>>, vector<16x288xbf16>
    tpu.vector_store %arg22[%c48, %c0_19], %37 {strides = array<i32>} : memref<144x288xbf16, #tpu.memory_space<vmem>>, vector<16x288xbf16>,
    %c0_20 = arith.constant 0 : index
    %c19_21 = arith.constant 19 : index
    %39 = vector.load %arg23[%c0_20, %c19_21] : memref<16x326xbf16, #tpu.memory_space<vmem>>, vector<16x288xbf16>
    %c64 = arith.constant 64 : index
    %c0_22 = arith.constant 0 : index
    %40 = vector.load %arg22[%c64, %c0_22] : memref<144x288xbf16, #tpu.memory_space<vmem>>, vector<16x288xbf16>
    tpu.vector_store %arg22[%c64, %c0_22], %39 {strides = array<i32>} : memref<144x288xbf16, #tpu.memory_space<vmem>>, vector<16x288xbf16>,
    %c0_23 = arith.constant 0 : index
    %c20 = arith.constant 20 : index
    %41 = vector.load %arg23[%c0_23, %c20] : memref<16x326xbf16, #tpu.memory_space<vmem>>, vector<16x288xbf16>
    %c80 = arith.constant 80 : index
    %c0_24 = arith.constant 0 : index
    %42 = vector.load %arg22[%c80, %c0_24] : memref<144x288xbf16, #tpu.memory_space<vmem>>, vector<16x288xbf16>
    tpu.vector_store %arg22[%c80, %c0_24], %41 {strides = array<i32>} : memref<144x288xbf16, #tpu.memory_space<vmem>>, vector<16x288xbf16>,
    %c0_25 = arith.constant 0 : index
    %c36 = arith.constant 36 : index
    %43 = vector.load %arg23[%c0_25, %c36] : memref<16x326xbf16, #tpu.memory_space<vmem>>, vector<16x288xbf16>
    %c96 = arith.constant 96 : index
    %c0_26 = arith.constant 0 : index
    %44 = vector.load %arg22[%c96, %c0_26] : memref<144x288xbf16, #tpu.memory_space<vmem>>, vector<16x288xbf16>
    tpu.vector_store %arg22[%c96, %c0_26], %43 {strides = array<i32>} : memref<144x288xbf16, #tpu.memory_space<vmem>>, vector<16x288xbf16>,
    %c0_27 = arith.constant 0 : index
    %c37 = arith.constant 37 : index
    %45 = vector.load %arg23[%c0_27, %c37] : memref<16x326xbf16, #tpu.memory_space<vmem>>, vector<16x288xbf16>
    %c112 = arith.constant 112 : index
    %c0_28 = arith.constant 0 : index
    %46 = vector.load %arg22[%c112, %c0_28] : memref<144x288xbf16, #tpu.memory_space<vmem>>, vector<16x288xbf16>
    tpu.vector_store %arg22[%c112, %c0_28], %45 {strides = array<i32>} : memref<144x288xbf16, #tpu.memory_space<vmem>>, vector<16x288xbf16>,
    %c0_29 = arith.constant 0 : index
    %c38 = arith.constant 38 : index
    %47 = vector.load %arg23[%c0_29, %c38] : memref<16x326xbf16, #tpu.memory_space<vmem>>, vector<16x288xbf16>
    %c128 = arith.constant 128 : index
    %c0_30 = arith.constant 0 : index
    %48 = vector.load %arg22[%c128, %c0_30] : memref<144x288xbf16, #tpu.memory_space<vmem>>, vector<16x288xbf16>
    tpu.vector_store %arg22[%c128, %c0_30], %47 {strides = array<i32>} : memref<144x288xbf16, #tpu.memory_space<vmem>>, vector<16x288xbf16>,
    %c0_31 = arith.constant 0 : index
    %c0_32 = arith.constant 0 : index
    %49 = vector.load %arg2[%c0_31, %c0_32] : memref<48x144xbf16, #tpu.memory_space<vmem>>, vector<48x144xbf16>
    %c0_33 = arith.constant 0 : index
    %c0_34 = arith.constant 0 : index
    %50 = vector.load %arg22[%c0_33, %c0_34] : memref<144x288xbf16, #tpu.memory_space<vmem>>, vector<144x288xbf16>
    %cst = arith.constant dense<0.000000e+00> : vector<48x288xf32>
    %51 = tpu.matmul %49, %50, %cst {dimension_numbers = #tpu.dot_dimension_numbers<[1], [0], [0], [1], [0, 0, 1, 1], [], []>} : vector<48x144xbf16>, vector<144x288xbf16>, vector<48x288xf32> -> vector<48x288xf32>
    %c0_35 = arith.constant 0 : index
    %c0_36 = arith.constant 0 : index
    %52 = vector.load %arg21[%c0_35, %c0_36] : memref<48x288xf32, #tpu.memory_space<vmem>>, vector<48x288xf32>
    tpu.vector_store %arg21[%c0_35, %c0_36], %51 {strides = array<i32>} : memref<48x288xf32, #tpu.memory_space<vmem>>, vector<48x288xf32>,
    %c0_37 = arith.constant 0 : index
    %c0_38 = arith.constant 0 : index
    %53 = vector.load %arg21[%c0_37, %c0_38] : memref<48x288xf32, #tpu.memory_space<vmem>>, vector<8x288xf32>
    %54 = vector.extract_strided_slice %26 {offsets = [0, 0], sizes = [8, 1], strides = [1, 1]} : vector<48x1xf32> to vector<8x1xf32>
    %55 = vector.broadcast %54 : vector<8x1xf32> to vector<8x288xf32>
    %56 = arith.addf %53, %55 : vector<8x288xf32>
    %cst_39 = arith.constant 0.000000e+00 : f32
    %57 = vector.broadcast %cst_39 : f32 to vector<8x288xf32>
    %58 = arith.cmpf oge, %56, %57 : vector<8x288xf32>
    %cst_40 = arith.constant 2.000000e-01 : f32
    %59 = vector.broadcast %cst_40 : f32 to vector<8x288xf32>
    %60 = arith.mulf %59, %56 : vector<8x288xf32>
    %61 = arith.select %58, %56, %60 : vector<8x288xi1>, vector<8x288xf32>
    %62 = vector.broadcast %20 : vector<1x288xf32> to vector<8x288xf32>
    %63 = arith.mulf %61, %62 : vector<8x288xf32>
    %64 = arith.truncf %63 : vector<8x288xf32> to vector<8x288xbf16>
    %c0_41 = arith.constant 0 : index
    %c19_42 = arith.constant 19 : index
    %65 = vector.load %arg23[%c0_41, %c19_42] : memref<16x326xbf16, #tpu.memory_space<vmem>>, vector<8x288xbf16>
    tpu.vector_store %arg23[%c0_41, %c19_42], %64 {strides = array<i32>} : memref<16x326xbf16, #tpu.memory_space<vmem>>, vector<8x288xbf16>,
    %c0_43 = arith.constant 0 : index
    %c0_44 = arith.constant 0 : index
    %66 = vector.load %arg23[%c0_43, %c0_44] : memref<16x326xbf16, #tpu.memory_space<vmem>>, vector<8x288xbf16>
    %c0_45 = arith.constant 0 : index
    %c0_46 = arith.constant 0 : index
    %67 = vector.load %arg22[%c0_45, %c0_46] : memref<144x288xbf16, #tpu.memory_space<vmem>>, vector<8x288xbf16>
    tpu.vector_store %arg22[%c0_45, %c0_46], %66 {strides = array<i32>} : memref<144x288xbf16, #tpu.memory_space<vmem>>, vector<8x288xbf16>,
    %c0_47 = arith.constant 0 : index
    %c1_48 = arith.constant 1 : index
    %68 = vector.load %arg23[%c0_47, %c1_48] : memref<16x326xbf16, #tpu.memory_space<vmem>>, vector<8x288xbf16>
    %c16_49 = arith.constant 16 : index
    %c0_50 = arith.constant 0 : index
    %69 = vector.load %arg22[%c16_49, %c0_50] : memref<144x288xbf16, #tpu.memory_space<vmem>>, vector<8x288xbf16>
    tpu.vector_store %arg22[%c16_49, %c0_50], %68 {strides = array<i32>} : memref<144x288xbf16, #tpu.memory_space<vmem>>, vector<8x288xbf16>,
    %c0_51 = arith.constant 0 : index
    %c2_52 = arith.constant 2 : index
    %70 = vector.load %arg23[%c0_51, %c2_52] : memref<16x326xbf16, #tpu.memory_space<vmem>>, vector<8x288xbf16>
    %c32_53 = arith.constant 32 : index
    %c0_54 = arith.constant 0 : index
    %71 = vector.load %arg22[%c32_53, %c0_54] : memref<144x288xbf16, #tpu.memory_space<vmem>>, vector<8x288xbf16>
    tpu.vector_store %arg22[%c32_53, %c0_54], %70 {strides = array<i32>} : memref<144x288xbf16, #tpu.memory_space<vmem>>, vector<8x288xbf16>,
    %c0_55 = arith.constant 0 : index
    %c18_56 = arith.constant 18 : index
    %72 = vector.load %arg23[%c0_55, %c18_56] : memref<16x326xbf16, #tpu.memory_space<vmem>>, vector<8x288xbf16>
    %c48_57 = arith.constant 48 : index
    %c0_58 = arith.constant 0 : index
    %73 = vector.load %arg22[%c48_57, %c0_58] : memref<144x288xbf16, #tpu.memory_space<vmem>>, vector<8x288xbf16>
    tpu.vector_store %arg22[%c48_57, %c0_58], %72 {strides = array<i32>} : memref<144x288xbf16, #tpu.memory_space<vmem>>, vector<8x288xbf16>,
    %c0_59 = arith.constant 0 : index
    %c19_60 = arith.constant 19 : index
    %74 = vector.load %arg23[%c0_59, %c19_60] : memref<16x326xbf16, #tpu.memory_space<vmem>>, vector<8x288xbf16>
    %c64_61 = arith.constant 64 : index
    %c0_62 = arith.constant 0 : index
    %75 = vector.load %arg22[%c64_61, %c0_62] : memref<144x288xbf16, #tpu.memory_space<vmem>>, vector<8x288xbf16>
    tpu.vector_store %arg22[%c64_61, %c0_62], %74 {strides = array<i32>} : memref<144x288xbf16, #tpu.memory_space<vmem>>, vector<8x288xbf16>,
    %c0_63 = arith.constant 0 : index
    %c20_64 = arith.constant 20 : index
    %76 = vector.load %arg23[%c0_63, %c20_64] : memref<16x326xbf16, #tpu.memory_space<vmem>>, vector<8x288xbf16>
    %c80_65 = arith.constant 80 : index
    %c0_66 = arith.constant 0 : index
    %77 = vector.load %arg22[%c80_65, %c0_66] : memref<144x288xbf16, #tpu.memory_space<vmem>>, vector<8x288xbf16>
    tpu.vector_store %arg22[%c80_65, %c0_66], %76 {strides = array<i32>} : memref<144x288xbf16, #tpu.memory_space<vmem>>, vector<8x288xbf16>,
    %c0_67 = arith.constant 0 : index
    %c36_68 = arith.constant 36 : index
    %78 = vector.load %arg23[%c0_67, %c36_68] : memref<16x326xbf16, #tpu.memory_space<vmem>>, vector<8x288xbf16>
    %c96_69 = arith.constant 96 : index
    %c0_70 = arith.constant 0 : index
    %79 = vector.load %arg22[%c96_69, %c0_70] : memref<144x288xbf16, #tpu.memory_space<vmem>>, vector<8x288xbf16>
    tpu.vector_store %arg22[%c96_69, %c0_70], %78 {strides = array<i32>} : memref<144x288xbf16, #tpu.memory_space<vmem>>, vector<8x288xbf16>,
    %c0_71 = arith.constant 0 : index
    %c37_72 = arith.constant 37 : index
    %80 = vector.load %arg23[%c0_71, %c37_72] : memref<16x326xbf16, #tpu.memory_space<vmem>>, vector<8x288xbf16>
    %c112_73 = arith.constant 112 : index
    %c0_74 = arith.constant 0 : index
    %81 = vector.load %arg22[%c112_73, %c0_74] : memref<144x288xbf16, #tpu.memory_space<vmem>>, vector<8x288xbf16>
    tpu.vector_store %arg22[%c112_73, %c0_74], %80 {strides = array<i32>} : memref<144x288xbf16, #tpu.memory_space<vmem>>, vector<8x288xbf16>,
    %c0_75 = arith.constant 0 : index
    %c38_76 = arith.constant 38 : index
    %82 = vector.load %arg23[%c0_75, %c38_76] : memref<16x326xbf16, #tpu.memory_space<vmem>>, vector<8x288xbf16>
    %c128_77 = arith.constant 128 : index
    %c0_78 = arith.constant 0 : index
    %83 = vector.load %arg22[%c128_77, %c0_78] : memref<144x288xbf16, #tpu.memory_space<vmem>>, vector<8x288xbf16>
    tpu.vector_store %arg22[%c128_77, %c0_78], %82 {strides = array<i32>} : memref<144x288xbf16, #tpu.memory_space<vmem>>, vector<8x288xbf16>,
    %c8 = arith.constant 8 : index
    %c0_79 = arith.constant 0 : index
    %84 = vector.load %arg21[%c8, %c0_79] : memref<48x288xf32, #tpu.memory_space<vmem>>, vector<40x288xf32>
    %c0_80 = arith.constant 0 : index
    %c0_81 = arith.constant 0 : index
    %85 = vector.load %arg3[%c0_80, %c0_81] : memref<40x144xbf16, #tpu.memory_space<vmem>>, vector<40x144xbf16>
    %c0_82 = arith.constant 0 : index
    %c0_83 = arith.constant 0 : index
    %86 = vector.load %arg22[%c0_82, %c0_83] : memref<144x288xbf16, #tpu.memory_space<vmem>>, vector<144x288xbf16>
    %cst_84 = arith.constant dense<0.000000e+00> : vector<40x288xf32>
    %87 = tpu.matmul %85, %86, %cst_84 {dimension_numbers = #tpu.dot_dimension_numbers<[1], [0], [0], [1], [0, 0, 1, 1], [], []>} : vector<40x144xbf16>, vector<144x288xbf16>, vector<40x288xf32> -> vector<40x288xf32>
    %88 = arith.addf %84, %87 : vector<40x288xf32>
    %c8_85 = arith.constant 8 : index
    %c0_86 = arith.constant 0 : index
    %89 = vector.load %arg21[%c8_85, %c0_86] : memref<48x288xf32, #tpu.memory_space<vmem>>, vector<40x288xf32>
    tpu.vector_store %arg21[%c8_85, %c0_86], %88 {strides = array<i32>} : memref<48x288xf32, #tpu.memory_space<vmem>>, vector<40x288xf32>,
    %c8_87 = arith.constant 8 : index
    %c0_88 = arith.constant 0 : index
    %90 = vector.load %arg21[%c8_87, %c0_88] : memref<48x288xf32, #tpu.memory_space<vmem>>, vector<8x288xf32>
    %91 = vector.extract_strided_slice %26 {offsets = [8, 0], sizes = [8, 1], strides = [1, 1]} : vector<48x1xf32> to vector<8x1xf32>
    %92 = vector.broadcast %91 : vector<8x1xf32> to vector<8x288xf32>
    %93 = arith.addf %90, %92 : vector<8x288xf32>
    %cst_89 = arith.constant 0.000000e+00 : f32
    %94 = vector.broadcast %cst_89 : f32 to vector<8x288xf32>
    %95 = arith.cmpf oge, %93, %94 : vector<8x288xf32>
    %cst_90 = arith.constant 2.000000e-01 : f32
    %96 = vector.broadcast %cst_90 : f32 to vector<8x288xf32>
    %97 = arith.mulf %96, %93 : vector<8x288xf32>
    %98 = arith.select %95, %93, %97 : vector<8x288xi1>, vector<8x288xf32>
    %99 = vector.broadcast %20 : vector<1x288xf32> to vector<8x288xf32>
    %100 = arith.mulf %98, %99 : vector<8x288xf32>
    %101 = arith.truncf %100 : vector<8x288xf32> to vector<8x288xbf16>
    %c0_91 = arith.constant 0 : index
    %c19_92 = arith.constant 19 : index
    %102 = vector.load %arg23[%c0_91, %c19_92] : memref<16x326xbf16, #tpu.memory_space<vmem>>, vector<8x288xbf16>
    tpu.vector_store %arg23[%c0_91, %c19_92], %101 {strides = array<i32>} : memref<16x326xbf16, #tpu.memory_space<vmem>>, vector<8x288xbf16>,
    %c0_93 = arith.constant 0 : index
    %c0_94 = arith.constant 0 : index
    %103 = vector.load %arg23[%c0_93, %c0_94] : memref<16x326xbf16, #tpu.memory_space<vmem>>, vector<8x288xbf16>
    %c0_95 = arith.constant 0 : index
    %c0_96 = arith.constant 0 : index
    %104 = vector.load %arg22[%c0_95, %c0_96] : memref<144x288xbf16, #tpu.memory_space<vmem>>, vector<8x288xbf16>
    tpu.vector_store %arg22[%c0_95, %c0_96], %103 {strides = array<i32>} : memref<144x288xbf16, #tpu.memory_space<vmem>>, vector<8x288xbf16>,
    %c0_97 = arith.constant 0 : index
    %c1_98 = arith.constant 1 : index
    %105 = vector.load %arg23[%c0_97, %c1_98] : memref<16x326xbf16, #tpu.memory_space<vmem>>, vector<8x288xbf16>
    %c16_99 = arith.constant 16 : index
    %c0_100 = arith.constant 0 : index
    %106 = vector.load %arg22[%c16_99, %c0_100] : memref<144x288xbf16, #tpu.memory_space<vmem>>, vector<8x288xbf16>
    tpu.vector_store %arg22[%c16_99, %c0_100], %105 {strides = array<i32>} : memref<144x288xbf16, #tpu.memory_space<vmem>>, vector<8x288xbf16>,
    %c0_101 = arith.constant 0 : index
    %c2_102 = arith.constant 2 : index
    %107 = vector.load %arg23[%c0_101, %c2_102] : memref<16x326xbf16, #tpu.memory_space<vmem>>, vector<8x288xbf16>
    %c32_103 = arith.constant 32 : index
    %c0_104 = arith.constant 0 : index
    %108 = vector.load %arg22[%c32_103, %c0_104] : memref<144x288xbf16, #tpu.memory_space<vmem>>, vector<8x288xbf16>
    tpu.vector_store %arg22[%c32_103, %c0_104], %107 {strides = array<i32>} : memref<144x288xbf16, #tpu.memory_space<vmem>>, vector<8x288xbf16>,
    %c0_105 = arith.constant 0 : index
    %c18_106 = arith.constant 18 : index
    %109 = vector.load %arg23[%c0_105, %c18_106] : memref<16x326xbf16, #tpu.memory_space<vmem>>, vector<8x288xbf16>
    %c48_107 = arith.constant 48 : index
    %c0_108 = arith.constant 0 : index
    %110 = vector.load %arg22[%c48_107, %c0_108] : memref<144x288xbf16, #tpu.memory_space<vmem>>, vector<8x288xbf16>
    tpu.vector_store %arg22[%c48_107, %c0_108], %109 {strides = array<i32>} : memref<144x288xbf16, #tpu.memory_space<vmem>>, vector<8x288xbf16>,
    %c0_109 = arith.constant 0 : index
    %c19_110 = arith.constant 19 : index
    %111 = vector.load %arg23[%c0_109, %c19_110] : memref<16x326xbf16, #tpu.memory_space<vmem>>, vector<8x288xbf16>
    %c64_111 = arith.constant 64 : index
    %c0_112 = arith.constant 0 : index
    %112 = vector.load %arg22[%c64_111, %c0_112] : memref<144x288xbf16, #tpu.memory_space<vmem>>, vector<8x288xbf16>
    tpu.vector_store %arg22[%c64_111, %c0_112], %111 {strides = array<i32>} : memref<144x288xbf16, #tpu.memory_space<vmem>>, vector<8x288xbf16>,
    %c0_113 = arith.constant 0 : index
    %c20_114 = arith.constant 20 : index
    %113 = vector.load %arg23[%c0_113, %c20_114] : memref<16x326xbf16, #tpu.memory_space<vmem>>, vector<8x288xbf16>
    %c80_115 = arith.constant 80 : index
    %c0_116 = arith.constant 0 : index
    %114 = vector.load %arg22[%c80_115, %c0_116] : memref<144x288xbf16, #tpu.memory_space<vmem>>, vector<8x288xbf16>
    tpu.vector_store %arg22[%c80_115, %c0_116], %113 {strides = array<i32>} : memref<144x288xbf16, #tpu.memory_space<vmem>>, vector<8x288xbf16>,
    %c0_117 = arith.constant 0 : index
    %c36_118 = arith.constant 36 : index
    %115 = vector.load %arg23[%c0_117, %c36_118] : memref<16x326xbf16, #tpu.memory_space<vmem>>, vector<8x288xbf16>
    %c96_119 = arith.constant 96 : index
    %c0_120 = arith.constant 0 : index
    %116 = vector.load %arg22[%c96_119, %c0_120] : memref<144x288xbf16, #tpu.memory_space<vmem>>, vector<8x288xbf16>
    tpu.vector_store %arg22[%c96_119, %c0_120], %115 {strides = array<i32>} : memref<144x288xbf16, #tpu.memory_space<vmem>>, vector<8x288xbf16>,
    %c0_121 = arith.constant 0 : index
    %c37_122 = arith.constant 37 : index
    %117 = vector.load %arg23[%c0_121, %c37_122] : memref<16x326xbf16, #tpu.memory_space<vmem>>, vector<8x288xbf16>
    %c112_123 = arith.constant 112 : index
    %c0_124 = arith.constant 0 : index
    %118 = vector.load %arg22[%c112_123, %c0_124] : memref<144x288xbf16, #tpu.memory_space<vmem>>, vector<8x288xbf16>
    tpu.vector_store %arg22[%c112_123, %c0_124], %117 {strides = array<i32>} : memref<144x288xbf16, #tpu.memory_space<vmem>>, vector<8x288xbf16>,
    %c0_125 = arith.constant 0 : index
    %c38_126 = arith.constant 38 : index
    %119 = vector.load %arg23[%c0_125, %c38_126] : memref<16x326xbf16, #tpu.memory_space<vmem>>, vector<8x288xbf16>
    %c128_127 = arith.constant 128 : index
    %c0_128 = arith.constant 0 : index
    %120 = vector.load %arg22[%c128_127, %c0_128] : memref<144x288xbf16, #tpu.memory_space<vmem>>, vector<8x288xbf16>
    tpu.vector_store %arg22[%c128_127, %c0_128], %119 {strides = array<i32>} : memref<144x288xbf16, #tpu.memory_space<vmem>>, vector<8x288xbf16>,
    %c16_129 = arith.constant 16 : index
    %c0_130 = arith.constant 0 : index
    %121 = vector.load %arg21[%c16_129, %c0_130] : memref<48x288xf32, #tpu.memory_space<vmem>>, vector<32x288xf32>
    %c0_131 = arith.constant 0 : index
    %c0_132 = arith.constant 0 : index
    %122 = vector.load %arg4[%c0_131, %c0_132] : memref<32x144xbf16, #tpu.memory_space<vmem>>, vector<32x144xbf16>
    %c0_133 = arith.constant 0 : index
    %c0_134 = arith.constant 0 : index
    %123 = vector.load %arg22[%c0_133, %c0_134] : memref<144x288xbf16, #tpu.memory_space<vmem>>, vector<144x288xbf16>
    %cst_135 = arith.constant dense<0.000000e+00> : vector<32x288xf32>
    %124 = tpu.matmul %122, %123, %cst_135 {dimension_numbers = #tpu.dot_dimension_numbers<[1], [0], [0], [1], [0, 0, 1, 1], [], []>} : vector<32x144xbf16>, vector<144x288xbf16>, vector<32x288xf32> -> vector<32x288xf32>
    %125 = arith.addf %121, %124 : vector<32x288xf32>
    %c16_136 = arith.constant 16 : index
    %c0_137 = arith.constant 0 : index
    %126 = vector.load %arg21[%c16_136, %c0_137] : memref<48x288xf32, #tpu.memory_space<vmem>>, vector<32x288xf32>
    tpu.vector_store %arg21[%c16_136, %c0_137], %125 {strides = array<i32>} : memref<48x288xf32, #tpu.memory_space<vmem>>, vector<32x288xf32>,
    %c16_138 = arith.constant 16 : index
    %c0_139 = arith.constant 0 : index
    %127 = vector.load %arg21[%c16_138, %c0_139] : memref<48x288xf32, #tpu.memory_space<vmem>>, vector<8x288xf32>
    %128 = vector.extract_strided_slice %26 {offsets = [16, 0], sizes = [8, 1], strides = [1, 1]} : vector<48x1xf32> to vector<8x1xf32>
    %129 = vector.broadcast %128 : vector<8x1xf32> to vector<8x288xf32>
    %130 = arith.addf %127, %129 : vector<8x288xf32>
    %cst_140 = arith.constant 0.000000e+00 : f32
    %131 = vector.broadcast %cst_140 : f32 to vector<8x288xf32>
    %132 = arith.cmpf oge, %130, %131 : vector<8x288xf32>
    %cst_141 = arith.constant 2.000000e-01 : f32
    %133 = vector.broadcast %cst_141 : f32 to vector<8x288xf32>
    %134 = arith.mulf %133, %130 : vector<8x288xf32>
    %135 = arith.select %132, %130, %134 : vector<8x288xi1>, vector<8x288xf32>
    %136 = vector.broadcast %20 : vector<1x288xf32> to vector<8x288xf32>
    %137 = arith.mulf %135, %136 : vector<8x288xf32>
    %138 = arith.truncf %137 : vector<8x288xf32> to vector<8x288xbf16>
    %c0_142 = arith.constant 0 : index
    %c19_143 = arith.constant 19 : index
    %139 = vector.load %arg23[%c0_142, %c19_143] : memref<16x326xbf16, #tpu.memory_space<vmem>>, vector<8x288xbf16>
    tpu.vector_store %arg23[%c0_142, %c19_143], %138 {strides = array<i32>} : memref<16x326xbf16, #tpu.memory_space<vmem>>, vector<8x288xbf16>,
    %c0_144 = arith.constant 0 : index
    %c0_145 = arith.constant 0 : index
    %140 = vector.load %arg23[%c0_144, %c0_145] : memref<16x326xbf16, #tpu.memory_space<vmem>>, vector<8x288xbf16>
    %c0_146 = arith.constant 0 : index
    %c0_147 = arith.constant 0 : index
    %141 = vector.load %arg22[%c0_146, %c0_147] : memref<144x288xbf16, #tpu.memory_space<vmem>>, vector<8x288xbf16>
    tpu.vector_store %arg22[%c0_146, %c0_147], %140 {strides = array<i32>} : memref<144x288xbf16, #tpu.memory_space<vmem>>, vector<8x288xbf16>,
    %c0_148 = arith.constant 0 : index
    %c1_149 = arith.constant 1 : index
    %142 = vector.load %arg23[%c0_148, %c1_149] : memref<16x326xbf16, #tpu.memory_space<vmem>>, vector<8x288xbf16>
    %c16_150 = arith.constant 16 : index
    %c0_151 = arith.constant 0 : index
    %143 = vector.load %arg22[%c16_150, %c0_151] : memref<144x288xbf16, #tpu.memory_space<vmem>>, vector<8x288xbf16>
    tpu.vector_store %arg22[%c16_150, %c0_151], %142 {strides = array<i32>} : memref<144x288xbf16, #tpu.memory_space<vmem>>, vector<8x288xbf16>,
    %c0_152 = arith.constant 0 : index
    %c2_153 = arith.constant 2 : index
    %144 = vector.load %arg23[%c0_152, %c2_153] : memref<16x326xbf16, #tpu.memory_space<vmem>>, vector<8x288xbf16>
    %c32_154 = arith.constant 32 : index
    %c0_155 = arith.constant 0 : index
    %145 = vector.load %arg22[%c32_154, %c0_155] : memref<144x288xbf16, #tpu.memory_space<vmem>>, vector<8x288xbf16>
    tpu.vector_store %arg22[%c32_154, %c0_155], %144 {strides = array<i32>} : memref<144x288xbf16, #tpu.memory_space<vmem>>, vector<8x288xbf16>,
    %c0_156 = arith.constant 0 : index
    %c18_157 = arith.constant 18 : index
    %146 = vector.load %arg23[%c0_156, %c18_157] : memref<16x326xbf16, #tpu.memory_space<vmem>>, vector<8x288xbf16>
    %c48_158 = arith.constant 48 : index
    %c0_159 = arith.constant 0 : index
    %147 = vector.load %arg22[%c48_158, %c0_159] : memref<144x288xbf16, #tpu.memory_space<vmem>>, vector<8x288xbf16>
    tpu.vector_store %arg22[%c48_158, %c0_159], %146 {strides = array<i32>} : memref<144x288xbf16, #tpu.memory_space<vmem>>, vector<8x288xbf16>,
    %c0_160 = arith.constant 0 : index
    %c19_161 = arith.constant 19 : index
    %148 = vector.load %arg23[%c0_160, %c19_161] : memref<16x326xbf16, #tpu.memory_space<vmem>>, vector<8x288xbf16>
    %c64_162 = arith.constant 64 : index
    %c0_163 = arith.constant 0 : index
    %149 = vector.load %arg22[%c64_162, %c0_163] : memref<144x288xbf16, #tpu.memory_space<vmem>>, vector<8x288xbf16>
    tpu.vector_store %arg22[%c64_162, %c0_163], %148 {strides = array<i32>} : memref<144x288xbf16, #tpu.memory_space<vmem>>, vector<8x288xbf16>,
    %c0_164 = arith.constant 0 : index
    %c20_165 = arith.constant 20 : index
    %150 = vector.load %arg23[%c0_164, %c20_165] : memref<16x326xbf16, #tpu.memory_space<vmem>>, vector<8x288xbf16>
    %c80_166 = arith.constant 80 : index
    %c0_167 = arith.constant 0 : index
    %151 = vector.load %arg22[%c80_166, %c0_167] : memref<144x288xbf16, #tpu.memory_space<vmem>>, vector<8x288xbf16>
    tpu.vector_store %arg22[%c80_166, %c0_167], %150 {strides = array<i32>} : memref<144x288xbf16, #tpu.memory_space<vmem>>, vector<8x288xbf16>,
    %c0_168 = arith.constant 0 : index
    %c36_169 = arith.constant 36 : index
    %152 = vector.load %arg23[%c0_168, %c36_169] : memref<16x326xbf16, #tpu.memory_space<vmem>>, vector<8x288xbf16>
    %c96_170 = arith.constant 96 : index
    %c0_171 = arith.constant 0 : index
    %153 = vector.load %arg22[%c96_170, %c0_171] : memref<144x288xbf16, #tpu.memory_space<vmem>>, vector<8x288xbf16>
    tpu.vector_store %arg22[%c96_170, %c0_171], %152 {strides = array<i32>} : memref<144x288xbf16, #tpu.memory_space<vmem>>, vector<8x288xbf16>,
    %c0_172 = arith.constant 0 : index
    %c37_173 = arith.constant 37 : index
    %154 = vector.load %arg23[%c0_172, %c37_173] : memref<16x326xbf16, #tpu.memory_space<vmem>>, vector<8x288xbf16>
    %c112_174 = arith.constant 112 : index
    %c0_175 = arith.constant 0 : index
    %155 = vector.load %arg22[%c112_174, %c0_175] : memref<144x288xbf16, #tpu.memory_space<vmem>>, vector<8x288xbf16>
    tpu.vector_store %arg22[%c112_174, %c0_175], %154 {strides = array<i32>} : memref<144x288xbf16, #tpu.memory_space<vmem>>, vector<8x288xbf16>,
    %c0_176 = arith.constant 0 : index
    %c38_177 = arith.constant 38 : index
    %156 = vector.load %arg23[%c0_176, %c38_177] : memref<16x326xbf16, #tpu.memory_space<vmem>>, vector<8x288xbf16>
    %c128_178 = arith.constant 128 : index
    %c0_179 = arith.constant 0 : index
    %157 = vector.load %arg22[%c128_178, %c0_179] : memref<144x288xbf16, #tpu.memory_space<vmem>>, vector<8x288xbf16>
    tpu.vector_store %arg22[%c128_178, %c0_179], %156 {strides = array<i32>} : memref<144x288xbf16, #tpu.memory_space<vmem>>, vector<8x288xbf16>,
    %c24 = arith.constant 24 : index
    %c0_180 = arith.constant 0 : index
    %158 = vector.load %arg21[%c24, %c0_180] : memref<48x288xf32, #tpu.memory_space<vmem>>, vector<24x288xf32>
    %c0_181 = arith.constant 0 : index
    %c0_182 = arith.constant 0 : index
    %159 = vector.load %arg5[%c0_181, %c0_182] : memref<24x144xbf16, #tpu.memory_space<vmem>>, vector<24x144xbf16>
    %c0_183 = arith.constant 0 : index
    %c0_184 = arith.constant 0 : index
    %160 = vector.load %arg22[%c0_183, %c0_184] : memref<144x288xbf16, #tpu.memory_space<vmem>>, vector<144x288xbf16>
    %cst_185 = arith.constant dense<0.000000e+00> : vector<24x288xf32>
    %161 = tpu.matmul %159, %160, %cst_185 {dimension_numbers = #tpu.dot_dimension_numbers<[1], [0], [0], [1], [0, 0, 1, 1], [], []>} : vector<24x144xbf16>, vector<144x288xbf16>, vector<24x288xf32> -> vector<24x288xf32>
    %162 = arith.addf %158, %161 : vector<24x288xf32>
    %c24_186 = arith.constant 24 : index
    %c0_187 = arith.constant 0 : index
    %163 = vector.load %arg21[%c24_186, %c0_187] : memref<48x288xf32, #tpu.memory_space<vmem>>, vector<24x288xf32>
    tpu.vector_store %arg21[%c24_186, %c0_187], %162 {strides = array<i32>} : memref<48x288xf32, #tpu.memory_space<vmem>>, vector<24x288xf32>,
    %c24_188 = arith.constant 24 : index
    %c0_189 = arith.constant 0 : index
    %164 = vector.load %arg21[%c24_188, %c0_189] : memref<48x288xf32, #tpu.memory_space<vmem>>, vector<8x288xf32>
    %165 = vector.extract_strided_slice %26 {offsets = [24, 0], sizes = [8, 1], strides = [1, 1]} : vector<48x1xf32> to vector<8x1xf32>
    %166 = vector.broadcast %165 : vector<8x1xf32> to vector<8x288xf32>
    %167 = arith.addf %164, %166 : vector<8x288xf32>
    %cst_190 = arith.constant 0.000000e+00 : f32
    %168 = vector.broadcast %cst_190 : f32 to vector<8x288xf32>
    %169 = arith.cmpf oge, %167, %168 : vector<8x288xf32>
    %cst_191 = arith.constant 2.000000e-01 : f32
    %170 = vector.broadcast %cst_191 : f32 to vector<8x288xf32>
    %171 = arith.mulf %170, %167 : vector<8x288xf32>
    %172 = arith.select %169, %167, %171 : vector<8x288xi1>, vector<8x288xf32>
    %173 = vector.broadcast %20 : vector<1x288xf32> to vector<8x288xf32>
    %174 = arith.mulf %172, %173 : vector<8x288xf32>
    %175 = arith.truncf %174 : vector<8x288xf32> to vector<8x288xbf16>
    %c0_192 = arith.constant 0 : index
    %c19_193 = arith.constant 19 : index
    %176 = vector.load %arg23[%c0_192, %c19_193] : memref<16x326xbf16, #tpu.memory_space<vmem>>, vector<8x288xbf16>
    tpu.vector_store %arg23[%c0_192, %c19_193], %175 {strides = array<i32>} : memref<16x326xbf16, #tpu.memory_space<vmem>>, vector<8x288xbf16>,
    %c0_194 = arith.constant 0 : index
    %c0_195 = arith.constant 0 : index
    %177 = vector.load %arg23[%c0_194, %c0_195] : memref<16x326xbf16, #tpu.memory_space<vmem>>, vector<8x288xbf16>
    %c0_196 = arith.constant 0 : index
    %c0_197 = arith.constant 0 : index
    %178 = vector.load %arg22[%c0_196, %c0_197] : memref<144x288xbf16, #tpu.memory_space<vmem>>, vector<8x288xbf16>
    tpu.vector_store %arg22[%c0_196, %c0_197], %177 {strides = array<i32>} : memref<144x288xbf16, #tpu.memory_space<vmem>>, vector<8x288xbf16>,
    %c0_198 = arith.constant 0 : index
    %c1_199 = arith.constant 1 : index
    %179 = vector.load %arg23[%c0_198, %c1_199] : memref<16x326xbf16, #tpu.memory_space<vmem>>, vector<8x288xbf16>
    %c16_200 = arith.constant 16 : index
    %c0_201 = arith.constant 0 : index
    %180 = vector.load %arg22[%c16_200, %c0_201] : memref<144x288xbf16, #tpu.memory_space<vmem>>, vector<8x288xbf16>
    tpu.vector_store %arg22[%c16_200, %c0_201], %179 {strides = array<i32>} : memref<144x288xbf16, #tpu.memory_space<vmem>>, vector<8x288xbf16>,
    %c0_202 = arith.constant 0 : index
    %c2_203 = arith.constant 2 : index
    %181 = vector.load %arg23[%c0_202, %c2_203] : memref<16x326xbf16, #tpu.memory_space<vmem>>, vector<8x288xbf16>
    %c32_204 = arith.constant 32 : index
    %c0_205 = arith.constant 0 : index
    %182 = vector.load %arg22[%c32_204, %c0_205] : memref<144x288xbf16, #tpu.memory_space<vmem>>, vector<8x288xbf16>
    tpu.vector_store %arg22[%c32_204, %c0_205], %181 {strides = array<i32>} : memref<144x288xbf16, #tpu.memory_space<vmem>>, vector<8x288xbf16>,
    %c0_206 = arith.constant 0 : index
    %c18_207 = arith.constant 18 : index
    %183 = vector.load %arg23[%c0_206, %c18_207] : memref<16x326xbf16, #tpu.memory_space<vmem>>, vector<8x288xbf16>
    %c48_208 = arith.constant 48 : index
    %c0_209 = arith.constant 0 : index
    %184 = vector.load %arg22[%c48_208, %c0_209] : memref<144x288xbf16, #tpu.memory_space<vmem>>, vector<8x288xbf16>
    tpu.vector_store %arg22[%c48_208, %c0_209], %183 {strides = array<i32>} : memref<144x288xbf16, #tpu.memory_space<vmem>>, vector<8x288xbf16>,
    %c0_210 = arith.constant 0 : index
    %c19_211 = arith.constant 19 : index
    %185 = vector.load %arg23[%c0_210, %c19_211] : memref<16x326xbf16, #tpu.memory_space<vmem>>, vector<8x288xbf16>
    %c64_212 = arith.constant 64 : index
    %c0_213 = arith.constant 0 : index
    %186 = vector.load %arg22[%c64_212, %c0_213] : memref<144x288xbf16, #tpu.memory_space<vmem>>, vector<8x288xbf16>
    tpu.vector_store %arg22[%c64_212, %c0_213], %185 {strides = array<i32>} : memref<144x288xbf16, #tpu.memory_space<vmem>>, vector<8x288xbf16>,
    %c0_214 = arith.constant 0 : index
    %c20_215 = arith.constant 20 : index
    %187 = vector.load %arg23[%c0_214, %c20_215] : memref<16x326xbf16, #tpu.memory_space<vmem>>, vector<8x288xbf16>
    %c80_216 = arith.constant 80 : index
    %c0_217 = arith.constant 0 : index
    %188 = vector.load %arg22[%c80_216, %c0_217] : memref<144x288xbf16, #tpu.memory_space<vmem>>, vector<8x288xbf16>
    tpu.vector_store %arg22[%c80_216, %c0_217], %187 {strides = array<i32>} : memref<144x288xbf16, #tpu.memory_space<vmem>>, vector<8x288xbf16>,
    %c0_218 = arith.constant 0 : index
    %c36_219 = arith.constant 36 : index
    %189 = vector.load %arg23[%c0_218, %c36_219] : memref<16x326xbf16, #tpu.memory_space<vmem>>, vector<8x288xbf16>
    %c96_220 = arith.constant 96 : index
    %c0_221 = arith.constant 0 : index
    %190 = vector.load %arg22[%c96_220, %c0_221] : memref<144x288xbf16, #tpu.memory_space<vmem>>, vector<8x288xbf16>
    tpu.vector_store %arg22[%c96_220, %c0_221], %189 {strides = array<i32>} : memref<144x288xbf16, #tpu.memory_space<vmem>>, vector<8x288xbf16>,
    %c0_222 = arith.constant 0 : index
    %c37_223 = arith.constant 37 : index
    %191 = vector.load %arg23[%c0_222, %c37_223] : memref<16x326xbf16, #tpu.memory_space<vmem>>, vector<8x288xbf16>
    %c112_224 = arith.constant 112 : index
    %c0_225 = arith.constant 0 : index
    %192 = vector.load %arg22[%c112_224, %c0_225] : memref<144x288xbf16, #tpu.memory_space<vmem>>, vector<8x288xbf16>
    tpu.vector_store %arg22[%c112_224, %c0_225], %191 {strides = array<i32>} : memref<144x288xbf16, #tpu.memory_space<vmem>>, vector<8x288xbf16>,
    %c0_226 = arith.constant 0 : index
    %c38_227 = arith.constant 38 : index
    %193 = vector.load %arg23[%c0_226, %c38_227] : memref<16x326xbf16, #tpu.memory_space<vmem>>, vector<8x288xbf16>
    %c128_228 = arith.constant 128 : index
    %c0_229 = arith.constant 0 : index
    %194 = vector.load %arg22[%c128_228, %c0_229] : memref<144x288xbf16, #tpu.memory_space<vmem>>, vector<8x288xbf16>
    tpu.vector_store %arg22[%c128_228, %c0_229], %193 {strides = array<i32>} : memref<144x288xbf16, #tpu.memory_space<vmem>>, vector<8x288xbf16>,
    %c32_230 = arith.constant 32 : index
    %c0_231 = arith.constant 0 : index
    %195 = vector.load %arg21[%c32_230, %c0_231] : memref<48x288xf32, #tpu.memory_space<vmem>>, vector<16x288xf32>
    %c0_232 = arith.constant 0 : index
    %c0_233 = arith.constant 0 : index
    %196 = vector.load %arg6[%c0_232, %c0_233] : memref<16x144xbf16, #tpu.memory_space<vmem>>, vector<16x144xbf16>
    %c0_234 = arith.constant 0 : index
    %c0_235 = arith.constant 0 : index
    %197 = vector.load %arg22[%c0_234, %c0_235] : memref<144x288xbf16, #tpu.memory_space<vmem>>, vector<144x288xbf16>
    %cst_236 = arith.constant dense<0.000000e+00> : vector<16x288xf32>
    %198 = tpu.matmul %196, %197, %cst_236 {dimension_numbers = #tpu.dot_dimension_numbers<[1], [0], [0], [1], [0, 0, 1, 1], [], []>} : vector<16x144xbf16>, vector<144x288xbf16>, vector<16x288xf32> -> vector<16x288xf32>
    %199 = arith.addf %195, %198 : vector<16x288xf32>
    %c32_237 = arith.constant 32 : index
    %c0_238 = arith.constant 0 : index
    %200 = vector.load %arg21[%c32_237, %c0_238] : memref<48x288xf32, #tpu.memory_space<vmem>>, vector<16x288xf32>
    tpu.vector_store %arg21[%c32_237, %c0_238], %199 {strides = array<i32>} : memref<48x288xf32, #tpu.memory_space<vmem>>, vector<16x288xf32>,
    %c32_239 = arith.constant 32 : index
    %c0_240 = arith.constant 0 : index
    %201 = vector.load %arg21[%c32_239, %c0_240] : memref<48x288xf32, #tpu.memory_space<vmem>>, vector<16x288xf32>
    %202 = vector.extract_strided_slice %26 {offsets = [32, 0], sizes = [16, 1], strides = [1, 1]} : vector<48x1xf32> to vector<16x1xf32>
    %203 = vector.broadcast %202 : vector<16x1xf32> to vector<16x288xf32>
    %204 = arith.addf %201, %203 : vector<16x288xf32>
    %cst_241 = arith.constant 2.000000e-01 : f32
    %205 = vector.broadcast %cst_241 : f32 to vector<16x288xf32>
    %206 = arith.mulf %204, %205 : vector<16x288xf32>
    %207 = arith.addf %206, %25 : vector<16x288xf32>
    %c0_242 = arith.constant 0 : index
    %c0_243 = arith.constant 0 : index
    %208 = vector.load %arg13[%c0_242, %c0_243] : memref<48x1xf32, #tpu.memory_space<vmem>>, vector<48x1xf32>
    %209 = vector.broadcast %20 : vector<1x288xf32> to vector<16x288xf32>
    %210 = arith.mulf %207, %209 : vector<16x288xf32>
    %211 = arith.truncf %210 : vector<16x288xf32> to vector<16x288xbf16>
    %c0_244 = arith.constant 0 : index
    %c19_245 = arith.constant 19 : index
    %212 = vector.load %arg23[%c0_244, %c19_245] : memref<16x326xbf16, #tpu.memory_space<vmem>>, vector<16x288xbf16>
    tpu.vector_store %arg23[%c0_244, %c19_245], %211 {strides = array<i32>} : memref<16x326xbf16, #tpu.memory_space<vmem>>, vector<16x288xbf16>,
    %c0_246 = arith.constant 0 : index
    %c0_247 = arith.constant 0 : index
    %213 = vector.load %arg23[%c0_246, %c0_247] : memref<16x326xbf16, #tpu.memory_space<vmem>>, vector<16x288xbf16>
    %c0_248 = arith.constant 0 : index
    %c0_249 = arith.constant 0 : index
    %214 = vector.load %arg22[%c0_248, %c0_249] : memref<144x288xbf16, #tpu.memory_space<vmem>>, vector<16x288xbf16>
    tpu.vector_store %arg22[%c0_248, %c0_249], %213 {strides = array<i32>} : memref<144x288xbf16, #tpu.memory_space<vmem>>, vector<16x288xbf16>,
    %c0_250 = arith.constant 0 : index
    %c1_251 = arith.constant 1 : index
    %215 = vector.load %arg23[%c0_250, %c1_251] : memref<16x326xbf16, #tpu.memory_space<vmem>>, vector<16x288xbf16>
    %c16_252 = arith.constant 16 : index
    %c0_253 = arith.constant 0 : index
    %216 = vector.load %arg22[%c16_252, %c0_253] : memref<144x288xbf16, #tpu.memory_space<vmem>>, vector<16x288xbf16>
    tpu.vector_store %arg22[%c16_252, %c0_253], %215 {strides = array<i32>} : memref<144x288xbf16, #tpu.memory_space<vmem>>, vector<16x288xbf16>,
    %c0_254 = arith.constant 0 : index
    %c2_255 = arith.constant 2 : index
    %217 = vector.load %arg23[%c0_254, %c2_255] : memref<16x326xbf16, #tpu.memory_space<vmem>>, vector<16x288xbf16>
    %c32_256 = arith.constant 32 : index
    %c0_257 = arith.constant 0 : index
    %218 = vector.load %arg22[%c32_256, %c0_257] : memref<144x288xbf16, #tpu.memory_space<vmem>>, vector<16x288xbf16>
    tpu.vector_store %arg22[%c32_256, %c0_257], %217 {strides = array<i32>} : memref<144x288xbf16, #tpu.memory_space<vmem>>, vector<16x288xbf16>,
    %c0_258 = arith.constant 0 : index
    %c18_259 = arith.constant 18 : index
    %219 = vector.load %arg23[%c0_258, %c18_259] : memref<16x326xbf16, #tpu.memory_space<vmem>>, vector<16x288xbf16>
    %c48_260 = arith.constant 48 : index
    %c0_261 = arith.constant 0 : index
    %220 = vector.load %arg22[%c48_260, %c0_261] : memref<144x288xbf16, #tpu.memory_space<vmem>>, vector<16x288xbf16>
    tpu.vector_store %arg22[%c48_260, %c0_261], %219 {strides = array<i32>} : memref<144x288xbf16, #tpu.memory_space<vmem>>, vector<16x288xbf16>,
    %c0_262 = arith.constant 0 : index
    %c19_263 = arith.constant 19 : index
    %221 = vector.load %arg23[%c0_262, %c19_263] : memref<16x326xbf16, #tpu.memory_space<vmem>>, vector<16x288xbf16>
    %c64_264 = arith.constant 64 : index
    %c0_265 = arith.constant 0 : index
    %222 = vector.load %arg22[%c64_264, %c0_265] : memref<144x288xbf16, #tpu.memory_space<vmem>>, vector<16x288xbf16>
    tpu.vector_store %arg22[%c64_264, %c0_265], %221 {strides = array<i32>} : memref<144x288xbf16, #tpu.memory_space<vmem>>, vector<16x288xbf16>,
    %c0_266 = arith.constant 0 : index
    %c20_267 = arith.constant 20 : index
    %223 = vector.load %arg23[%c0_266, %c20_267] : memref<16x326xbf16, #tpu.memory_space<vmem>>, vector<16x288xbf16>
    %c80_268 = arith.constant 80 : index
    %c0_269 = arith.constant 0 : index
    %224 = vector.load %arg22[%c80_268, %c0_269] : memref<144x288xbf16, #tpu.memory_space<vmem>>, vector<16x288xbf16>
    tpu.vector_store %arg22[%c80_268, %c0_269], %223 {strides = array<i32>} : memref<144x288xbf16, #tpu.memory_space<vmem>>, vector<16x288xbf16>,
    %c0_270 = arith.constant 0 : index
    %c36_271 = arith.constant 36 : index
    %225 = vector.load %arg23[%c0_270, %c36_271] : memref<16x326xbf16, #tpu.memory_space<vmem>>, vector<16x288xbf16>
    %c96_272 = arith.constant 96 : index
    %c0_273 = arith.constant 0 : index
    %226 = vector.load %arg22[%c96_272, %c0_273] : memref<144x288xbf16, #tpu.memory_space<vmem>>, vector<16x288xbf16>
    tpu.vector_store %arg22[%c96_272, %c0_273], %225 {strides = array<i32>} : memref<144x288xbf16, #tpu.memory_space<vmem>>, vector<16x288xbf16>,
    %c0_274 = arith.constant 0 : index
    %c37_275 = arith.constant 37 : index
    %227 = vector.load %arg23[%c0_274, %c37_275] : memref<16x326xbf16, #tpu.memory_space<vmem>>, vector<16x288xbf16>
    %c112_276 = arith.constant 112 : index
    %c0_277 = arith.constant 0 : index
    %228 = vector.load %arg22[%c112_276, %c0_277] : memref<144x288xbf16, #tpu.memory_space<vmem>>, vector<16x288xbf16>
    tpu.vector_store %arg22[%c112_276, %c0_277], %227 {strides = array<i32>} : memref<144x288xbf16, #tpu.memory_space<vmem>>, vector<16x288xbf16>,
    %c0_278 = arith.constant 0 : index
    %c38_279 = arith.constant 38 : index
    %229 = vector.load %arg23[%c0_278, %c38_279] : memref<16x326xbf16, #tpu.memory_space<vmem>>, vector<16x288xbf16>
    %c128_280 = arith.constant 128 : index
    %c0_281 = arith.constant 0 : index
    %230 = vector.load %arg22[%c128_280, %c0_281] : memref<144x288xbf16, #tpu.memory_space<vmem>>, vector<16x288xbf16>
    tpu.vector_store %arg22[%c128_280, %c0_281], %229 {strides = array<i32>} : memref<144x288xbf16, #tpu.memory_space<vmem>>, vector<16x288xbf16>,
    %c0_282 = arith.constant 0 : index
    %c0_283 = arith.constant 0 : index
    %231 = vector.load %arg8[%c0_282, %c0_283] : memref<48x144xbf16, #tpu.memory_space<vmem>>, vector<48x144xbf16>
    %c0_284 = arith.constant 0 : index
    %c0_285 = arith.constant 0 : index
    %232 = vector.load %arg22[%c0_284, %c0_285] : memref<144x288xbf16, #tpu.memory_space<vmem>>, vector<144x288xbf16>
    %cst_286 = arith.constant dense<0.000000e+00> : vector<48x288xf32>
    %233 = tpu.matmul %231, %232, %cst_286 {dimension_numbers = #tpu.dot_dimension_numbers<[1], [0], [0], [1], [0, 0, 1, 1], [], []>} : vector<48x144xbf16>, vector<144x288xbf16>, vector<48x288xf32> -> vector<48x288xf32>
    %c0_287 = arith.constant 0 : index
    %c0_288 = arith.constant 0 : index
    %234 = vector.load %arg21[%c0_287, %c0_288] : memref<48x288xf32, #tpu.memory_space<vmem>>, vector<48x288xf32>
    tpu.vector_store %arg21[%c0_287, %c0_288], %233 {strides = array<i32>} : memref<48x288xf32, #tpu.memory_space<vmem>>, vector<48x288xf32>,
    %c0_289 = arith.constant 0 : index
    %c0_290 = arith.constant 0 : index
    %235 = vector.load %arg21[%c0_289, %c0_290] : memref<48x288xf32, #tpu.memory_space<vmem>>, vector<8x288xf32>
    %236 = vector.extract_strided_slice %208 {offsets = [0, 0], sizes = [8, 1], strides = [1, 1]} : vector<48x1xf32> to vector<8x1xf32>
    %237 = vector.broadcast %236 : vector<8x1xf32> to vector<8x288xf32>
    %238 = arith.addf %235, %237 : vector<8x288xf32>
    %cst_291 = arith.constant 0.000000e+00 : f32
    %239 = vector.broadcast %cst_291 : f32 to vector<8x288xf32>
    %240 = arith.cmpf oge, %238, %239 : vector<8x288xf32>
    %cst_292 = arith.constant 2.000000e-01 : f32
    %241 = vector.broadcast %cst_292 : f32 to vector<8x288xf32>
    %242 = arith.mulf %241, %238 : vector<8x288xf32>
    %243 = arith.select %240, %238, %242 : vector<8x288xi1>, vector<8x288xf32>
    %244 = vector.broadcast %20 : vector<1x288xf32> to vector<8x288xf32>
    %245 = arith.mulf %243, %244 : vector<8x288xf32>
    %246 = arith.truncf %245 : vector<8x288xf32> to vector<8x288xbf16>
    %c0_293 = arith.constant 0 : index
    %c19_294 = arith.constant 19 : index
    %247 = vector.load %arg23[%c0_293, %c19_294] : memref<16x326xbf16, #tpu.memory_space<vmem>>, vector<8x288xbf16>
    tpu.vector_store %arg23[%c0_293, %c19_294], %246 {strides = array<i32>} : memref<16x326xbf16, #tpu.memory_space<vmem>>, vector<8x288xbf16>,
    %c0_295 = arith.constant 0 : index
    %c0_296 = arith.constant 0 : index
    %248 = vector.load %arg23[%c0_295, %c0_296] : memref<16x326xbf16, #tpu.memory_space<vmem>>, vector<8x288xbf16>
    %c0_297 = arith.constant 0 : index
    %c0_298 = arith.constant 0 : index
    %249 = vector.load %arg22[%c0_297, %c0_298] : memref<144x288xbf16, #tpu.memory_space<vmem>>, vector<8x288xbf16>
    tpu.vector_store %arg22[%c0_297, %c0_298], %248 {strides = array<i32>} : memref<144x288xbf16, #tpu.memory_space<vmem>>, vector<8x288xbf16>,
    %c0_299 = arith.constant 0 : index
    %c1_300 = arith.constant 1 : index
    %250 = vector.load %arg23[%c0_299, %c1_300] : memref<16x326xbf16, #tpu.memory_space<vmem>>, vector<8x288xbf16>
    %c16_301 = arith.constant 16 : index
    %c0_302 = arith.constant 0 : index
    %251 = vector.load %arg22[%c16_301, %c0_302] : memref<144x288xbf16, #tpu.memory_space<vmem>>, vector<8x288xbf16>
    tpu.vector_store %arg22[%c16_301, %c0_302], %250 {strides = array<i32>} : memref<144x288xbf16, #tpu.memory_space<vmem>>, vector<8x288xbf16>,
    %c0_303 = arith.constant 0 : index
    %c2_304 = arith.constant 2 : index
    %252 = vector.load %arg23[%c0_303, %c2_304] : memref<16x326xbf16, #tpu.memory_space<vmem>>, vector<8x288xbf16>
    %c32_305 = arith.constant 32 : index
    %c0_306 = arith.constant 0 : index
    %253 = vector.load %arg22[%c32_305, %c0_306] : memref<144x288xbf16, #tpu.memory_space<vmem>>, vector<8x288xbf16>
    tpu.vector_store %arg22[%c32_305, %c0_306], %252 {strides = array<i32>} : memref<144x288xbf16, #tpu.memory_space<vmem>>, vector<8x288xbf16>,
    %c0_307 = arith.constant 0 : index
    %c18_308 = arith.constant 18 : index
    %254 = vector.load %arg23[%c0_307, %c18_308] : memref<16x326xbf16, #tpu.memory_space<vmem>>, vector<8x288xbf16>
    %c48_309 = arith.constant 48 : index
    %c0_310 = arith.constant 0 : index
    %255 = vector.load %arg22[%c48_309, %c0_310] : memref<144x288xbf16, #tpu.memory_space<vmem>>, vector<8x288xbf16>
    tpu.vector_store %arg22[%c48_309, %c0_310], %254 {strides = array<i32>} : memref<144x288xbf16, #tpu.memory_space<vmem>>, vector<8x288xbf16>,
    %c0_311 = arith.constant 0 : index
    %c19_312 = arith.constant 19 : index
    %256 = vector.load %arg23[%c0_311, %c19_312] : memref<16x326xbf16, #tpu.memory_space<vmem>>, vector<8x288xbf16>
    %c64_313 = arith.constant 64 : index
    %c0_314 = arith.constant 0 : index
    %257 = vector.load %arg22[%c64_313, %c0_314] : memref<144x288xbf16, #tpu.memory_space<vmem>>, vector<8x288xbf16>
    tpu.vector_store %arg22[%c64_313, %c0_314], %256 {strides = array<i32>} : memref<144x288xbf16, #tpu.memory_space<vmem>>, vector<8x288xbf16>,
    %c0_315 = arith.constant 0 : index
    %c20_316 = arith.constant 20 : index
    %258 = vector.load %arg23[%c0_315, %c20_316] : memref<16x326xbf16, #tpu.memory_space<vmem>>, vector<8x288xbf16>
    %c80_317 = arith.constant 80 : index
    %c0_318 = arith.constant 0 : index
    %259 = vector.load %arg22[%c80_317, %c0_318] : memref<144x288xbf16, #tpu.memory_space<vmem>>, vector<8x288xbf16>
    tpu.vector_store %arg22[%c80_317, %c0_318], %258 {strides = array<i32>} : memref<144x288xbf16, #tpu.memory_space<vmem>>, vector<8x288xbf16>,
    %c0_319 = arith.constant 0 : index
    %c36_320 = arith.constant 36 : index
    %260 = vector.load %arg23[%c0_319, %c36_320] : memref<16x326xbf16, #tpu.memory_space<vmem>>, vector<8x288xbf16>
    %c96_321 = arith.constant 96 : index
    %c0_322 = arith.constant 0 : index
    %261 = vector.load %arg22[%c96_321, %c0_322] : memref<144x288xbf16, #tpu.memory_space<vmem>>, vector<8x288xbf16>
    tpu.vector_store %arg22[%c96_321, %c0_322], %260 {strides = array<i32>} : memref<144x288xbf16, #tpu.memory_space<vmem>>, vector<8x288xbf16>,
    %c0_323 = arith.constant 0 : index
    %c37_324 = arith.constant 37 : index
    %262 = vector.load %arg23[%c0_323, %c37_324] : memref<16x326xbf16, #tpu.memory_space<vmem>>, vector<8x288xbf16>
    %c112_325 = arith.constant 112 : index
    %c0_326 = arith.constant 0 : index
    %263 = vector.load %arg22[%c112_325, %c0_326] : memref<144x288xbf16, #tpu.memory_space<vmem>>, vector<8x288xbf16>
    tpu.vector_store %arg22[%c112_325, %c0_326], %262 {strides = array<i32>} : memref<144x288xbf16, #tpu.memory_space<vmem>>, vector<8x288xbf16>,
    %c0_327 = arith.constant 0 : index
    %c38_328 = arith.constant 38 : index
    %264 = vector.load %arg23[%c0_327, %c38_328] : memref<16x326xbf16, #tpu.memory_space<vmem>>, vector<8x288xbf16>
    %c128_329 = arith.constant 128 : index
    %c0_330 = arith.constant 0 : index
    %265 = vector.load %arg22[%c128_329, %c0_330] : memref<144x288xbf16, #tpu.memory_space<vmem>>, vector<8x288xbf16>
    tpu.vector_store %arg22[%c128_329, %c0_330], %264 {strides = array<i32>} : memref<144x288xbf16, #tpu.memory_space<vmem>>, vector<8x288xbf16>,
    %c8_331 = arith.constant 8 : index
    %c0_332 = arith.constant 0 : index
    %266 = vector.load %arg21[%c8_331, %c0_332] : memref<48x288xf32, #tpu.memory_space<vmem>>, vector<40x288xf32>
    %c0_333 = arith.constant 0 : index
    %c0_334 = arith.constant 0 : index
    %267 = vector.load %arg9[%c0_333, %c0_334] : memref<40x144xbf16, #tpu.memory_space<vmem>>, vector<40x144xbf16>
    %c0_335 = arith.constant 0 : index
    %c0_336 = arith.constant 0 : index
    %268 = vector.load %arg22[%c0_335, %c0_336] : memref<144x288xbf16, #tpu.memory_space<vmem>>, vector<144x288xbf16>
    %cst_337 = arith.constant dense<0.000000e+00> : vector<40x288xf32>
    %269 = tpu.matmul %267, %268, %cst_337 {dimension_numbers = #tpu.dot_dimension_numbers<[1], [0], [0], [1], [0, 0, 1, 1], [], []>} : vector<40x144xbf16>, vector<144x288xbf16>, vector<40x288xf32> -> vector<40x288xf32>
    %270 = arith.addf %266, %269 : vector<40x288xf32>
    %c8_338 = arith.constant 8 : index
    %c0_339 = arith.constant 0 : index
    %271 = vector.load %arg21[%c8_338, %c0_339] : memref<48x288xf32, #tpu.memory_space<vmem>>, vector<40x288xf32>
    tpu.vector_store %arg21[%c8_338, %c0_339], %270 {strides = array<i32>} : memref<48x288xf32, #tpu.memory_space<vmem>>, vector<40x288xf32>,
    %c8_340 = arith.constant 8 : index
    %c0_341 = arith.constant 0 : index
    %272 = vector.load %arg21[%c8_340, %c0_341] : memref<48x288xf32, #tpu.memory_space<vmem>>, vector<8x288xf32>
    %273 = vector.extract_strided_slice %208 {offsets = [8, 0], sizes = [8, 1], strides = [1, 1]} : vector<48x1xf32> to vector<8x1xf32>
    %274 = vector.broadcast %273 : vector<8x1xf32> to vector<8x288xf32>
    %275 = arith.addf %272, %274 : vector<8x288xf32>
    %cst_342 = arith.constant 0.000000e+00 : f32
    %276 = vector.broadcast %cst_342 : f32 to vector<8x288xf32>
    %277 = arith.cmpf oge, %275, %276 : vector<8x288xf32>
    %cst_343 = arith.constant 2.000000e-01 : f32
    %278 = vector.broadcast %cst_343 : f32 to vector<8x288xf32>
    %279 = arith.mulf %278, %275 : vector<8x288xf32>
    %280 = arith.select %277, %275, %279 : vector<8x288xi1>, vector<8x288xf32>
    %281 = vector.broadcast %20 : vector<1x288xf32> to vector<8x288xf32>
    %282 = arith.mulf %280, %281 : vector<8x288xf32>
    %283 = arith.truncf %282 : vector<8x288xf32> to vector<8x288xbf16>
    %c0_344 = arith.constant 0 : index
    %c19_345 = arith.constant 19 : index
    %284 = vector.load %arg23[%c0_344, %c19_345] : memref<16x326xbf16, #tpu.memory_space<vmem>>, vector<8x288xbf16>
    tpu.vector_store %arg23[%c0_344, %c19_345], %283 {strides = array<i32>} : memref<16x326xbf16, #tpu.memory_space<vmem>>, vector<8x288xbf16>,
    %c0_346 = arith.constant 0 : index
    %c0_347 = arith.constant 0 : index
    %285 = vector.load %arg23[%c0_346, %c0_347] : memref<16x326xbf16, #tpu.memory_space<vmem>>, vector<8x288xbf16>
    %c0_348 = arith.constant 0 : index
    %c0_349 = arith.constant 0 : index
    %286 = vector.load %arg22[%c0_348, %c0_349] : memref<144x288xbf16, #tpu.memory_space<vmem>>, vector<8x288xbf16>
    tpu.vector_store %arg22[%c0_348, %c0_349], %285 {strides = array<i32>} : memref<144x288xbf16, #tpu.memory_space<vmem>>, vector<8x288xbf16>,
    %c0_350 = arith.constant 0 : index
    %c1_351 = arith.constant 1 : index
    %287 = vector.load %arg23[%c0_350, %c1_351] : memref<16x326xbf16, #tpu.memory_space<vmem>>, vector<8x288xbf16>
    %c16_352 = arith.constant 16 : index
    %c0_353 = arith.constant 0 : index
    %288 = vector.load %arg22[%c16_352, %c0_353] : memref<144x288xbf16, #tpu.memory_space<vmem>>, vector<8x288xbf16>
    tpu.vector_store %arg22[%c16_352, %c0_353], %287 {strides = array<i32>} : memref<144x288xbf16, #tpu.memory_space<vmem>>, vector<8x288xbf16>,
    %c0_354 = arith.constant 0 : index
    %c2_355 = arith.constant 2 : index
    %289 = vector.load %arg23[%c0_354, %c2_355] : memref<16x326xbf16, #tpu.memory_space<vmem>>, vector<8x288xbf16>
    %c32_356 = arith.constant 32 : index
    %c0_357 = arith.constant 0 : index
    %290 = vector.load %arg22[%c32_356, %c0_357] : memref<144x288xbf16, #tpu.memory_space<vmem>>, vector<8x288xbf16>
    tpu.vector_store %arg22[%c32_356, %c0_357], %289 {strides = array<i32>} : memref<144x288xbf16, #tpu.memory_space<vmem>>, vector<8x288xbf16>,
    %c0_358 = arith.constant 0 : index
    %c18_359 = arith.constant 18 : index
    %291 = vector.load %arg23[%c0_358, %c18_359] : memref<16x326xbf16, #tpu.memory_space<vmem>>, vector<8x288xbf16>
    %c48_360 = arith.constant 48 : index
    %c0_361 = arith.constant 0 : index
    %292 = vector.load %arg22[%c48_360, %c0_361] : memref<144x288xbf16, #tpu.memory_space<vmem>>, vector<8x288xbf16>
    tpu.vector_store %arg22[%c48_360, %c0_361], %291 {strides = array<i32>} : memref<144x288xbf16, #tpu.memory_space<vmem>>, vector<8x288xbf16>,
    %c0_362 = arith.constant 0 : index
    %c19_363 = arith.constant 19 : index
    %293 = vector.load %arg23[%c0_362, %c19_363] : memref<16x326xbf16, #tpu.memory_space<vmem>>, vector<8x288xbf16>
    %c64_364 = arith.constant 64 : index
    %c0_365 = arith.constant 0 : index
    %294 = vector.load %arg22[%c64_364, %c0_365] : memref<144x288xbf16, #tpu.memory_space<vmem>>, vector<8x288xbf16>
    tpu.vector_store %arg22[%c64_364, %c0_365], %293 {strides = array<i32>} : memref<144x288xbf16, #tpu.memory_space<vmem>>, vector<8x288xbf16>,
    %c0_366 = arith.constant 0 : index
    %c20_367 = arith.constant 20 : index
    %295 = vector.load %arg23[%c0_366, %c20_367] : memref<16x326xbf16, #tpu.memory_space<vmem>>, vector<8x288xbf16>
    %c80_368 = arith.constant 80 : index
    %c0_369 = arith.constant 0 : index
    %296 = vector.load %arg22[%c80_368, %c0_369] : memref<144x288xbf16, #tpu.memory_space<vmem>>, vector<8x288xbf16>
    tpu.vector_store %arg22[%c80_368, %c0_369], %295 {strides = array<i32>} : memref<144x288xbf16, #tpu.memory_space<vmem>>, vector<8x288xbf16>,
    %c0_370 = arith.constant 0 : index
    %c36_371 = arith.constant 36 : index
    %297 = vector.load %arg23[%c0_370, %c36_371] : memref<16x326xbf16, #tpu.memory_space<vmem>>, vector<8x288xbf16>
    %c96_372 = arith.constant 96 : index
    %c0_373 = arith.constant 0 : index
    %298 = vector.load %arg22[%c96_372, %c0_373] : memref<144x288xbf16, #tpu.memory_space<vmem>>, vector<8x288xbf16>
    tpu.vector_store %arg22[%c96_372, %c0_373], %297 {strides = array<i32>} : memref<144x288xbf16, #tpu.memory_space<vmem>>, vector<8x288xbf16>,
    %c0_374 = arith.constant 0 : index
    %c37_375 = arith.constant 37 : index
    %299 = vector.load %arg23[%c0_374, %c37_375] : memref<16x326xbf16, #tpu.memory_space<vmem>>, vector<8x288xbf16>
    %c112_376 = arith.constant 112 : index
    %c0_377 = arith.constant 0 : index
    %300 = vector.load %arg22[%c112_376, %c0_377] : memref<144x288xbf16, #tpu.memory_space<vmem>>, vector<8x288xbf16>
    tpu.vector_store %arg22[%c112_376, %c0_377], %299 {strides = array<i32>} : memref<144x288xbf16, #tpu.memory_space<vmem>>, vector<8x288xbf16>,
    %c0_378 = arith.constant 0 : index
    %c38_379 = arith.constant 38 : index
    %301 = vector.load %arg23[%c0_378, %c38_379] : memref<16x326xbf16, #tpu.memory_space<vmem>>, vector<8x288xbf16>
    %c128_380 = arith.constant 128 : index
    %c0_381 = arith.constant 0 : index
    %302 = vector.load %arg22[%c128_380, %c0_381] : memref<144x288xbf16, #tpu.memory_space<vmem>>, vector<8x288xbf16>
    tpu.vector_store %arg22[%c128_380, %c0_381], %301 {strides = array<i32>} : memref<144x288xbf16, #tpu.memory_space<vmem>>, vector<8x288xbf16>,
    %c16_382 = arith.constant 16 : index
    %c0_383 = arith.constant 0 : index
    %303 = vector.load %arg21[%c16_382, %c0_383] : memref<48x288xf32, #tpu.memory_space<vmem>>, vector<32x288xf32>
    %c0_384 = arith.constant 0 : index
    %c0_385 = arith.constant 0 : index
    %304 = vector.load %arg10[%c0_384, %c0_385] : memref<32x144xbf16, #tpu.memory_space<vmem>>, vector<32x144xbf16>
    %c0_386 = arith.constant 0 : index
    %c0_387 = arith.constant 0 : index
    %305 = vector.load %arg22[%c0_386, %c0_387] : memref<144x288xbf16, #tpu.memory_space<vmem>>, vector<144x288xbf16>
    %cst_388 = arith.constant dense<0.000000e+00> : vector<32x288xf32>
    %306 = tpu.matmul %304, %305, %cst_388 {dimension_numbers = #tpu.dot_dimension_numbers<[1], [0], [0], [1], [0, 0, 1, 1], [], []>} : vector<32x144xbf16>, vector<144x288xbf16>, vector<32x288xf32> -> vector<32x288xf32>
    %307 = arith.addf %303, %306 : vector<32x288xf32>
    %c16_389 = arith.constant 16 : index
    %c0_390 = arith.constant 0 : index
    %308 = vector.load %arg21[%c16_389, %c0_390] : memref<48x288xf32, #tpu.memory_space<vmem>>, vector<32x288xf32>
    tpu.vector_store %arg21[%c16_389, %c0_390], %307 {strides = array<i32>} : memref<48x288xf32, #tpu.memory_space<vmem>>, vector<32x288xf32>,
    %c16_391 = arith.constant 16 : index
    %c0_392 = arith.constant 0 : index
    %309 = vector.load %arg21[%c16_391, %c0_392] : memref<48x288xf32, #tpu.memory_space<vmem>>, vector<8x288xf32>
    %310 = vector.extract_strided_slice %208 {offsets = [16, 0], sizes = [8, 1], strides = [1, 1]} : vector<48x1xf32> to vector<8x1xf32>
    %311 = vector.broadcast %310 : vector<8x1xf32> to vector<8x288xf32>
    %312 = arith.addf %309, %311 : vector<8x288xf32>
    %cst_393 = arith.constant 0.000000e+00 : f32
    %313 = vector.broadcast %cst_393 : f32 to vector<8x288xf32>
    %314 = arith.cmpf oge, %312, %313 : vector<8x288xf32>
    %cst_394 = arith.constant 2.000000e-01 : f32
    %315 = vector.broadcast %cst_394 : f32 to vector<8x288xf32>
    %316 = arith.mulf %315, %312 : vector<8x288xf32>
    %317 = arith.select %314, %312, %316 : vector<8x288xi1>, vector<8x288xf32>
    %318 = vector.broadcast %20 : vector<1x288xf32> to vector<8x288xf32>
    %319 = arith.mulf %317, %318 : vector<8x288xf32>
    %320 = arith.truncf %319 : vector<8x288xf32> to vector<8x288xbf16>
    %c0_395 = arith.constant 0 : index
    %c19_396 = arith.constant 19 : index
    %321 = vector.load %arg23[%c0_395, %c19_396] : memref<16x326xbf16, #tpu.memory_space<vmem>>, vector<8x288xbf16>
    tpu.vector_store %arg23[%c0_395, %c19_396], %320 {strides = array<i32>} : memref<16x326xbf16, #tpu.memory_space<vmem>>, vector<8x288xbf16>,
    %c0_397 = arith.constant 0 : index
    %c0_398 = arith.constant 0 : index
    %322 = vector.load %arg23[%c0_397, %c0_398] : memref<16x326xbf16, #tpu.memory_space<vmem>>, vector<8x288xbf16>
    %c0_399 = arith.constant 0 : index
    %c0_400 = arith.constant 0 : index
    %323 = vector.load %arg22[%c0_399, %c0_400] : memref<144x288xbf16, #tpu.memory_space<vmem>>, vector<8x288xbf16>
    tpu.vector_store %arg22[%c0_399, %c0_400], %322 {strides = array<i32>} : memref<144x288xbf16, #tpu.memory_space<vmem>>, vector<8x288xbf16>,
    %c0_401 = arith.constant 0 : index
    %c1_402 = arith.constant 1 : index
    %324 = vector.load %arg23[%c0_401, %c1_402] : memref<16x326xbf16, #tpu.memory_space<vmem>>, vector<8x288xbf16>
    %c16_403 = arith.constant 16 : index
    %c0_404 = arith.constant 0 : index
    %325 = vector.load %arg22[%c16_403, %c0_404] : memref<144x288xbf16, #tpu.memory_space<vmem>>, vector<8x288xbf16>
    tpu.vector_store %arg22[%c16_403, %c0_404], %324 {strides = array<i32>} : memref<144x288xbf16, #tpu.memory_space<vmem>>, vector<8x288xbf16>,
    %c0_405 = arith.constant 0 : index
    %c2_406 = arith.constant 2 : index
    %326 = vector.load %arg23[%c0_405, %c2_406] : memref<16x326xbf16, #tpu.memory_space<vmem>>, vector<8x288xbf16>
    %c32_407 = arith.constant 32 : index
    %c0_408 = arith.constant 0 : index
    %327 = vector.load %arg22[%c32_407, %c0_408] : memref<144x288xbf16, #tpu.memory_space<vmem>>, vector<8x288xbf16>
    tpu.vector_store %arg22[%c32_407, %c0_408], %326 {strides = array<i32>} : memref<144x288xbf16, #tpu.memory_space<vmem>>, vector<8x288xbf16>,
    %c0_409 = arith.constant 0 : index
    %c18_410 = arith.constant 18 : index
    %328 = vector.load %arg23[%c0_409, %c18_410] : memref<16x326xbf16, #tpu.memory_space<vmem>>, vector<8x288xbf16>
    %c48_411 = arith.constant 48 : index
    %c0_412 = arith.constant 0 : index
    %329 = vector.load %arg22[%c48_411, %c0_412] : memref<144x288xbf16, #tpu.memory_space<vmem>>, vector<8x288xbf16>
    tpu.vector_store %arg22[%c48_411, %c0_412], %328 {strides = array<i32>} : memref<144x288xbf16, #tpu.memory_space<vmem>>, vector<8x288xbf16>,
    %c0_413 = arith.constant 0 : index
    %c19_414 = arith.constant 19 : index
    %330 = vector.load %arg23[%c0_413, %c19_414] : memref<16x326xbf16, #tpu.memory_space<vmem>>, vector<8x288xbf16>
    %c64_415 = arith.constant 64 : index
    %c0_416 = arith.constant 0 : index
    %331 = vector.load %arg22[%c64_415, %c0_416] : memref<144x288xbf16, #tpu.memory_space<vmem>>, vector<8x288xbf16>
    tpu.vector_store %arg22[%c64_415, %c0_416], %330 {strides = array<i32>} : memref<144x288xbf16, #tpu.memory_space<vmem>>, vector<8x288xbf16>,
    %c0_417 = arith.constant 0 : index
    %c20_418 = arith.constant 20 : index
    %332 = vector.load %arg23[%c0_417, %c20_418] : memref<16x326xbf16, #tpu.memory_space<vmem>>, vector<8x288xbf16>
    %c80_419 = arith.constant 80 : index
    %c0_420 = arith.constant 0 : index
    %333 = vector.load %arg22[%c80_419, %c0_420] : memref<144x288xbf16, #tpu.memory_space<vmem>>, vector<8x288xbf16>
    tpu.vector_store %arg22[%c80_419, %c0_420], %332 {strides = array<i32>} : memref<144x288xbf16, #tpu.memory_space<vmem>>, vector<8x288xbf16>,
    %c0_421 = arith.constant 0 : index
    %c36_422 = arith.constant 36 : index
    %334 = vector.load %arg23[%c0_421, %c36_422] : memref<16x326xbf16, #tpu.memory_space<vmem>>, vector<8x288xbf16>
    %c96_423 = arith.constant 96 : index
    %c0_424 = arith.constant 0 : index
    %335 = vector.load %arg22[%c96_423, %c0_424] : memref<144x288xbf16, #tpu.memory_space<vmem>>, vector<8x288xbf16>
    tpu.vector_store %arg22[%c96_423, %c0_424], %334 {strides = array<i32>} : memref<144x288xbf16, #tpu.memory_space<vmem>>, vector<8x288xbf16>,
    %c0_425 = arith.constant 0 : index
    %c37_426 = arith.constant 37 : index
    %336 = vector.load %arg23[%c0_425, %c37_426] : memref<16x326xbf16, #tpu.memory_space<vmem>>, vector<8x288xbf16>
    %c112_427 = arith.constant 112 : index
    %c0_428 = arith.constant 0 : index
    %337 = vector.load %arg22[%c112_427, %c0_428] : memref<144x288xbf16, #tpu.memory_space<vmem>>, vector<8x288xbf16>
    tpu.vector_store %arg22[%c112_427, %c0_428], %336 {strides = array<i32>} : memref<144x288xbf16, #tpu.memory_space<vmem>>, vector<8x288xbf16>,
    %c0_429 = arith.constant 0 : index
    %c38_430 = arith.constant 38 : index
    %338 = vector.load %arg23[%c0_429, %c38_430] : memref<16x326xbf16, #tpu.memory_space<vmem>>, vector<8x288xbf16>
    %c128_431 = arith.constant 128 : index
    %c0_432 = arith.constant 0 : index
    %339 = vector.load %arg22[%c128_431, %c0_432] : memref<144x288xbf16, #tpu.memory_space<vmem>>, vector<8x288xbf16>
    tpu.vector_store %arg22[%c128_431, %c0_432], %338 {strides = array<i32>} : memref<144x288xbf16, #tpu.memory_space<vmem>>, vector<8x288xbf16>,
    %c24_433 = arith.constant 24 : index
    %c0_434 = arith.constant 0 : index
    %340 = vector.load %arg21[%c24_433, %c0_434] : memref<48x288xf32, #tpu.memory_space<vmem>>, vector<24x288xf32>
    %c0_435 = arith.constant 0 : index
    %c0_436 = arith.constant 0 : index
    %341 = vector.load %arg11[%c0_435, %c0_436] : memref<24x144xbf16, #tpu.memory_space<vmem>>, vector<24x144xbf16>
    %c0_437 = arith.constant 0 : index
    %c0_438 = arith.constant 0 : index
    %342 = vector.load %arg22[%c0_437, %c0_438] : memref<144x288xbf16, #tpu.memory_space<vmem>>, vector<144x288xbf16>
    %cst_439 = arith.constant dense<0.000000e+00> : vector<24x288xf32>
    %343 = tpu.matmul %341, %342, %cst_439 {dimension_numbers = #tpu.dot_dimension_numbers<[1], [0], [0], [1], [0, 0, 1, 1], [], []>} : vector<24x144xbf16>, vector<144x288xbf16>, vector<24x288xf32> -> vector<24x288xf32>
    %344 = arith.addf %340, %343 : vector<24x288xf32>
    %c24_440 = arith.constant 24 : index
    %c0_441 = arith.constant 0 : index
    %345 = vector.load %arg21[%c24_440, %c0_441] : memref<48x288xf32, #tpu.memory_space<vmem>>, vector<24x288xf32>
    tpu.vector_store %arg21[%c24_440, %c0_441], %344 {strides = array<i32>} : memref<48x288xf32, #tpu.memory_space<vmem>>, vector<24x288xf32>,
    %c24_442 = arith.constant 24 : index
    %c0_443 = arith.constant 0 : index
    %346 = vector.load %arg21[%c24_442, %c0_443] : memref<48x288xf32, #tpu.memory_space<vmem>>, vector<8x288xf32>
    %347 = vector.extract_strided_slice %208 {offsets = [24, 0], sizes = [8, 1], strides = [1, 1]} : vector<48x1xf32> to vector<8x1xf32>
    %348 = vector.broadcast %347 : vector<8x1xf32> to vector<8x288xf32>
    %349 = arith.addf %346, %348 : vector<8x288xf32>
    %cst_444 = arith.constant 0.000000e+00 : f32
    %350 = vector.broadcast %cst_444 : f32 to vector<8x288xf32>
    %351 = arith.cmpf oge, %349, %350 : vector<8x288xf32>
    %cst_445 = arith.constant 2.000000e-01 : f32
    %352 = vector.broadcast %cst_445 : f32 to vector<8x288xf32>
    %353 = arith.mulf %352, %349 : vector<8x288xf32>
    %354 = arith.select %351, %349, %353 : vector<8x288xi1>, vector<8x288xf32>
    %355 = vector.broadcast %20 : vector<1x288xf32> to vector<8x288xf32>
    %356 = arith.mulf %354, %355 : vector<8x288xf32>
    %357 = arith.truncf %356 : vector<8x288xf32> to vector<8x288xbf16>
    %c0_446 = arith.constant 0 : index
    %c19_447 = arith.constant 19 : index
    %358 = vector.load %arg23[%c0_446, %c19_447] : memref<16x326xbf16, #tpu.memory_space<vmem>>, vector<8x288xbf16>
    tpu.vector_store %arg23[%c0_446, %c19_447], %357 {strides = array<i32>} : memref<16x326xbf16, #tpu.memory_space<vmem>>, vector<8x288xbf16>,
    %c0_448 = arith.constant 0 : index
    %c0_449 = arith.constant 0 : index
    %359 = vector.load %arg23[%c0_448, %c0_449] : memref<16x326xbf16, #tpu.memory_space<vmem>>, vector<8x288xbf16>
    %c0_450 = arith.constant 0 : index
    %c0_451 = arith.constant 0 : index
    %360 = vector.load %arg22[%c0_450, %c0_451] : memref<144x288xbf16, #tpu.memory_space<vmem>>, vector<8x288xbf16>
    tpu.vector_store %arg22[%c0_450, %c0_451], %359 {strides = array<i32>} : memref<144x288xbf16, #tpu.memory_space<vmem>>, vector<8x288xbf16>,
    %c0_452 = arith.constant 0 : index
    %c1_453 = arith.constant 1 : index
    %361 = vector.load %arg23[%c0_452, %c1_453] : memref<16x326xbf16, #tpu.memory_space<vmem>>, vector<8x288xbf16>
    %c16_454 = arith.constant 16 : index
    %c0_455 = arith.constant 0 : index
    %362 = vector.load %arg22[%c16_454, %c0_455] : memref<144x288xbf16, #tpu.memory_space<vmem>>, vector<8x288xbf16>
    tpu.vector_store %arg22[%c16_454, %c0_455], %361 {strides = array<i32>} : memref<144x288xbf16, #tpu.memory_space<vmem>>, vector<8x288xbf16>,
    %c0_456 = arith.constant 0 : index
    %c2_457 = arith.constant 2 : index
    %363 = vector.load %arg23[%c0_456, %c2_457] : memref<16x326xbf16, #tpu.memory_space<vmem>>, vector<8x288xbf16>
    %c32_458 = arith.constant 32 : index
    %c0_459 = arith.constant 0 : index
    %364 = vector.load %arg22[%c32_458, %c0_459] : memref<144x288xbf16, #tpu.memory_space<vmem>>, vector<8x288xbf16>
    tpu.vector_store %arg22[%c32_458, %c0_459], %363 {strides = array<i32>} : memref<144x288xbf16, #tpu.memory_space<vmem>>, vector<8x288xbf16>,
    %c0_460 = arith.constant 0 : index
    %c18_461 = arith.constant 18 : index
    %365 = vector.load %arg23[%c0_460, %c18_461] : memref<16x326xbf16, #tpu.memory_space<vmem>>, vector<8x288xbf16>
    %c48_462 = arith.constant 48 : index
    %c0_463 = arith.constant 0 : index
    %366 = vector.load %arg22[%c48_462, %c0_463] : memref<144x288xbf16, #tpu.memory_space<vmem>>, vector<8x288xbf16>
    tpu.vector_store %arg22[%c48_462, %c0_463], %365 {strides = array<i32>} : memref<144x288xbf16, #tpu.memory_space<vmem>>, vector<8x288xbf16>,
    %c0_464 = arith.constant 0 : index
    %c19_465 = arith.constant 19 : index
    %367 = vector.load %arg23[%c0_464, %c19_465] : memref<16x326xbf16, #tpu.memory_space<vmem>>, vector<8x288xbf16>
    %c64_466 = arith.constant 64 : index
    %c0_467 = arith.constant 0 : index
    %368 = vector.load %arg22[%c64_466, %c0_467] : memref<144x288xbf16, #tpu.memory_space<vmem>>, vector<8x288xbf16>
    tpu.vector_store %arg22[%c64_466, %c0_467], %367 {strides = array<i32>} : memref<144x288xbf16, #tpu.memory_space<vmem>>, vector<8x288xbf16>,
    %c0_468 = arith.constant 0 : index
    %c20_469 = arith.constant 20 : index
    %369 = vector.load %arg23[%c0_468, %c20_469] : memref<16x326xbf16, #tpu.memory_space<vmem>>, vector<8x288xbf16>
    %c80_470 = arith.constant 80 : index
    %c0_471 = arith.constant 0 : index
    %370 = vector.load %arg22[%c80_470, %c0_471] : memref<144x288xbf16, #tpu.memory_space<vmem>>, vector<8x288xbf16>
    tpu.vector_store %arg22[%c80_470, %c0_471], %369 {strides = array<i32>} : memref<144x288xbf16, #tpu.memory_space<vmem>>, vector<8x288xbf16>,
    %c0_472 = arith.constant 0 : index
    %c36_473 = arith.constant 36 : index
    %371 = vector.load %arg23[%c0_472, %c36_473] : memref<16x326xbf16, #tpu.memory_space<vmem>>, vector<8x288xbf16>
    %c96_474 = arith.constant 96 : index
    %c0_475 = arith.constant 0 : index
    %372 = vector.load %arg22[%c96_474, %c0_475] : memref<144x288xbf16, #tpu.memory_space<vmem>>, vector<8x288xbf16>
    tpu.vector_store %arg22[%c96_474, %c0_475], %371 {strides = array<i32>} : memref<144x288xbf16, #tpu.memory_space<vmem>>, vector<8x288xbf16>,
    %c0_476 = arith.constant 0 : index
    %c37_477 = arith.constant 37 : index
    %373 = vector.load %arg23[%c0_476, %c37_477] : memref<16x326xbf16, #tpu.memory_space<vmem>>, vector<8x288xbf16>
    %c112_478 = arith.constant 112 : index
    %c0_479 = arith.constant 0 : index
    %374 = vector.load %arg22[%c112_478, %c0_479] : memref<144x288xbf16, #tpu.memory_space<vmem>>, vector<8x288xbf16>
    tpu.vector_store %arg22[%c112_478, %c0_479], %373 {strides = array<i32>} : memref<144x288xbf16, #tpu.memory_space<vmem>>, vector<8x288xbf16>,
    %c0_480 = arith.constant 0 : index
    %c38_481 = arith.constant 38 : index
    %375 = vector.load %arg23[%c0_480, %c38_481] : memref<16x326xbf16, #tpu.memory_space<vmem>>, vector<8x288xbf16>
    %c128_482 = arith.constant 128 : index
    %c0_483 = arith.constant 0 : index
    %376 = vector.load %arg22[%c128_482, %c0_483] : memref<144x288xbf16, #tpu.memory_space<vmem>>, vector<8x288xbf16>
    tpu.vector_store %arg22[%c128_482, %c0_483], %375 {strides = array<i32>} : memref<144x288xbf16, #tpu.memory_space<vmem>>, vector<8x288xbf16>,
    %c32_484 = arith.constant 32 : index
    %c0_485 = arith.constant 0 : index
    %377 = vector.load %arg21[%c32_484, %c0_485] : memref<48x288xf32, #tpu.memory_space<vmem>>, vector<16x288xf32>
    %c0_486 = arith.constant 0 : index
    %c0_487 = arith.constant 0 : index
    %378 = vector.load %arg12[%c0_486, %c0_487] : memref<16x144xbf16, #tpu.memory_space<vmem>>, vector<16x144xbf16>
    %c0_488 = arith.constant 0 : index
    %c0_489 = arith.constant 0 : index
    %379 = vector.load %arg22[%c0_488, %c0_489] : memref<144x288xbf16, #tpu.memory_space<vmem>>, vector<144x288xbf16>
    %cst_490 = arith.constant dense<0.000000e+00> : vector<16x288xf32>
    %380 = tpu.matmul %378, %379, %cst_490 {dimension_numbers = #tpu.dot_dimension_numbers<[1], [0], [0], [1], [0, 0, 1, 1], [], []>} : vector<16x144xbf16>, vector<144x288xbf16>, vector<16x288xf32> -> vector<16x288xf32>
    %381 = arith.addf %377, %380 : vector<16x288xf32>
    %c32_491 = arith.constant 32 : index
    %c0_492 = arith.constant 0 : index
    %382 = vector.load %arg21[%c32_491, %c0_492] : memref<48x288xf32, #tpu.memory_space<vmem>>, vector<16x288xf32>
    tpu.vector_store %arg21[%c32_491, %c0_492], %381 {strides = array<i32>} : memref<48x288xf32, #tpu.memory_space<vmem>>, vector<16x288xf32>,
    %c32_493 = arith.constant 32 : index
    %c0_494 = arith.constant 0 : index
    %383 = vector.load %arg21[%c32_493, %c0_494] : memref<48x288xf32, #tpu.memory_space<vmem>>, vector<16x288xf32>
    %384 = vector.extract_strided_slice %208 {offsets = [32, 0], sizes = [16, 1], strides = [1, 1]} : vector<48x1xf32> to vector<16x1xf32>
    %385 = vector.broadcast %384 : vector<16x1xf32> to vector<16x288xf32>
    %386 = arith.addf %383, %385 : vector<16x288xf32>
    %cst_495 = arith.constant 2.000000e-01 : f32
    %387 = vector.broadcast %cst_495 : f32 to vector<16x288xf32>
    %388 = arith.mulf %386, %387 : vector<16x288xf32>
    %389 = arith.addf %388, %207 : vector<16x288xf32>
    %c0_496 = arith.constant 0 : index
    %c0_497 = arith.constant 0 : index
    %390 = vector.load %arg19[%c0_496, %c0_497] : memref<48x1xf32, #tpu.memory_space<vmem>>, vector<48x1xf32>
    %391 = vector.broadcast %20 : vector<1x288xf32> to vector<16x288xf32>
    %392 = arith.mulf %389, %391 : vector<16x288xf32>
    %393 = arith.truncf %392 : vector<16x288xf32> to vector<16x288xbf16>
    %c0_498 = arith.constant 0 : index
    %c19_499 = arith.constant 19 : index
    %394 = vector.load %arg23[%c0_498, %c19_499] : memref<16x326xbf16, #tpu.memory_space<vmem>>, vector<16x288xbf16>
    tpu.vector_store %arg23[%c0_498, %c19_499], %393 {strides = array<i32>} : memref<16x326xbf16, #tpu.memory_space<vmem>>, vector<16x288xbf16>,
    %c0_500 = arith.constant 0 : index
    %c0_501 = arith.constant 0 : index
    %395 = vector.load %arg23[%c0_500, %c0_501] : memref<16x326xbf16, #tpu.memory_space<vmem>>, vector<16x288xbf16>
    %c0_502 = arith.constant 0 : index
    %c0_503 = arith.constant 0 : index
    %396 = vector.load %arg22[%c0_502, %c0_503] : memref<144x288xbf16, #tpu.memory_space<vmem>>, vector<16x288xbf16>
    tpu.vector_store %arg22[%c0_502, %c0_503], %395 {strides = array<i32>} : memref<144x288xbf16, #tpu.memory_space<vmem>>, vector<16x288xbf16>,
    %c0_504 = arith.constant 0 : index
    %c1_505 = arith.constant 1 : index
    %397 = vector.load %arg23[%c0_504, %c1_505] : memref<16x326xbf16, #tpu.memory_space<vmem>>, vector<16x288xbf16>
    %c16_506 = arith.constant 16 : index
    %c0_507 = arith.constant 0 : index
    %398 = vector.load %arg22[%c16_506, %c0_507] : memref<144x288xbf16, #tpu.memory_space<vmem>>, vector<16x288xbf16>
    tpu.vector_store %arg22[%c16_506, %c0_507], %397 {strides = array<i32>} : memref<144x288xbf16, #tpu.memory_space<vmem>>, vector<16x288xbf16>,
    %c0_508 = arith.constant 0 : index
    %c2_509 = arith.constant 2 : index
    %399 = vector.load %arg23[%c0_508, %c2_509] : memref<16x326xbf16, #tpu.memory_space<vmem>>, vector<16x288xbf16>
    %c32_510 = arith.constant 32 : index
    %c0_511 = arith.constant 0 : index
    %400 = vector.load %arg22[%c32_510, %c0_511] : memref<144x288xbf16, #tpu.memory_space<vmem>>, vector<16x288xbf16>
    tpu.vector_store %arg22[%c32_510, %c0_511], %399 {strides = array<i32>} : memref<144x288xbf16, #tpu.memory_space<vmem>>, vector<16x288xbf16>,
    %c0_512 = arith.constant 0 : index
    %c18_513 = arith.constant 18 : index
    %401 = vector.load %arg23[%c0_512, %c18_513] : memref<16x326xbf16, #tpu.memory_space<vmem>>, vector<16x288xbf16>
    %c48_514 = arith.constant 48 : index
    %c0_515 = arith.constant 0 : index
    %402 = vector.load %arg22[%c48_514, %c0_515] : memref<144x288xbf16, #tpu.memory_space<vmem>>, vector<16x288xbf16>
    tpu.vector_store %arg22[%c48_514, %c0_515], %401 {strides = array<i32>} : memref<144x288xbf16, #tpu.memory_space<vmem>>, vector<16x288xbf16>,
    %c0_516 = arith.constant 0 : index
    %c19_517 = arith.constant 19 : index
    %403 = vector.load %arg23[%c0_516, %c19_517] : memref<16x326xbf16, #tpu.memory_space<vmem>>, vector<16x288xbf16>
    %c64_518 = arith.constant 64 : index
    %c0_519 = arith.constant 0 : index
    %404 = vector.load %arg22[%c64_518, %c0_519] : memref<144x288xbf16, #tpu.memory_space<vmem>>, vector<16x288xbf16>
    tpu.vector_store %arg22[%c64_518, %c0_519], %403 {strides = array<i32>} : memref<144x288xbf16, #tpu.memory_space<vmem>>, vector<16x288xbf16>,
    %c0_520 = arith.constant 0 : index
    %c20_521 = arith.constant 20 : index
    %405 = vector.load %arg23[%c0_520, %c20_521] : memref<16x326xbf16, #tpu.memory_space<vmem>>, vector<16x288xbf16>
    %c80_522 = arith.constant 80 : index
    %c0_523 = arith.constant 0 : index
    %406 = vector.load %arg22[%c80_522, %c0_523] : memref<144x288xbf16, #tpu.memory_space<vmem>>, vector<16x288xbf16>
    tpu.vector_store %arg22[%c80_522, %c0_523], %405 {strides = array<i32>} : memref<144x288xbf16, #tpu.memory_space<vmem>>, vector<16x288xbf16>,
    %c0_524 = arith.constant 0 : index
    %c36_525 = arith.constant 36 : index
    %407 = vector.load %arg23[%c0_524, %c36_525] : memref<16x326xbf16, #tpu.memory_space<vmem>>, vector<16x288xbf16>
    %c96_526 = arith.constant 96 : index
    %c0_527 = arith.constant 0 : index
    %408 = vector.load %arg22[%c96_526, %c0_527] : memref<144x288xbf16, #tpu.memory_space<vmem>>, vector<16x288xbf16>
    tpu.vector_store %arg22[%c96_526, %c0_527], %407 {strides = array<i32>} : memref<144x288xbf16, #tpu.memory_space<vmem>>, vector<16x288xbf16>,
    %c0_528 = arith.constant 0 : index
    %c37_529 = arith.constant 37 : index
    %409 = vector.load %arg23[%c0_528, %c37_529] : memref<16x326xbf16, #tpu.memory_space<vmem>>, vector<16x288xbf16>
    %c112_530 = arith.constant 112 : index
    %c0_531 = arith.constant 0 : index
    %410 = vector.load %arg22[%c112_530, %c0_531] : memref<144x288xbf16, #tpu.memory_space<vmem>>, vector<16x288xbf16>
    tpu.vector_store %arg22[%c112_530, %c0_531], %409 {strides = array<i32>} : memref<144x288xbf16, #tpu.memory_space<vmem>>, vector<16x288xbf16>,
    %c0_532 = arith.constant 0 : index
    %c38_533 = arith.constant 38 : index
    %411 = vector.load %arg23[%c0_532, %c38_533] : memref<16x326xbf16, #tpu.memory_space<vmem>>, vector<16x288xbf16>
    %c128_534 = arith.constant 128 : index
    %c0_535 = arith.constant 0 : index
    %412 = vector.load %arg22[%c128_534, %c0_535] : memref<144x288xbf16, #tpu.memory_space<vmem>>, vector<16x288xbf16>
    tpu.vector_store %arg22[%c128_534, %c0_535], %411 {strides = array<i32>} : memref<144x288xbf16, #tpu.memory_space<vmem>>, vector<16x288xbf16>,
    %c0_536 = arith.constant 0 : index
    %c0_537 = arith.constant 0 : index
    %413 = vector.load %arg14[%c0_536, %c0_537] : memref<48x144xbf16, #tpu.memory_space<vmem>>, vector<48x144xbf16>
    %c0_538 = arith.constant 0 : index
    %c0_539 = arith.constant 0 : index
    %414 = vector.load %arg22[%c0_538, %c0_539] : memref<144x288xbf16, #tpu.memory_space<vmem>>, vector<144x288xbf16>
    %cst_540 = arith.constant dense<0.000000e+00> : vector<48x288xf32>
    %415 = tpu.matmul %413, %414, %cst_540 {dimension_numbers = #tpu.dot_dimension_numbers<[1], [0], [0], [1], [0, 0, 1, 1], [], []>} : vector<48x144xbf16>, vector<144x288xbf16>, vector<48x288xf32> -> vector<48x288xf32>
    %c0_541 = arith.constant 0 : index
    %c0_542 = arith.constant 0 : index
    %416 = vector.load %arg21[%c0_541, %c0_542] : memref<48x288xf32, #tpu.memory_space<vmem>>, vector<48x288xf32>
    tpu.vector_store %arg21[%c0_541, %c0_542], %415 {strides = array<i32>} : memref<48x288xf32, #tpu.memory_space<vmem>>, vector<48x288xf32>,
    %c0_543 = arith.constant 0 : index
    %c0_544 = arith.constant 0 : index
    %417 = vector.load %arg21[%c0_543, %c0_544] : memref<48x288xf32, #tpu.memory_space<vmem>>, vector<8x288xf32>
    %418 = vector.extract_strided_slice %390 {offsets = [0, 0], sizes = [8, 1], strides = [1, 1]} : vector<48x1xf32> to vector<8x1xf32>
    %419 = vector.broadcast %418 : vector<8x1xf32> to vector<8x288xf32>
    %420 = arith.addf %417, %419 : vector<8x288xf32>
    %cst_545 = arith.constant 0.000000e+00 : f32
    %421 = vector.broadcast %cst_545 : f32 to vector<8x288xf32>
    %422 = arith.cmpf oge, %420, %421 : vector<8x288xf32>
    %cst_546 = arith.constant 2.000000e-01 : f32
    %423 = vector.broadcast %cst_546 : f32 to vector<8x288xf32>
    %424 = arith.mulf %423, %420 : vector<8x288xf32>
    %425 = arith.select %422, %420, %424 : vector<8x288xi1>, vector<8x288xf32>
    %426 = vector.broadcast %20 : vector<1x288xf32> to vector<8x288xf32>
    %427 = arith.mulf %425, %426 : vector<8x288xf32>
    %428 = arith.truncf %427 : vector<8x288xf32> to vector<8x288xbf16>
    %c0_547 = arith.constant 0 : index
    %c19_548 = arith.constant 19 : index
    %429 = vector.load %arg23[%c0_547, %c19_548] : memref<16x326xbf16, #tpu.memory_space<vmem>>, vector<8x288xbf16>
    tpu.vector_store %arg23[%c0_547, %c19_548], %428 {strides = array<i32>} : memref<16x326xbf16, #tpu.memory_space<vmem>>, vector<8x288xbf16>,
    %c0_549 = arith.constant 0 : index
    %c0_550 = arith.constant 0 : index
    %430 = vector.load %arg23[%c0_549, %c0_550] : memref<16x326xbf16, #tpu.memory_space<vmem>>, vector<8x288xbf16>
    %c0_551 = arith.constant 0 : index
    %c0_552 = arith.constant 0 : index
    %431 = vector.load %arg22[%c0_551, %c0_552] : memref<144x288xbf16, #tpu.memory_space<vmem>>, vector<8x288xbf16>
    tpu.vector_store %arg22[%c0_551, %c0_552], %430 {strides = array<i32>} : memref<144x288xbf16, #tpu.memory_space<vmem>>, vector<8x288xbf16>,
    %c0_553 = arith.constant 0 : index
    %c1_554 = arith.constant 1 : index
    %432 = vector.load %arg23[%c0_553, %c1_554] : memref<16x326xbf16, #tpu.memory_space<vmem>>, vector<8x288xbf16>
    %c16_555 = arith.constant 16 : index
    %c0_556 = arith.constant 0 : index
    %433 = vector.load %arg22[%c16_555, %c0_556] : memref<144x288xbf16, #tpu.memory_space<vmem>>, vector<8x288xbf16>
    tpu.vector_store %arg22[%c16_555, %c0_556], %432 {strides = array<i32>} : memref<144x288xbf16, #tpu.memory_space<vmem>>, vector<8x288xbf16>,
    %c0_557 = arith.constant 0 : index
    %c2_558 = arith.constant 2 : index
    %434 = vector.load %arg23[%c0_557, %c2_558] : memref<16x326xbf16, #tpu.memory_space<vmem>>, vector<8x288xbf16>
    %c32_559 = arith.constant 32 : index
    %c0_560 = arith.constant 0 : index
    %435 = vector.load %arg22[%c32_559, %c0_560] : memref<144x288xbf16, #tpu.memory_space<vmem>>, vector<8x288xbf16>
    tpu.vector_store %arg22[%c32_559, %c0_560], %434 {strides = array<i32>} : memref<144x288xbf16, #tpu.memory_space<vmem>>, vector<8x288xbf16>,
    %c0_561 = arith.constant 0 : index
    %c18_562 = arith.constant 18 : index
    %436 = vector.load %arg23[%c0_561, %c18_562] : memref<16x326xbf16, #tpu.memory_space<vmem>>, vector<8x288xbf16>
    %c48_563 = arith.constant 48 : index
    %c0_564 = arith.constant 0 : index
    %437 = vector.load %arg22[%c48_563, %c0_564] : memref<144x288xbf16, #tpu.memory_space<vmem>>, vector<8x288xbf16>
    tpu.vector_store %arg22[%c48_563, %c0_564], %436 {strides = array<i32>} : memref<144x288xbf16, #tpu.memory_space<vmem>>, vector<8x288xbf16>,
    %c0_565 = arith.constant 0 : index
    %c19_566 = arith.constant 19 : index
    %438 = vector.load %arg23[%c0_565, %c19_566] : memref<16x326xbf16, #tpu.memory_space<vmem>>, vector<8x288xbf16>
    %c64_567 = arith.constant 64 : index
    %c0_568 = arith.constant 0 : index
    %439 = vector.load %arg22[%c64_567, %c0_568] : memref<144x288xbf16, #tpu.memory_space<vmem>>, vector<8x288xbf16>
    tpu.vector_store %arg22[%c64_567, %c0_568], %438 {strides = array<i32>} : memref<144x288xbf16, #tpu.memory_space<vmem>>, vector<8x288xbf16>,
    %c0_569 = arith.constant 0 : index
    %c20_570 = arith.constant 20 : index
    %440 = vector.load %arg23[%c0_569, %c20_570] : memref<16x326xbf16, #tpu.memory_space<vmem>>, vector<8x288xbf16>
    %c80_571 = arith.constant 80 : index
    %c0_572 = arith.constant 0 : index
    %441 = vector.load %arg22[%c80_571, %c0_572] : memref<144x288xbf16, #tpu.memory_space<vmem>>, vector<8x288xbf16>
    tpu.vector_store %arg22[%c80_571, %c0_572], %440 {strides = array<i32>} : memref<144x288xbf16, #tpu.memory_space<vmem>>, vector<8x288xbf16>,
    %c0_573 = arith.constant 0 : index
    %c36_574 = arith.constant 36 : index
    %442 = vector.load %arg23[%c0_573, %c36_574] : memref<16x326xbf16, #tpu.memory_space<vmem>>, vector<8x288xbf16>
    %c96_575 = arith.constant 96 : index
    %c0_576 = arith.constant 0 : index
    %443 = vector.load %arg22[%c96_575, %c0_576] : memref<144x288xbf16, #tpu.memory_space<vmem>>, vector<8x288xbf16>
    tpu.vector_store %arg22[%c96_575, %c0_576], %442 {strides = array<i32>} : memref<144x288xbf16, #tpu.memory_space<vmem>>, vector<8x288xbf16>,
    %c0_577 = arith.constant 0 : index
    %c37_578 = arith.constant 37 : index
    %444 = vector.load %arg23[%c0_577, %c37_578] : memref<16x326xbf16, #tpu.memory_space<vmem>>, vector<8x288xbf16>
    %c112_579 = arith.constant 112 : index
    %c0_580 = arith.constant 0 : index
    %445 = vector.load %arg22[%c112_579, %c0_580] : memref<144x288xbf16, #tpu.memory_space<vmem>>, vector<8x288xbf16>
    tpu.vector_store %arg22[%c112_579, %c0_580], %444 {strides = array<i32>} : memref<144x288xbf16, #tpu.memory_space<vmem>>, vector<8x288xbf16>,
    %c0_581 = arith.constant 0 : index
    %c38_582 = arith.constant 38 : index
    %446 = vector.load %arg23[%c0_581, %c38_582] : memref<16x326xbf16, #tpu.memory_space<vmem>>, vector<8x288xbf16>
    %c128_583 = arith.constant 128 : index
    %c0_584 = arith.constant 0 : index
    %447 = vector.load %arg22[%c128_583, %c0_584] : memref<144x288xbf16, #tpu.memory_space<vmem>>, vector<8x288xbf16>
    tpu.vector_store %arg22[%c128_583, %c0_584], %446 {strides = array<i32>} : memref<144x288xbf16, #tpu.memory_space<vmem>>, vector<8x288xbf16>,
    %c8_585 = arith.constant 8 : index
    %c0_586 = arith.constant 0 : index
    %448 = vector.load %arg21[%c8_585, %c0_586] : memref<48x288xf32, #tpu.memory_space<vmem>>, vector<40x288xf32>
    %c0_587 = arith.constant 0 : index
    %c0_588 = arith.constant 0 : index
    %449 = vector.load %arg15[%c0_587, %c0_588] : memref<40x144xbf16, #tpu.memory_space<vmem>>, vector<40x144xbf16>
    %c0_589 = arith.constant 0 : index
    %c0_590 = arith.constant 0 : index
    %450 = vector.load %arg22[%c0_589, %c0_590] : memref<144x288xbf16, #tpu.memory_space<vmem>>, vector<144x288xbf16>
    %cst_591 = arith.constant dense<0.000000e+00> : vector<40x288xf32>
    %451 = tpu.matmul %449, %450, %cst_591 {dimension_numbers = #tpu.dot_dimension_numbers<[1], [0], [0], [1], [0, 0, 1, 1], [], []>} : vector<40x144xbf16>, vector<144x288xbf16>, vector<40x288xf32> -> vector<40x288xf32>
    %452 = arith.addf %448, %451 : vector<40x288xf32>
    %c8_592 = arith.constant 8 : index
    %c0_593 = arith.constant 0 : index
    %453 = vector.load %arg21[%c8_592, %c0_593] : memref<48x288xf32, #tpu.memory_space<vmem>>, vector<40x288xf32>
    tpu.vector_store %arg21[%c8_592, %c0_593], %452 {strides = array<i32>} : memref<48x288xf32, #tpu.memory_space<vmem>>, vector<40x288xf32>,
    %c8_594 = arith.constant 8 : index
    %c0_595 = arith.constant 0 : index
    %454 = vector.load %arg21[%c8_594, %c0_595] : memref<48x288xf32, #tpu.memory_space<vmem>>, vector<8x288xf32>
    %455 = vector.extract_strided_slice %390 {offsets = [8, 0], sizes = [8, 1], strides = [1, 1]} : vector<48x1xf32> to vector<8x1xf32>
    %456 = vector.broadcast %455 : vector<8x1xf32> to vector<8x288xf32>
    %457 = arith.addf %454, %456 : vector<8x288xf32>
    %cst_596 = arith.constant 0.000000e+00 : f32
    %458 = vector.broadcast %cst_596 : f32 to vector<8x288xf32>
    %459 = arith.cmpf oge, %457, %458 : vector<8x288xf32>
    %cst_597 = arith.constant 2.000000e-01 : f32
    %460 = vector.broadcast %cst_597 : f32 to vector<8x288xf32>
    %461 = arith.mulf %460, %457 : vector<8x288xf32>
    %462 = arith.select %459, %457, %461 : vector<8x288xi1>, vector<8x288xf32>
    %463 = vector.broadcast %20 : vector<1x288xf32> to vector<8x288xf32>
    %464 = arith.mulf %462, %463 : vector<8x288xf32>
    %465 = arith.truncf %464 : vector<8x288xf32> to vector<8x288xbf16>
    %c0_598 = arith.constant 0 : index
    %c19_599 = arith.constant 19 : index
    %466 = vector.load %arg23[%c0_598, %c19_599] : memref<16x326xbf16, #tpu.memory_space<vmem>>, vector<8x288xbf16>
    tpu.vector_store %arg23[%c0_598, %c19_599], %465 {strides = array<i32>} : memref<16x326xbf16, #tpu.memory_space<vmem>>, vector<8x288xbf16>,
    %c0_600 = arith.constant 0 : index
    %c0_601 = arith.constant 0 : index
    %467 = vector.load %arg23[%c0_600, %c0_601] : memref<16x326xbf16, #tpu.memory_space<vmem>>, vector<8x288xbf16>
    %c0_602 = arith.constant 0 : index
    %c0_603 = arith.constant 0 : index
    %468 = vector.load %arg22[%c0_602, %c0_603] : memref<144x288xbf16, #tpu.memory_space<vmem>>, vector<8x288xbf16>
    tpu.vector_store %arg22[%c0_602, %c0_603], %467 {strides = array<i32>} : memref<144x288xbf16, #tpu.memory_space<vmem>>, vector<8x288xbf16>,
    %c0_604 = arith.constant 0 : index
    %c1_605 = arith.constant 1 : index
    %469 = vector.load %arg23[%c0_604, %c1_605] : memref<16x326xbf16, #tpu.memory_space<vmem>>, vector<8x288xbf16>
    %c16_606 = arith.constant 16 : index
    %c0_607 = arith.constant 0 : index
    %470 = vector.load %arg22[%c16_606, %c0_607] : memref<144x288xbf16, #tpu.memory_space<vmem>>, vector<8x288xbf16>
    tpu.vector_store %arg22[%c16_606, %c0_607], %469 {strides = array<i32>} : memref<144x288xbf16, #tpu.memory_space<vmem>>, vector<8x288xbf16>,
    %c0_608 = arith.constant 0 : index
    %c2_609 = arith.constant 2 : index
    %471 = vector.load %arg23[%c0_608, %c2_609] : memref<16x326xbf16, #tpu.memory_space<vmem>>, vector<8x288xbf16>
    %c32_610 = arith.constant 32 : index
    %c0_611 = arith.constant 0 : index
    %472 = vector.load %arg22[%c32_610, %c0_611] : memref<144x288xbf16, #tpu.memory_space<vmem>>, vector<8x288xbf16>
    tpu.vector_store %arg22[%c32_610, %c0_611], %471 {strides = array<i32>} : memref<144x288xbf16, #tpu.memory_space<vmem>>, vector<8x288xbf16>,
    %c0_612 = arith.constant 0 : index
    %c18_613 = arith.constant 18 : index
    %473 = vector.load %arg23[%c0_612, %c18_613] : memref<16x326xbf16, #tpu.memory_space<vmem>>, vector<8x288xbf16>
    %c48_614 = arith.constant 48 : index
    %c0_615 = arith.constant 0 : index
    %474 = vector.load %arg22[%c48_614, %c0_615] : memref<144x288xbf16, #tpu.memory_space<vmem>>, vector<8x288xbf16>
    tpu.vector_store %arg22[%c48_614, %c0_615], %473 {strides = array<i32>} : memref<144x288xbf16, #tpu.memory_space<vmem>>, vector<8x288xbf16>,
    %c0_616 = arith.constant 0 : index
    %c19_617 = arith.constant 19 : index
    %475 = vector.load %arg23[%c0_616, %c19_617] : memref<16x326xbf16, #tpu.memory_space<vmem>>, vector<8x288xbf16>
    %c64_618 = arith.constant 64 : index
    %c0_619 = arith.constant 0 : index
    %476 = vector.load %arg22[%c64_618, %c0_619] : memref<144x288xbf16, #tpu.memory_space<vmem>>, vector<8x288xbf16>
    tpu.vector_store %arg22[%c64_618, %c0_619], %475 {strides = array<i32>} : memref<144x288xbf16, #tpu.memory_space<vmem>>, vector<8x288xbf16>,
    %c0_620 = arith.constant 0 : index
    %c20_621 = arith.constant 20 : index
    %477 = vector.load %arg23[%c0_620, %c20_621] : memref<16x326xbf16, #tpu.memory_space<vmem>>, vector<8x288xbf16>
    %c80_622 = arith.constant 80 : index
    %c0_623 = arith.constant 0 : index
    %478 = vector.load %arg22[%c80_622, %c0_623] : memref<144x288xbf16, #tpu.memory_space<vmem>>, vector<8x288xbf16>
    tpu.vector_store %arg22[%c80_622, %c0_623], %477 {strides = array<i32>} : memref<144x288xbf16, #tpu.memory_space<vmem>>, vector<8x288xbf16>,
    %c0_624 = arith.constant 0 : index
    %c36_625 = arith.constant 36 : index
    %479 = vector.load %arg23[%c0_624, %c36_625] : memref<16x326xbf16, #tpu.memory_space<vmem>>, vector<8x288xbf16>
    %c96_626 = arith.constant 96 : index
    %c0_627 = arith.constant 0 : index
    %480 = vector.load %arg22[%c96_626, %c0_627] : memref<144x288xbf16, #tpu.memory_space<vmem>>, vector<8x288xbf16>
    tpu.vector_store %arg22[%c96_626, %c0_627], %479 {strides = array<i32>} : memref<144x288xbf16, #tpu.memory_space<vmem>>, vector<8x288xbf16>,
    %c0_628 = arith.constant 0 : index
    %c37_629 = arith.constant 37 : index
    %481 = vector.load %arg23[%c0_628, %c37_629] : memref<16x326xbf16, #tpu.memory_space<vmem>>, vector<8x288xbf16>
    %c112_630 = arith.constant 112 : index
    %c0_631 = arith.constant 0 : index
    %482 = vector.load %arg22[%c112_630, %c0_631] : memref<144x288xbf16, #tpu.memory_space<vmem>>, vector<8x288xbf16>
    tpu.vector_store %arg22[%c112_630, %c0_631], %481 {strides = array<i32>} : memref<144x288xbf16, #tpu.memory_space<vmem>>, vector<8x288xbf16>,
    %c0_632 = arith.constant 0 : index
    %c38_633 = arith.constant 38 : index
    %483 = vector.load %arg23[%c0_632, %c38_633] : memref<16x326xbf16, #tpu.memory_space<vmem>>, vector<8x288xbf16>
    %c128_634 = arith.constant 128 : index
    %c0_635 = arith.constant 0 : index
    %484 = vector.load %arg22[%c128_634, %c0_635] : memref<144x288xbf16, #tpu.memory_space<vmem>>, vector<8x288xbf16>
    tpu.vector_store %arg22[%c128_634, %c0_635], %483 {strides = array<i32>} : memref<144x288xbf16, #tpu.memory_space<vmem>>, vector<8x288xbf16>,
    %c16_636 = arith.constant 16 : index
    %c0_637 = arith.constant 0 : index
    %485 = vector.load %arg21[%c16_636, %c0_637] : memref<48x288xf32, #tpu.memory_space<vmem>>, vector<32x288xf32>
    %c0_638 = arith.constant 0 : index
    %c0_639 = arith.constant 0 : index
    %486 = vector.load %arg16[%c0_638, %c0_639] : memref<32x144xbf16, #tpu.memory_space<vmem>>, vector<32x144xbf16>
    %c0_640 = arith.constant 0 : index
    %c0_641 = arith.constant 0 : index
    %487 = vector.load %arg22[%c0_640, %c0_641] : memref<144x288xbf16, #tpu.memory_space<vmem>>, vector<144x288xbf16>
    %cst_642 = arith.constant dense<0.000000e+00> : vector<32x288xf32>
    %488 = tpu.matmul %486, %487, %cst_642 {dimension_numbers = #tpu.dot_dimension_numbers<[1], [0], [0], [1], [0, 0, 1, 1], [], []>} : vector<32x144xbf16>, vector<144x288xbf16>, vector<32x288xf32> -> vector<32x288xf32>
    %489 = arith.addf %485, %488 : vector<32x288xf32>
    %c16_643 = arith.constant 16 : index
    %c0_644 = arith.constant 0 : index
    %490 = vector.load %arg21[%c16_643, %c0_644] : memref<48x288xf32, #tpu.memory_space<vmem>>, vector<32x288xf32>
    tpu.vector_store %arg21[%c16_643, %c0_644], %489 {strides = array<i32>} : memref<48x288xf32, #tpu.memory_space<vmem>>, vector<32x288xf32>,
    %c16_645 = arith.constant 16 : index
    %c0_646 = arith.constant 0 : index
    %491 = vector.load %arg21[%c16_645, %c0_646] : memref<48x288xf32, #tpu.memory_space<vmem>>, vector<8x288xf32>
    %492 = vector.extract_strided_slice %390 {offsets = [16, 0], sizes = [8, 1], strides = [1, 1]} : vector<48x1xf32> to vector<8x1xf32>
    %493 = vector.broadcast %492 : vector<8x1xf32> to vector<8x288xf32>
    %494 = arith.addf %491, %493 : vector<8x288xf32>
    %cst_647 = arith.constant 0.000000e+00 : f32
    %495 = vector.broadcast %cst_647 : f32 to vector<8x288xf32>
    %496 = arith.cmpf oge, %494, %495 : vector<8x288xf32>
    %cst_648 = arith.constant 2.000000e-01 : f32
    %497 = vector.broadcast %cst_648 : f32 to vector<8x288xf32>
    %498 = arith.mulf %497, %494 : vector<8x288xf32>
    %499 = arith.select %496, %494, %498 : vector<8x288xi1>, vector<8x288xf32>
    %500 = vector.broadcast %20 : vector<1x288xf32> to vector<8x288xf32>
    %501 = arith.mulf %499, %500 : vector<8x288xf32>
    %502 = arith.truncf %501 : vector<8x288xf32> to vector<8x288xbf16>
    %c0_649 = arith.constant 0 : index
    %c19_650 = arith.constant 19 : index
    %503 = vector.load %arg23[%c0_649, %c19_650] : memref<16x326xbf16, #tpu.memory_space<vmem>>, vector<8x288xbf16>
    tpu.vector_store %arg23[%c0_649, %c19_650], %502 {strides = array<i32>} : memref<16x326xbf16, #tpu.memory_space<vmem>>, vector<8x288xbf16>,
    %c0_651 = arith.constant 0 : index
    %c0_652 = arith.constant 0 : index
    %504 = vector.load %arg23[%c0_651, %c0_652] : memref<16x326xbf16, #tpu.memory_space<vmem>>, vector<8x288xbf16>
    %c0_653 = arith.constant 0 : index
    %c0_654 = arith.constant 0 : index
    %505 = vector.load %arg22[%c0_653, %c0_654] : memref<144x288xbf16, #tpu.memory_space<vmem>>, vector<8x288xbf16>
    tpu.vector_store %arg22[%c0_653, %c0_654], %504 {strides = array<i32>} : memref<144x288xbf16, #tpu.memory_space<vmem>>, vector<8x288xbf16>,
    %c0_655 = arith.constant 0 : index
    %c1_656 = arith.constant 1 : index
    %506 = vector.load %arg23[%c0_655, %c1_656] : memref<16x326xbf16, #tpu.memory_space<vmem>>, vector<8x288xbf16>
    %c16_657 = arith.constant 16 : index
    %c0_658 = arith.constant 0 : index
    %507 = vector.load %arg22[%c16_657, %c0_658] : memref<144x288xbf16, #tpu.memory_space<vmem>>, vector<8x288xbf16>
    tpu.vector_store %arg22[%c16_657, %c0_658], %506 {strides = array<i32>} : memref<144x288xbf16, #tpu.memory_space<vmem>>, vector<8x288xbf16>,
    %c0_659 = arith.constant 0 : index
    %c2_660 = arith.constant 2 : index
    %508 = vector.load %arg23[%c0_659, %c2_660] : memref<16x326xbf16, #tpu.memory_space<vmem>>, vector<8x288xbf16>
    %c32_661 = arith.constant 32 : index
    %c0_662 = arith.constant 0 : index
    %509 = vector.load %arg22[%c32_661, %c0_662] : memref<144x288xbf16, #tpu.memory_space<vmem>>, vector<8x288xbf16>
    tpu.vector_store %arg22[%c32_661, %c0_662], %508 {strides = array<i32>} : memref<144x288xbf16, #tpu.memory_space<vmem>>, vector<8x288xbf16>,
    %c0_663 = arith.constant 0 : index
    %c18_664 = arith.constant 18 : index
    %510 = vector.load %arg23[%c0_663, %c18_664] : memref<16x326xbf16, #tpu.memory_space<vmem>>, vector<8x288xbf16>
    %c48_665 = arith.constant 48 : index
    %c0_666 = arith.constant 0 : index
    %511 = vector.load %arg22[%c48_665, %c0_666] : memref<144x288xbf16, #tpu.memory_space<vmem>>, vector<8x288xbf16>
    tpu.vector_store %arg22[%c48_665, %c0_666], %510 {strides = array<i32>} : memref<144x288xbf16, #tpu.memory_space<vmem>>, vector<8x288xbf16>,
    %c0_667 = arith.constant 0 : index
    %c19_668 = arith.constant 19 : index
    %512 = vector.load %arg23[%c0_667, %c19_668] : memref<16x326xbf16, #tpu.memory_space<vmem>>, vector<8x288xbf16>
    %c64_669 = arith.constant 64 : index
    %c0_670 = arith.constant 0 : index
    %513 = vector.load %arg22[%c64_669, %c0_670] : memref<144x288xbf16, #tpu.memory_space<vmem>>, vector<8x288xbf16>
    tpu.vector_store %arg22[%c64_669, %c0_670], %512 {strides = array<i32>} : memref<144x288xbf16, #tpu.memory_space<vmem>>, vector<8x288xbf16>,
    %c0_671 = arith.constant 0 : index
    %c20_672 = arith.constant 20 : index
    %514 = vector.load %arg23[%c0_671, %c20_672] : memref<16x326xbf16, #tpu.memory_space<vmem>>, vector<8x288xbf16>
    %c80_673 = arith.constant 80 : index
    %c0_674 = arith.constant 0 : index
    %515 = vector.load %arg22[%c80_673, %c0_674] : memref<144x288xbf16, #tpu.memory_space<vmem>>, vector<8x288xbf16>
    tpu.vector_store %arg22[%c80_673, %c0_674], %514 {strides = array<i32>} : memref<144x288xbf16, #tpu.memory_space<vmem>>, vector<8x288xbf16>,
    %c0_675 = arith.constant 0 : index
    %c36_676 = arith.constant 36 : index
    %516 = vector.load %arg23[%c0_675, %c36_676] : memref<16x326xbf16, #tpu.memory_space<vmem>>, vector<8x288xbf16>
    %c96_677 = arith.constant 96 : index
    %c0_678 = arith.constant 0 : index
    %517 = vector.load %arg22[%c96_677, %c0_678] : memref<144x288xbf16, #tpu.memory_space<vmem>>, vector<8x288xbf16>
    tpu.vector_store %arg22[%c96_677, %c0_678], %516 {strides = array<i32>} : memref<144x288xbf16, #tpu.memory_space<vmem>>, vector<8x288xbf16>,
    %c0_679 = arith.constant 0 : index
    %c37_680 = arith.constant 37 : index
    %518 = vector.load %arg23[%c0_679, %c37_680] : memref<16x326xbf16, #tpu.memory_space<vmem>>, vector<8x288xbf16>
    %c112_681 = arith.constant 112 : index
    %c0_682 = arith.constant 0 : index
    %519 = vector.load %arg22[%c112_681, %c0_682] : memref<144x288xbf16, #tpu.memory_space<vmem>>, vector<8x288xbf16>
    tpu.vector_store %arg22[%c112_681, %c0_682], %518 {strides = array<i32>} : memref<144x288xbf16, #tpu.memory_space<vmem>>, vector<8x288xbf16>,
    %c0_683 = arith.constant 0 : index
    %c38_684 = arith.constant 38 : index
    %520 = vector.load %arg23[%c0_683, %c38_684] : memref<16x326xbf16, #tpu.memory_space<vmem>>, vector<8x288xbf16>
    %c128_685 = arith.constant 128 : index
    %c0_686 = arith.constant 0 : index
    %521 = vector.load %arg22[%c128_685, %c0_686] : memref<144x288xbf16, #tpu.memory_space<vmem>>, vector<8x288xbf16>
    tpu.vector_store %arg22[%c128_685, %c0_686], %520 {strides = array<i32>} : memref<144x288xbf16, #tpu.memory_space<vmem>>, vector<8x288xbf16>,
    %c24_687 = arith.constant 24 : index
    %c0_688 = arith.constant 0 : index
    %522 = vector.load %arg21[%c24_687, %c0_688] : memref<48x288xf32, #tpu.memory_space<vmem>>, vector<24x288xf32>
    %c0_689 = arith.constant 0 : index
    %c0_690 = arith.constant 0 : index
    %523 = vector.load %arg17[%c0_689, %c0_690] : memref<24x144xbf16, #tpu.memory_space<vmem>>, vector<24x144xbf16>
    %c0_691 = arith.constant 0 : index
    %c0_692 = arith.constant 0 : index
    %524 = vector.load %arg22[%c0_691, %c0_692] : memref<144x288xbf16, #tpu.memory_space<vmem>>, vector<144x288xbf16>
    %cst_693 = arith.constant dense<0.000000e+00> : vector<24x288xf32>
    %525 = tpu.matmul %523, %524, %cst_693 {dimension_numbers = #tpu.dot_dimension_numbers<[1], [0], [0], [1], [0, 0, 1, 1], [], []>} : vector<24x144xbf16>, vector<144x288xbf16>, vector<24x288xf32> -> vector<24x288xf32>
    %526 = arith.addf %522, %525 : vector<24x288xf32>
    %c24_694 = arith.constant 24 : index
    %c0_695 = arith.constant 0 : index
    %527 = vector.load %arg21[%c24_694, %c0_695] : memref<48x288xf32, #tpu.memory_space<vmem>>, vector<24x288xf32>
    tpu.vector_store %arg21[%c24_694, %c0_695], %526 {strides = array<i32>} : memref<48x288xf32, #tpu.memory_space<vmem>>, vector<24x288xf32>,
    %c24_696 = arith.constant 24 : index
    %c0_697 = arith.constant 0 : index
    %528 = vector.load %arg21[%c24_696, %c0_697] : memref<48x288xf32, #tpu.memory_space<vmem>>, vector<8x288xf32>
    %529 = vector.extract_strided_slice %390 {offsets = [24, 0], sizes = [8, 1], strides = [1, 1]} : vector<48x1xf32> to vector<8x1xf32>
    %530 = vector.broadcast %529 : vector<8x1xf32> to vector<8x288xf32>
    %531 = arith.addf %528, %530 : vector<8x288xf32>
    %cst_698 = arith.constant 0.000000e+00 : f32
    %532 = vector.broadcast %cst_698 : f32 to vector<8x288xf32>
    %533 = arith.cmpf oge, %531, %532 : vector<8x288xf32>
    %cst_699 = arith.constant 2.000000e-01 : f32
    %534 = vector.broadcast %cst_699 : f32 to vector<8x288xf32>
    %535 = arith.mulf %534, %531 : vector<8x288xf32>
    %536 = arith.select %533, %531, %535 : vector<8x288xi1>, vector<8x288xf32>
    %537 = vector.broadcast %20 : vector<1x288xf32> to vector<8x288xf32>
    %538 = arith.mulf %536, %537 : vector<8x288xf32>
    %539 = arith.truncf %538 : vector<8x288xf32> to vector<8x288xbf16>
    %c0_700 = arith.constant 0 : index
    %c19_701 = arith.constant 19 : index
    %540 = vector.load %arg23[%c0_700, %c19_701] : memref<16x326xbf16, #tpu.memory_space<vmem>>, vector<8x288xbf16>
    tpu.vector_store %arg23[%c0_700, %c19_701], %539 {strides = array<i32>} : memref<16x326xbf16, #tpu.memory_space<vmem>>, vector<8x288xbf16>,
    %c0_702 = arith.constant 0 : index
    %c0_703 = arith.constant 0 : index
    %541 = vector.load %arg23[%c0_702, %c0_703] : memref<16x326xbf16, #tpu.memory_space<vmem>>, vector<8x288xbf16>
    %c0_704 = arith.constant 0 : index
    %c0_705 = arith.constant 0 : index
    %542 = vector.load %arg22[%c0_704, %c0_705] : memref<144x288xbf16, #tpu.memory_space<vmem>>, vector<8x288xbf16>
    tpu.vector_store %arg22[%c0_704, %c0_705], %541 {strides = array<i32>} : memref<144x288xbf16, #tpu.memory_space<vmem>>, vector<8x288xbf16>,
    %c0_706 = arith.constant 0 : index
    %c1_707 = arith.constant 1 : index
    %543 = vector.load %arg23[%c0_706, %c1_707] : memref<16x326xbf16, #tpu.memory_space<vmem>>, vector<8x288xbf16>
    %c16_708 = arith.constant 16 : index
    %c0_709 = arith.constant 0 : index
    %544 = vector.load %arg22[%c16_708, %c0_709] : memref<144x288xbf16, #tpu.memory_space<vmem>>, vector<8x288xbf16>
    tpu.vector_store %arg22[%c16_708, %c0_709], %543 {strides = array<i32>} : memref<144x288xbf16, #tpu.memory_space<vmem>>, vector<8x288xbf16>,
    %c0_710 = arith.constant 0 : index
    %c2_711 = arith.constant 2 : index
    %545 = vector.load %arg23[%c0_710, %c2_711] : memref<16x326xbf16, #tpu.memory_space<vmem>>, vector<8x288xbf16>
    %c32_712 = arith.constant 32 : index
    %c0_713 = arith.constant 0 : index
    %546 = vector.load %arg22[%c32_712, %c0_713] : memref<144x288xbf16, #tpu.memory_space<vmem>>, vector<8x288xbf16>
    tpu.vector_store %arg22[%c32_712, %c0_713], %545 {strides = array<i32>} : memref<144x288xbf16, #tpu.memory_space<vmem>>, vector<8x288xbf16>,
    %c0_714 = arith.constant 0 : index
    %c18_715 = arith.constant 18 : index
    %547 = vector.load %arg23[%c0_714, %c18_715] : memref<16x326xbf16, #tpu.memory_space<vmem>>, vector<8x288xbf16>
    %c48_716 = arith.constant 48 : index
    %c0_717 = arith.constant 0 : index
    %548 = vector.load %arg22[%c48_716, %c0_717] : memref<144x288xbf16, #tpu.memory_space<vmem>>, vector<8x288xbf16>
    tpu.vector_store %arg22[%c48_716, %c0_717], %547 {strides = array<i32>} : memref<144x288xbf16, #tpu.memory_space<vmem>>, vector<8x288xbf16>,
    %c0_718 = arith.constant 0 : index
    %c19_719 = arith.constant 19 : index
    %549 = vector.load %arg23[%c0_718, %c19_719] : memref<16x326xbf16, #tpu.memory_space<vmem>>, vector<8x288xbf16>
    %c64_720 = arith.constant 64 : index
    %c0_721 = arith.constant 0 : index
    %550 = vector.load %arg22[%c64_720, %c0_721] : memref<144x288xbf16, #tpu.memory_space<vmem>>, vector<8x288xbf16>
    tpu.vector_store %arg22[%c64_720, %c0_721], %549 {strides = array<i32>} : memref<144x288xbf16, #tpu.memory_space<vmem>>, vector<8x288xbf16>,
    %c0_722 = arith.constant 0 : index
    %c20_723 = arith.constant 20 : index
    %551 = vector.load %arg23[%c0_722, %c20_723] : memref<16x326xbf16, #tpu.memory_space<vmem>>, vector<8x288xbf16>
    %c80_724 = arith.constant 80 : index
    %c0_725 = arith.constant 0 : index
    %552 = vector.load %arg22[%c80_724, %c0_725] : memref<144x288xbf16, #tpu.memory_space<vmem>>, vector<8x288xbf16>
    tpu.vector_store %arg22[%c80_724, %c0_725], %551 {strides = array<i32>} : memref<144x288xbf16, #tpu.memory_space<vmem>>, vector<8x288xbf16>,
    %c0_726 = arith.constant 0 : index
    %c36_727 = arith.constant 36 : index
    %553 = vector.load %arg23[%c0_726, %c36_727] : memref<16x326xbf16, #tpu.memory_space<vmem>>, vector<8x288xbf16>
    %c96_728 = arith.constant 96 : index
    %c0_729 = arith.constant 0 : index
    %554 = vector.load %arg22[%c96_728, %c0_729] : memref<144x288xbf16, #tpu.memory_space<vmem>>, vector<8x288xbf16>
    tpu.vector_store %arg22[%c96_728, %c0_729], %553 {strides = array<i32>} : memref<144x288xbf16, #tpu.memory_space<vmem>>, vector<8x288xbf16>,
    %c0_730 = arith.constant 0 : index
    %c37_731 = arith.constant 37 : index
    %555 = vector.load %arg23[%c0_730, %c37_731] : memref<16x326xbf16, #tpu.memory_space<vmem>>, vector<8x288xbf16>
    %c112_732 = arith.constant 112 : index
    %c0_733 = arith.constant 0 : index
    %556 = vector.load %arg22[%c112_732, %c0_733] : memref<144x288xbf16, #tpu.memory_space<vmem>>, vector<8x288xbf16>
    tpu.vector_store %arg22[%c112_732, %c0_733], %555 {strides = array<i32>} : memref<144x288xbf16, #tpu.memory_space<vmem>>, vector<8x288xbf16>,
    %c0_734 = arith.constant 0 : index
    %c38_735 = arith.constant 38 : index
    %557 = vector.load %arg23[%c0_734, %c38_735] : memref<16x326xbf16, #tpu.memory_space<vmem>>, vector<8x288xbf16>
    %c128_736 = arith.constant 128 : index
    %c0_737 = arith.constant 0 : index
    %558 = vector.load %arg22[%c128_736, %c0_737] : memref<144x288xbf16, #tpu.memory_space<vmem>>, vector<8x288xbf16>
    tpu.vector_store %arg22[%c128_736, %c0_737], %557 {strides = array<i32>} : memref<144x288xbf16, #tpu.memory_space<vmem>>, vector<8x288xbf16>,
    %c32_738 = arith.constant 32 : index
    %c0_739 = arith.constant 0 : index
    %559 = vector.load %arg21[%c32_738, %c0_739] : memref<48x288xf32, #tpu.memory_space<vmem>>, vector<16x288xf32>
    %c0_740 = arith.constant 0 : index
    %c0_741 = arith.constant 0 : index
    %560 = vector.load %arg18[%c0_740, %c0_741] : memref<16x144xbf16, #tpu.memory_space<vmem>>, vector<16x144xbf16>
    %c0_742 = arith.constant 0 : index
    %c0_743 = arith.constant 0 : index
    %561 = vector.load %arg22[%c0_742, %c0_743] : memref<144x288xbf16, #tpu.memory_space<vmem>>, vector<144x288xbf16>
    %cst_744 = arith.constant dense<0.000000e+00> : vector<16x288xf32>
    %562 = tpu.matmul %560, %561, %cst_744 {dimension_numbers = #tpu.dot_dimension_numbers<[1], [0], [0], [1], [0, 0, 1, 1], [], []>} : vector<16x144xbf16>, vector<144x288xbf16>, vector<16x288xf32> -> vector<16x288xf32>
    %563 = arith.addf %559, %562 : vector<16x288xf32>
    %c32_745 = arith.constant 32 : index
    %c0_746 = arith.constant 0 : index
    %564 = vector.load %arg21[%c32_745, %c0_746] : memref<48x288xf32, #tpu.memory_space<vmem>>, vector<16x288xf32>
    tpu.vector_store %arg21[%c32_745, %c0_746], %563 {strides = array<i32>} : memref<48x288xf32, #tpu.memory_space<vmem>>, vector<16x288xf32>,
    %c32_747 = arith.constant 32 : index
    %c0_748 = arith.constant 0 : index
    %565 = vector.load %arg21[%c32_747, %c0_748] : memref<48x288xf32, #tpu.memory_space<vmem>>, vector<16x288xf32>
    %566 = vector.extract_strided_slice %390 {offsets = [32, 0], sizes = [16, 1], strides = [1, 1]} : vector<48x1xf32> to vector<16x1xf32>
    %567 = vector.broadcast %566 : vector<16x1xf32> to vector<16x288xf32>
    %568 = arith.addf %565, %567 : vector<16x288xf32>
    %cst_749 = arith.constant 2.000000e-01 : f32
    %569 = vector.broadcast %cst_749 : f32 to vector<16x288xf32>
    %570 = arith.mulf %568, %569 : vector<16x288xf32>
    %571 = arith.addf %570, %389 : vector<16x288xf32>
    %cst_750 = arith.constant 2.000000e-01 : f32
    %572 = vector.broadcast %cst_750 : f32 to vector<16x288xf32>
    %573 = arith.mulf %571, %572 : vector<16x288xf32>
    %574 = arith.addf %573, %25 : vector<16x288xf32>
    %c0_751 = arith.constant 0 : index
    %c0_752 = arith.constant 0 : index
    %c0_753 = arith.constant 0 : index
    %575 = vector.load %arg20[%c0_751, %c0_752, %c0_753] : memref<1x16x288xf32, #tpu.memory_space<vmem>>, vector<1x16x288xf32>
    %576 = vector.shape_cast %575 : vector<1x16x288xf32> to vector<16x288xf32>
    %577 = vector.shape_cast %574 : vector<16x288xf32> to vector<1x16x288xf32>
    tpu.vector_store %arg20[%c0_751, %c0_752, %c0_753], %577 {strides = array<i32>} : memref<1x16x288xf32, #tpu.memory_space<vmem>>, vector<1x16x288xf32>,
    return
  }
  func.func @transform_0(%arg0: i32) -> (i32, i32, i32) {
    %c0_i32 = arith.constant 0 : i32
    %c0_i32_0 = arith.constant 0 : i32
    %c0_i32_1 = arith.constant 0 : i32
    return %arg0, %c0_i32, %c0_i32_0 : i32, i32, i32
  }
  func.func @transform_1(%arg0: i32) -> (i32, i32) {
    %c0_i32 = arith.constant 0 : i32
    %c0_i32_0 = arith.constant 0 : i32
    %c0_i32_1 = arith.constant 0 : i32
    return %c0_i32, %c0_i32_0 : i32, i32
  }
  func.func @transform_2(%arg0: i32) -> (i32, i32) {
    %c0_i32 = arith.constant 0 : i32
    %c0_i32_0 = arith.constant 0 : i32
    %c0_i32_1 = arith.constant 0 : i32
    return %c0_i32, %c0_i32_0 : i32, i32
  }
  func.func @transform_3(%arg0: i32) -> (i32, i32) {
    %c0_i32 = arith.constant 0 : i32
    %c0_i32_0 = arith.constant 0 : i32
    %c0_i32_1 = arith.constant 0 : i32
    return %c0_i32, %c0_i32_0 : i32, i32
  }
  func.func @transform_4(%arg0: i32) -> (i32, i32) {
    %c0_i32 = arith.constant 0 : i32
    %c0_i32_0 = arith.constant 0 : i32
    %c0_i32_1 = arith.constant 0 : i32
    return %c0_i32, %c0_i32_0 : i32, i32
  }
  func.func @transform_5(%arg0: i32) -> (i32, i32) {
    %c0_i32 = arith.constant 0 : i32
    %c0_i32_0 = arith.constant 0 : i32
    %c0_i32_1 = arith.constant 0 : i32
    return %c0_i32, %c0_i32_0 : i32, i32
  }
  func.func @transform_6(%arg0: i32) -> (i32, i32) {
    %c0_i32 = arith.constant 0 : i32
    %c0_i32_0 = arith.constant 0 : i32
    %c0_i32_1 = arith.constant 0 : i32
    return %c0_i32, %c0_i32_0 : i32, i32
  }
  func.func @transform_7(%arg0: i32) -> (i32, i32) {
    %c0_i32 = arith.constant 0 : i32
    %c0_i32_0 = arith.constant 0 : i32
    %c0_i32_1 = arith.constant 0 : i32
    return %c0_i32, %c0_i32_0 : i32, i32
  }
  func.func @transform_8(%arg0: i32) -> (i32, i32) {
    %c0_i32 = arith.constant 0 : i32
    %c0_i32_0 = arith.constant 0 : i32
    %c0_i32_1 = arith.constant 0 : i32
    return %c0_i32, %c0_i32_0 : i32, i32
  }
  func.func @transform_9(%arg0: i32) -> (i32, i32) {
    %c0_i32 = arith.constant 0 : i32
    %c0_i32_0 = arith.constant 0 : i32
    %c0_i32_1 = arith.constant 0 : i32
    return %c0_i32, %c0_i32_0 : i32, i32
  }
  func.func @transform_10(%arg0: i32) -> (i32, i32) {
    %c0_i32 = arith.constant 0 : i32
    %c0_i32_0 = arith.constant 0 : i32
    %c0_i32_1 = arith.constant 0 : i32
    return %c0_i32, %c0_i32_0 : i32, i32
  }
  func.func @transform_11(%arg0: i32) -> (i32, i32) {
    %c0_i32 = arith.constant 0 : i32
    %c0_i32_0 = arith.constant 0 : i32
    %c0_i32_1 = arith.constant 0 : i32
    return %c0_i32, %c0_i32_0 : i32, i32
  }
  func.func @transform_12(%arg0: i32) -> (i32, i32) {
    %c0_i32 = arith.constant 0 : i32
    %c0_i32_0 = arith.constant 0 : i32
    %c0_i32_1 = arith.constant 0 : i32
    return %c0_i32, %c0_i32_0 : i32, i32
  }
  func.func @transform_13(%arg0: i32) -> (i32, i32) {
    %c0_i32 = arith.constant 0 : i32
    %c0_i32_0 = arith.constant 0 : i32
    %c0_i32_1 = arith.constant 0 : i32
    return %c0_i32, %c0_i32_0 : i32, i32
  }
  func.func @transform_14(%arg0: i32) -> (i32, i32) {
    %c0_i32 = arith.constant 0 : i32
    %c0_i32_0 = arith.constant 0 : i32
    %c0_i32_1 = arith.constant 0 : i32
    return %c0_i32, %c0_i32_0 : i32, i32
  }
  func.func @transform_15(%arg0: i32) -> (i32, i32) {
    %c0_i32 = arith.constant 0 : i32
    %c0_i32_0 = arith.constant 0 : i32
    %c0_i32_1 = arith.constant 0 : i32
    return %c0_i32, %c0_i32_0 : i32, i32
  }
  func.func @transform_16(%arg0: i32) -> (i32, i32) {
    %c0_i32 = arith.constant 0 : i32
    %c0_i32_0 = arith.constant 0 : i32
    %c0_i32_1 = arith.constant 0 : i32
    return %c0_i32, %c0_i32_0 : i32, i32
  }
  func.func @transform_17(%arg0: i32) -> (i32, i32) {
    %c0_i32 = arith.constant 0 : i32
    %c0_i32_0 = arith.constant 0 : i32
    %c0_i32_1 = arith.constant 0 : i32
    return %c0_i32, %c0_i32_0 : i32, i32
  }
  func.func @transform_18(%arg0: i32) -> (i32, i32) {
    %c0_i32 = arith.constant 0 : i32
    %c0_i32_0 = arith.constant 0 : i32
    %c0_i32_1 = arith.constant 0 : i32
    return %c0_i32, %c0_i32_0 : i32, i32
  }
  func.func @transform_19(%arg0: i32) -> (i32, i32, i32) {
    %c0_i32 = arith.constant 0 : i32
    %c0_i32_0 = arith.constant 0 : i32
    %c0_i32_1 = arith.constant 0 : i32
    return %arg0, %c0_i32, %c0_i32_0 : i32, i32, i32
  }
}

</mosaic_0001>

<bundles_post_ra>
// kernel: rrdb_forward.1
= control target key start
LH: loop header
LB: loop body
LE: loop exit
PB: predicated region body
PF: predicated region fallthrough
CT: control target
= control target key end

     0   :  { %s9002_s0 = inlined_call_operand.vmem [shape: f32[2,16,288], index: 0, kind: input, shape index: {}]   ;;  %s9003_s1 = inlined_call_operand.vmem [shape: bf16[48,144], index: 1, kind: input, shape index: {}]   ;;  %s9004_s2 = inlined_call_operand.vmem [shape: bf16[40,144], index: 2, kind: input, shape index: {}]   ;;  %s9005_s3 = inlined_call_operand.vmem [shape: bf16[32,144], index: 3, kind: input, shape index: {}]   ;;  %s9006_s4 = inlined_call_operand.vmem [shape: bf16[24,144], index: 4, kind: input, shape index: {}]   ;;  %s9007_s5 = inlined_call_operand.vmem [shape: bf16[16,144], index: 5, kind: input, shape index: {}]   ;;  %s9008_s6 = inlined_call_operand.vmem [shape: f32[48,1], index: 6, kind: input, shape index: {}]   ;;  %s9009_s7 = inlined_call_operand.vmem [shape: bf16[48,144], index: 7, kind: input, shape index: {}]   ;;  %s9010_s8 = inlined_call_operand.vmem [shape: bf16[40,144], index: 8, kind: input, shape index: {}]   ;;  %s9011_s9 = inlined_call_operand.vmem [shape: bf16[32,144], index: 9, kind: input, shape index: {}]   ;;  %s9012_s10 = inlined_call_operand.vmem [shape: bf16[24,144], index: 10, kind: input, shape index: {}]   ;;  %s9013_s11 = inlined_call_operand.vmem [shape: bf16[16,144], index: 11, kind: input, shape index: {}]   ;;  %s9014_s12 = inlined_call_operand.vmem [shape: f32[48,1], index: 12, kind: input, shape index: {}]   ;;  %s9015_s13 = inlined_call_operand.vmem [shape: bf16[48,144], index: 13, kind: input, shape index: {}]   ;;  %s9016_s14 = inlined_call_operand.vmem [shape: bf16[40,144], index: 14, kind: input, shape index: {}]   ;;  %s9017_s15 = inlined_call_operand.vmem [shape: bf16[32,144], index: 15, kind: input, shape index: {}]   ;;  %s9018_s16 = inlined_call_operand.vmem [shape: bf16[24,144], index: 16, kind: input, shape index: {}]   ;;  %s9019_s17 = inlined_call_operand.vmem [shape: bf16[16,144], index: 17, kind: input, shape index: {}]   ;;  %s9020_s18 = inlined_call_operand.vmem [shape: f32[48,1], index: 18, kind: input, shape index: {}]   ;;  %s9021_s19 = inlined_call_operand.vmem [shape: f32[2,16,288], index: 19, kind: output, shape index: {}]  }
   0x1   :  { %9050 = sst [smem:[#allocation6_spill]] %s9002_s0  ;;  %s7240_s0 = smov 0  }
   0x2   :  { %9051 = sst [smem:[#allocation7_spill]] %s9003_s1 }
   0x3   :  { %9052 = sst [smem:[#allocation8_spill]] %s9004_s2 }
   0x4   :  { %9053 = sst [smem:[#allocation9_spill]] %s9005_s3 }
   0x5   :  { %9054 = sst [smem:[#allocation10_spill]] %s9006_s4 }
   0x6   :  { %9055 = sst [smem:[#allocation11_spill]] %s9021_s19 }
   0x7 LB: > { %9056 = sst [smem:[#allocation5_spill]] %s7126_s0  ;;  %s7246_s30 = sadd.s32 4294967295, %s7126_s0   ;;  %s7126_s0 = sphi %s7240_s0, %s29_s0  }
   0x8   : > { %p6845_p0 = scmp.ge.s32.totalorder %s7126_s0, 1  ;;  %p537_p1 = scmp.lt.s32.totalorder %s7126_s0, 3 }
   0xa   : > { %p538_p2 = pnand %p6845_p0, %p537_p1 }
   0xb   : > { %p593_p3 = scmp.lt.s32.totalorder (!%p538_p2), %s7246_s30, 1  ;;  %v604_v0 = vlaneseq (!%p538_p2)  ;;  %s9057_s2 = sld [smem:[#allocation6_spill]] (!%p538_p2)  ;;  %v7128_v25 = vmov (!%p538_p2), 0.0  }
   0xc   : > { %541 = sbr.rel (%p538_p2) target bundleno = 7814 (0x1e86), region = 96  ;;  %s9058_s19 = sld [smem:[#allocation11_spill]] (!%p538_p2) }
   0xd   : > { %v605_v1 = vand.u32 (!%p538_p2), 127, %v604_v0  ;;  %p6851_p4 = scmp.ne.s32.totalorder (!%p538_p2), %s7246_s30, 0 }
   0xf   : > { %v606_v2 = vadd.s32 (!%p538_p2), 128, %v605_v1  ;;  %v607_v3 = vadd.s32 (!%p538_p2), 256, %v605_v1  ;;  %v7252_v4 = vmul.u32.u64.low (!%p538_p2), 3817748708, %v605_v1  ;;  %v7253_v5 = vmul.u32.u64.high 3817748708, %v605_v1, %v7252_v4 }
  0x11   : > { %v7265_v6 = vmul.u32.u64.low (!%p538_p2), 3817748708, %v606_v2  ;;  %v7266_v7 = vmul.u32.u64.high 3817748708, %v606_v2, %v7265_v6  ;;  %v7268_v8 = vmul.u32.u64.low (!%p538_p2), 3817748708, %v607_v3  ;;  %v7269_v9 = vmul.u32.u64.high 3817748708, %v607_v3, %v7268_v8 }
  0x12   : > { %v614_v10 = vshrl.u32 (!%p538_p2), %v7253_v5, 4 }
  0x13   : > { %s594_s20 = scalar_select %p593_p3, %s7246_s30, 1  ;;  %v625_v12 = vshrl.u32 %v7266_v7, 4  ;;  %v636_v13 = vshrl.u32 %v7269_v9, 4 }
  0x14   : > { %v615_v11 = vmul.u32 18, %v614_v10  ;;  %vm671_vm12 = vcmask (!%p6851_p4), 572416   ;;  %vm675_vm13 = vcmask (!%p6851_p4), 261120   ;;  %v7129_v29 = vmov (!%p6851_p4), 0  }
  0x15   : > { %s6986_s21 = smul.u32 48, %s594_s20  ;;  %v626_v15 = vmul.u32 18, %v625_v12  ;;  %v637_v16 = vmul.u32 18, %v636_v13  ;;  %669 = vst [vmem:[#allocation4] sm:$0xff] (!%p6851_p4), %v7129_v29  ;;  %670 = vst [vmem:[#allocation4 + $0x8] sm:$0xff] (!%p6851_p4), %v7129_v29 }
  0x16   : > { %v616_v14 = vsub.s32 %v605_v1, %v615_v11  ;;  %673 = vst [vmem:[#allocation3] sm:$0xff] (!%p6851_p4), %v7129_v29  ;;  %674 = vst [vmem:[#allocation3 + $0x8] sm:$0xff] (!%p6851_p4), %v7129_v29 }
  0x17   : > { %s7258_s23 = scalar_lea.vmem %s9057_s2, %s6986_s21  ;;  %s7263_s3 = scalar_lea.vmem %s9058_s19, %s6986_s21  ;;  %v627_v17 = vsub.s32 %v606_v2, %v626_v15  ;;  %v638_v18 = vsub.s32 %v607_v3, %v637_v16  ;;  %677 = vst [vmem:[#allocation3 + $0x18] sm:$0xff] (!%p6851_p4), %v7129_v29  ;;  %678 = vst [vmem:[#allocation3 + $0x20] sm:$0xff] (!%p6851_p4), %v7129_v29 }
  0x18   : > { %vm641_vm0 = vcmp.ne.s32.totalorder %v616_v14, 0  ;;  %vm644_vm1 = vcmp.lt.s32.totalorder %v616_v14, 0  ;;  %v650_v19 = vadd.s32 18, %v616_v14  ;;  %668 = sbr.rel (%p6851_p4) target bundleno = 38 (0x26), region = 100  ;;  %680 = vst [vmem:[#allocation3 + $0x30] sm:$0xff] (!%p6851_p4), %v7129_v29  ;;  %681 = vst [vmem:[#allocation3 + $0x38] sm:$0xff] (!%p6851_p4), %v7129_v29 }
  0x19   : > { %vm647_vm2 = vmand %vm644_vm1, %vm641_vm0  ;;  %vm642_vm3 = vcmp.ne.s32.totalorder %v627_v17, 0  ;;  %vm643_vm4 = vcmp.ne.s32.totalorder %v638_v18, 0  ;;  %vm645_vm5 = vcmp.lt.s32.totalorder %v627_v17, 0  ;;  %vm646_vm6 = vcmp.lt.s32.totalorder %v638_v18, 0  ;;  %683 = vst [vmem:[#allocation3 + $0x48] sm:$0xff] (!%p6851_p4), %v7129_v29 }
  0x1a   : > { %vm648_vm7 = vmand %vm645_vm5, %vm642_vm3  ;;  %v651_v20 = vadd.s32 18, %v627_v17  ;;  %v652_v21 = vadd.s32 18, %v638_v18  ;;  %v653_v22 = vsel %vm647_vm2, %v650_v19, %v616_v14  ;;  %684 = vst [vmem:[#allocation3 + $0x50] sm:$0xff] (!%p6851_p4), %v7129_v29 }
  0x1b   : > { %vm649_vm8 = vmand %vm646_vm6, %vm643_vm4  ;;  %vm656_vm9 = vcmp.lt.s32.totalorder %v653_v22, 16  ;;  %686 = vst [vmem:[#allocation3 + $0x60] sm:$0xff] (!%p6851_p4), %v7129_v29 }
  0x1c   : > { %v654_v23 = vsel %vm648_vm7, %v651_v20, %v627_v17  ;;  %v655_v24 = vsel %vm649_vm8, %v652_v21, %v638_v18  ;;  %v7274_v26 = vsel %vm656_vm9, 1.0, %v7128_v25  ;;  %687 = vst [vmem:[#allocation3 + $0x68] sm:$0xff] (!%p6851_p4), %v7129_v29  ;;  %689 = vst [vmem:[#allocation3 + $0x78] sm:$0xff] (!%p6851_p4), %v7129_v29 }
  0x1d   : > { %vm657_vm10 = vcmp.lt.s32.totalorder %v654_v23, 16  ;;  %vm658_vm11 = vcmp.lt.s32.totalorder %v655_v24, 16  ;;  %690 = vst [vmem:[#allocation3 + $0x80] sm:$0xff] (!%p6851_p4), %v7129_v29  ;;  %692 = vst [vmem:[#allocation3 + $0x90] sm:$0xff] (!%p6851_p4), %v7129_v29 }
  0x1e   : > { %v7276_v27 = vsel %vm657_vm10, 1.0, %v7128_v25  ;;  %v7278_v28 = vsel %vm658_vm11, 1.0, %v7128_v25  ;;  %693 = vst [vmem:[#allocation3 + $0x98] sm:$0xff] (!%p6851_p4), %v7129_v29  ;;  %695 = vst [vmem:[#allocation3 + $0xa8] sm:$0xff] (!%p6851_p4), %v7129_v29 }
  0x1f   : > { %696 = vst [vmem:[#allocation3 + $0xb0] sm:$0xff] %v7129_v29  ;;  %698 = vst [vmem:[#allocation3 + $0xc0] sm:$0xff] %v7129_v29 }
  0x20   : > { %699 = vst [vmem:[#allocation3 + $0xc8] sm:$0xff] %v7129_v29  ;;  %672 = vst.msk [vmem:[#allocation4 + $0x10] sm:$0xff] %vm671_vm12, %v7129_v29 }
  0x21   : > { %676 = vst.msk [vmem:[#allocation3 + $0x10] sm:$0xff] %vm675_vm13, %v7129_v29  ;;  %679 = vst.msk [vmem:[#allocation3 + $0x28] sm:$0xff] %vm675_vm13, %v7129_v29 }
  0x22   : > { %682 = vst.msk [vmem:[#allocation3 + $0x40] sm:$0xff] %vm675_vm13, %v7129_v29  ;;  %685 = vst.msk [vmem:[#allocation3 + $0x58] sm:$0xff] %vm675_vm13, %v7129_v29 }
  0x23   : > { %688 = vst.msk [vmem:[#allocation3 + $0x70] sm:$0xff] %vm675_vm13, %v7129_v29  ;;  %691 = vst.msk [vmem:[#allocation3 + $0x88] sm:$0xff] %vm675_vm13, %v7129_v29 }
  0x24   : > { %694 = vst.msk [vmem:[#allocation3 + $0xa0] sm:$0xff] %vm675_vm13, %v7129_v29  ;;  %697 = vst.msk [vmem:[#allocation3 + $0xb8] sm:$0xff] %vm675_vm13, %v7129_v29 }
  0x25   : > { %700 = vst.msk [vmem:[#allocation3 + $0xd0] sm:$0xff] %vm675_vm13, %v7129_v29 }
  0x26 PF: > { %v701_v30 = vld [vmem:[%s7258_s23] sm:$0xff]  ;;  %v704_v31 = vld [vmem:[%s7258_s23 + $0x18] sm:$0xff]  ;;  %v702_v32 = vld [vmem:[%s7258_s23 + $0x8] sm:$0xff]  ;;  %s9027_s26 = smov 19   ;;  %v7131_v45 = vmov 0   ;;  %vm9036_vm14 = vcmask 1047704  }
  0x27   : > { %v713_v33 = vmul.f32 %v7274_v26, %v701_v30  ;;  %v716_v34 = vmul.f32 %v7274_v26, %v704_v31  ;;  %v705_v35 = vld [vmem:[%s7258_s23 + $0x20] sm:$0xff]  ;;  %v714_v36 = vmul.f32 %v7276_v27, %v702_v32  ;;  %v703_v37 = vld [vmem:[%s7258_s23 + $0x10] sm:$0xff]  ;;  %v706_v38 = vld [vmem:[%s7258_s23 + $0x28] sm:$0xff]  ;;  %1050 = vmatprep.subr.bf16.mxu1 %v7131_v45  ;;  %7013 = vset.pattern.permute.xlu1 %v7131_v45  ;;  %vm731_vm15 = vcmask 154624   ;;  %s9044_s27 = smov 126   ;;  %s9025_s28 = smov 127  }
  0x28   : > { %v717_v39 = vmul.f32 %v7276_v27, %v705_v35  ;;  %v715_v40 = vmul.f32 %v7278_v28, %v703_v37  ;;  %v718_v41 = vmul.f32 %v7278_v28, %v706_v38  ;;  %7014 = vset.pattern.permute.xlu0 %v7131_v45  ;;  %vm9035_vm0 = vcmask 416768   ;;  %s9040_s29 = smov 109   ;;  %s9038_s30 = smov 110   ;;  %v707_v55 = vld [vmem:[%s9008_s6] sm:$0xff] }
  0x29   : > { %v719_v42 = vpack.c.bf16 %v716_v34, %v713_v33  ;;  %vm747_vm1 = vcmask 261120   ;;  %s9042_s20 = smov 92   ;;  %s9029_s21 = smov 108   ;;  %vm977_vm2 = vcmask 130048   ;;  %vm761_vm3 = vcmask 1039360  }
  0x2a   : > { %v721_v43 = vpack.c.bf16 %v718_v41, %v715_v40  ;;  %v720_v44 = vpack.c.bf16 %v717_v39, %v714_v36  ;;  %s9033_s1 = smov 91   ;;  %s9059_s24 = sld [smem:[#allocation7_spill]]  ;;  %vm782_vm4 = vcmask 1031168   ;;  %vm803_vm5 = vcmask 900096  }
  0x2b   : > { %725 = vrot.lane.b32.xlu0 %v719_v42, %s9027_s26  ;;  %s9031_s25 = smov 90   ;;  %vm824_vm6 = vcmask 891904   ;;  %vm845_vm7 = vcmask 883712   ;;  %vm866_vm8 = vcmask 752640   ;;  %vm887_vm9 = vcmask 744448   ;;  %s9060_s22 = sld [smem:[#allocation8_spill]] }
  0x2c   : > { %729 = vrot.lane.b32.xlu1 %v721_v43, %s9027_s26  ;;  %vm9037_vm10 = vcmask 736256   ;;  %s9064_s2 = smov 91   ;;  %s9069_s19 = smov 126  }
  0x2d   : > { %s9073_s4 = sld [smem:[#allocation10_spill]] }
  0x2f   : > { %727 = vrot.lane.b32.xlu0 %v720_v44, %s9027_s26 }
  0x30   : > { %v7017_v54 = vld [vmem:[%s9059_s24 + $0x4] ss:$8 sps:$4 sm:$0xff]   ;;  %v7015_v41 = vld [vmem:[%s9059_s24] ss:$8 sps:$4 sm:$0xff]  }
  0x31   : > { %6861 = vmatprep.mubr.msk.bf16.mxu1 %vm977_vm2, %v7017_v54  ;;  %6858 = vmatprep.mubr.msk.bf16.mxu0 %vm977_vm2, %v7017_v54 }
  0x9d   : > { %v726_v46 = vpop.permute.xlu0 %725 }
  0x9e   : > { %738 = vst.msk [vmem:[#allocation4] sm:$0xff] %vm9036_vm14, %v726_v46  ;;  %v730_v47 = vpop.permute.xlu1 %729 }
  0xa1   : > { %v728_v48 = vpop.permute.xlu0 %727 }
  0xa2   : > { %v732_v49 = vsel %vm731_vm15, %v726_v46, %v728_v48  ;;  %v733_v50 = vsel %vm731_vm15, %v728_v48, %v730_v47 }
  0xa3   : > { %739 = vst [vmem:[#allocation4 + $0x8] sm:$0xff] %v732_v49  ;;  %746 = vst [vmem:[#allocation3 + $0x8] sm:$0xff] %v732_v49  ;;  %987 = vmatprep.subr.bf16.mxu0 %v732_v49 }
  0xa4   : > { %741 = vst.msk [vmem:[#allocation4 + $0x10] sm:$0xff] %vm9035_vm0, %v733_v50 }
  0xa5   : > { %v742_v51 = vld [vmem:[#allocation4] sm:$0xff] }
  0xa6   : > { %745 = vst [vmem:[#allocation3] sm:$0xff] %v742_v51  ;;  %776 = vrot.lane.b32.xlu0 %v742_v51, %s9044_s27  ;;  %755 = vrot.lane.b32.xlu1 %v742_v51, %s9025_s28 }
  0xa7   : > { %988 = vmatpush1.bf16.msra.mxu0 %v742_v51 }
  0xaa   : > { %818 = vrot.lane.b32.xlu0 %v742_v51, %s9040_s29  ;;  %797 = vrot.lane.b32.xlu1 %v742_v51, %s9038_s30 }
  0xab   : > { %v744_v52 = vld [vmem:[#allocation4 + $0x10] sm:$0xff] }
  0xac   : > { %748 = vst.msk [vmem:[#allocation3 + $0x10] sm:$0xff] %vm747_vm1, %v744_v52 }
  0xae   : > { %860 = vrot.lane.b32.xlu0 %v742_v51, %s9042_s20  ;;  %839 = vrot.lane.b32.xlu1 %v742_v51, %s9029_s21 }
  0xb2   : > { %881 = vrot.lane.b32.xlu1 %v742_v51, %s9033_s1  ;;  %759 = vrot.lane.b32.xlu0 %v744_v52, %s9025_s28 }
  0xb3   : > { %v925_v53 = vld [vmem:[#allocation3 + $0x10] sm:$0xff] }
  0xb4   : > { %1051 = vmatpush1.bf16.msra.mxu1 %v925_v53 }
  0xb5   : > { %1052 = vmatprep.subr.bf16.mxu1 %v7131_v45 }
  0xb6   : > { %778 = vrot.lane.b32.xlu0 %v732_v49, %s9044_s27  ;;  %757 = vrot.lane.b32.xlu1 %v732_v49, %s9025_s28 }
  0xba   : > { %801 = vrot.lane.b32.xlu0 %v744_v52, %s9038_s30  ;;  %780 = vrot.lane.b32.xlu1 %v744_v52, %s9044_s27 }
  0xbe   : > { %820 = vrot.lane.b32.xlu0 %v732_v49, %s9040_s29  ;;  %799 = vrot.lane.b32.xlu1 %v732_v49, %s9038_s30 }
  0xc2   : > { %843 = vrot.lane.b32.xlu0 %v744_v52, %s9029_s21  ;;  %822 = vrot.lane.b32.xlu1 %v744_v52, %s9040_s29 }
  0xc6   : > { %862 = vrot.lane.b32.xlu0 %v732_v49, %s9042_s20  ;;  %841 = vrot.lane.b32.xlu1 %v732_v49, %s9029_s21 }
  0xca   : > { %885 = vrot.lane.b32.xlu0 %v744_v52, %s9033_s1  ;;  %864 = vrot.lane.b32.xlu1 %v744_v52, %s9042_s20 }
  0xce   : > { %904 = vrot.lane.b32.xlu0 %v732_v49, %s9031_s25  ;;  %883 = vrot.lane.b32.xlu1 %v732_v49, %s9033_s1 }
  0xd2   : > { %902 = vrot.lane.b32.xlu0 %v742_v51, %s9031_s25  ;;  %906 = vrot.lane.b32.xlu1 %v744_v52, %s9031_s25 }
  0xd6   : > { %1130 = vperm.xlu1 %7013, %v707_v55  }
 0x118   : > { %v756_v56 = vpop.permute.xlu1 %755  ;;  %v777_v57 = vpop.permute.xlu0 %776 }
 0x11c   : > { %v798_v58 = vpop.permute.xlu1 %797  ;;  %v819_v59 = vpop.permute.xlu0 %818 }
 0x120   : > { %v840_v60 = vpop.permute.xlu1 %839  ;;  %v861_v61 = vpop.permute.xlu0 %860 }
 0x124   : > { %v7347_v62 = vpop.permute.xlu1 %881  ;;  %v760_v63 = vpop.permute.xlu0 %759 }
 0x125   : > { %769 = vst.msk [vmem:[#allocation3 + $0x28] sm:$0xff] %vm747_vm1, %v760_v63 }
 0x128   : > { %v758_v0 = vpop.permute.xlu1 %757  ;;  %v779_v1 = vpop.permute.xlu0 %778 }
 0x129   : > { %v762_v2 = vsel %vm761_vm3, %v756_v56, %v758_v0  ;;  %v763_v3 = vsel %vm761_vm3, %v758_v0, %v760_v63  ;;  %v783_v4 = vsel %vm782_vm4, %v777_v57, %v779_v1 }
 0x12a   : > { %767 = vst [vmem:[#allocation3 + $0x18] sm:$0xff] %v762_v2  ;;  %768 = vst [vmem:[#allocation3 + $0x20] sm:$0xff] %v763_v3  ;;  %989 = vmatprep.subr.bf16.mxu0 %v763_v3 }
 0x12b   : > { %788 = vst [vmem:[#allocation3 + $0x30] sm:$0xff] %v783_v4  ;;  %990 = vmatpush1.bf16.msra.mxu0 %v762_v2 }
 0x12c   : > { %v781_v5 = vpop.permute.xlu1 %780  ;;  %v802_v6 = vpop.permute.xlu0 %801  ;;  %v928_v7 = vld [vmem:[#allocation3 + $0x28] sm:$0xff] }
 0x12d   : > { %v784_v8 = vsel %vm782_vm4, %v779_v1, %v781_v5  ;;  %790 = vst.msk [vmem:[#allocation3 + $0x40] sm:$0xff] %vm747_vm1, %v781_v5  ;;  %811 = vst.msk [vmem:[#allocation3 + $0x58] sm:$0xff] %vm747_vm1, %v802_v6  ;;  %1053 = vmatpush1.bf16.msra.mxu1 %v928_v7 }
 0x12e   : > { %789 = vst [vmem:[#allocation3 + $0x38] sm:$0xff] %v784_v8  ;;  %1054 = vmatprep.subr.bf16.mxu1 %v7131_v45  ;;  %991 = vmatprep.subr.bf16.mxu0 %v784_v8 }
 0x12f   : > { %992 = vmatpush1.bf16.msra.mxu0 %v783_v4 }
 0x130   : > { %v800_v9 = vpop.permute.xlu1 %799  ;;  %v821_v10 = vpop.permute.xlu0 %820 }
 0x131   : > { %v804_v11 = vsel %vm803_vm5, %v798_v58, %v800_v9  ;;  %v805_v12 = vsel %vm803_vm5, %v800_v9, %v802_v6  ;;  %v825_v13 = vsel %vm824_vm6, %v819_v59, %v821_v10 }
 0x132   : > { %809 = vst [vmem:[#allocation3 + $0x48] sm:$0xff] %v804_v11  ;;  %810 = vst [vmem:[#allocation3 + $0x50] sm:$0xff] %v805_v12  ;;  %993 = vmatprep.subr.bf16.mxu0 %v805_v12 }
 0x133   : > { %830 = vst [vmem:[#allocation3 + $0x60] sm:$0xff] %v825_v13  ;;  %994 = vmatpush1.bf16.msra.mxu0 %v804_v11 }
 0x134   : > { %v823_v14 = vpop.permute.xlu1 %822  ;;  %v844_v15 = vpop.permute.xlu0 %843  ;;  %v931_v16 = vld [vmem:[#allocation3 + $0x40] sm:$0xff]  ;;  %v934_v20 = vld [vmem:[#allocation3 + $0x58] sm:$0xff] }
 0x135   : > { %v826_v17 = vsel %vm824_vm6, %v821_v10, %v823_v14  ;;  %832 = vst.msk [vmem:[#allocation3 + $0x70] sm:$0xff] %vm747_vm1, %v823_v14  ;;  %853 = vst.msk [vmem:[#allocation3 + $0x88] sm:$0xff] %vm747_vm1, %v844_v15  ;;  %1055 = vmatpush1.bf16.msra.mxu1 %v931_v16 }
 0x136   : > { %831 = vst [vmem:[#allocation3 + $0x68] sm:$0xff] %v826_v17  ;;  %1056 = vmatprep.subr.bf16.mxu1 %v7131_v45  ;;  %995 = vmatprep.subr.bf16.mxu0 %v826_v17 }
 0x137   : > { %996 = vmatpush1.bf16.msra.mxu0 %v825_v13 }
 0x138   : > { %v842_v18 = vpop.permute.xlu1 %841  ;;  %v863_v19 = vpop.permute.xlu0 %862 }
 0x139   : > { %v846_v21 = vsel %vm845_vm7, %v840_v60, %v842_v18  ;;  %v847_v22 = vsel %vm845_vm7, %v842_v18, %v844_v15  ;;  %v867_v23 = vsel %vm866_vm8, %v861_v61, %v863_v19  ;;  %1057 = vmatpush1.bf16.msra.mxu1 %v934_v20 }
 0x13a   : > { %851 = vst [vmem:[#allocation3 + $0x78] sm:$0xff] %v846_v21  ;;  %852 = vst [vmem:[#allocation3 + $0x80] sm:$0xff] %v847_v22  ;;  %1058 = vmatprep.subr.bf16.mxu1 %v7131_v45  ;;  %997 = vmatprep.subr.bf16.mxu0 %v847_v22 }
 0x13b   : > { %872 = vst [vmem:[#allocation3 + $0x90] sm:$0xff] %v867_v23  ;;  %998 = vmatpush1.bf16.msra.mxu0 %v846_v21 }
 0x13c   : > { %v865_v24 = vpop.permute.xlu1 %864  ;;  %v886_v25 = vpop.permute.xlu0 %885  ;;  %v937_v29 = vld [vmem:[#allocation3 + $0x70] sm:$0xff]  ;;  %v940_v33 = vld [vmem:[#allocation3 + $0x88] sm:$0xff] }
 0x13d   : > { %v868_v30 = vsel %vm866_vm8, %v863_v19, %v865_v24  ;;  %874 = vst.msk [vmem:[#allocation3 + $0xa0] sm:$0xff] %vm747_vm1, %v865_v24  ;;  %895 = vst.msk [vmem:[#allocation3 + $0xb8] sm:$0xff] %vm747_vm1, %v886_v25  ;;  %1059 = vmatpush1.bf16.msra.mxu1 %v937_v29 }
 0x13e   : > { %873 = vst [vmem:[#allocation3 + $0x98] sm:$0xff] %v868_v30  ;;  %1060 = vmatprep.subr.bf16.mxu1 %v7131_v45  ;;  %999 = vmatprep.subr.bf16.mxu0 %v868_v30 }
 0x13f   : > { %1000 = vmatpush1.bf16.msra.mxu0 %v867_v23 }
 0x140   : > { %v884_v31 = vpop.permute.xlu1 %883  ;;  %v905_v32 = vpop.permute.xlu0 %904 }
 0x141   : > { %v888_v34 = vsel %vm887_vm9, %v7347_v62, %v884_v31  ;;  %v889_v35 = vsel %vm887_vm9, %v884_v31, %v886_v25  ;;  %1061 = vmatpush1.bf16.msra.mxu1 %v940_v33 }
 0x142   : > { %893 = vst [vmem:[#allocation3 + $0xa8] sm:$0xff] %v888_v34  ;;  %894 = vst [vmem:[#allocation3 + $0xb0] sm:$0xff] %v889_v35  ;;  %1062 = vmatprep.subr.bf16.mxu1 %v7131_v45  ;;  %1001 = vmatprep.subr.bf16.mxu0 %v889_v35  ;;  %v7020_v35 = vld [vmem:[%s9059_s24 + $0x10] ss:$8 sps:$4 sm:$0xff]  }
 0x143   : > { %1002 = vmatpush1.bf16.msra.mxu0 %v888_v34  ;;  %v7018_v34 = vld [vmem:[%s9059_s24 + $0x14] ss:$8 sps:$4 sm:$0xff]  }
 0x144   : > { %v907_v36 = vpop.permute.xlu1 %906  ;;  %v903_v37 = vpop.permute.xlu0 %902  ;;  %v943_v38 = vld [vmem:[#allocation3 + $0xa0] sm:$0xff]  ;;  %v946_v42 = vld [vmem:[#allocation3 + $0xb8] sm:$0xff] }
 0x145   : > { %v910_v39 = vsel %vm9037_vm10, %v905_v32, %v907_v36  ;;  %916 = vst.msk [vmem:[#allocation3 + $0xd0] sm:$0xff] %vm747_vm1, %v907_v36  ;;  %v909_v40 = vsel %vm9037_vm10, %v903_v37, %v905_v32  ;;  %1063 = vmatpush1.bf16.msra.mxu1 %v943_v38 }
 0x146   : > { %915 = vst [vmem:[#allocation3 + $0xc8] sm:$0xff] %v910_v39  ;;  %914 = vst [vmem:[#allocation3 + $0xc0] sm:$0xff] %v909_v40  ;;  %1064 = vmatprep.subr.bf16.mxu1 %v7131_v45  ;;  %1003 = vmatprep.subr.bf16.mxu0 %v910_v39 }
 0x147   : > { %1004 = vmatpush1.bf16.msra.mxu0 %v909_v40 }
 0x149   : > { %1065 = vmatpush1.bf16.msra.mxu1 %v946_v42  ;;  %v7023_v42 = vld [vmem:[%s9059_s24 + $0x20] ss:$8 sps:$4 sm:$0xff]  }
 0x14a   : > { %1066 = vmatprep.subr.bf16.mxu1 %v7131_v45  ;;  %1020 = vmatmul.mubr.bf16.vlgmr.msra.gmra.mrb[0].mxu0 %v7015_v41 }
 0x14b   : > { %6859 = vmatprep.mubr.msk.bf16.mxu0 %vm977_vm2, %v7018_v34 }
 0x14c   : > { %v949_v43 = vld [vmem:[#allocation3 + $0xd0] sm:$0xff] }
 0x14d   : > { %1067 = vmatpush1.bf16.msra.mxu1 %v949_v43 }
 0x14e   : > { %1478 = vmatprep.subr.bf16.mxu1 %v7131_v45 }
 0x150   : > { %1083 = vmatmul.mubr.bf16.vlgmr.msra.gmra.mrb[0].mxu1 %v7015_v41  ;;  %v7021_v41 = vld [vmem:[%s9059_s24 + $0x24] ss:$8 sps:$4 sm:$0xff]  }
 0x151   : > { %6862 = vmatprep.mubr.msk.bf16.mxu1 %vm977_vm2, %v7018_v34 }
 0x152   : > { %1030 = vmatmul.mubr.bf16.gmra.mrb[4].mxu0 %v7020_v35 }
 0x153   : > { %6860 = vmatprep.mubr.msk.bf16.mxu0 %vm977_vm2, %v7021_v41 }
 0x155   : > { %v1131_v44 = vpop.permute.xlu1 %1130 }
 0x158   : > { %1091 = vmatmul.mubr.bf16.gmra.mrb[4].mxu1 %v7020_v35 }
 0x159   : > { %6863 = vmatprep.mubr.msk.bf16.mxu1 %vm977_vm2, %v7021_v41 }
 0x15a   : > { %1040 = vmatmul.mubr.bf16.gmra.mrb[8].mxu0 %v7023_v42 }
 0x160   : > { %1099 = vmatmul.mubr.bf16.gmra.mrb[8].mxu1 %v7023_v42 }
 0x21d   : > { %v1021_v46 = vpop.f32.mrb[0].mxu0 }
 0x21e   : > { %v1023_v47 = vpop.f32.mrb[1].mxu0  ;;  %v1133_v48 = vadd.f32 %v1131_v44, %v1021_v46 }
 0x21f   : > { %v7385_v49 = vpop.f32.mrb[2].mxu0  ;;  %v1134_v50 = vadd.f32 %v1131_v44, %v1023_v47 }
 0x220   : > { %v7387_v51 = vpop.f32.mrb[3].mxu0  ;;  %vm1136_vm11 = vcmp.ge.f32.partialorder %v1133_v48, 0.0  ;;  %v1139_v52 = vmul.f32 0.2, %v1133_v48 }
 0x221   : > { %vm1137_vm12 = vcmp.ge.f32.partialorder %v1134_v50, 0.0  ;;  %v1140_v53 = vmul.f32 0.2, %v1134_v50 }
 0x222   : > { %v1142_v54 = vsel %vm1136_vm11, %v1133_v48, %v1139_v52  ;;  %vm1165_vm11 = vcmask 1043608   ;;  %v7026_v48 = vld [vmem:[%s9060_s22 + $0x4] ss:$8 sps:$4 sm:$0xff]  }
 0x223   : > { %v1084_v55 = vpop.f32.mrb[0].mxu1  ;;  %v1145_v56 = vmul.f32 %v7274_v26, %v1142_v54  ;;  %v1143_v57 = vsel %vm1137_vm12, %v1134_v50, %v1140_v53  ;;  %vm1168_vm12 = vcmask 412672   ;;  %v708_v50 = vld [vmem:[%s9008_s6 + $0x8] sm:$0xff]  ;;  %6873 = vmatprep.mubr.msk.bf16.mxu1 %vm977_vm2, %v7026_v48  ;;  %6870 = vmatprep.mubr.msk.bf16.mxu0 %vm977_vm2, %v7026_v48 }
 0x224   : > { %1109 = vst.msk [vmem:[#allocation2 + $0x10] sm:$0xff] %vm747_vm1, %v1084_v55  ;;  %v1086_v58 = vpop.f32.mrb[1].mxu1  ;;  %v1146_v59 = vmul.f32 %v7276_v27, %v1143_v57 }
 0x225   : > { %v1087_v60 = vpop.f32.mrb[2].mxu1  ;;  %v1148_v61 = vpack.c.bf16 %v1145_v56, %v1145_v56 }
 0x226   : > { %1112 = vst.msk [vmem:[#allocation2 + $0x28] sm:$0xff] %vm747_vm1, %v1087_v60  ;;  %v1089_v62 = vpop.f32.mrb[3].mxu1  ;;  %v1149_v63 = vpack.c.bf16 %v1146_v59, %v1146_v59 }
 0x227   : > { %1154 = vrot.lane.b32.xlu0 %v1148_v61, %s9027_s26 }
 0x228   : > { %1156 = vrot.lane.b32.xlu1 %v1149_v63, %s9027_s26 }
 0x22b   : > { %v1127_v0 = vld [vmem:[#allocation2 + $0x10] sm:$0xff] }
 0x22c   : > { %v1135_v1 = vadd.f32 %v1131_v44, %v1127_v0 }
 0x22e   : > { %vm1138_vm13 = vcmp.ge.f32.partialorder %v1135_v1, 0.0  ;;  %v1141_v2 = vmul.f32 0.2, %v1135_v1 }
 0x230   : > { %v1144_v3 = vsel %vm1138_vm13, %v1135_v1, %v1141_v2  ;;  %vm1175_vm13 = vcmask 257024  }
 0x231   : > { %v1147_v4 = vmul.f32 %v7278_v28, %v1144_v3 }
 0x233   : > { %v1150_v5 = vpack.c.bf16 %v1147_v4, %v1147_v4 }
 0x235   : > { %1158 = vrot.lane.b32.xlu0 %v1150_v5, %s9027_s26  ;;  %s9072_s26 = smov 92  }
 0x299   : > { %v1155_v6 = vpop.permute.xlu0 %1154 }
 0x29a   : > { %1166 = vst.msk [vmem:[#allocation4] sm:$0xf] %vm1165_vm11, %v1155_v6  ;;  %v1157_v7 = vpop.permute.xlu1 %1156 }
 0x29b   : > { %v1160_v8 = vsel %vm731_vm15, %v1155_v6, %v1157_v7 }
 0x29c   : > { %1167 = vst [vmem:[#allocation4 + $0x8] sm:$0xf] %v1160_v8 }
 0x2a1   : > { %v1197_v9 = vld [vmem:[#allocation4] sm:$0xf] }
 0x2a2   : > { %v1177_v10 = vld [vmem:[#allocation4] sm:$0xf]  ;;  %1203 = vrot.lane.b32.xlu0 %v1197_v9, %s9044_s27 }
 0x2a3   : > { %1183 = vrot.lane.b32.xlu1 %v1177_v10, %s9025_s28  ;;  %v1171_v11 = vld [vmem:[#allocation4 + $0x8] sm:$0xf]  ;;  %v1170_v12 = vld [vmem:[#allocation4] sm:$0xf] }
 0x2a4   : > { %1174 = vst [vmem:[#allocation3 + $0x8] sm:$0xf] %v1171_v11  ;;  %1173 = vst [vmem:[#allocation3] sm:$0xf] %v1170_v12  ;;  %v1237_v13 = vld [vmem:[#allocation4] sm:$0xf] }
 0x2a5   : > { %v1217_v14 = vld [vmem:[#allocation4] sm:$0xf]  ;;  %v1178_v24 = vld [vmem:[#allocation4 + $0x8] sm:$0xf] }
 0x2a6   : > { %1243 = vrot.lane.b32.xlu0 %v1237_v13, %s9040_s29  ;;  %v1277_v17 = vld [vmem:[#allocation4] sm:$0xf]  ;;  %v1198_v25 = vld [vmem:[#allocation4 + $0x8] sm:$0xf] }
 0x2a7   : > { %1223 = vrot.lane.b32.xlu1 %v1217_v14, %s9038_s30  ;;  %v1159_v15 = vpop.permute.xlu0 %1158  ;;  %v1257_v18 = vld [vmem:[#allocation4] sm:$0xf]  ;;  %v1218_v32 = vld [vmem:[#allocation4 + $0x8] sm:$0xf] }
 0x2a8   : > { %v1161_v16 = vsel %vm731_vm15, %v1157_v7, %v1159_v15  ;;  %v1297_v21 = vld [vmem:[#allocation4] sm:$0xf]  ;;  %v1238_v33 = vld [vmem:[#allocation4 + $0x8] sm:$0xf] }
 0x2a9   : > { %1169 = vst.msk [vmem:[#allocation4 + $0x10] sm:$0xf] %vm1168_vm12, %v1161_v16  ;;  %v1258_v38 = vld [vmem:[#allocation4 + $0x8] sm:$0xf]  ;;  %v1317_v52 = vld [vmem:[#allocation4] sm:$0xf] }
 0x2aa   : > { %1283 = vrot.lane.b32.xlu0 %v1277_v17, %s9042_s20  ;;  %v1278_v39 = vld [vmem:[#allocation4 + $0x8] sm:$0xf] }
 0x2ab   : > { %1263 = vrot.lane.b32.xlu1 %v1257_v18, %s9029_s21  ;;  %v1358_v19 = vld [vmem:[#allocation3 + $0x8] sm:$0xff]  ;;  %v1357_v20 = vld [vmem:[#allocation3] sm:$0xff] }
 0x2ac   : > { %1417 = vmatprep.subr.bf16.mxu0 %v1358_v19  ;;  %v1298_v44 = vld [vmem:[#allocation4 + $0x8] sm:$0xf] }
 0x2ad   : > { %1418 = vmatpush1.bf16.msra.mxu0 %v1357_v20  ;;  %v1318_v46 = vld [vmem:[#allocation4 + $0x8] sm:$0xf] }
 0x2af   : > { %1303 = vrot.lane.b32.xlu1 %v1297_v21, %s9033_s1 }
 0x2b0   : > { %v1179_v22 = vld [vmem:[#allocation4 + $0x10] sm:$0xf] }
 0x2b1   : > { %v1172_v23 = vld [vmem:[#allocation4 + $0x10] sm:$0xf]  ;;  %1187 = vrot.lane.b32.xlu0 %v1179_v22, %s9025_s28 }
 0x2b2   : > { %1176 = vst.msk [vmem:[#allocation3 + $0x10] sm:$0xf] %vm1175_vm13, %v1172_v23  ;;  %v1199_v29 = vld [vmem:[#allocation4 + $0x10] sm:$0xf] }
 0x2b3   : > { %1185 = vrot.lane.b32.xlu1 %v1178_v24, %s9025_s28  ;;  %v1219_v31 = vld [vmem:[#allocation4 + $0x10] sm:$0xf]  ;;  %s9063_s28 = smov 108  }
 0x2b4   : > { %v1239_v36 = vld [vmem:[#allocation4 + $0x10] sm:$0xf] }
 0x2b5   : > { %1205 = vrot.lane.b32.xlu0 %v1198_v25, %s9044_s27  ;;  %v1259_v37 = vld [vmem:[#allocation4 + $0x10] sm:$0xf] }
 0x2b6   : > { %v1279_v40 = vld [vmem:[#allocation4 + $0x10] sm:$0xf] }
 0x2b7   : > { %1207 = vrot.lane.b32.xlu1 %v1199_v29, %s9044_s27  ;;  %v1299_v43 = vld [vmem:[#allocation4 + $0x10] sm:$0xf] }
 0x2b8   : > { %v1319_v47 = vld [vmem:[#allocation4 + $0x10] sm:$0xf] }
 0x2b9   : > { %v1359_v30 = vld [vmem:[#allocation3 + $0x10] sm:$0xff]  ;;  %1227 = vrot.lane.b32.xlu0 %v1219_v31, %s9038_s30 }
 0x2ba   : > { %1479 = vmatpush1.bf16.msra.mxu1 %v1359_v30 }
 0x2bb   : > { %1225 = vrot.lane.b32.xlu1 %v1218_v32, %s9038_s30  ;;  %1480 = vmatprep.subr.bf16.mxu1 %v7131_v45 }
 0x2bd   : > { %1245 = vrot.lane.b32.xlu0 %v1238_v33, %s9040_s29 }
 0x2bf   : > { %1247 = vrot.lane.b32.xlu1 %v1239_v36, %s9040_s29 }
 0x2c1   : > { %1267 = vrot.lane.b32.xlu0 %v1259_v37, %s9029_s21 }
 0x2c3   : > { %1265 = vrot.lane.b32.xlu1 %v1258_v38, %s9029_s21  ;;  %s9065_s21 = smov 90  }
 0x2c5   : > { %1285 = vrot.lane.b32.xlu0 %v1278_v39, %s9042_s20 }
 0x2c7   : > { %1287 = vrot.lane.b32.xlu1 %v1279_v40, %s9042_s20 }
 0x2c9   : > { %1307 = vrot.lane.b32.xlu0 %v1299_v43, %s9033_s1 }
 0x2cb   : > { %1305 = vrot.lane.b32.xlu1 %v1298_v44, %s9033_s1  ;;  %s9061_s1 = smov 19  }
 0x2cd   : > { %1325 = vrot.lane.b32.xlu0 %v1318_v46, %s9031_s25 }
 0x2cf   : > { %1327 = vrot.lane.b32.xlu1 %v1319_v47, %s9031_s25 }
 0x2d1   : > { %1323 = vrot.lane.b32.xlu0 %v1317_v52, %s9031_s25  ;;  %s9062_s25 = smov 127  }
 0x2d3   : > { %1569 = vperm.xlu1 %7013, %v708_v50  }
 0x314   : > { %v1204_v53 = vpop.permute.xlu0 %1203 }
 0x315   : > { %v1184_v54 = vpop.permute.xlu1 %1183 }
 0x318   : > { %v1244_v56 = vpop.permute.xlu0 %1243 }
 0x319   : > { %v1224_v55 = vpop.permute.xlu1 %1223 }
 0x31c   : > { %v1284_v58 = vpop.permute.xlu0 %1283 }
 0x31d   : > { %v1264_v57 = vpop.permute.xlu1 %1263 }
 0x321   : > { %v7451_v59 = vpop.permute.xlu1 %1303 }
 0x323   : > { %v1188_v60 = vpop.permute.xlu0 %1187 }
 0x324   : > { %1196 = vst.msk [vmem:[#allocation3 + $0x28] sm:$0xf] %vm1175_vm13, %v1188_v60 }
 0x325   : > { %v1186_v61 = vpop.permute.xlu1 %1185 }
 0x326   : > { %v1189_v62 = vsel %vm761_vm3, %v1184_v54, %v1186_v61  ;;  %v1190_v63 = vsel %vm761_vm3, %v1186_v61, %v1188_v60  ;;  %v1356_v61 = vld [vmem:[%s9060_s22 + $0x20] sm:$0xff] }
 0x327   : > { %1194 = vst [vmem:[#allocation3 + $0x18] sm:$0xf] %v1189_v62  ;;  %1195 = vst [vmem:[#allocation3 + $0x20] sm:$0xf] %v1190_v63  ;;  %v1206_v0 = vpop.permute.xlu0 %1205  ;;  %v7029_v62 = vld [vmem:[%s9060_s22 + $0x10] ss:$8 sps:$4 sm:$0xff]   ;;  %v6869_v63 = vcombine.high %v1356_v61, %v1356_v61 }
 0x328   : > { %v1209_v1 = vsel %vm782_vm4, %v1204_v53, %v1206_v0 }
 0x329   : > { %v1208_v2 = vpop.permute.xlu1 %1207  ;;  %1214 = vst [vmem:[#allocation3 + $0x30] sm:$0xf] %v1209_v1  ;;  %v1031_v1 = vpop.f32.mrb[4].mxu0 }
 0x32a   : > { %v1210_v3 = vsel %vm782_vm4, %v1206_v0, %v1208_v2  ;;  %1216 = vst.msk [vmem:[#allocation3 + $0x40] sm:$0xf] %vm1175_vm13, %v1208_v2  ;;  %v6868_v0 = vcombine.low %v1356_v61, %v1356_v61  ;;  %v1033_v2 = vpop.f32.mrb[5].mxu0 }
 0x32b   : > { %1215 = vst [vmem:[#allocation3 + $0x38] sm:$0xf] %v1210_v3  ;;  %v1228_v4 = vpop.permute.xlu0 %1227  ;;  %v1362_v5 = vld [vmem:[#allocation3 + $0x28] sm:$0xff]  ;;  %v1092_v3 = vpop.f32.mrb[4].mxu1 }
 0x32c   : > { %1236 = vst.msk [vmem:[#allocation3 + $0x58] sm:$0xf] %vm1175_vm13, %v1228_v4  ;;  %1481 = vmatpush1.bf16.msra.mxu1 %v1362_v5  ;;  %v1094_v5 = vpop.f32.mrb[5].mxu1 }
 0x32d   : > { %v1226_v6 = vpop.permute.xlu1 %1225  ;;  %1482 = vmatprep.subr.bf16.mxu1 %v7131_v45  ;;  %1115 = vst.msk [vmem:[#allocation2 + $0x40] sm:$0xff] %vm747_vm1, %v1092_v3 }
 0x32e   : > { %v1229_v7 = vsel %vm803_vm5, %v1224_v55, %v1226_v6  ;;  %v1230_v8 = vsel %vm803_vm5, %v1226_v6, %v1228_v4  ;;  %v1361_v9 = vld [vmem:[#allocation3 + $0x20] sm:$0xff]  ;;  %v1360_v10 = vld [vmem:[#allocation3 + $0x18] sm:$0xff]  ;;  %v1035_v4 = vpop.f32.mrb[6].mxu0 }
 0x32f   : > { %1234 = vst [vmem:[#allocation3 + $0x48] sm:$0xf] %v1229_v7  ;;  %1235 = vst [vmem:[#allocation3 + $0x50] sm:$0xf] %v1230_v8  ;;  %1419 = vmatprep.subr.bf16.mxu0 %v1361_v9  ;;  %v1246_v11 = vpop.permute.xlu0 %1245  ;;  %v1037_v6 = vpop.f32.mrb[7].mxu0 }
 0x330   : > { %1420 = vmatpush1.bf16.msra.mxu0 %v1360_v10  ;;  %v1249_v12 = vsel %vm824_vm6, %v1244_v56, %v1246_v11  ;;  %v1363_v17 = vld [vmem:[#allocation3 + $0x30] sm:$0xff]  ;;  %v1095_v7 = vpop.f32.mrb[6].mxu1  ;;  %v1041_v9 = vpop.f32.mrb[8].mxu0 }
 0x331   : > { %v1248_v13 = vpop.permute.xlu1 %1247  ;;  %v1365_v14 = vld [vmem:[#allocation3 + $0x40] sm:$0xff]  ;;  %1254 = vst [vmem:[#allocation3 + $0x60] sm:$0xf] %v1249_v12  ;;  %1118 = vst.msk [vmem:[#allocation2 + $0x58] sm:$0xff] %vm747_vm1, %v1095_v7  ;;  %v1097_v8 = vpop.f32.mrb[7].mxu1 }
 0x332   : > { %v1250_v15 = vsel %vm824_vm6, %v1246_v11, %v1248_v13  ;;  %1256 = vst.msk [vmem:[#allocation3 + $0x70] sm:$0xf] %vm1175_vm13, %v1248_v13  ;;  %1483 = vmatpush1.bf16.msra.mxu1 %v1365_v14  ;;  %v1364_v16 = vld [vmem:[#allocation3 + $0x38] sm:$0xff]  ;;  %v1100_v10 = vpop.f32.mrb[8].mxu1  ;;  %v1043_v11 = vpop.f32.mrb[9].mxu0 }
 0x333   : > { %1255 = vst [vmem:[#allocation3 + $0x68] sm:$0xf] %v1250_v15  ;;  %1421 = vmatprep.subr.bf16.mxu0 %v1364_v16  ;;  %1484 = vmatprep.subr.bf16.mxu1 %v7131_v45  ;;  %v1268_v18 = vpop.permute.xlu0 %1267  ;;  %v1368_v19 = vld [vmem:[#allocation3 + $0x58] sm:$0xff]  ;;  %1121 = vst.msk [vmem:[#allocation2 + $0x70] sm:$0xff] %vm747_vm1, %v1100_v10  ;;  %v1102_v12 = vpop.f32.mrb[9].mxu1 }
 0x334   : > { %1422 = vmatpush1.bf16.msra.mxu0 %v1363_v17  ;;  %1276 = vst.msk [vmem:[#allocation3 + $0x88] sm:$0xf] %vm1175_vm13, %v1268_v18  ;;  %v7505_v13 = vpop.f32.mrb[10].mxu0  ;;  %v1103_v14 = vpop.f32.mrb[10].mxu1  ;;  %v1339_v17 = vld [vmem:[#allocation2 + $0x28] sm:$0xff] }
 0x335   : > { %v1266_v20 = vpop.permute.xlu1 %1265  ;;  %v7507_v15 = vpop.f32.mrb[11].mxu0  ;;  %1124 = vst.msk [vmem:[#allocation2 + $0x88] sm:$0xff] %vm747_vm1, %v1103_v14 }
 0x336   : > { %v1269_v21 = vsel %vm845_vm7, %v1264_v57, %v1266_v20  ;;  %v1270_v22 = vsel %vm845_vm7, %v1266_v20, %v1268_v18  ;;  %1485 = vmatpush1.bf16.msra.mxu1 %v1368_v19  ;;  %v1367_v23 = vld [vmem:[#allocation3 + $0x50] sm:$0xff]  ;;  %v1366_v24 = vld [vmem:[#allocation3 + $0x48] sm:$0xff]  ;;  %v1105_v16 = vpop.f32.mrb[11].mxu1 }
 0x337   : > { %1274 = vst [vmem:[#allocation3 + $0x78] sm:$0xf] %v1269_v21  ;;  %1275 = vst [vmem:[#allocation3 + $0x80] sm:$0xf] %v1270_v22  ;;  %1423 = vmatprep.subr.bf16.mxu0 %v1367_v23  ;;  %1486 = vmatprep.subr.bf16.mxu1 %v7131_v45  ;;  %v1286_v25 = vpop.permute.xlu0 %1285  ;;  %v7024_v57 = vld [vmem:[%s9060_s22] ss:$8 sps:$4 sm:$0xff]  }
 0x338   : > { %1424 = vmatpush1.bf16.msra.mxu0 %v1366_v24  ;;  %v1289_v29 = vsel %vm866_vm8, %v1284_v58, %v1286_v25  ;;  %v1369_v34 = vld [vmem:[#allocation3 + $0x60] sm:$0xff]  ;;  %v1342_v21 = vld [vmem:[#allocation2 + $0x40] sm:$0xff] }
 0x339   : > { %v1288_v30 = vpop.permute.xlu1 %1287  ;;  %v1371_v31 = vld [vmem:[#allocation3 + $0x70] sm:$0xff]  ;;  %1294 = vst [vmem:[#allocation3 + $0x90] sm:$0xf] %v1289_v29 }
 0x33a   : > { %v1290_v32 = vsel %vm866_vm8, %v1286_v25, %v1288_v30  ;;  %1296 = vst.msk [vmem:[#allocation3 + $0xa0] sm:$0xf] %vm1175_vm13, %v1288_v30  ;;  %1487 = vmatpush1.bf16.msra.mxu1 %v1371_v31  ;;  %v1370_v33 = vld [vmem:[#allocation3 + $0x68] sm:$0xff] }
 0x33b   : > { %1295 = vst [vmem:[#allocation3 + $0x98] sm:$0xf] %v1290_v32  ;;  %1425 = vmatprep.subr.bf16.mxu0 %v1370_v33  ;;  %1488 = vmatprep.subr.bf16.mxu1 %v7131_v45  ;;  %v1308_v35 = vpop.permute.xlu0 %1307  ;;  %v1374_v36 = vld [vmem:[#allocation3 + $0x88] sm:$0xff] }
 0x33c   : > { %1426 = vmatpush1.bf16.msra.mxu0 %v1369_v34  ;;  %1316 = vst.msk [vmem:[#allocation3 + $0xb8] sm:$0xf] %vm1175_vm13, %v1308_v35 }
 0x33d   : > { %v1306_v37 = vpop.permute.xlu1 %1305 }
 0x33e   : > { %v1309_v38 = vsel %vm887_vm9, %v7451_v59, %v1306_v37  ;;  %v1310_v39 = vsel %vm887_vm9, %v1306_v37, %v1308_v35  ;;  %1489 = vmatpush1.bf16.msra.mxu1 %v1374_v36  ;;  %v1373_v40 = vld [vmem:[#allocation3 + $0x80] sm:$0xff]  ;;  %v1372_v41 = vld [vmem:[#allocation3 + $0x78] sm:$0xff] }
 0x33f   : > { %1314 = vst [vmem:[#allocation3 + $0xa8] sm:$0xf] %v1309_v38  ;;  %1315 = vst [vmem:[#allocation3 + $0xb0] sm:$0xf] %v1310_v39  ;;  %1427 = vmatprep.subr.bf16.mxu0 %v1373_v40  ;;  %1490 = vmatprep.subr.bf16.mxu1 %v7131_v45  ;;  %v1326_v42 = vpop.permute.xlu0 %1325  ;;  %v7027_v59 = vld [vmem:[%s9060_s22 + $0x14] ss:$8 sps:$4 sm:$0xff]  }
 0x340   : > { %1428 = vmatpush1.bf16.msra.mxu0 %v1372_v41  ;;  %v1375_v48 = vld [vmem:[#allocation3 + $0x90] sm:$0xff]  ;;  %v1345_v38 = vld [vmem:[#allocation2 + $0x58] sm:$0xff] }
 0x341   : > { %v1328_v43 = vpop.permute.xlu1 %1327  ;;  %v1377_v44 = vld [vmem:[#allocation3 + $0xa0] sm:$0xff] }
 0x342   : > { %v1330_v46 = vsel %vm9037_vm10, %v1326_v42, %v1328_v43  ;;  %1336 = vst.msk [vmem:[#allocation3 + $0xd0] sm:$0xf] %vm1175_vm13, %v1328_v43  ;;  %1491 = vmatpush1.bf16.msra.mxu1 %v1377_v44  ;;  %v1376_v47 = vld [vmem:[#allocation3 + $0x98] sm:$0xff]  ;;  %v1348_v43 = vld [vmem:[#allocation2 + $0x70] sm:$0xff] }
 0x343   : > { %1335 = vst [vmem:[#allocation3 + $0xc8] sm:$0xf] %v1330_v46  ;;  %1429 = vmatprep.subr.bf16.mxu0 %v1376_v47  ;;  %1492 = vmatprep.subr.bf16.mxu1 %v7131_v45  ;;  %v1324_v50 = vpop.permute.xlu0 %1323  ;;  %v1380_v52 = vld [vmem:[#allocation3 + $0xb8] sm:$0xff] }
 0x344   : > { %1430 = vmatpush1.bf16.msra.mxu0 %v1375_v48  ;;  %v1329_v53 = vsel %vm9037_vm10, %v1324_v50, %v1326_v42 }
 0x345   : > { %1334 = vst [vmem:[#allocation3 + $0xc0] sm:$0xf] %v1329_v53 }
 0x346   : > { %1493 = vmatpush1.bf16.msra.mxu1 %v1380_v52  ;;  %v1379_v54 = vld [vmem:[#allocation3 + $0xb0] sm:$0xff]  ;;  %v1378_v55 = vld [vmem:[#allocation3 + $0xa8] sm:$0xff] }
 0x347   : > { %1431 = vmatprep.subr.bf16.mxu0 %v1379_v54  ;;  %1494 = vmatprep.subr.bf16.mxu1 %v7131_v45 }
 0x348   : > { %1432 = vmatpush1.bf16.msra.mxu0 %v1378_v55 }
 0x349   : > { %v1383_v56 = vld [vmem:[#allocation3 + $0xd0] sm:$0xff] }
 0x34a   : > { %1495 = vmatpush1.bf16.msra.mxu1 %v1383_v56  ;;  %v1382_v58 = vld [vmem:[#allocation3 + $0xc8] sm:$0xff] }
 0x34b   : > { %1433 = vmatprep.subr.bf16.mxu0 %v1382_v58  ;;  %1893 = vmatprep.subr.bf16.mxu1 %v7131_v45 }
 0x34c   : > { %v1381_v60 = vld [vmem:[#allocation3 + $0xc0] sm:$0xff] }
 0x34d   : > { %1511 = vmatmul.mubr.bf16.vlgmr.msra.gmra.mrb[12].mxu1 %v7024_v57  ;;  %1434 = vmatpush1.bf16.msra.mxu0 %v1381_v60 }
 0x34e   : > { %6874 = vmatprep.mubr.msk.bf16.mxu1 %vm977_vm2, %v7027_v59 }
 0x350   : > { %1450 = vmatmul.mubr.bf16.vlgmr.msra.gmra.mrb[12].mxu0 %v7024_v57 }
 0x351   : > { %6871 = vmatprep.mubr.msk.bf16.mxu0 %vm977_vm2, %v7027_v59 }
 0x352   : > { %v1570_v31 = vpop.permute.xlu1 %1569 }
 0x355   : > { %1519 = vmatmul.mubr.bf16.gmra.mrb[16].mxu1 %v7029_v62 }
 0x356   : > { %6875 = vmatprep.mubr.msk.bf16.mxu1 %vm977_vm2, %v6869_v63 }
 0x358   : > { %1460 = vmatmul.mubr.bf16.gmra.mrb[16].mxu0 %v7029_v62 }
 0x359   : > { %6872 = vmatprep.mubr.msk.bf16.mxu0 %vm977_vm2, %v6869_v63 }
 0x35d   : > { %1527 = vmatmul.mubr.bf16.gmra.mrb[20].mxu1 %v6868_v0 }
 0x360   : > { %1470 = vmatmul.mubr.bf16.gmra.mrb[20].mxu0 %v6868_v0 }
 0x420   : > { %v1512_v18 = vpop.f32.mrb[12].mxu1 }
 0x421   : > { %v1536_v19 = vadd.f32 %v1512_v18, %v1339_v17  ;;  %v1514_v20 = vpop.f32.mrb[13].mxu1 }
 0x422   : > { %v1515_v22 = vpop.f32.mrb[14].mxu1 }
 0x423   : > { %1551 = vst.msk [vmem:[#allocation2 + $0x28] sm:$0xff] %vm747_vm1, %v1536_v19  ;;  %v1539_v23 = vadd.f32 %v1515_v22, %v1342_v21  ;;  %v1517_v24 = vpop.f32.mrb[15].mxu1  ;;  %v1451_v25 = vpop.f32.mrb[12].mxu0 }
 0x424   : > { %v1534_v29 = vadd.f32 %v1451_v25, %v7385_v49  ;;  %v1453_v30 = vpop.f32.mrb[13].mxu0 }
 0x425   : > { %1554 = vst.msk [vmem:[#allocation2 + $0x40] sm:$0xff] %vm747_vm1, %v1539_v23  ;;  %v1535_v32 = vadd.f32 %v1453_v30, %v7387_v51  ;;  %v1455_v33 = vpop.f32.mrb[14].mxu0 }
 0x426   : > { %v7514_v34 = vadd.f32 %v1455_v33, %v1031_v1  ;;  %v1457_v35 = vpop.f32.mrb[15].mxu0  ;;  %v1572_v36 = vadd.f32 %v1570_v31, %v1534_v29 }
 0x427   : > { %v7516_v37 = vadd.f32 %v1457_v35, %v1033_v2  ;;  %v1573_v40 = vadd.f32 %v1570_v31, %v1535_v32 }
 0x428   : > { %v1520_v39 = vpop.f32.mrb[16].mxu1  ;;  %vm1575_vm0 = vcmp.ge.f32.partialorder %v1572_v36, 0.0  ;;  %v1578_v49 = vmul.f32 0.2, %v1572_v36 }
 0x429   : > { %v1542_v41 = vadd.f32 %v1520_v39, %v1345_v38  ;;  %v1522_v42 = vpop.f32.mrb[17].mxu1  ;;  %vm1576_vm14 = vcmp.ge.f32.partialorder %v1573_v40, 0.0  ;;  %v1579_v46 = vmul.f32 0.2, %v1573_v40 }
 0x42a   : > { %v1523_v44 = vpop.f32.mrb[18].mxu1  ;;  %v1566_v47 = vld [vmem:[#allocation2 + $0x28] sm:$0xff]  ;;  %v1581_v50 = vsel %vm1575_vm0, %v1572_v36, %v1578_v49 }
 0x42b   : > { %1557 = vst.msk [vmem:[#allocation2 + $0x58] sm:$0xff] %vm747_vm1, %v1542_v41  ;;  %v1545_v51 = vadd.f32 %v1523_v44, %v1348_v43  ;;  %v1525_v48 = vpop.f32.mrb[19].mxu1  ;;  %v1574_v52 = vadd.f32 %v1570_v31, %v1566_v47  ;;  %v1461_v53 = vpop.f32.mrb[16].mxu0  ;;  %v1584_v54 = vmul.f32 %v7274_v26, %v1581_v50  ;;  %v1582_v55 = vsel %vm1576_vm14, %v1573_v40, %v1579_v46 }
 0x42c   : > { %v7520_v56 = vadd.f32 %v1461_v53, %v1035_v4  ;;  %v1463_v57 = vpop.f32.mrb[17].mxu0  ;;  %v1585_v58 = vmul.f32 %v7276_v27, %v1582_v55  ;;  %v1351_v4 = vld [vmem:[#allocation2 + $0x88] sm:$0xff]  ;;  %vm9067_vm14 = vcmask 736256  }
 0x42d   : > { %1560 = vst.msk [vmem:[#allocation2 + $0x70] sm:$0xff] %vm747_vm1, %v1545_v51  ;;  %vm1577_vm10 = vcmp.ge.f32.partialorder %v1574_v52, 0.0  ;;  %v1580_v59 = vmul.f32 0.2, %v1574_v52  ;;  %v7524_v60 = vadd.f32 %v1463_v57, %v1037_v6  ;;  %v1465_v61 = vpop.f32.mrb[18].mxu0  ;;  %v1587_v62 = vpack.c.bf16 %v1584_v54, %v1584_v54  ;;  %vm9068_vm0 = vmmov %vm9067_vm14 }
 0x42e   : > { %v7526_v63 = vadd.f32 %v1465_v61, %v1041_v9  ;;  %v1467_v0 = vpop.f32.mrb[19].mxu0  ;;  %v1588_v1 = vpack.c.bf16 %v1585_v58, %v1585_v58 }
 0x42f   : > { %v1583_v2 = vsel %vm1577_vm10, %v1574_v52, %v1580_v59  ;;  %v7528_v3 = vadd.f32 %v1467_v0, %v1043_v11  ;;  %1593 = vrot.lane.b32.xlu0 %v1587_v62, %s9061_s1  ;;  %v709_v62 = vld [vmem:[%s9008_s6 + $0x10] sm:$0xff] }
 0x430   : > { %v1528_v5 = vpop.f32.mrb[20].mxu1  ;;  %v1586_v7 = vmul.f32 %v7278_v28, %v1583_v2  ;;  %1595 = vrot.lane.b32.xlu1 %v1588_v1, %s9061_s1 }
 0x431   : > { %v1548_v8 = vadd.f32 %v1528_v5, %v1351_v4  ;;  %v1530_v6 = vpop.f32.mrb[21].mxu1 }
 0x432   : > { %v1589_v10 = vpack.c.bf16 %v1586_v7, %v1586_v7  ;;  %v1531_v12 = vpop.f32.mrb[22].mxu1 }
 0x433   : > { %1563 = vst.msk [vmem:[#allocation2 + $0x88] sm:$0xff] %vm747_vm1, %v1548_v8  ;;  %v1532_v9 = vpop.f32.mrb[23].mxu1  ;;  %v1471_v14 = vpop.f32.mrb[20].mxu0 }
 0x434   : > { %1597 = vrot.lane.b32.xlu0 %v1589_v10, %s9061_s1  ;;  %v7536_v11 = vadd.f32 %v1471_v14, %v7505_v13  ;;  %v1473_v16 = vpop.f32.mrb[21].mxu0 }
 0x435   : > { %v7539_v17 = vadd.f32 %v1473_v16, %v7507_v15  ;;  %v1475_v18 = vpop.f32.mrb[22].mxu0 }
 0x436   : > { %v1476_v19 = vpop.f32.mrb[23].mxu0 }
 0x4a1   : > { %v1594_v20 = vpop.permute.xlu0 %1593 }
 0x4a2   : > { %1604 = vst.msk [vmem:[#allocation4] sm:$0xf] %vm1165_vm11, %v1594_v20  ;;  %v1596_v21 = vpop.permute.xlu1 %1595 }
 0x4a3   : > { %v1599_v22 = vsel %vm731_vm15, %v1594_v20, %v1596_v21 }
 0x4a4   : > { %1605 = vst [vmem:[#allocation4 + $0x8] sm:$0xf] %v1599_v22 }
 0x4a6   : > { %v1598_v23 = vpop.permute.xlu0 %1597 }
 0x4a7   : > { %v1600_v24 = vsel %vm731_vm15, %v1596_v21, %v1598_v23 }
 0x4a8   : > { %1606 = vst.msk [vmem:[#allocation4 + $0x10] sm:$0xf] %vm1168_vm12, %v1600_v24 }
 0x4a9   : > { %v1633_v13 = vld [vmem:[#allocation4] sm:$0xf] }
 0x4aa   : > { %v1613_v25 = vld [vmem:[#allocation4] sm:$0xf]  ;;  %1639 = vrot.lane.b32.xlu0 %v1633_v13, %s9044_s27 }
 0x4ab   : > { %1619 = vrot.lane.b32.xlu1 %v1613_v25, %s9062_s25  ;;  %v1608_v15 = vld [vmem:[#allocation4 + $0x8] sm:$0xf]  ;;  %v1607_v29 = vld [vmem:[#allocation4] sm:$0xf] }
 0x4ac   : > { %1611 = vst [vmem:[#allocation3 + $0x8] sm:$0xf] %v1608_v15  ;;  %1610 = vst [vmem:[#allocation3] sm:$0xf] %v1607_v29  ;;  %v1673_v30 = vld [vmem:[#allocation4] sm:$0xf] }
 0x4ad   : > { %v1653_v31 = vld [vmem:[#allocation4] sm:$0xf]  ;;  %v1634_v42 = vld [vmem:[#allocation4 + $0x8] sm:$0xf] }
 0x4ae   : > { %1679 = vrot.lane.b32.xlu0 %v1673_v30, %s9040_s29  ;;  %v1713_v33 = vld [vmem:[#allocation4] sm:$0xf]  ;;  %v1614_v49 = vld [vmem:[#allocation4 + $0x8] sm:$0xf] }
 0x4af   : > { %1659 = vrot.lane.b32.xlu1 %v1653_v31, %s9038_s30  ;;  %v1609_v32 = vld [vmem:[#allocation4 + $0x10] sm:$0xf]  ;;  %v1693_v35 = vld [vmem:[#allocation4] sm:$0xf]  ;;  %v1674_v46 = vld [vmem:[#allocation4 + $0x8] sm:$0xf] }
 0x4b0   : > { %1612 = vst.msk [vmem:[#allocation3 + $0x10] sm:$0xf] %vm1175_vm13, %v1609_v32  ;;  %v1733_v39 = vld [vmem:[#allocation4] sm:$0xf]  ;;  %v1615_v40 = vld [vmem:[#allocation4 + $0x10] sm:$0xf] }
 0x4b1   : > { %v1655_v43 = vld [vmem:[#allocation4 + $0x10] sm:$0xf]  ;;  %v1654_v47 = vld [vmem:[#allocation4 + $0x8] sm:$0xf]  ;;  %v1753_v59 = vld [vmem:[#allocation4] sm:$0xf] }
 0x4b2   : > { %1719 = vrot.lane.b32.xlu0 %v1713_v33, %s9042_s20  ;;  %v1635_v44 = vld [vmem:[#allocation4 + $0x10] sm:$0xf]  ;;  %v1714_v50 = vld [vmem:[#allocation4 + $0x8] sm:$0xf] }
 0x4b3   : > { %1699 = vrot.lane.b32.xlu1 %v1693_v35, %s9063_s28  ;;  %v1790_v36 = vld [vmem:[#allocation3 + $0x8] sm:$0xff]  ;;  %v1789_v38 = vld [vmem:[#allocation3] sm:$0xff] }
 0x4b4   : > { %1840 = vmatprep.subr.bf16.mxu0 %v1790_v36  ;;  %v1695_v51 = vld [vmem:[#allocation4 + $0x10] sm:$0xf]  ;;  %v1694_v52 = vld [vmem:[#allocation4 + $0x8] sm:$0xf] }
 0x4b5   : > { %1841 = vmatpush1.bf16.msra.mxu0 %v1789_v38  ;;  %v1675_v48 = vld [vmem:[#allocation4 + $0x10] sm:$0xf]  ;;  %v1754_v55 = vld [vmem:[#allocation4 + $0x8] sm:$0xf] }
 0x4b6   : > { %1623 = vrot.lane.b32.xlu0 %v1615_v40, %s9062_s25  ;;  %v1735_v53 = vld [vmem:[#allocation4 + $0x10] sm:$0xf]  ;;  %v1734_v57 = vld [vmem:[#allocation4 + $0x8] sm:$0xf] }
 0x4b7   : > { %1739 = vrot.lane.b32.xlu1 %v1733_v39, %s9064_s2  ;;  %v1791_v41 = vld [vmem:[#allocation3 + $0x10] sm:$0xff]  ;;  %v1715_v54 = vld [vmem:[#allocation4 + $0x10] sm:$0xf] }
 0x4b8   : > { %1894 = vmatpush1.bf16.msra.mxu1 %v1791_v41  ;;  %v1755_v61 = vld [vmem:[#allocation4 + $0x10] sm:$0xf] }
 0x4b9   : > { %1895 = vmatprep.subr.bf16.mxu1 %v7131_v45 }
 0x4ba   : > { %1641 = vrot.lane.b32.xlu0 %v1634_v42, %s9044_s27 }
 0x4bb   : > { %1621 = vrot.lane.b32.xlu1 %v1614_v49, %s9062_s25 }
 0x4be   : > { %1663 = vrot.lane.b32.xlu0 %v1655_v43, %s9038_s30 }
 0x4bf   : > { %1643 = vrot.lane.b32.xlu1 %v1635_v44, %s9044_s27 }
 0x4c2   : > { %1681 = vrot.lane.b32.xlu0 %v1674_v46, %s9040_s29 }
 0x4c3   : > { %1661 = vrot.lane.b32.xlu1 %v1654_v47, %s9038_s30  ;;  %s9070_s30 = smov 109  }
 0x4c6   : > { %1703 = vrot.lane.b32.xlu0 %v1695_v51, %s9063_s28 }
 0x4c7   : > { %1683 = vrot.lane.b32.xlu1 %v1675_v48, %s9040_s29  ;;  %s9066_s29 = sld [smem:[#allocation9_spill]] }
 0x4ca   : > { %1721 = vrot.lane.b32.xlu0 %v1714_v50, %s9042_s20 }
 0x4cb   : > { %1701 = vrot.lane.b32.xlu1 %v1694_v52, %s9063_s28 }
 0x4cd   : > { %v7034_v58 = vld [vmem:[%s9066_s29 + $0x4] ss:$8 sps:$4 sm:$0xff]  }
 0x4ce   : > { %1743 = vrot.lane.b32.xlu0 %v1735_v53, %s9064_s2  ;;  %6882 = vmatprep.mubr.msk.bf16.mxu1 %vm977_vm2, %v7034_v58 }
 0x4cf   : > { %1723 = vrot.lane.b32.xlu1 %v1715_v54, %s9042_s20  ;;  %6880 = vmatprep.mubr.msk.bf16.mxu0 %vm977_vm2, %v7034_v58  ;;  %s9071_s20 = smov 110  }
 0x4d2   : > { %1761 = vrot.lane.b32.xlu0 %v1754_v55, %s9065_s21 }
 0x4d3   : > { %1741 = vrot.lane.b32.xlu1 %v1734_v57, %s9064_s2 }
 0x4d6   : > { %1759 = vrot.lane.b32.xlu0 %v1753_v59, %s9065_s21 }
 0x4d7   : > { %1763 = vrot.lane.b32.xlu1 %v1755_v61, %s9065_s21 }
 0x4db   : > { %1971 = vperm.xlu1 %7013, %v709_v62  }
 0x51c   : > { %v1640_v0 = vpop.permute.xlu0 %1639 }
 0x51d   : > { %v1620_v1 = vpop.permute.xlu1 %1619 }
 0x520   : > { %v1680_v2 = vpop.permute.xlu0 %1679 }
 0x521   : > { %v1660_v4 = vpop.permute.xlu1 %1659 }
 0x524   : > { %v1720_v5 = vpop.permute.xlu0 %1719 }
 0x525   : > { %v1700_v7 = vpop.permute.xlu1 %1699 }
 0x528   : > { %v1624_v8 = vpop.permute.xlu0 %1623 }
 0x529   : > { %v7579_v6 = vpop.permute.xlu1 %1739  ;;  %1632 = vst.msk [vmem:[#allocation3 + $0x28] sm:$0xf] %vm1175_vm13, %v1624_v8 }
 0x52c   : > { %v1642_v10 = vpop.permute.xlu0 %1641 }
 0x52d   : > { %v1622_v12 = vpop.permute.xlu1 %1621  ;;  %v1645_v9 = vsel %vm782_vm4, %v1640_v0, %v1642_v10 }
 0x52e   : > { %v1625_v14 = vsel %vm761_vm3, %v1620_v1, %v1622_v12  ;;  %v1626_v16 = vsel %vm761_vm3, %v1622_v12, %v1624_v8  ;;  %1650 = vst [vmem:[#allocation3 + $0x30] sm:$0xf] %v1645_v9  ;;  %v7032_v9 = vld [vmem:[%s9066_s29] ss:$8 sps:$4 sm:$0xff]  }
 0x52f   : > { %1630 = vst [vmem:[#allocation3 + $0x18] sm:$0xf] %v1625_v14  ;;  %1631 = vst [vmem:[#allocation3 + $0x20] sm:$0xf] %v1626_v16 }
 0x530   : > { %v1664_v18 = vpop.permute.xlu0 %1663  ;;  %v1794_v20 = vld [vmem:[#allocation3 + $0x28] sm:$0xff] }
 0x531   : > { %v1644_v19 = vpop.permute.xlu1 %1643  ;;  %1672 = vst.msk [vmem:[#allocation3 + $0x58] sm:$0xf] %vm1175_vm13, %v1664_v18  ;;  %1896 = vmatpush1.bf16.msra.mxu1 %v1794_v20  ;;  %v1775_v20 = vld [vmem:[#allocation2 + $0x40] sm:$0xff] }
 0x532   : > { %v1646_v21 = vsel %vm782_vm4, %v1642_v10, %v1644_v19  ;;  %1652 = vst.msk [vmem:[#allocation3 + $0x40] sm:$0xf] %vm1175_vm13, %v1644_v19  ;;  %1897 = vmatprep.subr.bf16.mxu1 %v7131_v45  ;;  %v7037_v19 = vld [vmem:[%s9066_s29 + $0x10] ss:$8 sps:$4 sm:$0xff]  }
 0x533   : > { %1651 = vst [vmem:[#allocation3 + $0x38] sm:$0xf] %v1646_v21 }
 0x534   : > { %v1682_v22 = vpop.permute.xlu0 %1681 }
 0x535   : > { %v1662_v23 = vpop.permute.xlu1 %1661  ;;  %v1685_v24 = vsel %vm824_vm6, %v1680_v2, %v1682_v22  ;;  %v1795_v36 = vld [vmem:[#allocation3 + $0x30] sm:$0xff] }
 0x536   : > { %v1665_v13 = vsel %vm803_vm5, %v1660_v4, %v1662_v23  ;;  %v1666_v25 = vsel %vm803_vm5, %v1662_v23, %v1664_v18  ;;  %v1793_v15 = vld [vmem:[#allocation3 + $0x20] sm:$0xff]  ;;  %v1792_v29 = vld [vmem:[#allocation3 + $0x18] sm:$0xff]  ;;  %1690 = vst [vmem:[#allocation3 + $0x60] sm:$0xf] %v1685_v24 }
 0x537   : > { %1670 = vst [vmem:[#allocation3 + $0x48] sm:$0xf] %v1665_v13  ;;  %1671 = vst [vmem:[#allocation3 + $0x50] sm:$0xf] %v1666_v25  ;;  %1842 = vmatprep.subr.bf16.mxu0 %v1793_v15  ;;  %v7035_v18 = vld [vmem:[%s9066_s29 + $0x14] ss:$8 sps:$4 sm:$0xff]  }
 0x538   : > { %1843 = vmatpush1.bf16.msra.mxu0 %v1792_v29  ;;  %v1704_v30 = vpop.permute.xlu0 %1703  ;;  %v1800_v40 = vld [vmem:[#allocation3 + $0x58] sm:$0xff]  ;;  %v1778_v13 = vld [vmem:[#allocation2 + $0x58] sm:$0xff] }
 0x539   : > { %v1684_v31 = vpop.permute.xlu1 %1683  ;;  %v1797_v32 = vld [vmem:[#allocation3 + $0x40] sm:$0xff]  ;;  %1712 = vst.msk [vmem:[#allocation3 + $0x88] sm:$0xf] %vm1175_vm13, %v1704_v30 }
 0x53a   : > { %v1686_v33 = vsel %vm824_vm6, %v1682_v22, %v1684_v31  ;;  %1692 = vst.msk [vmem:[#allocation3 + $0x70] sm:$0xf] %vm1175_vm13, %v1684_v31  ;;  %1898 = vmatpush1.bf16.msra.mxu1 %v1797_v32  ;;  %v1796_v35 = vld [vmem:[#allocation3 + $0x38] sm:$0xff] }
 0x53b   : > { %1691 = vst [vmem:[#allocation3 + $0x68] sm:$0xf] %v1686_v33  ;;  %1844 = vmatprep.subr.bf16.mxu0 %v1796_v35  ;;  %1899 = vmatprep.subr.bf16.mxu1 %v7131_v45 }
 0x53c   : > { %1845 = vmatpush1.bf16.msra.mxu0 %v1795_v36  ;;  %v1722_v38 = vpop.permute.xlu0 %1721 }
 0x53d   : > { %v1702_v39 = vpop.permute.xlu1 %1701  ;;  %v1725_v41 = vsel %vm866_vm8, %v1720_v5, %v1722_v38  ;;  %v1801_v52 = vld [vmem:[#allocation3 + $0x60] sm:$0xff] }
 0x53e   : > { %v1705_v42 = vsel %vm845_vm7, %v1700_v7, %v1702_v39  ;;  %v1706_v49 = vsel %vm845_vm7, %v1702_v39, %v1704_v30  ;;  %1900 = vmatpush1.bf16.msra.mxu1 %v1800_v40  ;;  %v1799_v43 = vld [vmem:[#allocation3 + $0x50] sm:$0xff]  ;;  %v1798_v44 = vld [vmem:[#allocation3 + $0x48] sm:$0xff]  ;;  %1730 = vst [vmem:[#allocation3 + $0x90] sm:$0xf] %v1725_v41 }
 0x53f   : > { %1710 = vst [vmem:[#allocation3 + $0x78] sm:$0xf] %v1705_v42  ;;  %1711 = vst [vmem:[#allocation3 + $0x80] sm:$0xf] %v1706_v49  ;;  %1846 = vmatprep.subr.bf16.mxu0 %v1799_v43  ;;  %1901 = vmatprep.subr.bf16.mxu1 %v7131_v45  ;;  %v1781_v42 = vld [vmem:[#allocation2 + $0x70] sm:$0xff] }
 0x540   : > { %1847 = vmatpush1.bf16.msra.mxu0 %v1798_v44  ;;  %v1744_v46 = vpop.permute.xlu0 %1743  ;;  %v1806_v55 = vld [vmem:[#allocation3 + $0x88] sm:$0xff] }
 0x541   : > { %v1724_v47 = vpop.permute.xlu1 %1723  ;;  %v1803_v51 = vld [vmem:[#allocation3 + $0x70] sm:$0xff]  ;;  %1752 = vst.msk [vmem:[#allocation3 + $0xb8] sm:$0xf] %vm1175_vm13, %v1744_v46 }
 0x542   : > { %v1726_v48 = vsel %vm866_vm8, %v1722_v38, %v1724_v47  ;;  %1732 = vst.msk [vmem:[#allocation3 + $0xa0] sm:$0xf] %vm1175_vm13, %v1724_v47  ;;  %1902 = vmatpush1.bf16.msra.mxu1 %v1803_v51  ;;  %v1802_v50 = vld [vmem:[#allocation3 + $0x68] sm:$0xff]  ;;  %v1784_v51 = vld [vmem:[#allocation2 + $0x88] sm:$0xff] }
 0x543   : > { %1731 = vst [vmem:[#allocation3 + $0x98] sm:$0xf] %v1726_v48  ;;  %1848 = vmatprep.subr.bf16.mxu0 %v1802_v50  ;;  %1903 = vmatprep.subr.bf16.mxu1 %v7131_v45 }
 0x544   : > { %1849 = vmatpush1.bf16.msra.mxu0 %v1801_v52  ;;  %v1762_v53 = vpop.permute.xlu0 %1761 }
 0x545   : > { %v1742_v54 = vpop.permute.xlu1 %1741  ;;  %v1807_v7 = vld [vmem:[#allocation3 + $0x90] sm:$0xff] }
 0x546   : > { %v1745_v57 = vsel %vm887_vm9, %v7579_v6, %v1742_v54  ;;  %v1746_v58 = vsel %vm887_vm9, %v1742_v54, %v1744_v46  ;;  %1904 = vmatpush1.bf16.msra.mxu1 %v1806_v55  ;;  %v1805_v59 = vld [vmem:[#allocation3 + $0x80] sm:$0xff]  ;;  %v1804_v61 = vld [vmem:[#allocation3 + $0x78] sm:$0xff] }
 0x547   : > { %1750 = vst [vmem:[#allocation3 + $0xa8] sm:$0xf] %v1745_v57  ;;  %1751 = vst [vmem:[#allocation3 + $0xb0] sm:$0xf] %v1746_v58  ;;  %1850 = vmatprep.subr.bf16.mxu0 %v1805_v59  ;;  %1905 = vmatprep.subr.bf16.mxu1 %v7131_v45 }
 0x548   : > { %1851 = vmatpush1.bf16.msra.mxu0 %v1804_v61  ;;  %v1760_v62 = vpop.permute.xlu0 %1759  ;;  %v1812_v8 = vld [vmem:[#allocation3 + $0xb8] sm:$0xff] }
 0x549   : > { %v1764_v0 = vpop.permute.xlu1 %1763  ;;  %v1809_v1 = vld [vmem:[#allocation3 + $0xa0] sm:$0xff]  ;;  %v1765_v2 = vsel %vm9067_vm14, %v1760_v62, %v1762_v53 }
 0x54a   : > { %v1766_v4 = vsel %vm9068_vm0, %v1762_v53, %v1764_v0  ;;  %1772 = vst.msk [vmem:[#allocation3 + $0xd0] sm:$0xf] %vm1175_vm13, %v1764_v0  ;;  %1906 = vmatpush1.bf16.msra.mxu1 %v1809_v1  ;;  %v1808_v5 = vld [vmem:[#allocation3 + $0x98] sm:$0xff]  ;;  %1770 = vst [vmem:[#allocation3 + $0xc0] sm:$0xf] %v1765_v2 }
 0x54b   : > { %1771 = vst [vmem:[#allocation3 + $0xc8] sm:$0xf] %v1766_v4  ;;  %1852 = vmatprep.subr.bf16.mxu0 %v1808_v5  ;;  %1907 = vmatprep.subr.bf16.mxu1 %v7131_v45 }
 0x54c   : > { %1853 = vmatpush1.bf16.msra.mxu0 %v1807_v7 }
 0x54e   : > { %1908 = vmatpush1.bf16.msra.mxu1 %v1812_v8  ;;  %v1811_v6 = vld [vmem:[#allocation3 + $0xb0] sm:$0xff]  ;;  %v1810_v10 = vld [vmem:[#allocation3 + $0xa8] sm:$0xff] }
 0x54f   : > { %1854 = vmatprep.subr.bf16.mxu0 %v1811_v6  ;;  %1909 = vmatprep.subr.bf16.mxu1 %v7131_v45 }
 0x550   : > { %1855 = vmatpush1.bf16.msra.mxu0 %v1810_v10 }
 0x551   : > { %v1815_v12 = vld [vmem:[#allocation3 + $0xd0] sm:$0xff]  ;;  %v1813_v16 = vld [vmem:[#allocation3 + $0xc0] sm:$0xff] }
 0x552   : > { %1910 = vmatpush1.bf16.msra.mxu1 %v1815_v12  ;;  %v1814_v14 = vld [vmem:[#allocation3 + $0xc8] sm:$0xff] }
 0x553   : > { %1856 = vmatprep.subr.bf16.mxu0 %v1814_v14  ;;  %2286 = vmatprep.subr.bf16.mxu1 %v7131_v45 }
 0x554   : > { %1857 = vmatpush1.bf16.msra.mxu0 %v1813_v16 }
 0x555   : > { %1926 = vmatmul.mubr.bf16.vlgmr.msra.gmra.mrb[24].mxu1 %v7032_v9 }
 0x556   : > { %6883 = vmatprep.mubr.msk.bf16.mxu1 %vm977_vm2, %v7035_v18 }
 0x557   : > { %1873 = vmatmul.mubr.bf16.vlgmr.msra.gmra.mrb[24].mxu0 %v7032_v9 }
 0x558   : > { %6881 = vmatprep.mubr.msk.bf16.mxu0 %vm977_vm2, %v7035_v18 }
 0x55a   : > { %v1972_v32 = vpop.permute.xlu1 %1971 }
 0x55d   : > { %1934 = vmatmul.mubr.bf16.gmra.mrb[28].mxu1 %v7037_v19 }
 0x55f   : > { %1883 = vmatmul.mubr.bf16.gmra.mrb[28].mxu0 %v7037_v19 }
 0x628   : > { %v1927_v21 = vpop.f32.mrb[24].mxu1 }
 0x629   : > { %v1944_v22 = vadd.f32 %v1927_v21, %v1775_v20  ;;  %v1929_v23 = vpop.f32.mrb[25].mxu1 }
 0x62a   : > { %v1874_v24 = vpop.f32.mrb[24].mxu0  ;;  %v1930_v25 = vpop.f32.mrb[26].mxu1 }
 0x62b   : > { %1956 = vst.msk [vmem:[#allocation2 + $0x40] sm:$0xff] %vm747_vm1, %v1944_v22  ;;  %v1942_v15 = vadd.f32 %v1874_v24, %v7514_v34  ;;  %v1947_v29 = vadd.f32 %v1930_v25, %v1778_v13  ;;  %v1876_v30 = vpop.f32.mrb[25].mxu0  ;;  %v1932_v31 = vpop.f32.mrb[27].mxu1 }
 0x62c   : > { %v1943_v33 = vadd.f32 %v1876_v30, %v7516_v37  ;;  %v1878_v35 = vpop.f32.mrb[26].mxu0 }
 0x62d   : > { %1959 = vst.msk [vmem:[#allocation2 + $0x58] sm:$0xff] %vm747_vm1, %v1947_v29  ;;  %v7630_v36 = vadd.f32 %v1878_v35, %v7520_v56  ;;  %v1880_v38 = vpop.f32.mrb[27].mxu0  ;;  %v1974_v39 = vadd.f32 %v1972_v32, %v1942_v15 }
 0x62e   : > { %v7633_v40 = vadd.f32 %v1880_v38, %v7524_v60  ;;  %v1975_v41 = vadd.f32 %v1972_v32, %v1943_v33 }
 0x62f   : > { %vm1977_vm10 = vcmp.ge.f32.partialorder %v1974_v39, 0.0  ;;  %v1980_v34 = vmul.f32 0.2, %v1974_v39 }
 0x630   : > { %v1935_v49 = vpop.f32.mrb[28].mxu1  ;;  %vm1978_vm14 = vcmp.ge.f32.partialorder %v1975_v41, 0.0  ;;  %v1981_v43 = vmul.f32 0.2, %v1975_v41 }
 0x631   : > { %v1950_v44 = vadd.f32 %v1935_v49, %v1781_v42  ;;  %v1937_v37 = vpop.f32.mrb[29].mxu1  ;;  %v1983_v46 = vsel %vm1977_vm10, %v1974_v39, %v1980_v34  ;;  %vm9074_vm10 = vcmask 736256  }
 0x632   : > { %v1884_v47 = vpop.f32.mrb[28].mxu0  ;;  %v1938_v48 = vpop.f32.mrb[30].mxu1  ;;  %v1986_v56 = vmul.f32 %v7274_v26, %v1983_v46  ;;  %v1984_v50 = vsel %vm1978_vm14, %v1975_v41, %v1981_v43  ;;  %v1968_v52 = vld [vmem:[#allocation2 + $0x40] sm:$0xff]  ;;  %vm9075_vm14 = vmmov %vm9074_vm10 }
 0x633   : > { %1962 = vst.msk [vmem:[#allocation2 + $0x70] sm:$0xff] %vm747_vm1, %v1950_v44  ;;  %v7638_v60 = vadd.f32 %v1884_v47, %v7526_v63  ;;  %v1953_v53 = vadd.f32 %v1938_v48, %v1784_v51  ;;  %v1886_v54 = vpop.f32.mrb[29].mxu0  ;;  %v1987_v55 = vmul.f32 %v7276_v27, %v1984_v50  ;;  %v1976_v57 = vadd.f32 %v1972_v32, %v1968_v52  ;;  %v1940_v58 = vpop.f32.mrb[31].mxu1  ;;  %v7040_v37 = vld [vmem:[%s9073_s4 + $0x4] ss:$8 sps:$4 sm:$0xff]   ;;  %v710_v51 = vld [vmem:[%s9008_s6 + $0x18] sm:$0xff] }
 0x634   : > { %v7642_v59 = vadd.f32 %v1886_v54, %v7528_v3  ;;  %v1888_v61 = vpop.f32.mrb[30].mxu0  ;;  %v1989_v62 = vpack.c.bf16 %v1986_v56, %v1986_v56  ;;  %6890 = vmatprep.mubr.msk.bf16.mxu1 %vm977_vm2, %v7040_v37  ;;  %6888 = vmatprep.mubr.msk.bf16.mxu0 %vm977_vm2, %v7040_v37 }
 0x635   : > { %1965 = vst.msk [vmem:[#allocation2 + $0x88] sm:$0xff] %vm747_vm1, %v1953_v53  ;;  %v7646_v0 = vadd.f32 %v1888_v61, %v7536_v11  ;;  %v1890_v1 = vpop.f32.mrb[31].mxu0  ;;  %v1990_v2 = vpack.c.bf16 %v1987_v55, %v1987_v55  ;;  %vm1979_vm0 = vcmp.ge.f32.partialorder %v1976_v57, 0.0  ;;  %v1982_v63 = vmul.f32 0.2, %v1976_v57 }
 0x636   : > { %v7649_v4 = vadd.f32 %v1890_v1, %v7539_v17  ;;  %1995 = vrot.lane.b32.xlu0 %v1989_v62, %s9061_s1 }
 0x637   : > { %1997 = vrot.lane.b32.xlu1 %v1990_v2, %s9061_s1  ;;  %v1985_v3 = vsel %vm1979_vm0, %v1976_v57, %v1982_v63 }
 0x638   : > { %v1988_v5 = vmul.f32 %v7278_v28, %v1985_v3 }
 0x63a   : > { %v1991_v7 = vpack.c.bf16 %v1988_v5, %v1988_v5 }
 0x63c   : > { %1999 = vrot.lane.b32.xlu0 %v1991_v7, %s9061_s1 }
 0x6a8   : > { %v1996_v8 = vpop.permute.xlu0 %1995 }
 0x6a9   : > { %2006 = vst.msk [vmem:[#allocation4] sm:$0xf] %vm1165_vm11, %v1996_v8  ;;  %v1998_v11 = vpop.permute.xlu1 %1997 }
 0x6aa   : > { %v2001_v6 = vsel %vm731_vm15, %v1996_v8, %v1998_v11 }
 0x6ab   : > { %2007 = vst [vmem:[#allocation4 + $0x8] sm:$0xf] %v2001_v6 }
 0x6ae   : > { %v2000_v10 = vpop.permute.xlu0 %1999 }
 0x6af   : > { %v2002_v17 = vsel %vm731_vm15, %v1998_v11, %v2000_v10 }
 0x6b0   : > { %2008 = vst.msk [vmem:[#allocation4 + $0x10] sm:$0xf] %vm1168_vm12, %v2002_v17  ;;  %v2035_v12 = vld [vmem:[#allocation4] sm:$0xf] }
 0x6b1   : > { %v2015_v9 = vld [vmem:[#allocation4] sm:$0xf]  ;;  %2041 = vrot.lane.b32.xlu0 %v2035_v12, %s9069_s19 }
 0x6b2   : > { %2021 = vrot.lane.b32.xlu1 %v2015_v9, %s9062_s25  ;;  %v2010_v14 = vld [vmem:[#allocation4 + $0x8] sm:$0xf]  ;;  %v2009_v16 = vld [vmem:[#allocation4] sm:$0xf] }
 0x6b3   : > { %2013 = vst [vmem:[#allocation3 + $0x8] sm:$0xf] %v2010_v14  ;;  %2012 = vst [vmem:[#allocation3] sm:$0xf] %v2009_v16  ;;  %v2075_v18 = vld [vmem:[#allocation4] sm:$0xf] }
 0x6b4   : > { %v2055_v19 = vld [vmem:[#allocation4] sm:$0xf]  ;;  %v2036_v29 = vld [vmem:[#allocation4 + $0x8] sm:$0xf] }
 0x6b5   : > { %2081 = vrot.lane.b32.xlu0 %v2075_v18, %s9070_s30  ;;  %v2115_v21 = vld [vmem:[#allocation4] sm:$0xf]  ;;  %v2016_v30 = vld [vmem:[#allocation4 + $0x8] sm:$0xf] }
 0x6b6   : > { %2061 = vrot.lane.b32.xlu1 %v2055_v19, %s9071_s20  ;;  %v2095_v22 = vld [vmem:[#allocation4] sm:$0xf]  ;;  %v2076_v33 = vld [vmem:[#allocation4 + $0x8] sm:$0xf] }
 0x6b7   : > { %v2011_v20 = vld [vmem:[#allocation4 + $0x10] sm:$0xf]  ;;  %v2135_v13 = vld [vmem:[#allocation4] sm:$0xf]  ;;  %v2056_v35 = vld [vmem:[#allocation4 + $0x8] sm:$0xf] }
 0x6b8   : > { %2014 = vst.msk [vmem:[#allocation3 + $0x10] sm:$0xf] %vm1175_vm13, %v2011_v20  ;;  %v2017_v25 = vld [vmem:[#allocation4 + $0x10] sm:$0xf]  ;;  %v2116_v41 = vld [vmem:[#allocation4 + $0x8] sm:$0xf] }
 0x6b9   : > { %2121 = vrot.lane.b32.xlu0 %v2115_v21, %s9072_s26  ;;  %v2057_v31 = vld [vmem:[#allocation4 + $0x10] sm:$0xf]  ;;  %v2096_v34 = vld [vmem:[#allocation4 + $0x8] sm:$0xf]  ;;  %v2155_v46 = vld [vmem:[#allocation4] sm:$0xf] }
 0x6ba   : > { %2101 = vrot.lane.b32.xlu1 %v2095_v22, %s9063_s28  ;;  %v2188_v23 = vld [vmem:[#allocation3 + $0x8] sm:$0xff]  ;;  %v2187_v24 = vld [vmem:[#allocation3] sm:$0xff] }
 0x6bb   : > { %2235 = vmatprep.subr.bf16.mxu0 %v2188_v23  ;;  %v2037_v32 = vld [vmem:[#allocation4 + $0x10] sm:$0xf]  ;;  %v2156_v43 = vld [vmem:[#allocation4 + $0x8] sm:$0xf] }
 0x6bc   : > { %2236 = vmatpush1.bf16.msra.mxu0 %v2187_v24  ;;  %v2097_v38 = vld [vmem:[#allocation4 + $0x10] sm:$0xf]  ;;  %v2136_v44 = vld [vmem:[#allocation4 + $0x8] sm:$0xf] }
 0x6bd   : > { %2025 = vrot.lane.b32.xlu0 %v2017_v25, %s9062_s25  ;;  %v2077_v39 = vld [vmem:[#allocation4 + $0x10] sm:$0xf] }
 0x6be   : > { %2141 = vrot.lane.b32.xlu1 %v2135_v13, %s9064_s2  ;;  %v2137_v42 = vld [vmem:[#allocation4 + $0x10] sm:$0xf] }
 0x6bf   : > { %v2189_v15 = vld [vmem:[#allocation3 + $0x10] sm:$0xff]  ;;  %v2117_v49 = vld [vmem:[#allocation4 + $0x10] sm:$0xf] }
 0x6c0   : > { %2287 = vmatpush1.bf16.msra.mxu1 %v2189_v15  ;;  %v2157_v47 = vld [vmem:[#allocation4 + $0x10] sm:$0xf] }
 0x6c1   : > { %2043 = vrot.lane.b32.xlu0 %v2036_v29, %s9069_s19  ;;  %2288 = vmatprep.subr.bf16.mxu1 %v7131_v45 }
 0x6c2   : > { %2023 = vrot.lane.b32.xlu1 %v2016_v30, %s9062_s25 }
 0x6c5   : > { %2065 = vrot.lane.b32.xlu0 %v2057_v31, %s9071_s20 }
 0x6c6   : > { %2045 = vrot.lane.b32.xlu1 %v2037_v32, %s9069_s19 }
 0x6c9   : > { %2083 = vrot.lane.b32.xlu0 %v2076_v33, %s9070_s30 }
 0x6ca   : > { %2063 = vrot.lane.b32.xlu1 %v2056_v35, %s9071_s20 }
 0x6cd   : > { %2105 = vrot.lane.b32.xlu0 %v2097_v38, %s9063_s28 }
 0x6ce   : > { %2085 = vrot.lane.b32.xlu1 %v2077_v39, %s9070_s30 }
 0x6d1   : > { %2123 = vrot.lane.b32.xlu0 %v2116_v41, %s9072_s26 }
 0x6d2   : > { %2103 = vrot.lane.b32.xlu1 %v2096_v34, %s9063_s28 }
 0x6d5   : > { %2145 = vrot.lane.b32.xlu0 %v2137_v42, %s9064_s2 }
 0x6d6   : > { %2125 = vrot.lane.b32.xlu1 %v2117_v49, %s9072_s26 }
 0x6d9   : > { %2163 = vrot.lane.b32.xlu0 %v2156_v43, %s9065_s21 }
 0x6da   : > { %2143 = vrot.lane.b32.xlu1 %v2136_v44, %s9064_s2 }
 0x6dd   : > { %2161 = vrot.lane.b32.xlu0 %v2155_v46, %s9065_s21 }
 0x6de   : > { %2165 = vrot.lane.b32.xlu1 %v2157_v47, %s9065_s21 }
 0x6e2   : > { %2357 = vperm.xlu1 %7013, %v710_v51  }
 0x723   : > { %v2042_v48 = vpop.permute.xlu0 %2041 }
 0x724   : > { %v2022_v56 = vpop.permute.xlu1 %2021 }
 0x727   : > { %v2082_v50 = vpop.permute.xlu0 %2081 }
 0x728   : > { %v2062_v52 = vpop.permute.xlu1 %2061 }
 0x72b   : > { %v2122_v53 = vpop.permute.xlu0 %2121 }
 0x72c   : > { %v2102_v54 = vpop.permute.xlu1 %2101 }
 0x72f   : > { %v2026_v55 = vpop.permute.xlu0 %2025 }
 0x730   : > { %v7693_v57 = vpop.permute.xlu1 %2141  ;;  %2034 = vst.msk [vmem:[#allocation3 + $0x28] sm:$0xf] %vm1175_vm13, %v2026_v55 }
 0x733   : > { %v2044_v58 = vpop.permute.xlu0 %2043 }
 0x734   : > { %v2024_v61 = vpop.permute.xlu1 %2023  ;;  %v2047_v62 = vsel %vm782_vm4, %v2042_v48, %v2044_v58 }
 0x735   : > { %v2027_v1 = vsel %vm761_vm3, %v2022_v56, %v2024_v61  ;;  %v2028_v2 = vsel %vm761_vm3, %v2024_v61, %v2026_v55  ;;  %2052 = vst [vmem:[#allocation3 + $0x30] sm:$0xf] %v2047_v62  ;;  %v7038_v61 = vld [vmem:[%s9073_s4] ss:$8 sps:$4 sm:$0xff]  }
 0x736   : > { %2032 = vst [vmem:[#allocation3 + $0x18] sm:$0xf] %v2027_v1  ;;  %2033 = vst [vmem:[#allocation3 + $0x20] sm:$0xf] %v2028_v2 }
 0x737   : > { %v2066_v63 = vpop.permute.xlu0 %2065  ;;  %v2192_v5 = vld [vmem:[#allocation3 + $0x28] sm:$0xff] }
 0x738   : > { %v2046_v3 = vpop.permute.xlu1 %2045  ;;  %2074 = vst.msk [vmem:[#allocation3 + $0x58] sm:$0xf] %vm1175_vm13, %v2066_v63  ;;  %2289 = vmatpush1.bf16.msra.mxu1 %v2192_v5 }
 0x739   : > { %v2048_v7 = vsel %vm782_vm4, %v2044_v58, %v2046_v3  ;;  %2054 = vst.msk [vmem:[#allocation3 + $0x40] sm:$0xf] %vm1175_vm13, %v2046_v3  ;;  %2290 = vmatprep.subr.bf16.mxu1 %v7131_v45  ;;  %v2177_v3 = vld [vmem:[#allocation2 + $0x58] sm:$0xff] }
 0x73a   : > { %2053 = vst [vmem:[#allocation3 + $0x38] sm:$0xf] %v2048_v7 }
 0x73b   : > { %v2084_v8 = vpop.permute.xlu0 %2083 }
 0x73c   : > { %v2064_v11 = vpop.permute.xlu1 %2063  ;;  %v2087_v6 = vsel %vm824_vm6, %v2082_v50, %v2084_v8  ;;  %v2193_v21 = vld [vmem:[#allocation3 + $0x30] sm:$0xff] }
 0x73d   : > { %v2067_v10 = vsel %vm803_vm5, %v2062_v52, %v2064_v11  ;;  %v2068_v17 = vsel %vm803_vm5, %v2064_v11, %v2066_v63  ;;  %v2191_v12 = vld [vmem:[#allocation3 + $0x20] sm:$0xff]  ;;  %v2190_v9 = vld [vmem:[#allocation3 + $0x18] sm:$0xff]  ;;  %2092 = vst [vmem:[#allocation3 + $0x60] sm:$0xf] %v2087_v6 }
 0x73e   : > { %2072 = vst [vmem:[#allocation3 + $0x48] sm:$0xf] %v2067_v10  ;;  %2073 = vst [vmem:[#allocation3 + $0x50] sm:$0xf] %v2068_v17  ;;  %2237 = vmatprep.subr.bf16.mxu0 %v2191_v12  ;;  %v2180_v6 = vld [vmem:[#allocation2 + $0x70] sm:$0xff] }
 0x73f   : > { %2238 = vmatpush1.bf16.msra.mxu0 %v2190_v9  ;;  %v2106_v14 = vpop.permute.xlu0 %2105  ;;  %v2198_v24 = vld [vmem:[#allocation3 + $0x58] sm:$0xff] }
 0x740   : > { %v2086_v16 = vpop.permute.xlu1 %2085  ;;  %v2195_v18 = vld [vmem:[#allocation3 + $0x40] sm:$0xff]  ;;  %2114 = vst.msk [vmem:[#allocation3 + $0x88] sm:$0xf] %vm1175_vm13, %v2106_v14 }
 0x741   : > { %v2088_v19 = vsel %vm824_vm6, %v2084_v8, %v2086_v16  ;;  %2094 = vst.msk [vmem:[#allocation3 + $0x70] sm:$0xf] %vm1175_vm13, %v2086_v16  ;;  %2291 = vmatpush1.bf16.msra.mxu1 %v2195_v18  ;;  %v2194_v20 = vld [vmem:[#allocation3 + $0x38] sm:$0xff] }
 0x742   : > { %2093 = vst [vmem:[#allocation3 + $0x68] sm:$0xf] %v2088_v19  ;;  %2239 = vmatprep.subr.bf16.mxu0 %v2194_v20  ;;  %2292 = vmatprep.subr.bf16.mxu1 %v7131_v45 }
 0x743   : > { %2240 = vmatpush1.bf16.msra.mxu0 %v2193_v21  ;;  %v2124_v22 = vpop.permute.xlu0 %2123 }
 0x744   : > { %v2104_v23 = vpop.permute.xlu1 %2103  ;;  %v2127_v13 = vsel %vm866_vm8, %v2122_v53, %v2124_v22  ;;  %v2199_v39 = vld [vmem:[#allocation3 + $0x60] sm:$0xff] }
 0x745   : > { %v2107_v25 = vsel %vm845_vm7, %v2102_v54, %v2104_v23  ;;  %v2108_v15 = vsel %vm845_vm7, %v2104_v23, %v2106_v14  ;;  %2293 = vmatpush1.bf16.msra.mxu1 %v2198_v24  ;;  %v2197_v29 = vld [vmem:[#allocation3 + $0x50] sm:$0xff]  ;;  %v2196_v30 = vld [vmem:[#allocation3 + $0x48] sm:$0xff]  ;;  %2132 = vst [vmem:[#allocation3 + $0x90] sm:$0xf] %v2127_v13  ;;  %v2183_v13 = vld [vmem:[#allocation2 + $0x88] sm:$0xff] }
 0x746   : > { %2112 = vst [vmem:[#allocation3 + $0x78] sm:$0xf] %v2107_v25  ;;  %2113 = vst [vmem:[#allocation3 + $0x80] sm:$0xf] %v2108_v15  ;;  %2241 = vmatprep.subr.bf16.mxu0 %v2197_v29  ;;  %2294 = vmatprep.subr.bf16.mxu1 %v7131_v45 }
 0x747   : > { %2242 = vmatpush1.bf16.msra.mxu0 %v2196_v30  ;;  %v2146_v31 = vpop.permute.xlu0 %2145  ;;  %v2204_v42 = vld [vmem:[#allocation3 + $0x88] sm:$0xff] }
 0x748   : > { %v2126_v32 = vpop.permute.xlu1 %2125  ;;  %v2201_v33 = vld [vmem:[#allocation3 + $0x70] sm:$0xff]  ;;  %2154 = vst.msk [vmem:[#allocation3 + $0xb8] sm:$0xf] %vm1175_vm13, %v2146_v31 }
 0x749   : > { %v2128_v35 = vsel %vm866_vm8, %v2124_v22, %v2126_v32  ;;  %2134 = vst.msk [vmem:[#allocation3 + $0xa0] sm:$0xf] %vm1175_vm13, %v2126_v32  ;;  %2295 = vmatpush1.bf16.msra.mxu1 %v2201_v33  ;;  %v2200_v38 = vld [vmem:[#allocation3 + $0x68] sm:$0xff] }
 0x74a   : > { %2133 = vst [vmem:[#allocation3 + $0x98] sm:$0xf] %v2128_v35  ;;  %2243 = vmatprep.subr.bf16.mxu0 %v2200_v38  ;;  %2296 = vmatprep.subr.bf16.mxu1 %v7131_v45 }
 0x74b   : > { %2244 = vmatpush1.bf16.msra.mxu0 %v2199_v39  ;;  %v2164_v41 = vpop.permute.xlu0 %2163 }
 0x74c   : > { %v2144_v34 = vpop.permute.xlu1 %2143  ;;  %v2205_v52 = vld [vmem:[#allocation3 + $0x90] sm:$0xff] }
 0x74d   : > { %v2147_v49 = vsel %vm887_vm9, %v7693_v57, %v2144_v34  ;;  %v2148_v43 = vsel %vm887_vm9, %v2144_v34, %v2146_v31  ;;  %2297 = vmatpush1.bf16.msra.mxu1 %v2204_v42  ;;  %v2203_v44 = vld [vmem:[#allocation3 + $0x80] sm:$0xff]  ;;  %v2202_v37 = vld [vmem:[#allocation3 + $0x78] sm:$0xff] }
 0x74e   : > { %2152 = vst [vmem:[#allocation3 + $0xa8] sm:$0xf] %v2147_v49  ;;  %2153 = vst [vmem:[#allocation3 + $0xb0] sm:$0xf] %v2148_v43  ;;  %2245 = vmatprep.subr.bf16.mxu0 %v2203_v44  ;;  %2298 = vmatprep.subr.bf16.mxu1 %v7131_v45  ;;  %v2186_v57 = vld [vmem:[%s9073_s4 + $0x10] sm:$0xff] }
 0x74f   : > { %2246 = vmatpush1.bf16.msra.mxu0 %v2202_v37  ;;  %v2162_v46 = vpop.permute.xlu0 %2161  ;;  %v2210_v53 = vld [vmem:[#allocation3 + $0xb8] sm:$0xff]  ;;  %v6887_v2 = vcombine.high %v2186_v57, %v2186_v57  ;;  %v6886_v63 = vcombine.low %v2186_v57, %v2186_v57 }
 0x750   : > { %v2166_v47 = vpop.permute.xlu1 %2165  ;;  %v2207_v51 = vld [vmem:[#allocation3 + $0xa0] sm:$0xff]  ;;  %v2167_v48 = vsel %vm9074_vm10, %v2162_v46, %v2164_v41 }
 0x751   : > { %v2168_v56 = vsel %vm9075_vm14, %v2164_v41, %v2166_v47  ;;  %2174 = vst.msk [vmem:[#allocation3 + $0xd0] sm:$0xf] %vm1175_vm13, %v2166_v47  ;;  %2299 = vmatpush1.bf16.msra.mxu1 %v2207_v51  ;;  %v2206_v50 = vld [vmem:[#allocation3 + $0x98] sm:$0xff]  ;;  %2172 = vst [vmem:[#allocation3 + $0xc0] sm:$0xf] %v2167_v48 }
 0x752   : > { %2173 = vst [vmem:[#allocation3 + $0xc8] sm:$0xf] %v2168_v56  ;;  %2247 = vmatprep.subr.bf16.mxu0 %v2206_v50  ;;  %2300 = vmatprep.subr.bf16.mxu1 %v7131_v45 }
 0x753   : > { %2248 = vmatpush1.bf16.msra.mxu0 %v2205_v52 }
 0x755   : > { %2301 = vmatpush1.bf16.msra.mxu1 %v2210_v53  ;;  %v2209_v54 = vld [vmem:[#allocation3 + $0xb0] sm:$0xff]  ;;  %v2208_v55 = vld [vmem:[#allocation3 + $0xa8] sm:$0xff] }
 0x756   : > { %2249 = vmatprep.subr.bf16.mxu0 %v2209_v54  ;;  %2302 = vmatprep.subr.bf16.mxu1 %v7131_v45 }
 0x757   : > { %2250 = vmatpush1.bf16.msra.mxu0 %v2208_v55 }
 0x758   : > { %v2213_v58 = vld [vmem:[#allocation3 + $0xd0] sm:$0xff]  ;;  %v2211_v1 = vld [vmem:[#allocation3 + $0xc0] sm:$0xff] }
 0x759   : > { %2303 = vmatpush1.bf16.msra.mxu1 %v2213_v58  ;;  %v2212_v62 = vld [vmem:[#allocation3 + $0xc8] sm:$0xff] }
 0x75a   : > { %2251 = vmatprep.subr.bf16.mxu0 %v2212_v62  ;;  %2651 = vmatprep.subr.bf16.mxu1 %v7131_v45 }
 0x75b   : > { %2252 = vmatpush1.bf16.msra.mxu0 %v2211_v1 }
 0x75c   : > { %2319 = vmatmul.mubr.bf16.vlgmr.msra.gmra.mrb[32].mxu1 %v7038_v61 }
 0x75d   : > { %6891 = vmatprep.mubr.msk.bf16.mxu1 %vm977_vm2, %v6887_v2 }
 0x75e   : > { %2268 = vmatmul.mubr.bf16.vlgmr.msra.gmra.mrb[32].mxu0 %v7038_v61 }
 0x75f   : > { %6889 = vmatprep.mubr.msk.bf16.mxu0 %vm977_vm2, %v6887_v2 }
 0x761   : > { %v2358_v16 = vpop.permute.xlu1 %2357 }
 0x764   : > { %2327 = vmatmul.mubr.bf16.gmra.mrb[36].mxu1 %v6886_v63 }
 0x766   : > { %2278 = vmatmul.mubr.bf16.gmra.mrb[36].mxu0 %v6886_v63 }
 0x82f   : > { %v2320_v5 = vpop.f32.mrb[32].mxu1 }
 0x830   : > { %v2336_v7 = vadd.f32 %v2320_v5, %v2177_v3  ;;  %v2322_v8 = vpop.f32.mrb[33].mxu1 }
 0x831   : > { %v2269_v11 = vpop.f32.mrb[32].mxu0  ;;  %v2323_v10 = vpop.f32.mrb[34].mxu1 }
 0x832   : > { %2345 = vst.msk [vmem:[#allocation2 + $0x58] sm:$0xff] %vm747_vm1, %v2336_v7  ;;  %v2334_v17 = vadd.f32 %v2269_v11, %v7630_v36  ;;  %v2339_v12 = vadd.f32 %v2323_v10, %v2180_v6  ;;  %v2271_v9 = vpop.f32.mrb[33].mxu0  ;;  %v2325_v14 = vpop.f32.mrb[35].mxu1 }
 0x833   : > { %v2335_v18 = vadd.f32 %v2271_v9, %v7633_v40  ;;  %v2273_v19 = vpop.f32.mrb[34].mxu0 }
 0x834   : > { %2348 = vst.msk [vmem:[#allocation2 + $0x70] sm:$0xff] %vm747_vm1, %v2339_v12  ;;  %v7741_v20 = vadd.f32 %v2273_v19, %v7638_v60  ;;  %v2275_v21 = vpop.f32.mrb[35].mxu0  ;;  %v2360_v22 = vadd.f32 %v2358_v16, %v2334_v17 }
 0x835   : > { %v7744_v23 = vadd.f32 %v2275_v21, %v7642_v59  ;;  %v2361_v24 = vadd.f32 %v2358_v16, %v2335_v18 }
 0x836   : > { %vm2363_vm0 = vcmp.ge.f32.partialorder %v2360_v22, 0.0  ;;  %v2366_v36 = vmul.f32 0.2, %v2360_v22 }
 0x837   : > { %v2328_v25 = vpop.f32.mrb[36].mxu1  ;;  %vm2364_vm10 = vcmp.ge.f32.partialorder %v2361_v24, 0.0  ;;  %v2367_v15 = vmul.f32 0.2, %v2361_v24 }
 0x838   : > { %v2342_v29 = vadd.f32 %v2328_v25, %v2183_v13  ;;  %v2369_v40 = vsel %vm2363_vm0, %v2360_v22, %v2366_v36  ;;  %v2330_v30 = vpop.f32.mrb[37].mxu1  ;;  %v7045_v13 = vld [vmem:[%s9007_s5 + $0x4] ss:$8 sps:$4 sm:$0xff]   ;;  %vm9076_vm0 = vcmask 736256  }
 0x839   : > { %v2279_v31 = vpop.f32.mrb[36].mxu0  ;;  %v2372_v32 = vmul.f32 %v7274_v26, %v2369_v40  ;;  %v2370_v60 = vsel %vm2364_vm10, %v2361_v24, %v2367_v15  ;;  %v2354_v33 = vld [vmem:[#allocation2 + $0x58] sm:$0xff]  ;;  %v2331_v35 = vpop.f32.mrb[38].mxu1  ;;  %6895 = vmatprep.mubr.msk.bf16.mxu1 %vm977_vm2, %v7045_v13  ;;  %6894 = vmatprep.mubr.msk.bf16.mxu0 %vm977_vm2, %v7045_v13  ;;  %v712_v40 = vld [vmem:[%s9008_s6 + $0x28] sm:$0xff]  ;;  %vm9077_vm10 = vmmov %vm9076_vm0 }
 0x83a   : > { %2351 = vst.msk [vmem:[#allocation2 + $0x88] sm:$0xff] %vm747_vm1, %v2342_v29  ;;  %v7749_v59 = vadd.f32 %v2279_v31, %v7646_v0  ;;  %v2281_v38 = vpop.f32.mrb[37].mxu0  ;;  %v2373_v39 = vmul.f32 %v7276_v27, %v2370_v60  ;;  %v2362_v41 = vadd.f32 %v2358_v16, %v2354_v33  ;;  %v2332_v34 = vpop.f32.mrb[39].mxu1  ;;  %v711_v29 = vld [vmem:[%s9008_s6 + $0x20] sm:$0xff] }
 0x83b   : > { %v7753_v42 = vadd.f32 %v2281_v38, %v7649_v4  ;;  %v2375_v49 = vpack.c.bf16 %v2372_v32, %v2372_v32  ;;  %v2283_v43 = vpop.f32.mrb[38].mxu0 }
 0x83c   : > { %v2376_v44 = vpack.c.bf16 %v2373_v39, %v2373_v39  ;;  %vm2365_vm14 = vcmp.ge.f32.partialorder %v2362_v41, 0.0  ;;  %v2368_v37 = vmul.f32 0.2, %v2362_v41  ;;  %v2284_v46 = vpop.f32.mrb[39].mxu0 }
 0x83d   : > { %2381 = vrot.lane.b32.xlu0 %v2375_v49, %s9061_s1 }
 0x83e   : > { %2383 = vrot.lane.b32.xlu1 %v2376_v44, %s9061_s1  ;;  %v2371_v0 = vsel %vm2365_vm14, %v2362_v41, %v2368_v37  ;;  %vm9078_vm14 = vcmask 1047704  }
 0x83f   : > { %v2374_v47 = vmul.f32 %v7278_v28, %v2371_v0 }
 0x841   : > { %v2377_v51 = vpack.c.bf16 %v2374_v47, %v2374_v47 }
 0x843   : > { %2385 = vrot.lane.b32.xlu0 %v2377_v51, %s9061_s1 }
 0x8af   : > { %v2382_v48 = vpop.permute.xlu0 %2381 }
 0x8b0   : > { %2392 = vst.msk [vmem:[#allocation4] sm:$0xf] %vm1165_vm11, %v2382_v48  ;;  %v2384_v4 = vpop.permute.xlu1 %2383 }
 0x8b1   : > { %v2387_v56 = vsel %vm731_vm15, %v2382_v48, %v2384_v4 }
 0x8b2   : > { %2393 = vst [vmem:[#allocation4 + $0x8] sm:$0xf] %v2387_v56 }
 0x8b5   : > { %v2386_v50 = vpop.permute.xlu0 %2385 }
 0x8b6   : > { %v2388_v52 = vsel %vm731_vm15, %v2384_v4, %v2386_v50 }
 0x8b7   : > { %2394 = vst.msk [vmem:[#allocation4 + $0x10] sm:$0xf] %vm1168_vm12, %v2388_v52  ;;  %v2421_v53 = vld [vmem:[#allocation4] sm:$0xf] }
 0x8b8   : > { %v2401_v54 = vld [vmem:[#allocation4] sm:$0xf]  ;;  %2427 = vrot.lane.b32.xlu0 %v2421_v53, %s9069_s19 }
 0x8b9   : > { %2407 = vrot.lane.b32.xlu1 %v2401_v54, %s9062_s25  ;;  %v2396_v55 = vld [vmem:[#allocation4 + $0x8] sm:$0xf]  ;;  %v2395_v57 = vld [vmem:[#allocation4] sm:$0xf] }
 0x8ba   : > { %2399 = vst [vmem:[#allocation3 + $0x8] sm:$0xf] %v2396_v55  ;;  %2398 = vst [vmem:[#allocation3] sm:$0xf] %v2395_v57  ;;  %v2461_v58 = vld [vmem:[#allocation4] sm:$0xf] }
 0x8bb   : > { %v2441_v61 = vld [vmem:[#allocation4] sm:$0xf]  ;;  %v2422_v11 = vld [vmem:[#allocation4 + $0x8] sm:$0xf] }
 0x8bc   : > { %2467 = vrot.lane.b32.xlu0 %v2461_v58, %s9070_s30  ;;  %v2501_v1 = vld [vmem:[#allocation4] sm:$0xf]  ;;  %v2402_v6 = vld [vmem:[#allocation4 + $0x8] sm:$0xf] }
 0x8bd   : > { %2447 = vrot.lane.b32.xlu1 %v2441_v61, %s9071_s20  ;;  %v2481_v2 = vld [vmem:[#allocation4] sm:$0xf]  ;;  %v2462_v12 = vld [vmem:[#allocation4 + $0x8] sm:$0xf] }
 0x8be   : > { %v2397_v62 = vld [vmem:[#allocation4 + $0x10] sm:$0xf]  ;;  %v2521_v5 = vld [vmem:[#allocation4] sm:$0xf]  ;;  %v2442_v9 = vld [vmem:[#allocation4 + $0x8] sm:$0xf] }
 0x8bf   : > { %2400 = vst.msk [vmem:[#allocation3 + $0x10] sm:$0xf] %vm1175_vm13, %v2397_v62  ;;  %v2403_v7 = vld [vmem:[#allocation4 + $0x10] sm:$0xf]  ;;  %v2502_v18 = vld [vmem:[#allocation4 + $0x8] sm:$0xf] }
 0x8c0   : > { %2507 = vrot.lane.b32.xlu0 %v2501_v1, %s9072_s26  ;;  %v2443_v10 = vld [vmem:[#allocation4 + $0x10] sm:$0xf]  ;;  %v2482_v19 = vld [vmem:[#allocation4 + $0x8] sm:$0xf]  ;;  %v2541_v25 = vld [vmem:[#allocation4] sm:$0xf] }
 0x8c1   : > { %2487 = vrot.lane.b32.xlu1 %v2481_v2, %s9063_s28  ;;  %v2570_v63 = vld [vmem:[#allocation3 + $0x8] sm:$0xff]  ;;  %v2569_v3 = vld [vmem:[#allocation3] sm:$0xff] }
 0x8c2   : > { %2608 = vmatprep.subr.bf16.mxu0 %v2570_v63  ;;  %v2423_v17 = vld [vmem:[#allocation4 + $0x10] sm:$0xf]  ;;  %v2542_v24 = vld [vmem:[#allocation4 + $0x8] sm:$0xf] }
 0x8c3   : > { %2609 = vmatpush1.bf16.msra.mxu0 %v2569_v3  ;;  %v2483_v14 = vld [vmem:[#allocation4 + $0x10] sm:$0xf]  ;;  %v2522_v36 = vld [vmem:[#allocation4 + $0x8] sm:$0xf] }
 0x8c4   : > { %2411 = vrot.lane.b32.xlu0 %v2403_v7, %s9062_s25  ;;  %v2463_v16 = vld [vmem:[#allocation4 + $0x10] sm:$0xf] }
 0x8c5   : > { %2527 = vrot.lane.b32.xlu1 %v2521_v5, %s9064_s2  ;;  %v2523_v21 = vld [vmem:[#allocation4 + $0x10] sm:$0xf] }
 0x8c6   : > { %v2571_v8 = vld [vmem:[#allocation3 + $0x10] sm:$0xff]  ;;  %v2503_v22 = vld [vmem:[#allocation4 + $0x10] sm:$0xf] }
 0x8c7   : > { %2652 = vmatpush1.bf16.msra.mxu1 %v2571_v8  ;;  %v2543_v15 = vld [vmem:[#allocation4 + $0x10] sm:$0xf] }
 0x8c8   : > { %2429 = vrot.lane.b32.xlu0 %v2422_v11, %s9069_s19  ;;  %2653 = vmatprep.subr.bf16.mxu1 %v7131_v45 }
 0x8c9   : > { %2409 = vrot.lane.b32.xlu1 %v2402_v6, %s9062_s25 }
 0x8cc   : > { %2451 = vrot.lane.b32.xlu0 %v2443_v10, %s9071_s20 }
 0x8cd   : > { %2431 = vrot.lane.b32.xlu1 %v2423_v17, %s9069_s19 }
 0x8d0   : > { %2469 = vrot.lane.b32.xlu0 %v2462_v12, %s9070_s30 }
 0x8d1   : > { %2449 = vrot.lane.b32.xlu1 %v2442_v9, %s9071_s20 }
 0x8d4   : > { %2491 = vrot.lane.b32.xlu0 %v2483_v14, %s9063_s28 }
 0x8d5   : > { %2471 = vrot.lane.b32.xlu1 %v2463_v16, %s9070_s30 }
 0x8d8   : > { %2509 = vrot.lane.b32.xlu0 %v2502_v18, %s9072_s26 }
 0x8d9   : > { %2489 = vrot.lane.b32.xlu1 %v2482_v19, %s9063_s28 }
 0x8dc   : > { %2531 = vrot.lane.b32.xlu0 %v2523_v21, %s9064_s2 }
 0x8dd   : > { %2511 = vrot.lane.b32.xlu1 %v2503_v22, %s9072_s26 }
 0x8e0   : > { %2549 = vrot.lane.b32.xlu0 %v2542_v24, %s9065_s21 }
 0x8e1   : > { %2529 = vrot.lane.b32.xlu1 %v2522_v36, %s9064_s2 }
 0x8e4   : > { %2547 = vrot.lane.b32.xlu0 %v2541_v25, %s9065_s21 }
 0x8e5   : > { %2551 = vrot.lane.b32.xlu1 %v2543_v15, %s9065_s21 }
 0x8e8   : > { %2717 = vperm.xlu0 %7014, %v712_v40  }
 0x8e9   : > { %2712 = vperm.xlu1 %7013, %v711_v29  }
 0x92a   : > { %v2428_v30 = vpop.permute.xlu0 %2427 }
 0x92b   : > { %v2408_v31 = vpop.permute.xlu1 %2407 }
 0x92e   : > { %v2468_v32 = vpop.permute.xlu0 %2467 }
 0x92f   : > { %v2448_v60 = vpop.permute.xlu1 %2447 }
 0x932   : > { %v2508_v33 = vpop.permute.xlu0 %2507 }
 0x933   : > { %v2488_v35 = vpop.permute.xlu1 %2487 }
 0x936   : > { %v2412_v38 = vpop.permute.xlu0 %2411 }
 0x937   : > { %v7800_v39 = vpop.permute.xlu1 %2527  ;;  %2420 = vst.msk [vmem:[#allocation3 + $0x28] sm:$0xf] %vm1175_vm13, %v2412_v38 }
 0x93a   : > { %v2430_v41 = vpop.permute.xlu0 %2429 }
 0x93b   : > { %v2410_v34 = vpop.permute.xlu1 %2409  ;;  %v2433_v49 = vsel %vm782_vm4, %v2428_v30, %v2430_v41 }
 0x93c   : > { %v2413_v43 = vsel %vm761_vm3, %v2408_v31, %v2410_v34  ;;  %v2414_v44 = vsel %vm761_vm3, %v2410_v34, %v2412_v38  ;;  %2438 = vst [vmem:[#allocation3 + $0x30] sm:$0xf] %v2433_v49  ;;  %v7043_v38 = vld [vmem:[%s9007_s5] ss:$8 sps:$4 sm:$0xff]   ;;  %v2563_v34 = vld [vmem:[#allocation2 + $0x70] sm:$0xff] }
 0x93d   : > { %2418 = vst [vmem:[#allocation3 + $0x18] sm:$0xf] %v2413_v43  ;;  %2419 = vst [vmem:[#allocation3 + $0x20] sm:$0xf] %v2414_v44 }
 0x93e   : > { %v2452_v37 = vpop.permute.xlu0 %2451  ;;  %v2574_v0 = vld [vmem:[#allocation3 + $0x28] sm:$0xff] }
 0x93f   : > { %v2432_v46 = vpop.permute.xlu1 %2431  ;;  %2460 = vst.msk [vmem:[#allocation3 + $0x58] sm:$0xf] %vm1175_vm13, %v2452_v37  ;;  %2654 = vmatpush1.bf16.msra.mxu1 %v2574_v0  ;;  %v2566_v0 = vld [vmem:[#allocation2 + $0x88] sm:$0xff] }
 0x940   : > { %v2434_v47 = vsel %vm782_vm4, %v2430_v41, %v2432_v46  ;;  %2440 = vst.msk [vmem:[#allocation3 + $0x40] sm:$0xf] %vm1175_vm13, %v2432_v46  ;;  %2655 = vmatprep.subr.bf16.mxu1 %v7131_v45 }
 0x941   : > { %2439 = vst [vmem:[#allocation3 + $0x38] sm:$0xf] %v2434_v47 }
 0x942   : > { %v2470_v51 = vpop.permute.xlu0 %2469 }
 0x943   : > { %v2450_v48 = vpop.permute.xlu1 %2449  ;;  %v2473_v4 = vsel %vm824_vm6, %v2468_v32, %v2470_v51  ;;  %v2575_v62 = vld [vmem:[#allocation3 + $0x30] sm:$0xff] }
 0x944   : > { %v2453_v56 = vsel %vm803_vm5, %v2448_v60, %v2450_v48  ;;  %v2454_v50 = vsel %vm803_vm5, %v2450_v48, %v2452_v37  ;;  %v2573_v52 = vld [vmem:[#allocation3 + $0x20] sm:$0xff]  ;;  %v2572_v53 = vld [vmem:[#allocation3 + $0x18] sm:$0xff]  ;;  %2478 = vst [vmem:[#allocation3 + $0x60] sm:$0xf] %v2473_v4 }
 0x945   : > { %2458 = vst [vmem:[#allocation3 + $0x48] sm:$0xf] %v2453_v56  ;;  %2459 = vst [vmem:[#allocation3 + $0x50] sm:$0xf] %v2454_v50  ;;  %2610 = vmatprep.subr.bf16.mxu0 %v2573_v52 }
 0x946   : > { %2611 = vmatpush1.bf16.msra.mxu0 %v2572_v53  ;;  %v2492_v54 = vpop.permute.xlu0 %2491  ;;  %v2580_v63 = vld [vmem:[#allocation3 + $0x58] sm:$0xff] }
 0x947   : > { %v2472_v55 = vpop.permute.xlu1 %2471  ;;  %v2577_v57 = vld [vmem:[#allocation3 + $0x40] sm:$0xff]  ;;  %2500 = vst.msk [vmem:[#allocation3 + $0x88] sm:$0xf] %vm1175_vm13, %v2492_v54 }
 0x948   : > { %v2474_v58 = vsel %vm824_vm6, %v2470_v51, %v2472_v55  ;;  %2480 = vst.msk [vmem:[#allocation3 + $0x70] sm:$0xf] %vm1175_vm13, %v2472_v55  ;;  %2656 = vmatpush1.bf16.msra.mxu1 %v2577_v57  ;;  %v2576_v61 = vld [vmem:[#allocation3 + $0x38] sm:$0xff] }
 0x949   : > { %2479 = vst [vmem:[#allocation3 + $0x68] sm:$0xf] %v2474_v58  ;;  %2612 = vmatprep.subr.bf16.mxu0 %v2576_v61  ;;  %2657 = vmatprep.subr.bf16.mxu1 %v7131_v45 }
 0x94a   : > { %2613 = vmatpush1.bf16.msra.mxu0 %v2575_v62  ;;  %v2510_v1 = vpop.permute.xlu0 %2509 }
 0x94b   : > { %v2490_v2 = vpop.permute.xlu1 %2489  ;;  %v2513_v3 = vsel %vm866_vm8, %v2508_v33, %v2510_v1  ;;  %v2581_v14 = vld [vmem:[#allocation3 + $0x60] sm:$0xff] }
 0x94c   : > { %v2493_v5 = vsel %vm845_vm7, %v2488_v35, %v2490_v2  ;;  %v2494_v7 = vsel %vm845_vm7, %v2490_v2, %v2492_v54  ;;  %2658 = vmatpush1.bf16.msra.mxu1 %v2580_v63  ;;  %v2579_v8 = vld [vmem:[#allocation3 + $0x50] sm:$0xff]  ;;  %v2578_v11 = vld [vmem:[#allocation3 + $0x48] sm:$0xff]  ;;  %2518 = vst [vmem:[#allocation3 + $0x90] sm:$0xf] %v2513_v3 }
 0x94d   : > { %2498 = vst [vmem:[#allocation3 + $0x78] sm:$0xf] %v2493_v5  ;;  %2499 = vst [vmem:[#allocation3 + $0x80] sm:$0xf] %v2494_v7  ;;  %2614 = vmatprep.subr.bf16.mxu0 %v2579_v8  ;;  %2659 = vmatprep.subr.bf16.mxu1 %v7131_v45  ;;  %v7109_v8 = vld [vmem:[%s7258_s23 + $0x18] sm:$0xff] }
 0x94e   : > { %2615 = vmatpush1.bf16.msra.mxu0 %v2578_v11  ;;  %v2532_v6 = vpop.permute.xlu0 %2531  ;;  %v2586_v19 = vld [vmem:[#allocation3 + $0x88] sm:$0xff] }
 0x94f   : > { %v2512_v10 = vpop.permute.xlu1 %2511  ;;  %v2583_v17 = vld [vmem:[#allocation3 + $0x70] sm:$0xff]  ;;  %2540 = vst.msk [vmem:[#allocation3 + $0xb8] sm:$0xf] %vm1175_vm13, %v2532_v6 }
 0x950   : > { %v2514_v12 = vsel %vm866_vm8, %v2510_v1, %v2512_v10  ;;  %2520 = vst.msk [vmem:[#allocation3 + $0xa0] sm:$0xf] %vm1175_vm13, %v2512_v10  ;;  %2660 = vmatpush1.bf16.msra.mxu1 %v2583_v17  ;;  %v2582_v9 = vld [vmem:[#allocation3 + $0x68] sm:$0xff]  ;;  %v7111_v17 = vld [vmem:[%s7258_s23 + $0x8] sm:$0xff] }
 0x951   : > { %2519 = vst [vmem:[#allocation3 + $0x98] sm:$0xf] %v2514_v12  ;;  %2616 = vmatprep.subr.bf16.mxu0 %v2582_v9  ;;  %2661 = vmatprep.subr.bf16.mxu1 %v7131_v45 }
 0x952   : > { %2617 = vmatpush1.bf16.msra.mxu0 %v2581_v14  ;;  %v2550_v16 = vpop.permute.xlu0 %2549 }
 0x953   : > { %v2530_v18 = vpop.permute.xlu1 %2529  ;;  %v2587_v31 = vld [vmem:[#allocation3 + $0x90] sm:$0xff] }
 0x954   : > { %v2533_v21 = vsel %vm887_vm9, %v7800_v39, %v2530_v18  ;;  %v2534_v22 = vsel %vm887_vm9, %v2530_v18, %v2532_v6  ;;  %2662 = vmatpush1.bf16.msra.mxu1 %v2586_v19  ;;  %v2585_v24 = vld [vmem:[#allocation3 + $0x80] sm:$0xff]  ;;  %v2584_v36 = vld [vmem:[#allocation3 + $0x78] sm:$0xff] }
 0x955   : > { %2538 = vst [vmem:[#allocation3 + $0xa8] sm:$0xf] %v2533_v21  ;;  %2539 = vst [vmem:[#allocation3 + $0xb0] sm:$0xf] %v2534_v22  ;;  %2618 = vmatprep.subr.bf16.mxu0 %v2585_v24  ;;  %2663 = vmatprep.subr.bf16.mxu1 %v7131_v45  ;;  %v7112_v21 = vld [vmem:[%s7258_s23 + $0x10] sm:$0xff] }
 0x956   : > { %2619 = vmatpush1.bf16.msra.mxu0 %v2584_v36  ;;  %v2548_v13 = vpop.permute.xlu0 %2547  ;;  %v2592_v32 = vld [vmem:[#allocation3 + $0xb8] sm:$0xff] }
 0x957   : > { %v2552_v25 = vpop.permute.xlu1 %2551  ;;  %v2589_v15 = vld [vmem:[#allocation3 + $0xa0] sm:$0xff]  ;;  %v2553_v29 = vsel %vm9076_vm0, %v2548_v13, %v2550_v16  ;;  %v7113_v13 = vld [vmem:[%s7258_s23 + $0x28] sm:$0xff]  ;;  %vm9079_vm0 = vcmask 416768  }
 0x958   : > { %v2554_v40 = vsel %vm9077_vm10, %v2550_v16, %v2552_v25  ;;  %2560 = vst.msk [vmem:[#allocation3 + $0xd0] sm:$0xf] %vm1175_vm13, %v2552_v25  ;;  %2664 = vmatpush1.bf16.msra.mxu1 %v2589_v15  ;;  %v2588_v30 = vld [vmem:[#allocation3 + $0x98] sm:$0xff]  ;;  %2558 = vst [vmem:[#allocation3 + $0xc0] sm:$0xf] %v2553_v29 }
 0x959   : > { %2559 = vst [vmem:[#allocation3 + $0xc8] sm:$0xf] %v2554_v40  ;;  %2620 = vmatprep.subr.bf16.mxu0 %v2588_v30  ;;  %2665 = vmatprep.subr.bf16.mxu1 %v7131_v45 }
 0x95a   : > { %2621 = vmatpush1.bf16.msra.mxu0 %v2587_v31 }
 0x95c   : > { %2666 = vmatpush1.bf16.msra.mxu1 %v2592_v32  ;;  %v2591_v60 = vld [vmem:[#allocation3 + $0xb0] sm:$0xff]  ;;  %v2590_v33 = vld [vmem:[#allocation3 + $0xa8] sm:$0xff] }
 0x95d   : > { %2622 = vmatprep.subr.bf16.mxu0 %v2591_v60  ;;  %2667 = vmatprep.subr.bf16.mxu1 %v7131_v45 }
 0x95e   : > { %2623 = vmatpush1.bf16.msra.mxu0 %v2590_v33 }
 0x95f   : > { %v2595_v35 = vld [vmem:[#allocation3 + $0xd0] sm:$0xff]  ;;  %v2593_v41 = vld [vmem:[#allocation3 + $0xc0] sm:$0xff] }
 0x960   : > { %2668 = vmatpush1.bf16.msra.mxu1 %v2595_v35  ;;  %v2594_v39 = vld [vmem:[#allocation3 + $0xc8] sm:$0xff] }
 0x961   : > { %2624 = vmatprep.subr.bf16.mxu0 %v2594_v39  ;;  %3068 = vmatprep.subr.bf16.mxu1 %v7131_v45 }
 0x962   : > { %2625 = vmatpush1.bf16.msra.mxu0 %v2593_v41 }
 0x963   : > { %2684 = vmatmul.mubr.bf16.vlgmr.msra.gmra.mrb[40].mxu1 %v7043_v38 }
 0x965   : > { %2641 = vmatmul.mubr.bf16.vlgmr.msra.gmra.mrb[40].mxu0 %v7043_v38 }
 0x967   : > { %v2718_v53 = vpop.permute.xlu0 %2717 }
 0x968   : > { %v2713_v43 = vpop.permute.xlu1 %2712 }
 0xa36   : > { %v2685_v49 = vpop.f32.mrb[40].mxu1 }
 0xa37   : > { %v2694_v44 = vadd.f32 %v2685_v49, %v2563_v34  ;;  %v2687_v37 = vpop.f32.mrb[41].mxu1  ;;  %v7046_v49 = vld [vmem:[%s9009_s7 + $0x4] ss:$8 sps:$4 sm:$0xff]  }
 0xa38   : > { %v2642_v46 = vpop.f32.mrb[40].mxu0  ;;  %v2688_v47 = vpop.f32.mrb[42].mxu1  ;;  %6905 = vmatprep.mubr.msk.bf16.mxu1 %vm977_vm2, %v7046_v49  ;;  %6902 = vmatprep.mubr.msk.bf16.mxu0 %vm977_vm2, %v7046_v49 }
 0xa39   : > { %2700 = vst.msk [vmem:[#allocation2 + $0x70] sm:$0xff] %vm747_vm1, %v2694_v44  ;;  %v2692_v51 = vadd.f32 %v2642_v46, %v7741_v20  ;;  %v2697_v48 = vadd.f32 %v2688_v47, %v2566_v0  ;;  %v2644_v4 = vpop.f32.mrb[41].mxu0  ;;  %v2690_v56 = vpop.f32.mrb[43].mxu1 }
 0xa3a   : > { %v2693_v50 = vadd.f32 %v2644_v4, %v7744_v23  ;;  %v2646_v52 = vpop.f32.mrb[42].mxu0  ;;  %v7108_v23 = vld [vmem:[%s7258_s23] sm:$0xff] }
 0xa3b   : > { %2703 = vst.msk [vmem:[#allocation2 + $0x88] sm:$0xff] %vm747_vm1, %v2697_v48  ;;  %v2695_v54 = vadd.f32 %v2646_v52, %v7749_v59  ;;  %v2648_v55 = vpop.f32.mrb[43].mxu0  ;;  %v2720_v57 = vadd.f32 %v2713_v43, %v2692_v51 }
 0xa3c   : > { %v2696_v58 = vadd.f32 %v2648_v55, %v7753_v42  ;;  %v2721_v61 = vadd.f32 %v2713_v43, %v2693_v50  ;;  %v7110_v42 = vld [vmem:[%s7258_s23 + $0x20] sm:$0xff] }
 0xa3d   : > { %v2723_v20 = vadd.f32 %v2718_v53, %v2695_v54  ;;  %v2726_v62 = vmul.f32 0.2, %v2720_v57 }
 0xa3e   : > { %v2724_v1 = vadd.f32 %v2718_v53, %v2696_v58  ;;  %v2727_v2 = vmul.f32 0.2, %v2721_v61 }
 0xa3f   : > { %v2729_v63 = vmul.f32 0.2, %v2723_v20  ;;  %v7845_v3 = vadd.f32 %v7108_v23, %v2726_v62 }
 0xa40   : > { %v2730_v5 = vmul.f32 0.2, %v2724_v1  ;;  %v2706_v7 = vld [vmem:[#allocation2 + $0x70] sm:$0xff]  ;;  %v7854_v12 = vadd.f32 %v7111_v17, %v2727_v2 }
 0xa41   : > { %v7848_v59 = vadd.f32 %v7109_v8, %v2729_v63  ;;  %v2722_v11 = vadd.f32 %v2713_v43, %v2706_v7  ;;  %v2744_v16 = vmul.f32 %v7274_v26, %v7845_v3  ;;  %v2738_v43 = vld [vmem:[%s9014_s12] sm:$0xff] }
 0xa42   : > { %v2709_v6 = vld [vmem:[#allocation2 + $0x88] sm:$0xff]  ;;  %v7851_v10 = vadd.f32 %v7110_v42, %v2730_v5  ;;  %v2745_v15 = vmul.f32 %v7276_v27, %v7854_v12 }
 0xa43   : > { %v2725_v9 = vadd.f32 %v2718_v53, %v2709_v6  ;;  %v2728_v14 = vmul.f32 0.2, %v2722_v11  ;;  %v2747_v18 = vmul.f32 %v7274_v26, %v7848_v59 }
 0xa44   : > { %v2748_v36 = vmul.f32 %v7276_v27, %v7851_v10 }
 0xa45   : > { %v2731_v19 = vmul.f32 0.2, %v2725_v9  ;;  %v7861_v22 = vadd.f32 %v7112_v21, %v2728_v14  ;;  %v2750_v24 = vpack.c.bf16 %v2747_v18, %v2744_v16 }
 0xa46   : > { %v2751_v30 = vpack.c.bf16 %v2748_v36, %v2745_v15 }
 0xa47   : > { %v7866_v25 = vadd.f32 %v7113_v13, %v2731_v19  ;;  %2756 = vrot.lane.b32.xlu1 %v2750_v24, %s9061_s1  ;;  %v2746_v29 = vmul.f32 %v7278_v28, %v7861_v22 }
 0xa49   : > { %v2749_v40 = vmul.f32 %v7278_v28, %v7866_v25 }
 0xa4b   : > { %v2752_v31 = vpack.c.bf16 %v2749_v40, %v2746_v29  ;;  %2758 = vrot.lane.b32.xlu1 %v2751_v30, %s9061_s1 }
 0xa4d   : > { %2760 = vrot.lane.b32.xlu0 %v2752_v31, %s9061_s1 }
 0xab9   : > { %v2757_v32 = vpop.permute.xlu1 %2756 }
 0xaba   : > { %2767 = vst.msk [vmem:[#allocation4] sm:$0xff] %vm9078_vm14, %v2757_v32  ;;  %vm9080_vm14 = vmmov %vm9077_vm10 }
 0xabd   : > { %v2759_v60 = vpop.permute.xlu1 %2758 }
 0xabe   : > { %v2762_v33 = vsel %vm731_vm15, %v2757_v32, %v2759_v60 }
 0xabf   : > { %v2761_v35 = vpop.permute.xlu0 %2760  ;;  %2768 = vst [vmem:[#allocation4 + $0x8] sm:$0xff] %v2762_v33  ;;  %2774 = vst [vmem:[#allocation3 + $0x8] sm:$0xff] %v2762_v33  ;;  %3005 = vmatprep.subr.bf16.mxu0 %v2762_v33 }
 0xac0   : > { %v2763_v38 = vsel %vm731_vm15, %v2759_v60, %v2761_v35 }
 0xac1   : > { %2769 = vst.msk [vmem:[#allocation4 + $0x10] sm:$0xff] %vm9079_vm0, %v2763_v38  ;;  %v2796_v39 = vld [vmem:[#allocation4] sm:$0xff] }
 0xac2   : > { %2802 = vrot.lane.b32.xlu0 %v2796_v39, %s9069_s19  ;;  %2782 = vrot.lane.b32.xlu1 %v2796_v39, %s9062_s25  ;;  %2773 = vst [vmem:[#allocation3] sm:$0xff] %v2796_v39 }
 0xac3   : > { %3006 = vmatpush1.bf16.msra.mxu0 %v2796_v39 }
 0xac6   : > { %2842 = vrot.lane.b32.xlu0 %v2796_v39, %s9070_s30  ;;  %2822 = vrot.lane.b32.xlu1 %v2796_v39, %s9071_s20 }
 0xac8   : > { %v2778_v41 = vld [vmem:[#allocation4 + $0x10] sm:$0xff] }
 0xac9   : > { %2775 = vst.msk [vmem:[#allocation3 + $0x10] sm:$0xff] %vm747_vm1, %v2778_v41 }
 0xaca   : > { %2882 = vrot.lane.b32.xlu0 %v2796_v39, %s9072_s26  ;;  %2862 = vrot.lane.b32.xlu1 %v2796_v39, %s9063_s28 }
 0xace   : > { %2902 = vrot.lane.b32.xlu1 %v2796_v39, %s9064_s2  ;;  %2786 = vrot.lane.b32.xlu0 %v2778_v41, %s9062_s25 }
 0xad0   : > { %v2944_v34 = vld [vmem:[#allocation3 + $0x10] sm:$0xff] }
 0xad1   : > { %3069 = vmatpush1.bf16.msra.mxu1 %v2944_v34 }
 0xad2   : > { %2804 = vrot.lane.b32.xlu0 %v2762_v33, %s9069_s19  ;;  %2784 = vrot.lane.b32.xlu1 %v2762_v33, %s9062_s25 }
 0xad3   : > { %3070 = vmatprep.subr.bf16.mxu1 %v7131_v45 }
 0xad6   : > { %2826 = vrot.lane.b32.xlu0 %v2778_v41, %s9071_s20  ;;  %2806 = vrot.lane.b32.xlu1 %v2778_v41, %s9069_s19 }
 0xada   : > { %2844 = vrot.lane.b32.xlu0 %v2762_v33, %s9070_s30  ;;  %2824 = vrot.lane.b32.xlu1 %v2762_v33, %s9071_s20 }
 0xade   : > { %2866 = vrot.lane.b32.xlu0 %v2778_v41, %s9063_s28  ;;  %2846 = vrot.lane.b32.xlu1 %v2778_v41, %s9070_s30 }
 0xae2   : > { %2884 = vrot.lane.b32.xlu0 %v2762_v33, %s9072_s26  ;;  %2864 = vrot.lane.b32.xlu1 %v2762_v33, %s9063_s28 }
 0xae6   : > { %2906 = vrot.lane.b32.xlu0 %v2778_v41, %s9064_s2  ;;  %2886 = vrot.lane.b32.xlu1 %v2778_v41, %s9072_s26 }
 0xaea   : > { %2924 = vrot.lane.b32.xlu0 %v2762_v33, %s9065_s21  ;;  %2904 = vrot.lane.b32.xlu1 %v2762_v33, %s9064_s2  ;;  %v7048_v33 = vld [vmem:[%s9009_s7] ss:$8 sps:$4 sm:$0xff]  }
 0xaee   : > { %2922 = vrot.lane.b32.xlu0 %v2796_v39, %s9065_s21  ;;  %2926 = vrot.lane.b32.xlu1 %v2778_v41, %s9065_s21 }
 0xaf2   : > { %3148 = vperm.xlu1 %7013, %v2738_v43  }
 0xb34   : > { %v2803_v44 = vpop.permute.xlu0 %2802  ;;  %v2783_v37 = vpop.permute.xlu1 %2782 }
 0xb38   : > { %v2843_v46 = vpop.permute.xlu0 %2842  ;;  %v2823_v0 = vpop.permute.xlu1 %2822 }
 0xb3c   : > { %v2883_v47 = vpop.permute.xlu0 %2882  ;;  %v2863_v51 = vpop.permute.xlu1 %2862 }
 0xb40   : > { %v2787_v48 = vpop.permute.xlu0 %2786  ;;  %v7915_v4 = vpop.permute.xlu1 %2902 }
 0xb41   : > { %2795 = vst.msk [vmem:[#allocation3 + $0x28] sm:$0xff] %vm747_vm1, %v2787_v48 }
 0xb44   : > { %v2805_v56 = vpop.permute.xlu0 %2804  ;;  %v2785_v50 = vpop.permute.xlu1 %2784 }
 0xb45   : > { %v2808_v52 = vsel %vm782_vm4, %v2803_v44, %v2805_v56  ;;  %v2788_v53 = vsel %vm761_vm3, %v2783_v37, %v2785_v50  ;;  %v2789_v54 = vsel %vm761_vm3, %v2785_v50, %v2787_v48 }
 0xb46   : > { %2813 = vst [vmem:[#allocation3 + $0x30] sm:$0xff] %v2808_v52  ;;  %2793 = vst [vmem:[#allocation3 + $0x18] sm:$0xff] %v2788_v53  ;;  %3007 = vmatprep.subr.bf16.mxu0 %v2789_v54 }
 0xb47   : > { %2794 = vst [vmem:[#allocation3 + $0x20] sm:$0xff] %v2789_v54  ;;  %3008 = vmatpush1.bf16.msra.mxu0 %v2788_v53 }
 0xb48   : > { %v2827_v55 = vpop.permute.xlu0 %2826  ;;  %v2807_v57 = vpop.permute.xlu1 %2806  ;;  %v2947_v58 = vld [vmem:[#allocation3 + $0x28] sm:$0xff] }
 0xb49   : > { %2835 = vst.msk [vmem:[#allocation3 + $0x58] sm:$0xff] %vm747_vm1, %v2827_v55  ;;  %v2809_v61 = vsel %vm782_vm4, %v2805_v56, %v2807_v57  ;;  %2815 = vst.msk [vmem:[#allocation3 + $0x40] sm:$0xff] %vm747_vm1, %v2807_v57  ;;  %3071 = vmatpush1.bf16.msra.mxu1 %v2947_v58 }
 0xb4a   : > { %2814 = vst [vmem:[#allocation3 + $0x38] sm:$0xff] %v2809_v61  ;;  %3072 = vmatprep.subr.bf16.mxu1 %v7131_v45  ;;  %3009 = vmatprep.subr.bf16.mxu0 %v2809_v61 }
 0xb4b   : > { %3010 = vmatpush1.bf16.msra.mxu0 %v2808_v52 }
 0xb4c   : > { %v2845_v20 = vpop.permute.xlu0 %2844  ;;  %v2825_v62 = vpop.permute.xlu1 %2824 }
 0xb4d   : > { %v2848_v1 = vsel %vm824_vm6, %v2843_v46, %v2845_v20  ;;  %v2828_v2 = vsel %vm803_vm5, %v2823_v0, %v2825_v62  ;;  %v2829_v63 = vsel %vm803_vm5, %v2825_v62, %v2827_v55 }
 0xb4e   : > { %2853 = vst [vmem:[#allocation3 + $0x60] sm:$0xff] %v2848_v1  ;;  %2833 = vst [vmem:[#allocation3 + $0x48] sm:$0xff] %v2828_v2  ;;  %3011 = vmatprep.subr.bf16.mxu0 %v2829_v63 }
 0xb4f   : > { %2834 = vst [vmem:[#allocation3 + $0x50] sm:$0xff] %v2829_v63  ;;  %3012 = vmatpush1.bf16.msra.mxu0 %v2828_v2 }
 0xb50   : > { %v2867_v23 = vpop.permute.xlu0 %2866  ;;  %v2847_v5 = vpop.permute.xlu1 %2846  ;;  %v2950_v7 = vld [vmem:[#allocation3 + $0x40] sm:$0xff]  ;;  %v2953_v42 = vld [vmem:[#allocation3 + $0x58] sm:$0xff] }
 0xb51   : > { %2875 = vst.msk [vmem:[#allocation3 + $0x88] sm:$0xff] %vm747_vm1, %v2867_v23  ;;  %v2849_v8 = vsel %vm824_vm6, %v2845_v20, %v2847_v5  ;;  %2855 = vst.msk [vmem:[#allocation3 + $0x70] sm:$0xff] %vm747_vm1, %v2847_v5  ;;  %3073 = vmatpush1.bf16.msra.mxu1 %v2950_v7 }
 0xb52   : > { %2854 = vst [vmem:[#allocation3 + $0x68] sm:$0xff] %v2849_v8  ;;  %3074 = vmatprep.subr.bf16.mxu1 %v7131_v45  ;;  %3013 = vmatprep.subr.bf16.mxu0 %v2849_v8 }
 0xb53   : > { %3014 = vmatpush1.bf16.msra.mxu0 %v2848_v1 }
 0xb54   : > { %v2885_v11 = vpop.permute.xlu0 %2884  ;;  %v2865_v6 = vpop.permute.xlu1 %2864 }
 0xb55   : > { %v2888_v17 = vsel %vm866_vm8, %v2883_v47, %v2885_v11  ;;  %v2868_v9 = vsel %vm845_vm7, %v2863_v51, %v2865_v6  ;;  %v2869_v14 = vsel %vm845_vm7, %v2865_v6, %v2867_v23  ;;  %3075 = vmatpush1.bf16.msra.mxu1 %v2953_v42 }
 0xb56   : > { %2893 = vst [vmem:[#allocation3 + $0x90] sm:$0xff] %v2888_v17  ;;  %2873 = vst [vmem:[#allocation3 + $0x78] sm:$0xff] %v2868_v9  ;;  %3076 = vmatprep.subr.bf16.mxu1 %v7131_v45  ;;  %3015 = vmatprep.subr.bf16.mxu0 %v2869_v14 }
 0xb57   : > { %2874 = vst [vmem:[#allocation3 + $0x80] sm:$0xff] %v2869_v14  ;;  %3016 = vmatpush1.bf16.msra.mxu0 %v2868_v9 }
 0xb58   : > { %v2907_v16 = vpop.permute.xlu0 %2906  ;;  %v2887_v18 = vpop.permute.xlu1 %2886  ;;  %v2956_v19 = vld [vmem:[#allocation3 + $0x70] sm:$0xff]  ;;  %v2959_v13 = vld [vmem:[#allocation3 + $0x88] sm:$0xff] }
 0xb59   : > { %2915 = vst.msk [vmem:[#allocation3 + $0xb8] sm:$0xff] %vm747_vm1, %v2907_v16  ;;  %v2889_v21 = vsel %vm866_vm8, %v2885_v11, %v2887_v18  ;;  %2895 = vst.msk [vmem:[#allocation3 + $0xa0] sm:$0xff] %vm747_vm1, %v2887_v18  ;;  %3077 = vmatpush1.bf16.msra.mxu1 %v2956_v19 }
 0xb5a   : > { %2894 = vst [vmem:[#allocation3 + $0x98] sm:$0xff] %v2889_v21  ;;  %3078 = vmatprep.subr.bf16.mxu1 %v7131_v45  ;;  %3017 = vmatprep.subr.bf16.mxu0 %v2889_v21 }
 0xb5b   : > { %3018 = vmatpush1.bf16.msra.mxu0 %v2888_v17 }
 0xb5c   : > { %v2925_v24 = vpop.permute.xlu0 %2924  ;;  %v2905_v36 = vpop.permute.xlu1 %2904 }
 0xb5d   : > { %v2908_v15 = vsel %vm887_vm9, %v7915_v4, %v2905_v36  ;;  %v2909_v29 = vsel %vm887_vm9, %v2905_v36, %v2907_v16  ;;  %3079 = vmatpush1.bf16.msra.mxu1 %v2959_v13 }
 0xb5e   : > { %2913 = vst [vmem:[#allocation3 + $0xa8] sm:$0xff] %v2908_v15  ;;  %2914 = vst [vmem:[#allocation3 + $0xb0] sm:$0xff] %v2909_v29  ;;  %3080 = vmatprep.subr.bf16.mxu1 %v7131_v45  ;;  %3019 = vmatprep.subr.bf16.mxu0 %v2909_v29 }
 0xb5f   : > { %3020 = vmatpush1.bf16.msra.mxu0 %v2908_v15 }
 0xb60   : > { %v2923_v40 = vpop.permute.xlu0 %2922  ;;  %v2927_v30 = vpop.permute.xlu1 %2926  ;;  %v2962_v31 = vld [vmem:[#allocation3 + $0xa0] sm:$0xff]  ;;  %v2965_v35 = vld [vmem:[#allocation3 + $0xb8] sm:$0xff] }
 0xb61   : > { %v2928_v32 = vsel %vm9077_vm10, %v2923_v40, %v2925_v24  ;;  %v2929_v60 = vsel %vm9080_vm14, %v2925_v24, %v2927_v30  ;;  %2935 = vst.msk [vmem:[#allocation3 + $0xd0] sm:$0xff] %vm747_vm1, %v2927_v30  ;;  %3081 = vmatpush1.bf16.msra.mxu1 %v2962_v31 }
 0xb62   : > { %2933 = vst [vmem:[#allocation3 + $0xc0] sm:$0xff] %v2928_v32  ;;  %2934 = vst [vmem:[#allocation3 + $0xc8] sm:$0xff] %v2929_v60  ;;  %3082 = vmatprep.subr.bf16.mxu1 %v7131_v45  ;;  %3021 = vmatprep.subr.bf16.mxu0 %v2929_v60  ;;  %v7049_v60 = vld [vmem:[%s9009_s7 + $0x14] ss:$8 sps:$4 sm:$0xff]  }
 0xb63   : > { %3022 = vmatpush1.bf16.msra.mxu0 %v2928_v32 }
 0xb65   : > { %3083 = vmatpush1.bf16.msra.mxu1 %v2965_v35 }
 0xb66   : > { %3084 = vmatprep.subr.bf16.mxu1 %v7131_v45  ;;  %3038 = vmatmul.mubr.bf16.vlgmr.msra.gmra.mrb[44].mxu0 %v7048_v33 }
 0xb67   : > { %6903 = vmatprep.mubr.msk.bf16.mxu0 %vm977_vm2, %v7049_v60 }
 0xb68   : > { %v2968_v38 = vld [vmem:[#allocation3 + $0xd0] sm:$0xff] }
 0xb69   : > { %3085 = vmatpush1.bf16.msra.mxu1 %v2968_v38 }
 0xb6a   : > { %3493 = vmatprep.subr.bf16.mxu1 %v7131_v45 }
 0xb6c   : > { %3101 = vmatmul.mubr.bf16.vlgmr.msra.gmra.mrb[44].mxu1 %v7048_v33  ;;  %v7051_v33 = vld [vmem:[%s9009_s7 + $0x10] ss:$8 sps:$4 sm:$0xff]  }
 0xb6d   : > { %6906 = vmatprep.mubr.msk.bf16.mxu1 %vm977_vm2, %v7049_v60 }
 0xb6e   : > { %3048 = vmatmul.mubr.bf16.gmra.mrb[48].mxu0 %v7051_v33 }
 0xb71   : > { %v3149_v39 = vpop.permute.xlu1 %3148 }
 0xb74   : > { %3109 = vmatmul.mubr.bf16.gmra.mrb[48].mxu1 %v7051_v33 }
 0xc39   : > { %v3039_v41 = vpop.f32.mrb[44].mxu0 }
 0xc3a   : > { %v3041_v34 = vpop.f32.mrb[45].mxu0  ;;  %v3151_v49 = vadd.f32 %v3149_v39, %v3039_v41 }
 0xc3b   : > { %v7953_v43 = vpop.f32.mrb[46].mxu0  ;;  %v3152_v44 = vadd.f32 %v3149_v39, %v3041_v34 }
 0xc3c   : > { %v7955_v37 = vpop.f32.mrb[47].mxu0  ;;  %vm3154_vm0 = vcmp.ge.f32.partialorder %v3151_v49, 0.0  ;;  %v3157_v46 = vmul.f32 0.2, %v3151_v49 }
 0xc3d   : > { %vm3155_vm10 = vcmp.ge.f32.partialorder %v3152_v44, 0.0  ;;  %v3158_v0 = vmul.f32 0.2, %v3152_v44 }
 0xc3e   : > { %v3160_v47 = vsel %vm3154_vm0, %v3151_v49, %v3157_v46  ;;  %v7052_v49 = vld [vmem:[%s9009_s7 + $0x24] ss:$8 sps:$4 sm:$0xff]   ;;  %vm9081_vm0 = vcmask 736256  }
 0xc3f   : > { %v3102_v51 = vpop.f32.mrb[44].mxu1  ;;  %v3163_v48 = vmul.f32 %v7274_v26, %v3160_v47  ;;  %v3161_v4 = vsel %vm3155_vm10, %v3152_v44, %v3158_v0  ;;  %v7054_v44 = vld [vmem:[%s9009_s7 + $0x20] ss:$8 sps:$4 sm:$0xff]   ;;  %6904 = vmatprep.mubr.msk.bf16.mxu0 %vm977_vm2, %v7052_v49  ;;  %6907 = vmatprep.mubr.msk.bf16.mxu1 %vm977_vm2, %v7052_v49  ;;  %vm9082_vm10 = vmmov %vm9081_vm0 }
 0xc40   : > { %3127 = vst.msk [vmem:[#allocation2 + $0x10] sm:$0xff] %vm747_vm1, %v3102_v51  ;;  %v3104_v56 = vpop.f32.mrb[45].mxu1  ;;  %v3164_v50 = vmul.f32 %v7276_v27, %v3161_v4  ;;  %3058 = vmatmul.mubr.bf16.gmra.mrb[52].mxu0 %v7054_v44  ;;  %3117 = vmatmul.mubr.bf16.gmra.mrb[52].mxu1 %v7054_v44  ;;  %v2739_v4 = vld [vmem:[%s9014_s12 + $0x8] sm:$0xff] }
 0xc41   : > { %v3105_v52 = vpop.f32.mrb[46].mxu1  ;;  %v3166_v53 = vpack.c.bf16 %v3163_v48, %v3163_v48  ;;  %v7057_v48 = vld [vmem:[%s9010_s8 + $0x4] ss:$8 sps:$4 sm:$0xff]  }
 0xc42   : > { %3130 = vst.msk [vmem:[#allocation2 + $0x28] sm:$0xff] %vm747_vm1, %v3105_v52  ;;  %v3107_v54 = vpop.f32.mrb[47].mxu1  ;;  %v3167_v55 = vpack.c.bf16 %v3164_v50, %v3164_v50  ;;  %6917 = vmatprep.mubr.msk.bf16.mxu1 %vm977_vm2, %v7057_v48  ;;  %6914 = vmatprep.mubr.msk.bf16.mxu0 %vm977_vm2, %v7057_v48 }
 0xc43   : > { %3172 = vrot.lane.b32.xlu0 %v3166_v53, %s9061_s1 }
 0xc44   : > { %3174 = vrot.lane.b32.xlu1 %v3167_v55, %s9061_s1 }
 0xc47   : > { %v3145_v57 = vld [vmem:[#allocation2 + $0x10] sm:$0xff] }
 0xc48   : > { %v3153_v58 = vadd.f32 %v3149_v39, %v3145_v57 }
 0xc4a   : > { %vm3156_vm14 = vcmp.ge.f32.partialorder %v3153_v58, 0.0  ;;  %v3159_v61 = vmul.f32 0.2, %v3153_v58 }
 0xc4c   : > { %v3162_v20 = vsel %vm3156_vm14, %v3153_v58, %v3159_v61 }
 0xc4d   : > { %v3165_v62 = vmul.f32 %v7278_v28, %v3162_v20 }
 0xc4f   : > { %v3168_v1 = vpack.c.bf16 %v3165_v62, %v3165_v62 }
 0xc51   : > { %3176 = vrot.lane.b32.xlu0 %v3168_v1, %s9061_s1 }
 0xcb5   : > { %v3173_v2 = vpop.permute.xlu0 %3172 }
 0xcb6   : > { %3183 = vst.msk [vmem:[#allocation4] sm:$0xf] %vm1165_vm11, %v3173_v2  ;;  %v3175_v63 = vpop.permute.xlu1 %3174 }
 0xcb7   : > { %v3178_v23 = vsel %vm731_vm15, %v3173_v2, %v3175_v63 }
 0xcb8   : > { %3184 = vst [vmem:[#allocation4 + $0x8] sm:$0xf] %v3178_v23 }
 0xcbd   : > { %v3212_v5 = vld [vmem:[#allocation4] sm:$0xf] }
 0xcbe   : > { %v3192_v7 = vld [vmem:[#allocation4] sm:$0xf]  ;;  %3218 = vrot.lane.b32.xlu0 %v3212_v5, %s9069_s19 }
 0xcbf   : > { %3198 = vrot.lane.b32.xlu1 %v3192_v7, %s9062_s25  ;;  %v3187_v8 = vld [vmem:[#allocation4 + $0x8] sm:$0xf]  ;;  %v3186_v11 = vld [vmem:[#allocation4] sm:$0xf] }
 0xcc0   : > { %3190 = vst [vmem:[#allocation3 + $0x8] sm:$0xf] %v3187_v8  ;;  %3189 = vst [vmem:[#allocation3] sm:$0xf] %v3186_v11  ;;  %v3252_v6 = vld [vmem:[#allocation4] sm:$0xf] }
 0xcc1   : > { %v3232_v42 = vld [vmem:[#allocation4] sm:$0xf]  ;;  %v3193_v13 = vld [vmem:[#allocation4 + $0x8] sm:$0xf] }
 0xcc2   : > { %3258 = vrot.lane.b32.xlu0 %v3252_v6, %s9070_s30  ;;  %v3292_v14 = vld [vmem:[#allocation4] sm:$0xf]  ;;  %v3213_v15 = vld [vmem:[#allocation4 + $0x8] sm:$0xf] }
 0xcc3   : > { %3238 = vrot.lane.b32.xlu1 %v3232_v42, %s9071_s20  ;;  %v3177_v17 = vpop.permute.xlu0 %3176  ;;  %v3272_v16 = vld [vmem:[#allocation4] sm:$0xf]  ;;  %v3233_v31 = vld [vmem:[#allocation4 + $0x8] sm:$0xf] }
 0xcc4   : > { %v3179_v9 = vsel %vm731_vm15, %v3175_v63, %v3177_v17  ;;  %v3312_v21 = vld [vmem:[#allocation4] sm:$0xf]  ;;  %v3253_v32 = vld [vmem:[#allocation4 + $0x8] sm:$0xf] }
 0xcc5   : > { %3185 = vst.msk [vmem:[#allocation4 + $0x10] sm:$0xf] %vm1168_vm12, %v3179_v9  ;;  %v3273_v39 = vld [vmem:[#allocation4 + $0x8] sm:$0xf]  ;;  %v3332_v56 = vld [vmem:[#allocation4] sm:$0xf] }
 0xcc6   : > { %3298 = vrot.lane.b32.xlu0 %v3292_v14, %s9072_s26  ;;  %v3293_v41 = vld [vmem:[#allocation4 + $0x8] sm:$0xf] }
 0xcc7   : > { %3278 = vrot.lane.b32.xlu1 %v3272_v16, %s9063_s28  ;;  %v3373_v18 = vld [vmem:[#allocation3 + $0x8] sm:$0xff]  ;;  %v3372_v19 = vld [vmem:[#allocation3] sm:$0xff] }
 0xcc8   : > { %3432 = vmatprep.subr.bf16.mxu0 %v3373_v18  ;;  %v3313_v0 = vld [vmem:[#allocation4 + $0x8] sm:$0xf] }
 0xcc9   : > { %3433 = vmatpush1.bf16.msra.mxu0 %v3372_v19  ;;  %v3333_v47 = vld [vmem:[#allocation4 + $0x8] sm:$0xf] }
 0xccb   : > { %3318 = vrot.lane.b32.xlu1 %v3312_v21, %s9064_s2 }
 0xccc   : > { %v3194_v24 = vld [vmem:[#allocation4 + $0x10] sm:$0xf] }
 0xccd   : > { %v3188_v36 = vld [vmem:[#allocation4 + $0x10] sm:$0xf]  ;;  %3202 = vrot.lane.b32.xlu0 %v3194_v24, %s9062_s25 }
 0xcce   : > { %3191 = vst.msk [vmem:[#allocation3 + $0x10] sm:$0xf] %vm1175_vm13, %v3188_v36  ;;  %v3214_v29 = vld [vmem:[#allocation4 + $0x10] sm:$0xf] }
 0xccf   : > { %3200 = vrot.lane.b32.xlu1 %v3193_v13, %s9062_s25  ;;  %v3234_v30 = vld [vmem:[#allocation4 + $0x10] sm:$0xf] }
 0xcd0   : > { %v3254_v35 = vld [vmem:[#allocation4 + $0x10] sm:$0xf] }
 0xcd1   : > { %3220 = vrot.lane.b32.xlu0 %v3213_v15, %s9069_s19  ;;  %v3274_v38 = vld [vmem:[#allocation4 + $0x10] sm:$0xf] }
 0xcd2   : > { %v3294_v34 = vld [vmem:[#allocation4 + $0x10] sm:$0xf] }
 0xcd3   : > { %3222 = vrot.lane.b32.xlu1 %v3214_v29, %s9069_s19  ;;  %v3314_v46 = vld [vmem:[#allocation4 + $0x10] sm:$0xf] }
 0xcd4   : > { %v3334_v51 = vld [vmem:[#allocation4 + $0x10] sm:$0xf] }
 0xcd5   : > { %v3374_v40 = vld [vmem:[#allocation3 + $0x10] sm:$0xff]  ;;  %3242 = vrot.lane.b32.xlu0 %v3234_v30, %s9071_s20 }
 0xcd6   : > { %3494 = vmatpush1.bf16.msra.mxu1 %v3374_v40 }
 0xcd7   : > { %3240 = vrot.lane.b32.xlu1 %v3233_v31, %s9071_s20  ;;  %3495 = vmatprep.subr.bf16.mxu1 %v7131_v45 }
 0xcd9   : > { %3260 = vrot.lane.b32.xlu0 %v3253_v32, %s9070_s30 }
 0xcdb   : > { %3262 = vrot.lane.b32.xlu1 %v3254_v35, %s9070_s30 }
 0xcdd   : > { %3282 = vrot.lane.b32.xlu0 %v3274_v38, %s9063_s28 }
 0xcdf   : > { %3280 = vrot.lane.b32.xlu1 %v3273_v39, %s9063_s28 }
 0xce1   : > { %3300 = vrot.lane.b32.xlu0 %v3293_v41, %s9072_s26 }
 0xce3   : > { %3302 = vrot.lane.b32.xlu1 %v3294_v34, %s9072_s26 }
 0xce5   : > { %3322 = vrot.lane.b32.xlu0 %v3314_v46, %s9064_s2 }
 0xce7   : > { %3320 = vrot.lane.b32.xlu1 %v3313_v0, %s9064_s2 }
 0xce9   : > { %3340 = vrot.lane.b32.xlu0 %v3333_v47, %s9065_s21 }
 0xceb   : > { %3342 = vrot.lane.b32.xlu1 %v3334_v51, %s9065_s21 }
 0xced   : > { %3338 = vrot.lane.b32.xlu0 %v3332_v56, %s9065_s21 }
 0xcef   : > { %3584 = vperm.xlu1 %7013, %v2739_v4  }
 0xd30   : > { %v3219_v52 = vpop.permute.xlu0 %3218 }
 0xd31   : > { %v3199_v50 = vpop.permute.xlu1 %3198 }
 0xd34   : > { %v3259_v54 = vpop.permute.xlu0 %3258 }
 0xd35   : > { %v3239_v53 = vpop.permute.xlu1 %3238 }
 0xd38   : > { %v3299_v57 = vpop.permute.xlu0 %3298 }
 0xd39   : > { %v3279_v55 = vpop.permute.xlu1 %3278 }
 0xd3d   : > { %v8019_v58 = vpop.permute.xlu1 %3318 }
 0xd3f   : > { %v3203_v61 = vpop.permute.xlu0 %3202 }
 0xd40   : > { %3211 = vst.msk [vmem:[#allocation3 + $0x28] sm:$0xf] %vm1175_vm13, %v3203_v61 }
 0xd41   : > { %v3201_v20 = vpop.permute.xlu1 %3200 }
 0xd42   : > { %v3204_v62 = vsel %vm761_vm3, %v3199_v50, %v3201_v20  ;;  %v3205_v1 = vsel %vm761_vm3, %v3201_v20, %v3203_v61 }
 0xd43   : > { %3209 = vst [vmem:[#allocation3 + $0x18] sm:$0xf] %v3204_v62  ;;  %3210 = vst [vmem:[#allocation3 + $0x20] sm:$0xf] %v3205_v1  ;;  %v3221_v2 = vpop.permute.xlu0 %3220  ;;  %v7055_v1 = vld [vmem:[%s9010_s8] ss:$8 sps:$4 sm:$0xff]  }
 0xd44   : > { %v3224_v63 = vsel %vm782_vm4, %v3219_v52, %v3221_v2 }
 0xd45   : > { %v3223_v23 = vpop.permute.xlu1 %3222  ;;  %3229 = vst [vmem:[#allocation3 + $0x30] sm:$0xf] %v3224_v63  ;;  %v7058_v63 = vld [vmem:[%s9010_s8 + $0x14] ss:$8 sps:$4 sm:$0xff]  }
 0xd46   : > { %v3225_v5 = vsel %vm782_vm4, %v3221_v2, %v3223_v23  ;;  %3231 = vst.msk [vmem:[#allocation3 + $0x40] sm:$0xf] %vm1175_vm13, %v3223_v23 }
 0xd47   : > { %3230 = vst [vmem:[#allocation3 + $0x38] sm:$0xf] %v3225_v5  ;;  %v3243_v7 = vpop.permute.xlu0 %3242  ;;  %v3377_v8 = vld [vmem:[#allocation3 + $0x28] sm:$0xff]  ;;  %v3371_v5 = vld [vmem:[%s9010_s8 + $0x20] sm:$0xff] }
 0xd48   : > { %3251 = vst.msk [vmem:[#allocation3 + $0x58] sm:$0xf] %vm1175_vm13, %v3243_v7  ;;  %3496 = vmatpush1.bf16.msra.mxu1 %v3377_v8  ;;  %v6913_v8 = vcombine.high %v3371_v5, %v3371_v5 }
 0xd49   : > { %v3241_v11 = vpop.permute.xlu1 %3240  ;;  %3497 = vmatprep.subr.bf16.mxu1 %v7131_v45 }
 0xd4a   : > { %v3244_v6 = vsel %vm803_vm5, %v3239_v53, %v3241_v11  ;;  %v3245_v42 = vsel %vm803_vm5, %v3241_v11, %v3243_v7  ;;  %v3376_v17 = vld [vmem:[#allocation3 + $0x20] sm:$0xff]  ;;  %v3375_v9 = vld [vmem:[#allocation3 + $0x18] sm:$0xff]  ;;  %v6912_v11 = vcombine.low %v3371_v5, %v3371_v5 }
 0xd4b   : > { %3249 = vst [vmem:[#allocation3 + $0x48] sm:$0xf] %v3244_v6  ;;  %3250 = vst [vmem:[#allocation3 + $0x50] sm:$0xf] %v3245_v42  ;;  %3434 = vmatprep.subr.bf16.mxu0 %v3376_v17  ;;  %v3261_v14 = vpop.permute.xlu0 %3260  ;;  %v7060_v7 = vld [vmem:[%s9010_s8 + $0x10] ss:$8 sps:$4 sm:$0xff]  }
 0xd4c   : > { %3435 = vmatpush1.bf16.msra.mxu0 %v3375_v9  ;;  %v3264_v16 = vsel %vm824_vm6, %v3259_v54, %v3261_v14  ;;  %v3378_v36 = vld [vmem:[#allocation3 + $0x30] sm:$0xff]  ;;  %v3049_v6 = vpop.f32.mrb[48].mxu0  ;;  %v3110_v17 = vpop.f32.mrb[48].mxu1 }
 0xd4d   : > { %v3263_v18 = vpop.permute.xlu1 %3262  ;;  %v3380_v19 = vld [vmem:[#allocation3 + $0x40] sm:$0xff]  ;;  %3269 = vst [vmem:[#allocation3 + $0x60] sm:$0xf] %v3264_v16  ;;  %v3051_v42 = vpop.f32.mrb[49].mxu0  ;;  %3133 = vst.msk [vmem:[#allocation2 + $0x40] sm:$0xff] %vm747_vm1, %v3110_v17 }
 0xd4e   : > { %v3265_v21 = vsel %vm824_vm6, %v3261_v14, %v3263_v18  ;;  %3271 = vst.msk [vmem:[#allocation3 + $0x70] sm:$0xf] %vm1175_vm13, %v3263_v18  ;;  %3498 = vmatpush1.bf16.msra.mxu1 %v3380_v19  ;;  %v3379_v24 = vld [vmem:[#allocation3 + $0x38] sm:$0xff]  ;;  %v3053_v9 = vpop.f32.mrb[50].mxu0  ;;  %v3112_v14 = vpop.f32.mrb[49].mxu1 }
 0xd4f   : > { %3270 = vst [vmem:[#allocation3 + $0x68] sm:$0xf] %v3265_v21  ;;  %3436 = vmatprep.subr.bf16.mxu0 %v3379_v24  ;;  %3499 = vmatprep.subr.bf16.mxu1 %v7131_v45  ;;  %v3283_v13 = vpop.permute.xlu0 %3282  ;;  %v3383_v15 = vld [vmem:[#allocation3 + $0x58] sm:$0xff]  ;;  %v3055_v16 = vpop.f32.mrb[51].mxu0 }
 0xd50   : > { %3437 = vmatpush1.bf16.msra.mxu0 %v3378_v36  ;;  %3291 = vst.msk [vmem:[#allocation3 + $0x88] sm:$0xf] %vm1175_vm13, %v3283_v13  ;;  %v3113_v18 = vpop.f32.mrb[50].mxu1  ;;  %v3059_v21 = vpop.f32.mrb[52].mxu0 }
 0xd51   : > { %v3281_v29 = vpop.permute.xlu1 %3280  ;;  %3136 = vst.msk [vmem:[#allocation2 + $0x58] sm:$0xff] %vm747_vm1, %v3113_v18  ;;  %v3115_v19 = vpop.f32.mrb[51].mxu1 }
 0xd52   : > { %v3284_v40 = vsel %vm845_vm7, %v3279_v55, %v3281_v29  ;;  %v3285_v30 = vsel %vm845_vm7, %v3281_v29, %v3283_v13  ;;  %3500 = vmatpush1.bf16.msra.mxu1 %v3383_v15  ;;  %v3382_v31 = vld [vmem:[#allocation3 + $0x50] sm:$0xff]  ;;  %v3381_v32 = vld [vmem:[#allocation3 + $0x48] sm:$0xff]  ;;  %v3118_v24 = vpop.f32.mrb[52].mxu1  ;;  %v3061_v36 = vpop.f32.mrb[53].mxu0 }
 0xd53   : > { %3289 = vst [vmem:[#allocation3 + $0x78] sm:$0xf] %v3284_v40  ;;  %3290 = vst [vmem:[#allocation3 + $0x80] sm:$0xf] %v3285_v30  ;;  %3438 = vmatprep.subr.bf16.mxu0 %v3382_v31  ;;  %3501 = vmatprep.subr.bf16.mxu1 %v7131_v45  ;;  %v3301_v60 = vpop.permute.xlu0 %3300  ;;  %v3120_v13 = vpop.f32.mrb[53].mxu1  ;;  %v3354_v31 = vld [vmem:[#allocation2 + $0x28] sm:$0xff] }
 0xd54   : > { %3439 = vmatpush1.bf16.msra.mxu0 %v3381_v32  ;;  %v3304_v33 = vsel %vm866_vm8, %v3299_v57, %v3301_v60  ;;  %v3384_v34 = vld [vmem:[#allocation3 + $0x60] sm:$0xff]  ;;  %3139 = vst.msk [vmem:[#allocation2 + $0x70] sm:$0xff] %vm747_vm1, %v3118_v24  ;;  %v8073_v15 = vpop.f32.mrb[54].mxu0  ;;  %v3121_v29 = vpop.f32.mrb[54].mxu1 }
 0xd55   : > { %v3303_v35 = vpop.permute.xlu1 %3302  ;;  %v3386_v38 = vld [vmem:[#allocation3 + $0x70] sm:$0xff]  ;;  %3309 = vst [vmem:[#allocation3 + $0x90] sm:$0xf] %v3304_v33  ;;  %v8075_v40 = vpop.f32.mrb[55].mxu0  ;;  %3142 = vst.msk [vmem:[#allocation2 + $0x88] sm:$0xff] %vm747_vm1, %v3121_v29 }
 0xd56   : > { %v3305_v39 = vsel %vm866_vm8, %v3301_v60, %v3303_v35  ;;  %3311 = vst.msk [vmem:[#allocation3 + $0xa0] sm:$0xf] %vm1175_vm13, %v3303_v35  ;;  %3502 = vmatpush1.bf16.msra.mxu1 %v3386_v38  ;;  %v3385_v41 = vld [vmem:[#allocation3 + $0x68] sm:$0xff]  ;;  %v3123_v30 = vpop.f32.mrb[55].mxu1  ;;  %v3357_v35 = vld [vmem:[#allocation2 + $0x40] sm:$0xff] }
 0xd57   : > { %3310 = vst [vmem:[#allocation3 + $0x98] sm:$0xf] %v3305_v39  ;;  %3440 = vmatprep.subr.bf16.mxu0 %v3385_v41  ;;  %3503 = vmatprep.subr.bf16.mxu1 %v7131_v45  ;;  %v3323_v49 = vpop.permute.xlu0 %3322  ;;  %v3389_v44 = vld [vmem:[#allocation3 + $0x88] sm:$0xff] }
 0xd58   : > { %3441 = vmatpush1.bf16.msra.mxu0 %v3384_v34  ;;  %3331 = vst.msk [vmem:[#allocation3 + $0xb8] sm:$0xf] %vm1175_vm13, %v3323_v49 }
 0xd59   : > { %v3321_v46 = vpop.permute.xlu1 %3320 }
 0xd5a   : > { %v3324_v0 = vsel %vm887_vm9, %v8019_v58, %v3321_v46  ;;  %v3325_v47 = vsel %vm887_vm9, %v3321_v46, %v3323_v49  ;;  %3504 = vmatpush1.bf16.msra.mxu1 %v3389_v44  ;;  %v3388_v51 = vld [vmem:[#allocation3 + $0x80] sm:$0xff]  ;;  %v3387_v48 = vld [vmem:[#allocation3 + $0x78] sm:$0xff] }
 0xd5b   : > { %3329 = vst [vmem:[#allocation3 + $0xa8] sm:$0xf] %v3324_v0  ;;  %3330 = vst [vmem:[#allocation3 + $0xb0] sm:$0xf] %v3325_v47  ;;  %3442 = vmatprep.subr.bf16.mxu0 %v3388_v51  ;;  %3505 = vmatprep.subr.bf16.mxu1 %v7131_v45  ;;  %v3341_v4 = vpop.permute.xlu0 %3340 }
 0xd5c   : > { %3443 = vmatpush1.bf16.msra.mxu0 %v3387_v48  ;;  %v3390_v54 = vld [vmem:[#allocation3 + $0x90] sm:$0xff] }
 0xd5d   : > { %v3343_v56 = vpop.permute.xlu1 %3342  ;;  %v3392_v50 = vld [vmem:[#allocation3 + $0xa0] sm:$0xff] }
 0xd5e   : > { %v3345_v52 = vsel %vm9081_vm0, %v3341_v4, %v3343_v56  ;;  %3351 = vst.msk [vmem:[#allocation3 + $0xd0] sm:$0xf] %vm1175_vm13, %v3343_v56  ;;  %3506 = vmatpush1.bf16.msra.mxu1 %v3392_v50  ;;  %v3391_v53 = vld [vmem:[#allocation3 + $0x98] sm:$0xff]  ;;  %v3360_v50 = vld [vmem:[#allocation2 + $0x58] sm:$0xff] }
 0xd5f   : > { %3350 = vst [vmem:[#allocation3 + $0xc8] sm:$0xf] %v3345_v52  ;;  %3444 = vmatprep.subr.bf16.mxu0 %v3391_v53  ;;  %3507 = vmatprep.subr.bf16.mxu1 %v7131_v45  ;;  %v3339_v55 = vpop.permute.xlu0 %3338  ;;  %v3395_v57 = vld [vmem:[#allocation3 + $0xb8] sm:$0xff] }
 0xd60   : > { %3445 = vmatpush1.bf16.msra.mxu0 %v3390_v54  ;;  %v3344_v58 = vsel %vm9082_vm10, %v3339_v55, %v3341_v4 }
 0xd61   : > { %3349 = vst [vmem:[#allocation3 + $0xc0] sm:$0xf] %v3344_v58 }
 0xd62   : > { %3508 = vmatpush1.bf16.msra.mxu1 %v3395_v57  ;;  %v3394_v61 = vld [vmem:[#allocation3 + $0xb0] sm:$0xff]  ;;  %v3393_v20 = vld [vmem:[#allocation3 + $0xa8] sm:$0xff]  ;;  %v3363_v57 = vld [vmem:[#allocation2 + $0x70] sm:$0xff] }
 0xd63   : > { %3446 = vmatprep.subr.bf16.mxu0 %v3394_v61  ;;  %3509 = vmatprep.subr.bf16.mxu1 %v7131_v45 }
 0xd64   : > { %3447 = vmatpush1.bf16.msra.mxu0 %v3393_v20 }
 0xd65   : > { %v3398_v62 = vld [vmem:[#allocation3 + $0xd0] sm:$0xff] }
 0xd66   : > { %3510 = vmatpush1.bf16.msra.mxu1 %v3398_v62  ;;  %v3397_v2 = vld [vmem:[#allocation3 + $0xc8] sm:$0xff] }
 0xd67   : > { %3448 = vmatprep.subr.bf16.mxu0 %v3397_v2  ;;  %3908 = vmatprep.subr.bf16.mxu1 %v7131_v45 }
 0xd68   : > { %v3396_v23 = vld [vmem:[#allocation3 + $0xc0] sm:$0xff] }
 0xd69   : > { %3526 = vmatmul.mubr.bf16.vlgmr.msra.gmra.mrb[56].mxu1 %v7055_v1  ;;  %3449 = vmatpush1.bf16.msra.mxu0 %v3396_v23 }
 0xd6a   : > { %6918 = vmatprep.mubr.msk.bf16.mxu1 %vm977_vm2, %v7058_v63 }
 0xd6c   : > { %3465 = vmatmul.mubr.bf16.vlgmr.msra.gmra.mrb[56].mxu0 %v7055_v1 }
 0xd6d   : > { %6915 = vmatprep.mubr.msk.bf16.mxu0 %vm977_vm2, %v7058_v63 }
 0xd6e   : > { %v3585_v46 = vpop.permute.xlu1 %3584 }
 0xd71   : > { %3534 = vmatmul.mubr.bf16.gmra.mrb[60].mxu1 %v7060_v7 }
 0xd72   : > { %6919 = vmatprep.mubr.msk.bf16.mxu1 %vm977_vm2, %v6913_v8 }
 0xd74   : > { %3475 = vmatmul.mubr.bf16.gmra.mrb[60].mxu0 %v7060_v7 }
 0xd75   : > { %6916 = vmatprep.mubr.msk.bf16.mxu0 %vm977_vm2, %v6913_v8 }
 0xd79   : > { %3542 = vmatmul.mubr.bf16.gmra.mrb[64].mxu1 %v6912_v11 }
 0xd7c   : > { %3485 = vmatmul.mubr.bf16.gmra.mrb[64].mxu0 %v6912_v11 }
 0xe3c   : > { %v3527_v32 = vpop.f32.mrb[56].mxu1 }
 0xe3d   : > { %v3551_v60 = vadd.f32 %v3527_v32, %v3354_v31  ;;  %v3529_v33 = vpop.f32.mrb[57].mxu1 }
 0xe3e   : > { %v3530_v38 = vpop.f32.mrb[58].mxu1 }
 0xe3f   : > { %3566 = vst.msk [vmem:[#allocation2 + $0x28] sm:$0xff] %vm747_vm1, %v3551_v60  ;;  %v3554_v39 = vadd.f32 %v3530_v38, %v3357_v35  ;;  %v3532_v41 = vpop.f32.mrb[59].mxu1  ;;  %v3466_v34 = vpop.f32.mrb[56].mxu0 }
 0xe40   : > { %v3549_v49 = vadd.f32 %v3466_v34, %v7953_v43  ;;  %v3468_v44 = vpop.f32.mrb[57].mxu0 }
 0xe41   : > { %3569 = vst.msk [vmem:[#allocation2 + $0x40] sm:$0xff] %vm747_vm1, %v3554_v39  ;;  %v3550_v0 = vadd.f32 %v3468_v44, %v7955_v37  ;;  %v3470_v47 = vpop.f32.mrb[58].mxu0 }
 0xe42   : > { %v8082_v51 = vadd.f32 %v3470_v47, %v3049_v6  ;;  %v3472_v48 = vpop.f32.mrb[59].mxu0  ;;  %v3587_v4 = vadd.f32 %v3585_v46, %v3549_v49 }
 0xe43   : > { %v8084_v56 = vadd.f32 %v3472_v48, %v3051_v42  ;;  %v3588_v53 = vadd.f32 %v3585_v46, %v3550_v0 }
 0xe44   : > { %v3535_v52 = vpop.f32.mrb[60].mxu1  ;;  %vm3590_vm14 = vcmp.ge.f32.partialorder %v3587_v4, 0.0  ;;  %v3593_v43 = vmul.f32 0.2, %v3587_v4 }
 0xe45   : > { %v3557_v54 = vadd.f32 %v3535_v52, %v3360_v50  ;;  %v3537_v55 = vpop.f32.mrb[61].mxu1  ;;  %vm3591_vm0 = vcmp.ge.f32.partialorder %v3588_v53, 0.0  ;;  %v3594_v61 = vmul.f32 0.2, %v3588_v53 }
 0xe46   : > { %v3538_v58 = vpop.f32.mrb[62].mxu1  ;;  %v3581_v20 = vld [vmem:[#allocation2 + $0x28] sm:$0xff]  ;;  %v3596_v1 = vsel %vm3590_vm14, %v3587_v4, %v3593_v43  ;;  %vm9083_vm14 = vcmask 736256  }
 0xe47   : > { %3572 = vst.msk [vmem:[#allocation2 + $0x58] sm:$0xff] %vm747_vm1, %v3557_v54  ;;  %v3560_v37 = vadd.f32 %v3538_v58, %v3363_v57  ;;  %v3540_v62 = vpop.f32.mrb[63].mxu1  ;;  %v3589_v2 = vadd.f32 %v3585_v46, %v3581_v20  ;;  %v3476_v63 = vpop.f32.mrb[60].mxu0  ;;  %v3599_v23 = vmul.f32 %v7274_v26, %v3596_v1  ;;  %v3597_v5 = vsel %vm3591_vm0, %v3588_v53, %v3594_v61  ;;  %vm9084_vm0 = vmmov %vm9083_vm14 }
 0xe48   : > { %v8088_v7 = vadd.f32 %v3476_v63, %v3053_v9  ;;  %v3478_v8 = vpop.f32.mrb[61].mxu0  ;;  %v3600_v11 = vmul.f32 %v7276_v27, %v3597_v5  ;;  %v3366_v9 = vld [vmem:[#allocation2 + $0x88] sm:$0xff] }
 0xe49   : > { %3575 = vst.msk [vmem:[#allocation2 + $0x70] sm:$0xff] %vm747_vm1, %v3560_v37  ;;  %vm3592_vm10 = vcmp.ge.f32.partialorder %v3589_v2, 0.0  ;;  %v3595_v6 = vmul.f32 0.2, %v3589_v2  ;;  %v8092_v42 = vadd.f32 %v3478_v8, %v3055_v16  ;;  %v3480_v17 = vpop.f32.mrb[62].mxu0  ;;  %v3602_v14 = vpack.c.bf16 %v3599_v23, %v3599_v23 }
 0xe4a   : > { %v8094_v18 = vadd.f32 %v3480_v17, %v3059_v21  ;;  %v3482_v19 = vpop.f32.mrb[63].mxu0  ;;  %v3603_v24 = vpack.c.bf16 %v3600_v11, %v3600_v11 }
 0xe4b   : > { %v3598_v13 = vsel %vm3592_vm10, %v3589_v2, %v3595_v6  ;;  %v8096_v29 = vadd.f32 %v3482_v19, %v3061_v36  ;;  %3608 = vrot.lane.b32.xlu0 %v3602_v14, %s9061_s1 }
 0xe4c   : > { %v3543_v30 = vpop.f32.mrb[64].mxu1  ;;  %v3601_v31 = vmul.f32 %v7278_v28, %v3598_v13  ;;  %3610 = vrot.lane.b32.xlu1 %v3603_v24, %s9061_s1  ;;  %v7065_v13 = vld [vmem:[%s9011_s9 + $0x4] ss:$8 sps:$4 sm:$0xff]  }
 0xe4d   : > { %v3563_v32 = vadd.f32 %v3543_v30, %v3366_v9  ;;  %v3545_v16 = vpop.f32.mrb[65].mxu1  ;;  %6926 = vmatprep.mubr.msk.bf16.mxu1 %vm977_vm2, %v7065_v13  ;;  %6924 = vmatprep.mubr.msk.bf16.mxu0 %vm977_vm2, %v7065_v13 }
 0xe4e   : > { %v3604_v60 = vpack.c.bf16 %v3601_v31, %v3601_v31  ;;  %v3546_v33 = vpop.f32.mrb[66].mxu1  ;;  %v2740_v31 = vld [vmem:[%s9014_s12 + $0x10] sm:$0xff] }
 0xe4f   : > { %3578 = vst.msk [vmem:[#allocation2 + $0x88] sm:$0xff] %vm747_vm1, %v3563_v32  ;;  %v3547_v21 = vpop.f32.mrb[67].mxu1  ;;  %v3486_v35 = vpop.f32.mrb[64].mxu0 }
 0xe50   : > { %3612 = vrot.lane.b32.xlu0 %v3604_v60, %s9061_s1  ;;  %v8104_v36 = vadd.f32 %v3486_v35, %v8073_v15  ;;  %v3488_v38 = vpop.f32.mrb[65].mxu0 }
 0xe51   : > { %v8107_v39 = vadd.f32 %v3488_v38, %v8075_v40  ;;  %v3490_v41 = vpop.f32.mrb[66].mxu0 }
 0xe52   : > { %v3491_v34 = vpop.f32.mrb[67].mxu0 }
 0xebd   : > { %v3609_v49 = vpop.permute.xlu0 %3608 }
 0xebe   : > { %3619 = vst.msk [vmem:[#allocation4] sm:$0xf] %vm1165_vm11, %v3609_v49  ;;  %v3611_v44 = vpop.permute.xlu1 %3610 }
 0xebf   : > { %v3614_v46 = vsel %vm731_vm15, %v3609_v49, %v3611_v44 }
 0xec0   : > { %3620 = vst [vmem:[#allocation4 + $0x8] sm:$0xf] %v3614_v46 }
 0xec2   : > { %v3613_v0 = vpop.permute.xlu0 %3612 }
 0xec3   : > { %v3615_v47 = vsel %vm731_vm15, %v3611_v44, %v3613_v0 }
 0xec4   : > { %3621 = vst.msk [vmem:[#allocation4 + $0x10] sm:$0xf] %vm1168_vm12, %v3615_v47 }
 0xec5   : > { %v3648_v15 = vld [vmem:[#allocation4] sm:$0xf] }
 0xec6   : > { %v3628_v48 = vld [vmem:[#allocation4] sm:$0xf]  ;;  %3654 = vrot.lane.b32.xlu0 %v3648_v15, %s9069_s19 }
 0xec7   : > { %3634 = vrot.lane.b32.xlu1 %v3628_v48, %s9062_s25  ;;  %v3623_v40 = vld [vmem:[#allocation4 + $0x8] sm:$0xf]  ;;  %v3622_v4 = vld [vmem:[#allocation4] sm:$0xf] }
 0xec8   : > { %3626 = vst [vmem:[#allocation3 + $0x8] sm:$0xf] %v3623_v40  ;;  %3625 = vst [vmem:[#allocation3] sm:$0xf] %v3622_v4  ;;  %v3688_v50 = vld [vmem:[#allocation4] sm:$0xf] }
 0xec9   : > { %v3668_v52 = vld [vmem:[#allocation4] sm:$0xf]  ;;  %v3649_v37 = vld [vmem:[#allocation4 + $0x8] sm:$0xf] }
 0xeca   : > { %3694 = vrot.lane.b32.xlu0 %v3688_v50, %s9070_s30  ;;  %v3728_v54 = vld [vmem:[#allocation4] sm:$0xf]  ;;  %v3629_v62 = vld [vmem:[#allocation4 + $0x8] sm:$0xf] }
 0xecb   : > { %3674 = vrot.lane.b32.xlu1 %v3668_v52, %s9071_s20  ;;  %v3624_v53 = vld [vmem:[#allocation4 + $0x10] sm:$0xf]  ;;  %v3708_v55 = vld [vmem:[#allocation4] sm:$0xf]  ;;  %v3689_v63 = vld [vmem:[#allocation4 + $0x8] sm:$0xf] }
 0xecc   : > { %3627 = vst.msk [vmem:[#allocation3 + $0x10] sm:$0xf] %vm1175_vm13, %v3624_v53  ;;  %v3748_v58 = vld [vmem:[#allocation4] sm:$0xf]  ;;  %v3630_v61 = vld [vmem:[#allocation4 + $0x10] sm:$0xf] }
 0xecd   : > { %v3670_v1 = vld [vmem:[#allocation4 + $0x10] sm:$0xf]  ;;  %v3669_v23 = vld [vmem:[#allocation4 + $0x8] sm:$0xf]  ;;  %v3768_v9 = vld [vmem:[#allocation4] sm:$0xf] }
 0xece   : > { %3734 = vrot.lane.b32.xlu0 %v3728_v54, %s9072_s26  ;;  %v3650_v2 = vld [vmem:[#allocation4 + $0x10] sm:$0xf]  ;;  %v3729_v11 = vld [vmem:[#allocation4 + $0x8] sm:$0xf] }
 0xecf   : > { %3714 = vrot.lane.b32.xlu1 %v3708_v55, %s9063_s28  ;;  %v3805_v43 = vld [vmem:[#allocation3 + $0x8] sm:$0xff]  ;;  %v3804_v57 = vld [vmem:[#allocation3] sm:$0xff] }
 0xed0   : > { %3855 = vmatprep.subr.bf16.mxu0 %v3805_v43  ;;  %v3710_v5 = vld [vmem:[#allocation4 + $0x10] sm:$0xf]  ;;  %v3709_v6 = vld [vmem:[#allocation4 + $0x8] sm:$0xf] }
 0xed1   : > { %3856 = vmatpush1.bf16.msra.mxu0 %v3804_v57  ;;  %v3690_v8 = vld [vmem:[#allocation4 + $0x10] sm:$0xf]  ;;  %v3769_v19 = vld [vmem:[#allocation4 + $0x8] sm:$0xf] }
 0xed2   : > { %3638 = vrot.lane.b32.xlu0 %v3630_v61, %s9062_s25  ;;  %v3750_v17 = vld [vmem:[#allocation4 + $0x10] sm:$0xf]  ;;  %v3749_v24 = vld [vmem:[#allocation4 + $0x8] sm:$0xf] }
 0xed3   : > { %3754 = vrot.lane.b32.xlu1 %v3748_v58, %s9064_s2  ;;  %v3806_v20 = vld [vmem:[#allocation3 + $0x10] sm:$0xff]  ;;  %v3730_v14 = vld [vmem:[#allocation4 + $0x10] sm:$0xf] }
 0xed4   : > { %3909 = vmatpush1.bf16.msra.mxu1 %v3806_v20  ;;  %v3770_v30 = vld [vmem:[#allocation4 + $0x10] sm:$0xf] }
 0xed5   : > { %3910 = vmatprep.subr.bf16.mxu1 %v7131_v45 }
 0xed6   : > { %3656 = vrot.lane.b32.xlu0 %v3649_v37, %s9069_s19 }
 0xed7   : > { %3636 = vrot.lane.b32.xlu1 %v3629_v62, %s9062_s25 }
 0xeda   : > { %3678 = vrot.lane.b32.xlu0 %v3670_v1, %s9071_s20 }
 0xedb   : > { %3658 = vrot.lane.b32.xlu1 %v3650_v2, %s9069_s19 }
 0xede   : > { %3696 = vrot.lane.b32.xlu0 %v3689_v63, %s9070_s30 }
 0xedf   : > { %3676 = vrot.lane.b32.xlu1 %v3669_v23, %s9071_s20 }
 0xee2   : > { %3718 = vrot.lane.b32.xlu0 %v3710_v5, %s9063_s28 }
 0xee3   : > { %3698 = vrot.lane.b32.xlu1 %v3690_v8, %s9070_s30 }
 0xee6   : > { %3736 = vrot.lane.b32.xlu0 %v3729_v11, %s9072_s26 }
 0xee7   : > { %3716 = vrot.lane.b32.xlu1 %v3709_v6, %s9063_s28 }
 0xeea   : > { %3758 = vrot.lane.b32.xlu0 %v3750_v17, %s9064_s2 }
 0xeeb   : > { %3738 = vrot.lane.b32.xlu1 %v3730_v14, %s9072_s26 }
 0xeee   : > { %3776 = vrot.lane.b32.xlu0 %v3769_v19, %s9065_s21 }
 0xeef   : > { %3756 = vrot.lane.b32.xlu1 %v3749_v24, %s9064_s2 }
 0xef2   : > { %3774 = vrot.lane.b32.xlu0 %v3768_v9, %s9065_s21 }
 0xef3   : > { %3778 = vrot.lane.b32.xlu1 %v3770_v30, %s9065_s21 }
 0xef7   : > { %3986 = vperm.xlu1 %7013, %v2740_v31  }
 0xf38   : > { %v3655_v32 = vpop.permute.xlu0 %3654 }
 0xf39   : > { %v3635_v16 = vpop.permute.xlu1 %3634 }
 0xf3c   : > { %v3695_v60 = vpop.permute.xlu0 %3694 }
 0xf3d   : > { %v3675_v33 = vpop.permute.xlu1 %3674 }
 0xf40   : > { %v3735_v21 = vpop.permute.xlu0 %3734 }
 0xf41   : > { %v3715_v35 = vpop.permute.xlu1 %3714 }
 0xf44   : > { %v3639_v38 = vpop.permute.xlu0 %3638 }
 0xf45   : > { %v8147_v41 = vpop.permute.xlu1 %3754  ;;  %3647 = vst.msk [vmem:[#allocation3 + $0x28] sm:$0xf] %vm1175_vm13, %v3639_v38 }
 0xf48   : > { %v3657_v34 = vpop.permute.xlu0 %3656 }
 0xf49   : > { %v3637_v49 = vpop.permute.xlu1 %3636  ;;  %v3660_v44 = vsel %vm782_vm4, %v3655_v32, %v3657_v34 }
 0xf4a   : > { %v3640_v46 = vsel %vm761_vm3, %v3635_v16, %v3637_v49  ;;  %v3641_v0 = vsel %vm761_vm3, %v3637_v49, %v3639_v38  ;;  %3665 = vst [vmem:[#allocation3 + $0x30] sm:$0xf] %v3660_v44 }
 0xf4b   : > { %3645 = vst [vmem:[#allocation3 + $0x18] sm:$0xf] %v3640_v46  ;;  %3646 = vst [vmem:[#allocation3 + $0x20] sm:$0xf] %v3641_v0 }
 0xf4c   : > { %v3679_v47 = vpop.permute.xlu0 %3678  ;;  %v3809_v48 = vld [vmem:[#allocation3 + $0x28] sm:$0xff] }
 0xf4d   : > { %v3659_v15 = vpop.permute.xlu1 %3658  ;;  %3687 = vst.msk [vmem:[#allocation3 + $0x58] sm:$0xf] %vm1175_vm13, %v3679_v47  ;;  %3911 = vmatpush1.bf16.msra.mxu1 %v3809_v48 }
 0xf4e   : > { %v3661_v40 = vsel %vm782_vm4, %v3657_v34, %v3659_v15  ;;  %3667 = vst.msk [vmem:[#allocation3 + $0x40] sm:$0xf] %vm1175_vm13, %v3659_v15  ;;  %3912 = vmatprep.subr.bf16.mxu1 %v7131_v45 }
 0xf4f   : > { %3666 = vst [vmem:[#allocation3 + $0x38] sm:$0xf] %v3661_v40  ;;  %v7063_v40 = vld [vmem:[%s9011_s9] ss:$8 sps:$4 sm:$0xff]  }
 0xf50   : > { %v3697_v4 = vpop.permute.xlu0 %3696 }
 0xf51   : > { %v3677_v50 = vpop.permute.xlu1 %3676  ;;  %v3700_v52 = vsel %vm824_vm6, %v3695_v60, %v3697_v4  ;;  %v3810_v62 = vld [vmem:[#allocation3 + $0x30] sm:$0xff] }
 0xf52   : > { %v3680_v53 = vsel %vm803_vm5, %v3675_v33, %v3677_v50  ;;  %v3681_v54 = vsel %vm803_vm5, %v3677_v50, %v3679_v47  ;;  %v3808_v55 = vld [vmem:[#allocation3 + $0x20] sm:$0xff]  ;;  %v3807_v43 = vld [vmem:[#allocation3 + $0x18] sm:$0xff]  ;;  %3705 = vst [vmem:[#allocation3 + $0x60] sm:$0xf] %v3700_v52 }
 0xf53   : > { %3685 = vst [vmem:[#allocation3 + $0x48] sm:$0xf] %v3680_v53  ;;  %3686 = vst [vmem:[#allocation3 + $0x50] sm:$0xf] %v3681_v54  ;;  %3857 = vmatprep.subr.bf16.mxu0 %v3808_v55  ;;  %v7066_v52 = vld [vmem:[%s9011_s9 + $0x14] ss:$8 sps:$4 sm:$0xff]  }
 0xf54   : > { %3858 = vmatpush1.bf16.msra.mxu0 %v3807_v43  ;;  %v3719_v57 = vpop.permute.xlu0 %3718  ;;  %v3815_v63 = vld [vmem:[#allocation3 + $0x58] sm:$0xff]  ;;  %v7068_v53 = vld [vmem:[%s9011_s9 + $0x10] ss:$8 sps:$4 sm:$0xff]   ;;  %v3790_v54 = vld [vmem:[#allocation2 + $0x40] sm:$0xff] }
 0xf55   : > { %v3699_v58 = vpop.permute.xlu1 %3698  ;;  %v3812_v61 = vld [vmem:[#allocation3 + $0x40] sm:$0xff]  ;;  %3727 = vst.msk [vmem:[#allocation3 + $0x88] sm:$0xf] %vm1175_vm13, %v3719_v57 }
 0xf56   : > { %v3701_v20 = vsel %vm824_vm6, %v3697_v4, %v3699_v58  ;;  %3707 = vst.msk [vmem:[#allocation3 + $0x70] sm:$0xf] %vm1175_vm13, %v3699_v58  ;;  %3913 = vmatpush1.bf16.msra.mxu1 %v3812_v61  ;;  %v3811_v37 = vld [vmem:[#allocation3 + $0x38] sm:$0xff]  ;;  %v3793_v61 = vld [vmem:[#allocation2 + $0x58] sm:$0xff] }
 0xf57   : > { %3706 = vst [vmem:[#allocation3 + $0x68] sm:$0xf] %v3701_v20  ;;  %3859 = vmatprep.subr.bf16.mxu0 %v3811_v37  ;;  %3914 = vmatprep.subr.bf16.mxu1 %v7131_v45 }
 0xf58   : > { %3860 = vmatpush1.bf16.msra.mxu0 %v3810_v62  ;;  %v3737_v1 = vpop.permute.xlu0 %3736 }
 0xf59   : > { %v3717_v2 = vpop.permute.xlu1 %3716  ;;  %v3740_v23 = vsel %vm866_vm8, %v3735_v21, %v3737_v1  ;;  %v3816_v9 = vld [vmem:[#allocation3 + $0x60] sm:$0xff] }
 0xf5a   : > { %v3720_v5 = vsel %vm845_vm7, %v3715_v35, %v3717_v2  ;;  %v3721_v8 = vsel %vm845_vm7, %v3717_v2, %v3719_v57  ;;  %3915 = vmatpush1.bf16.msra.mxu1 %v3815_v63  ;;  %v3814_v11 = vld [vmem:[#allocation3 + $0x50] sm:$0xff]  ;;  %v3813_v6 = vld [vmem:[#allocation3 + $0x48] sm:$0xff]  ;;  %3745 = vst [vmem:[#allocation3 + $0x90] sm:$0xf] %v3740_v23 }
 0xf5b   : > { %3725 = vst [vmem:[#allocation3 + $0x78] sm:$0xf] %v3720_v5  ;;  %3726 = vst [vmem:[#allocation3 + $0x80] sm:$0xf] %v3721_v8  ;;  %3861 = vmatprep.subr.bf16.mxu0 %v3814_v11  ;;  %3916 = vmatprep.subr.bf16.mxu1 %v7131_v45 }
 0xf5c   : > { %3862 = vmatpush1.bf16.msra.mxu0 %v3813_v6  ;;  %v3759_v17 = vpop.permute.xlu0 %3758  ;;  %v3821_v32 = vld [vmem:[#allocation3 + $0x88] sm:$0xff] }
 0xf5d   : > { %v3739_v14 = vpop.permute.xlu1 %3738  ;;  %v3818_v19 = vld [vmem:[#allocation3 + $0x70] sm:$0xff]  ;;  %3767 = vst.msk [vmem:[#allocation3 + $0xb8] sm:$0xf] %vm1175_vm13, %v3759_v17 }
 0xf5e   : > { %v3741_v24 = vsel %vm866_vm8, %v3737_v1, %v3739_v14  ;;  %3747 = vst.msk [vmem:[#allocation3 + $0xa0] sm:$0xf] %vm1175_vm13, %v3739_v14  ;;  %3917 = vmatpush1.bf16.msra.mxu1 %v3818_v19  ;;  %v3817_v13 = vld [vmem:[#allocation3 + $0x68] sm:$0xff]  ;;  %v3796_v19 = vld [vmem:[#allocation2 + $0x70] sm:$0xff] }
 0xf5f   : > { %3746 = vst [vmem:[#allocation3 + $0x98] sm:$0xf] %v3741_v24  ;;  %3863 = vmatprep.subr.bf16.mxu0 %v3817_v13  ;;  %3918 = vmatprep.subr.bf16.mxu1 %v7131_v45 }
 0xf60   : > { %3864 = vmatpush1.bf16.msra.mxu0 %v3816_v9  ;;  %v3777_v30 = vpop.permute.xlu0 %3776 }
 0xf61   : > { %v3757_v31 = vpop.permute.xlu1 %3756  ;;  %v3822_v46 = vld [vmem:[#allocation3 + $0x90] sm:$0xff] }
 0xf62   : > { %v3760_v16 = vsel %vm887_vm9, %v8147_v41, %v3757_v31  ;;  %v3761_v60 = vsel %vm887_vm9, %v3757_v31, %v3759_v17  ;;  %3919 = vmatpush1.bf16.msra.mxu1 %v3821_v32  ;;  %v3820_v33 = vld [vmem:[#allocation3 + $0x80] sm:$0xff]  ;;  %v3819_v21 = vld [vmem:[#allocation3 + $0x78] sm:$0xff] }
 0xf63   : > { %3765 = vst [vmem:[#allocation3 + $0xa8] sm:$0xf] %v3760_v16  ;;  %3766 = vst [vmem:[#allocation3 + $0xb0] sm:$0xf] %v3761_v60  ;;  %3865 = vmatprep.subr.bf16.mxu0 %v3820_v33  ;;  %3920 = vmatprep.subr.bf16.mxu1 %v7131_v45  ;;  %v3799_v32 = vld [vmem:[#allocation2 + $0x88] sm:$0xff] }
 0xf64   : > { %3866 = vmatpush1.bf16.msra.mxu0 %v3819_v21  ;;  %v3775_v35 = vpop.permute.xlu0 %3774  ;;  %v3827_v0 = vld [vmem:[#allocation3 + $0xb8] sm:$0xff] }
 0xf65   : > { %v3779_v38 = vpop.permute.xlu1 %3778  ;;  %v3824_v34 = vld [vmem:[#allocation3 + $0xa0] sm:$0xff]  ;;  %v3780_v49 = vsel %vm9083_vm14, %v3775_v35, %v3777_v30 }
 0xf66   : > { %v3781_v44 = vsel %vm9084_vm0, %v3777_v30, %v3779_v38  ;;  %3787 = vst.msk [vmem:[#allocation3 + $0xd0] sm:$0xf] %vm1175_vm13, %v3779_v38  ;;  %3921 = vmatpush1.bf16.msra.mxu1 %v3824_v34  ;;  %v3823_v41 = vld [vmem:[#allocation3 + $0x98] sm:$0xff]  ;;  %3785 = vst [vmem:[#allocation3 + $0xc0] sm:$0xf] %v3780_v49 }
 0xf67   : > { %3786 = vst [vmem:[#allocation3 + $0xc8] sm:$0xf] %v3781_v44  ;;  %3867 = vmatprep.subr.bf16.mxu0 %v3823_v41  ;;  %3922 = vmatprep.subr.bf16.mxu1 %v7131_v45 }
 0xf68   : > { %3868 = vmatpush1.bf16.msra.mxu0 %v3822_v46 }
 0xf6a   : > { %3923 = vmatpush1.bf16.msra.mxu1 %v3827_v0  ;;  %v3826_v47 = vld [vmem:[#allocation3 + $0xb0] sm:$0xff]  ;;  %v3825_v15 = vld [vmem:[#allocation3 + $0xa8] sm:$0xff] }
 0xf6b   : > { %3869 = vmatprep.subr.bf16.mxu0 %v3826_v47  ;;  %3924 = vmatprep.subr.bf16.mxu1 %v7131_v45 }
 0xf6c   : > { %3870 = vmatpush1.bf16.msra.mxu0 %v3825_v15 }
 0xf6d   : > { %v3830_v48 = vld [vmem:[#allocation3 + $0xd0] sm:$0xff]  ;;  %v3828_v50 = vld [vmem:[#allocation3 + $0xc0] sm:$0xff] }
 0xf6e   : > { %3925 = vmatpush1.bf16.msra.mxu1 %v3830_v48  ;;  %v3829_v4 = vld [vmem:[#allocation3 + $0xc8] sm:$0xff] }
 0xf6f   : > { %3871 = vmatprep.subr.bf16.mxu0 %v3829_v4  ;;  %4301 = vmatprep.subr.bf16.mxu1 %v7131_v45 }
 0xf70   : > { %3872 = vmatpush1.bf16.msra.mxu0 %v3828_v50 }
 0xf71   : > { %3941 = vmatmul.mubr.bf16.vlgmr.msra.gmra.mrb[68].mxu1 %v7063_v40 }
 0xf72   : > { %6927 = vmatprep.mubr.msk.bf16.mxu1 %vm977_vm2, %v7066_v52 }
 0xf73   : > { %3888 = vmatmul.mubr.bf16.vlgmr.msra.gmra.mrb[68].mxu0 %v7063_v40 }
 0xf74   : > { %6925 = vmatprep.mubr.msk.bf16.mxu0 %vm977_vm2, %v7066_v52 }
 0xf76   : > { %v3987_v63 = vpop.permute.xlu1 %3986 }
 0xf79   : > { %3949 = vmatmul.mubr.bf16.gmra.mrb[72].mxu1 %v7068_v53 }
 0xf7b   : > { %3898 = vmatmul.mubr.bf16.gmra.mrb[72].mxu0 %v7068_v53 }
0x1044   : > { %v3942_v55 = vpop.f32.mrb[68].mxu1 }
0x1045   : > { %v3959_v43 = vadd.f32 %v3942_v55, %v3790_v54  ;;  %v3944_v57 = vpop.f32.mrb[69].mxu1 }
0x1046   : > { %v3889_v58 = vpop.f32.mrb[68].mxu0  ;;  %v3945_v20 = vpop.f32.mrb[70].mxu1 }
0x1047   : > { %3971 = vst.msk [vmem:[#allocation2 + $0x40] sm:$0xff] %vm747_vm1, %v3959_v43  ;;  %v3957_v37 = vadd.f32 %v3889_v58, %v8082_v51  ;;  %v3962_v62 = vadd.f32 %v3945_v20, %v3793_v61  ;;  %v3891_v1 = vpop.f32.mrb[69].mxu0  ;;  %v3947_v2 = vpop.f32.mrb[71].mxu1 }
0x1048   : > { %v3958_v23 = vadd.f32 %v3891_v1, %v8084_v56  ;;  %v3893_v5 = vpop.f32.mrb[70].mxu0 }
0x1049   : > { %3974 = vst.msk [vmem:[#allocation2 + $0x58] sm:$0xff] %vm747_vm1, %v3962_v62  ;;  %v8198_v8 = vadd.f32 %v3893_v5, %v8088_v7  ;;  %v3895_v11 = vpop.f32.mrb[71].mxu0  ;;  %v3989_v6 = vadd.f32 %v3987_v63, %v3957_v37 }
0x104a   : > { %v8201_v17 = vadd.f32 %v3895_v11, %v8092_v42  ;;  %v3990_v14 = vadd.f32 %v3987_v63, %v3958_v23 }
0x104b   : > { %vm3992_vm10 = vcmp.ge.f32.partialorder %v3989_v6, 0.0  ;;  %v3995_v51 = vmul.f32 0.2, %v3989_v6 }
0x104c   : > { %v3950_v24 = vpop.f32.mrb[72].mxu1  ;;  %vm3993_vm14 = vcmp.ge.f32.partialorder %v3990_v14, 0.0  ;;  %v3996_v13 = vmul.f32 0.2, %v3990_v14 }
0x104d   : > { %v3965_v9 = vadd.f32 %v3950_v24, %v3796_v19  ;;  %v3952_v56 = vpop.f32.mrb[73].mxu1  ;;  %v3998_v30 = vsel %vm3992_vm10, %v3989_v6, %v3995_v51  ;;  %vm9085_vm10 = vcmask 736256  }
0x104e   : > { %v3899_v31 = vpop.f32.mrb[72].mxu0  ;;  %v3953_v16 = vpop.f32.mrb[74].mxu1  ;;  %v4001_v7 = vmul.f32 %v7274_v26, %v3998_v30  ;;  %v3999_v60 = vsel %vm3993_vm14, %v3990_v14, %v3996_v13  ;;  %v3983_v33 = vld [vmem:[#allocation2 + $0x40] sm:$0xff]  ;;  %vm9086_vm14 = vmmov %vm9085_vm10 }
0x104f   : > { %3977 = vst.msk [vmem:[#allocation2 + $0x70] sm:$0xff] %vm747_vm1, %v3965_v9  ;;  %v8206_v42 = vadd.f32 %v3899_v31, %v8094_v18  ;;  %v3968_v21 = vadd.f32 %v3953_v16, %v3799_v32  ;;  %v3901_v35 = vpop.f32.mrb[73].mxu0  ;;  %v4002_v38 = vmul.f32 %v7276_v27, %v3999_v60  ;;  %v3991_v34 = vadd.f32 %v3987_v63, %v3983_v33  ;;  %v3955_v49 = vpop.f32.mrb[75].mxu1  ;;  %v7071_v60 = vld [vmem:[%s9012_s10 + $0x4] ss:$8 sps:$4 sm:$0xff]  }
0x1050   : > { %v8210_v44 = vadd.f32 %v3901_v35, %v8096_v29  ;;  %v3903_v41 = vpop.f32.mrb[74].mxu0  ;;  %v4004_v46 = vpack.c.bf16 %v4001_v7, %v4001_v7  ;;  %6934 = vmatprep.mubr.msk.bf16.mxu1 %vm977_vm2, %v7071_v60  ;;  %6932 = vmatprep.mubr.msk.bf16.mxu0 %vm977_vm2, %v7071_v60  ;;  %v2741_v35 = vld [vmem:[%s9014_s12 + $0x18] sm:$0xff] }
0x1051   : > { %3980 = vst.msk [vmem:[#allocation2 + $0x88] sm:$0xff] %vm747_vm1, %v3968_v21  ;;  %v8214_v0 = vadd.f32 %v3903_v41, %v8104_v36  ;;  %v3905_v47 = vpop.f32.mrb[75].mxu0  ;;  %v4005_v15 = vpack.c.bf16 %v4002_v38, %v4002_v38  ;;  %vm3994_vm0 = vcmp.ge.f32.partialorder %v3991_v34, 0.0  ;;  %v3997_v18 = vmul.f32 0.2, %v3991_v34 }
0x1052   : > { %v8217_v48 = vadd.f32 %v3905_v47, %v8107_v39  ;;  %4010 = vrot.lane.b32.xlu0 %v4004_v46, %s9061_s1 }
0x1053   : > { %4012 = vrot.lane.b32.xlu1 %v4005_v15, %s9061_s1  ;;  %v4000_v29 = vsel %vm3994_vm0, %v3991_v34, %v3997_v18 }
0x1054   : > { %v4003_v40 = vmul.f32 %v7278_v28, %v4000_v29 }
0x1056   : > { %v4006_v4 = vpack.c.bf16 %v4003_v40, %v4003_v40 }
0x1058   : > { %4014 = vrot.lane.b32.xlu0 %v4006_v4, %s9061_s1 }
0x10c4   : > { %v4011_v50 = vpop.permute.xlu0 %4010 }
0x10c5   : > { %4021 = vst.msk [vmem:[#allocation4] sm:$0xf] %vm1165_vm11, %v4011_v50  ;;  %v4013_v36 = vpop.permute.xlu1 %4012 }
0x10c6   : > { %v4016_v52 = vsel %vm731_vm15, %v4011_v50, %v4013_v36 }
0x10c7   : > { %4022 = vst [vmem:[#allocation4 + $0x8] sm:$0xf] %v4016_v52 }
0x10ca   : > { %v4015_v53 = vpop.permute.xlu0 %4014 }
0x10cb   : > { %v4017_v39 = vsel %vm731_vm15, %v4013_v36, %v4015_v53 }
0x10cc   : > { %4023 = vst.msk [vmem:[#allocation4 + $0x10] sm:$0xf] %vm1168_vm12, %v4017_v39  ;;  %v4050_v54 = vld [vmem:[#allocation4] sm:$0xf] }
0x10cd   : > { %v4030_v55 = vld [vmem:[#allocation4] sm:$0xf]  ;;  %4056 = vrot.lane.b32.xlu0 %v4050_v54, %s9069_s19 }
0x10ce   : > { %4036 = vrot.lane.b32.xlu1 %v4030_v55, %s9062_s25  ;;  %v4025_v43 = vld [vmem:[#allocation4 + $0x8] sm:$0xf]  ;;  %v4024_v57 = vld [vmem:[#allocation4] sm:$0xf] }
0x10cf   : > { %4028 = vst [vmem:[#allocation3 + $0x8] sm:$0xf] %v4025_v43  ;;  %4027 = vst [vmem:[#allocation3] sm:$0xf] %v4024_v57  ;;  %v4090_v58 = vld [vmem:[#allocation4] sm:$0xf] }
0x10d0   : > { %v4070_v61 = vld [vmem:[#allocation4] sm:$0xf]  ;;  %v4051_v11 = vld [vmem:[#allocation4 + $0x8] sm:$0xf] }
0x10d1   : > { %4096 = vrot.lane.b32.xlu0 %v4090_v58, %s9070_s30  ;;  %v4130_v37 = vld [vmem:[#allocation4] sm:$0xf]  ;;  %v4031_v6 = vld [vmem:[#allocation4 + $0x8] sm:$0xf] }
0x10d2   : > { %4076 = vrot.lane.b32.xlu1 %v4070_v61, %s9071_s20  ;;  %v4110_v62 = vld [vmem:[#allocation4] sm:$0xf]  ;;  %v4091_v19 = vld [vmem:[#allocation4 + $0x8] sm:$0xf] }
0x10d3   : > { %v4026_v20 = vld [vmem:[#allocation4 + $0x10] sm:$0xf]  ;;  %v4150_v63 = vld [vmem:[#allocation4] sm:$0xf]  ;;  %v4071_v24 = vld [vmem:[#allocation4 + $0x8] sm:$0xf] }
0x10d4   : > { %4029 = vst.msk [vmem:[#allocation3 + $0x10] sm:$0xf] %vm1175_vm13, %v4026_v20  ;;  %v4032_v23 = vld [vmem:[#allocation4 + $0x10] sm:$0xf]  ;;  %v4131_v56 = vld [vmem:[#allocation4 + $0x8] sm:$0xf] }
0x10d5   : > { %4136 = vrot.lane.b32.xlu0 %v4130_v37, %s9072_s26  ;;  %v4072_v14 = vld [vmem:[#allocation4 + $0x10] sm:$0xf]  ;;  %v4111_v30 = vld [vmem:[#allocation4 + $0x8] sm:$0xf]  ;;  %v4170_v33 = vld [vmem:[#allocation4] sm:$0xf] }
0x10d6   : > { %4116 = vrot.lane.b32.xlu1 %v4110_v62, %s9063_s28  ;;  %v4203_v1 = vld [vmem:[#allocation3 + $0x8] sm:$0xff]  ;;  %v4202_v2 = vld [vmem:[#allocation3] sm:$0xff] }
0x10d7   : > { %4250 = vmatprep.subr.bf16.mxu0 %v4203_v1  ;;  %v4052_v51 = vld [vmem:[#allocation4 + $0x10] sm:$0xf]  ;;  %v4171_v16 = vld [vmem:[#allocation4 + $0x8] sm:$0xf] }
0x10d8   : > { %4251 = vmatpush1.bf16.msra.mxu0 %v4202_v2  ;;  %v4112_v13 = vld [vmem:[#allocation4 + $0x10] sm:$0xf]  ;;  %v4151_v7 = vld [vmem:[#allocation4 + $0x8] sm:$0xf] }
0x10d9   : > { %4040 = vrot.lane.b32.xlu0 %v4032_v23, %s9062_s25  ;;  %v4092_v9 = vld [vmem:[#allocation4 + $0x10] sm:$0xf] }
0x10da   : > { %4156 = vrot.lane.b32.xlu1 %v4150_v63, %s9064_s2  ;;  %v4152_v31 = vld [vmem:[#allocation4 + $0x10] sm:$0xf] }
0x10db   : > { %v4204_v5 = vld [vmem:[#allocation3 + $0x10] sm:$0xff]  ;;  %v4132_v32 = vld [vmem:[#allocation4 + $0x10] sm:$0xf] }
0x10dc   : > { %4302 = vmatpush1.bf16.msra.mxu1 %v4204_v5  ;;  %v4172_v21 = vld [vmem:[#allocation4 + $0x10] sm:$0xf] }
0x10dd   : > { %4058 = vrot.lane.b32.xlu0 %v4051_v11, %s9069_s19  ;;  %4303 = vmatprep.subr.bf16.mxu1 %v7131_v45 }
0x10de   : > { %4038 = vrot.lane.b32.xlu1 %v4031_v6, %s9062_s25 }
0x10e1   : > { %4080 = vrot.lane.b32.xlu0 %v4072_v14, %s9071_s20 }
0x10e2   : > { %4060 = vrot.lane.b32.xlu1 %v4052_v51, %s9069_s19 }
0x10e5   : > { %4098 = vrot.lane.b32.xlu0 %v4091_v19, %s9070_s30 }
0x10e6   : > { %4078 = vrot.lane.b32.xlu1 %v4071_v24, %s9071_s20 }
0x10e9   : > { %4120 = vrot.lane.b32.xlu0 %v4112_v13, %s9063_s28 }
0x10ea   : > { %4100 = vrot.lane.b32.xlu1 %v4092_v9, %s9070_s30 }
0x10ed   : > { %4138 = vrot.lane.b32.xlu0 %v4131_v56, %s9072_s26 }
0x10ee   : > { %4118 = vrot.lane.b32.xlu1 %v4111_v30, %s9063_s28 }
0x10f1   : > { %4160 = vrot.lane.b32.xlu0 %v4152_v31, %s9064_s2 }
0x10f2   : > { %4140 = vrot.lane.b32.xlu1 %v4132_v32, %s9072_s26 }
0x10f5   : > { %4178 = vrot.lane.b32.xlu0 %v4171_v16, %s9065_s21 }
0x10f6   : > { %4158 = vrot.lane.b32.xlu1 %v4151_v7, %s9064_s2 }
0x10f9   : > { %4176 = vrot.lane.b32.xlu0 %v4170_v33, %s9065_s21 }
0x10fa   : > { %4180 = vrot.lane.b32.xlu1 %v4172_v21, %s9065_s21 }
0x10fe   : > { %4372 = vperm.xlu1 %7013, %v2741_v35  }
0x113f   : > { %v4057_v38 = vpop.permute.xlu0 %4056 }
0x1140   : > { %v4037_v34 = vpop.permute.xlu1 %4036 }
0x1143   : > { %v4097_v49 = vpop.permute.xlu0 %4096 }
0x1144   : > { %v4077_v41 = vpop.permute.xlu1 %4076 }
0x1147   : > { %v4137_v46 = vpop.permute.xlu0 %4136 }
0x1148   : > { %v4117_v47 = vpop.permute.xlu1 %4116 }
0x114b   : > { %v4041_v15 = vpop.permute.xlu0 %4040 }
0x114c   : > { %v8261_v18 = vpop.permute.xlu1 %4156  ;;  %4049 = vst.msk [vmem:[#allocation3 + $0x28] sm:$0xf] %vm1175_vm13, %v4041_v15 }
0x114f   : > { %v4059_v29 = vpop.permute.xlu0 %4058 }
0x1150   : > { %v4039_v40 = vpop.permute.xlu1 %4038  ;;  %v4062_v4 = vsel %vm782_vm4, %v4057_v38, %v4059_v29 }
0x1151   : > { %v4042_v50 = vsel %vm761_vm3, %v4037_v34, %v4039_v40  ;;  %v4043_v36 = vsel %vm761_vm3, %v4039_v40, %v4041_v15  ;;  %4067 = vst [vmem:[#allocation3 + $0x30] sm:$0xf] %v4062_v4 }
0x1152   : > { %4047 = vst [vmem:[#allocation3 + $0x18] sm:$0xf] %v4042_v50  ;;  %4048 = vst [vmem:[#allocation3 + $0x20] sm:$0xf] %v4043_v36 }
0x1153   : > { %v4081_v52 = vpop.permute.xlu0 %4080  ;;  %v4207_v39 = vld [vmem:[#allocation3 + $0x28] sm:$0xff] }
0x1154   : > { %v4061_v53 = vpop.permute.xlu1 %4060  ;;  %4089 = vst.msk [vmem:[#allocation3 + $0x58] sm:$0xf] %vm1175_vm13, %v4081_v52  ;;  %4304 = vmatpush1.bf16.msra.mxu1 %v4207_v39  ;;  %v7069_v39 = vld [vmem:[%s9012_s10] ss:$8 sps:$4 sm:$0xff]  }
0x1155   : > { %v4063_v54 = vsel %vm782_vm4, %v4059_v29, %v4061_v53  ;;  %4069 = vst.msk [vmem:[#allocation3 + $0x40] sm:$0xf] %vm1175_vm13, %v4061_v53  ;;  %4305 = vmatprep.subr.bf16.mxu1 %v7131_v45 }
0x1156   : > { %4068 = vst [vmem:[#allocation3 + $0x38] sm:$0xf] %v4063_v54 }
0x1157   : > { %v4099_v55 = vpop.permute.xlu0 %4098 }
0x1158   : > { %v4079_v43 = vpop.permute.xlu1 %4078  ;;  %v4102_v57 = vsel %vm824_vm6, %v4097_v49, %v4099_v55  ;;  %v4208_v5 = vld [vmem:[#allocation3 + $0x30] sm:$0xff] }
0x1159   : > { %v4082_v58 = vsel %vm803_vm5, %v4077_v41, %v4079_v43  ;;  %v4083_v61 = vsel %vm803_vm5, %v4079_v43, %v4081_v52  ;;  %v4206_v20 = vld [vmem:[#allocation3 + $0x20] sm:$0xff]  ;;  %v4205_v37 = vld [vmem:[#allocation3 + $0x18] sm:$0xff]  ;;  %4107 = vst [vmem:[#allocation3 + $0x60] sm:$0xf] %v4102_v57 }
0x115a   : > { %4087 = vst [vmem:[#allocation3 + $0x48] sm:$0xf] %v4082_v58  ;;  %4088 = vst [vmem:[#allocation3 + $0x50] sm:$0xf] %v4083_v61  ;;  %4252 = vmatprep.subr.bf16.mxu0 %v4206_v20  ;;  %v4201_v52 = vld [vmem:[%s9012_s10 + $0x10] sm:$0xff]  ;;  %v4192_v58 = vld [vmem:[#allocation2 + $0x58] sm:$0xff] }
0x115b   : > { %4253 = vmatpush1.bf16.msra.mxu0 %v4205_v37  ;;  %v4121_v62 = vpop.permute.xlu0 %4120  ;;  %v4213_v14 = vld [vmem:[#allocation3 + $0x58] sm:$0xff]  ;;  %v6931_v43 = vcombine.high %v4201_v52, %v4201_v52  ;;  %v6930_v57 = vcombine.low %v4201_v52, %v4201_v52 }
0x115c   : > { %v4101_v1 = vpop.permute.xlu1 %4100  ;;  %v4210_v2 = vld [vmem:[#allocation3 + $0x40] sm:$0xff]  ;;  %4129 = vst.msk [vmem:[#allocation3 + $0x88] sm:$0xf] %vm1175_vm13, %v4121_v62 }
0x115d   : > { %v4103_v63 = vsel %vm824_vm6, %v4099_v55, %v4101_v1  ;;  %4109 = vst.msk [vmem:[#allocation3 + $0x70] sm:$0xf] %vm1175_vm13, %v4101_v1  ;;  %4306 = vmatpush1.bf16.msra.mxu1 %v4210_v2  ;;  %v4209_v23 = vld [vmem:[#allocation3 + $0x38] sm:$0xff]  ;;  %v4195_v1 = vld [vmem:[#allocation2 + $0x70] sm:$0xff] }
0x115e   : > { %4108 = vst [vmem:[#allocation3 + $0x68] sm:$0xf] %v4103_v63  ;;  %4254 = vmatprep.subr.bf16.mxu0 %v4209_v23  ;;  %4307 = vmatprep.subr.bf16.mxu1 %v7131_v45 }
0x115f   : > { %4255 = vmatpush1.bf16.msra.mxu0 %v4208_v5  ;;  %v4139_v11 = vpop.permute.xlu0 %4138 }
0x1160   : > { %v4119_v6 = vpop.permute.xlu1 %4118  ;;  %v4142_v51 = vsel %vm866_vm8, %v4137_v46, %v4139_v11  ;;  %v4214_v7 = vld [vmem:[#allocation3 + $0x60] sm:$0xff] }
0x1161   : > { %v4122_v19 = vsel %vm845_vm7, %v4117_v47, %v4119_v6  ;;  %v4123_v24 = vsel %vm845_vm7, %v4119_v6, %v4121_v62  ;;  %4308 = vmatpush1.bf16.msra.mxu1 %v4213_v14  ;;  %v4212_v13 = vld [vmem:[#allocation3 + $0x50] sm:$0xff]  ;;  %v4211_v9 = vld [vmem:[#allocation3 + $0x48] sm:$0xff]  ;;  %4147 = vst [vmem:[#allocation3 + $0x90] sm:$0xf] %v4142_v51 }
0x1162   : > { %4127 = vst [vmem:[#allocation3 + $0x78] sm:$0xf] %v4122_v19  ;;  %4128 = vst [vmem:[#allocation3 + $0x80] sm:$0xf] %v4123_v24  ;;  %4256 = vmatprep.subr.bf16.mxu0 %v4212_v13  ;;  %4309 = vmatprep.subr.bf16.mxu1 %v7131_v45 }
0x1163   : > { %4257 = vmatpush1.bf16.msra.mxu0 %v4211_v9  ;;  %v4161_v56 = vpop.permute.xlu0 %4160  ;;  %v4219_v21 = vld [vmem:[#allocation3 + $0x88] sm:$0xff] }
0x1164   : > { %v4141_v30 = vpop.permute.xlu1 %4140  ;;  %v4216_v31 = vld [vmem:[#allocation3 + $0x70] sm:$0xff]  ;;  %4169 = vst.msk [vmem:[#allocation3 + $0xb8] sm:$0xf] %vm1175_vm13, %v4161_v56 }
0x1165   : > { %v4143_v32 = vsel %vm866_vm8, %v4139_v11, %v4141_v30  ;;  %4149 = vst.msk [vmem:[#allocation3 + $0xa0] sm:$0xf] %vm1175_vm13, %v4141_v30  ;;  %4310 = vmatpush1.bf16.msra.mxu1 %v4216_v31  ;;  %v4215_v16 = vld [vmem:[#allocation3 + $0x68] sm:$0xff]  ;;  %v4198_v30 = vld [vmem:[#allocation2 + $0x88] sm:$0xff] }
0x1166   : > { %4148 = vst [vmem:[#allocation3 + $0x98] sm:$0xf] %v4143_v32  ;;  %4258 = vmatprep.subr.bf16.mxu0 %v4215_v16  ;;  %4311 = vmatprep.subr.bf16.mxu1 %v7131_v45 }
0x1167   : > { %4259 = vmatpush1.bf16.msra.mxu0 %v4214_v7  ;;  %v4179_v60 = vpop.permute.xlu0 %4178 }
0x1168   : > { %v4159_v33 = vpop.permute.xlu1 %4158  ;;  %v4220_v40 = vld [vmem:[#allocation3 + $0x90] sm:$0xff] }
0x1169   : > { %v4162_v35 = vsel %vm887_vm9, %v8261_v18, %v4159_v33  ;;  %v4163_v38 = vsel %vm887_vm9, %v4159_v33, %v4161_v56  ;;  %4312 = vmatpush1.bf16.msra.mxu1 %v4219_v21  ;;  %v4218_v34 = vld [vmem:[#allocation3 + $0x80] sm:$0xff]  ;;  %v4217_v49 = vld [vmem:[#allocation3 + $0x78] sm:$0xff] }
0x116a   : > { %4167 = vst [vmem:[#allocation3 + $0xa8] sm:$0xf] %v4162_v35  ;;  %4168 = vst [vmem:[#allocation3 + $0xb0] sm:$0xf] %v4163_v38  ;;  %4260 = vmatprep.subr.bf16.mxu0 %v4218_v34  ;;  %4313 = vmatprep.subr.bf16.mxu1 %v7131_v45 }
0x116b   : > { %4261 = vmatpush1.bf16.msra.mxu0 %v4217_v49  ;;  %v4177_v41 = vpop.permute.xlu0 %4176  ;;  %v4225_v4 = vld [vmem:[#allocation3 + $0xb8] sm:$0xff] }
0x116c   : > { %v4181_v46 = vpop.permute.xlu1 %4180  ;;  %v4222_v47 = vld [vmem:[#allocation3 + $0xa0] sm:$0xff]  ;;  %v4182_v15 = vsel %vm9085_vm10, %v4177_v41, %v4179_v60 }
0x116d   : > { %v4183_v29 = vsel %vm9086_vm14, %v4179_v60, %v4181_v46  ;;  %4189 = vst.msk [vmem:[#allocation3 + $0xd0] sm:$0xf] %vm1175_vm13, %v4181_v46  ;;  %4314 = vmatpush1.bf16.msra.mxu1 %v4222_v47  ;;  %v4221_v18 = vld [vmem:[#allocation3 + $0x98] sm:$0xff]  ;;  %4187 = vst [vmem:[#allocation3 + $0xc0] sm:$0xf] %v4182_v15 }
0x116e   : > { %4188 = vst [vmem:[#allocation3 + $0xc8] sm:$0xf] %v4183_v29  ;;  %4262 = vmatprep.subr.bf16.mxu0 %v4221_v18  ;;  %4315 = vmatprep.subr.bf16.mxu1 %v7131_v45 }
0x116f   : > { %4263 = vmatpush1.bf16.msra.mxu0 %v4220_v40 }
0x1171   : > { %4316 = vmatpush1.bf16.msra.mxu1 %v4225_v4  ;;  %v4224_v50 = vld [vmem:[#allocation3 + $0xb0] sm:$0xff]  ;;  %v4223_v36 = vld [vmem:[#allocation3 + $0xa8] sm:$0xff] }
0x1172   : > { %4264 = vmatprep.subr.bf16.mxu0 %v4224_v50  ;;  %4317 = vmatprep.subr.bf16.mxu1 %v7131_v45 }
0x1173   : > { %4265 = vmatpush1.bf16.msra.mxu0 %v4223_v36 }
0x1174   : > { %v4228_v53 = vld [vmem:[#allocation3 + $0xd0] sm:$0xff]  ;;  %v4226_v55 = vld [vmem:[#allocation3 + $0xc0] sm:$0xff] }
0x1175   : > { %4318 = vmatpush1.bf16.msra.mxu1 %v4228_v53  ;;  %v4227_v54 = vld [vmem:[#allocation3 + $0xc8] sm:$0xff] }
0x1176   : > { %4266 = vmatprep.subr.bf16.mxu0 %v4227_v54  ;;  %4666 = vmatprep.subr.bf16.mxu1 %v7131_v45 }
0x1177   : > { %4267 = vmatpush1.bf16.msra.mxu0 %v4226_v55 }
0x1178   : > { %4334 = vmatmul.mubr.bf16.vlgmr.msra.gmra.mrb[76].mxu1 %v7069_v39 }
0x1179   : > { %6935 = vmatprep.mubr.msk.bf16.mxu1 %vm977_vm2, %v6931_v43 }
0x117a   : > { %4283 = vmatmul.mubr.bf16.vlgmr.msra.gmra.mrb[76].mxu0 %v7069_v39 }
0x117b   : > { %6933 = vmatprep.mubr.msk.bf16.mxu0 %vm977_vm2, %v6931_v43 }
0x117d   : > { %v4373_v6 = vpop.permute.xlu1 %4372 }
0x1180   : > { %4342 = vmatmul.mubr.bf16.gmra.mrb[80].mxu1 %v6930_v57 }
0x1182   : > { %4293 = vmatmul.mubr.bf16.gmra.mrb[80].mxu0 %v6930_v57 }
0x124b   : > { %v4335_v61 = vpop.f32.mrb[76].mxu1 }
0x124c   : > { %v4351_v20 = vadd.f32 %v4335_v61, %v4192_v58  ;;  %v4337_v37 = vpop.f32.mrb[77].mxu1 }
0x124d   : > { %v4284_v62 = vpop.f32.mrb[76].mxu0  ;;  %v4338_v2 = vpop.f32.mrb[78].mxu1 }
0x124e   : > { %4360 = vst.msk [vmem:[#allocation2 + $0x58] sm:$0xff] %vm747_vm1, %v4351_v20  ;;  %v4349_v63 = vadd.f32 %v4284_v62, %v8198_v8  ;;  %v4354_v23 = vadd.f32 %v4338_v2, %v4195_v1  ;;  %v4286_v5 = vpop.f32.mrb[77].mxu0  ;;  %v4340_v11 = vpop.f32.mrb[79].mxu1 }
0x124f   : > { %v4350_v14 = vadd.f32 %v4286_v5, %v8201_v17  ;;  %v4288_v51 = vpop.f32.mrb[78].mxu0 }
0x1250   : > { %4363 = vst.msk [vmem:[#allocation2 + $0x70] sm:$0xff] %vm747_vm1, %v4354_v23  ;;  %v8309_v19 = vadd.f32 %v4288_v51, %v8206_v42  ;;  %v4290_v24 = vpop.f32.mrb[79].mxu0  ;;  %v4375_v13 = vadd.f32 %v4373_v6, %v4349_v63 }
0x1251   : > { %v8312_v9 = vadd.f32 %v4290_v24, %v8210_v44  ;;  %v4376_v56 = vadd.f32 %v4373_v6, %v4350_v14 }
0x1252   : > { %vm4378_vm0 = vcmp.ge.f32.partialorder %v4375_v13, 0.0  ;;  %v4381_v8 = vmul.f32 0.2, %v4375_v13 }
0x1253   : > { %v4343_v31 = vpop.f32.mrb[80].mxu1  ;;  %vm4379_vm10 = vcmp.ge.f32.partialorder %v4376_v56, 0.0  ;;  %v4382_v32 = vmul.f32 0.2, %v4376_v56 }
0x1254   : > { %v4357_v16 = vadd.f32 %v4343_v31, %v4198_v30  ;;  %v4384_v17 = vsel %vm4378_vm0, %v4375_v13, %v4381_v8  ;;  %v4345_v7 = vpop.f32.mrb[81].mxu1  ;;  %vm9087_vm0 = vcmask 736256  }
0x1255   : > { %v4294_v60 = vpop.f32.mrb[80].mxu0  ;;  %v4387_v33 = vmul.f32 %v7274_v26, %v4384_v17  ;;  %v4385_v42 = vsel %vm4379_vm10, %v4376_v56, %v4382_v32  ;;  %v4369_v21 = vld [vmem:[#allocation2 + $0x58] sm:$0xff]  ;;  %v4346_v35 = vpop.f32.mrb[82].mxu1  ;;  %vm9088_vm10 = vmmov %vm9087_vm0 }
0x1256   : > { %4366 = vst.msk [vmem:[#allocation2 + $0x88] sm:$0xff] %vm747_vm1, %v4357_v16  ;;  %v8317_v44 = vadd.f32 %v4294_v60, %v8214_v0  ;;  %v4296_v38 = vpop.f32.mrb[81].mxu0  ;;  %v4388_v34 = vmul.f32 %v7276_v27, %v4385_v42  ;;  %v4377_v49 = vadd.f32 %v4373_v6, %v4369_v21  ;;  %v4347_v41 = vpop.f32.mrb[83].mxu1  ;;  %v7076_v60 = vld [vmem:[%s9013_s11 + $0x4] ss:$8 sps:$4 sm:$0xff]  }
0x1257   : > { %v8321_v46 = vadd.f32 %v4296_v38, %v8217_v48  ;;  %v4390_v47 = vpack.c.bf16 %v4387_v33, %v4387_v33  ;;  %v4298_v15 = vpop.f32.mrb[82].mxu0  ;;  %6939 = vmatprep.mubr.msk.bf16.mxu1 %vm977_vm2, %v7076_v60  ;;  %6938 = vmatprep.mubr.msk.bf16.mxu0 %vm977_vm2, %v7076_v60  ;;  %v2743_v21 = vld [vmem:[%s9014_s12 + $0x28] sm:$0xff]  ;;  %v2742_v35 = vld [vmem:[%s9014_s12 + $0x20] sm:$0xff] }
0x1258   : > { %v4391_v29 = vpack.c.bf16 %v4388_v34, %v4388_v34  ;;  %vm4380_vm14 = vcmp.ge.f32.partialorder %v4377_v49, 0.0  ;;  %v4383_v18 = vmul.f32 0.2, %v4377_v49  ;;  %v4299_v40 = vpop.f32.mrb[83].mxu0 }
0x1259   : > { %4396 = vrot.lane.b32.xlu0 %v4390_v47, %s9061_s1 }
0x125a   : > { %4398 = vrot.lane.b32.xlu1 %v4391_v29, %s9061_s1  ;;  %v4386_v0 = vsel %vm4380_vm14, %v4377_v49, %v4383_v18  ;;  %vm9089_vm14 = vcmask 1047704  }
0x125b   : > { %v4389_v4 = vmul.f32 %v7278_v28, %v4386_v0 }
0x125d   : > { %v4392_v50 = vpack.c.bf16 %v4389_v4, %v4389_v4 }
0x125f   : > { %4400 = vrot.lane.b32.xlu0 %v4392_v50, %s9061_s1 }
0x12cb   : > { %v4397_v36 = vpop.permute.xlu0 %4396 }
0x12cc   : > { %4407 = vst.msk [vmem:[#allocation4] sm:$0xf] %vm1165_vm11, %v4397_v36  ;;  %v4399_v48 = vpop.permute.xlu1 %4398 }
0x12cd   : > { %v4402_v52 = vsel %vm731_vm15, %v4397_v36, %v4399_v48 }
0x12ce   : > { %4408 = vst [vmem:[#allocation4 + $0x8] sm:$0xf] %v4402_v52 }
0x12d1   : > { %v4401_v53 = vpop.permute.xlu0 %4400 }
0x12d2   : > { %v4403_v39 = vsel %vm731_vm15, %v4399_v48, %v4401_v53 }
0x12d3   : > { %4409 = vst.msk [vmem:[#allocation4 + $0x10] sm:$0xf] %vm1168_vm12, %v4403_v39  ;;  %v4436_v54 = vld [vmem:[#allocation4] sm:$0xf] }
0x12d4   : > { %v4416_v55 = vld [vmem:[#allocation4] sm:$0xf]  ;;  %4442 = vrot.lane.b32.xlu0 %v4436_v54, %s9069_s19 }
0x12d5   : > { %4422 = vrot.lane.b32.xlu1 %v4416_v55, %s9062_s25  ;;  %v4411_v43 = vld [vmem:[#allocation4 + $0x8] sm:$0xf]  ;;  %v4410_v57 = vld [vmem:[#allocation4] sm:$0xf] }
0x12d6   : > { %4414 = vst [vmem:[#allocation3 + $0x8] sm:$0xf] %v4411_v43  ;;  %4413 = vst [vmem:[#allocation3] sm:$0xf] %v4410_v57  ;;  %v4476_v58 = vld [vmem:[#allocation4] sm:$0xf] }
0x12d7   : > { %v4456_v61 = vld [vmem:[#allocation4] sm:$0xf]  ;;  %v4437_v11 = vld [vmem:[#allocation4 + $0x8] sm:$0xf] }
0x12d8   : > { %4482 = vrot.lane.b32.xlu0 %v4476_v58, %s9070_s30  ;;  %v4516_v37 = vld [vmem:[#allocation4] sm:$0xf]  ;;  %v4417_v6 = vld [vmem:[#allocation4 + $0x8] sm:$0xf] }
0x12d9   : > { %4462 = vrot.lane.b32.xlu1 %v4456_v61, %s9071_s20  ;;  %v4496_v62 = vld [vmem:[#allocation4] sm:$0xf]  ;;  %v4477_v24 = vld [vmem:[#allocation4 + $0x8] sm:$0xf] }
0x12da   : > { %v4412_v20 = vld [vmem:[#allocation4 + $0x10] sm:$0xf]  ;;  %v4536_v63 = vld [vmem:[#allocation4] sm:$0xf]  ;;  %v4457_v13 = vld [vmem:[#allocation4 + $0x8] sm:$0xf] }
0x12db   : > { %4415 = vst.msk [vmem:[#allocation3 + $0x10] sm:$0xf] %vm1175_vm13, %v4412_v20  ;;  %v4418_v23 = vld [vmem:[#allocation4 + $0x10] sm:$0xf]  ;;  %v4517_v30 = vld [vmem:[#allocation4 + $0x8] sm:$0xf] }
0x12dc   : > { %4522 = vrot.lane.b32.xlu0 %v4516_v37, %s9072_s26  ;;  %v4458_v14 = vld [vmem:[#allocation4 + $0x10] sm:$0xf]  ;;  %v4497_v31 = vld [vmem:[#allocation4 + $0x8] sm:$0xf]  ;;  %v4556_v33 = vld [vmem:[#allocation4] sm:$0xf] }
0x12dd   : > { %4502 = vrot.lane.b32.xlu1 %v4496_v62, %s9063_s28  ;;  %v4585_v1 = vld [vmem:[#allocation3 + $0x8] sm:$0xff]  ;;  %v4584_v2 = vld [vmem:[#allocation3] sm:$0xff] }
0x12de   : > { %4623 = vmatprep.subr.bf16.mxu0 %v4585_v1  ;;  %v4438_v51 = vld [vmem:[#allocation4 + $0x10] sm:$0xf]  ;;  %v4557_v17 = vld [vmem:[#allocation4 + $0x8] sm:$0xf] }
0x12df   : > { %4624 = vmatpush1.bf16.msra.mxu0 %v4584_v2  ;;  %v4498_v56 = vld [vmem:[#allocation4 + $0x10] sm:$0xf]  ;;  %v4537_v7 = vld [vmem:[#allocation4 + $0x8] sm:$0xf] }
0x12e0   : > { %4426 = vrot.lane.b32.xlu0 %v4418_v23, %s9062_s25  ;;  %v4478_v8 = vld [vmem:[#allocation4 + $0x10] sm:$0xf] }
0x12e1   : > { %4542 = vrot.lane.b32.xlu1 %v4536_v63, %s9064_s2  ;;  %v4538_v32 = vld [vmem:[#allocation4 + $0x10] sm:$0xf] }
0x12e2   : > { %v4586_v5 = vld [vmem:[#allocation3 + $0x10] sm:$0xff]  ;;  %v4518_v16 = vld [vmem:[#allocation4 + $0x10] sm:$0xf] }
0x12e3   : > { %4667 = vmatpush1.bf16.msra.mxu1 %v4586_v5  ;;  %v4558_v42 = vld [vmem:[#allocation4 + $0x10] sm:$0xf] }
0x12e4   : > { %4444 = vrot.lane.b32.xlu0 %v4437_v11, %s9069_s19  ;;  %4668 = vmatprep.subr.bf16.mxu1 %v7131_v45 }
0x12e5   : > { %4424 = vrot.lane.b32.xlu1 %v4417_v6, %s9062_s25 }
0x12e8   : > { %4466 = vrot.lane.b32.xlu0 %v4458_v14, %s9071_s20 }
0x12e9   : > { %4446 = vrot.lane.b32.xlu1 %v4438_v51, %s9069_s19 }
0x12ec   : > { %4484 = vrot.lane.b32.xlu0 %v4477_v24, %s9070_s30 }
0x12ed   : > { %4464 = vrot.lane.b32.xlu1 %v4457_v13, %s9071_s20 }
0x12f0   : > { %4506 = vrot.lane.b32.xlu0 %v4498_v56, %s9063_s28 }
0x12f1   : > { %4486 = vrot.lane.b32.xlu1 %v4478_v8, %s9070_s30 }
0x12f4   : > { %4524 = vrot.lane.b32.xlu0 %v4517_v30, %s9072_s26 }
0x12f5   : > { %4504 = vrot.lane.b32.xlu1 %v4497_v31, %s9063_s28 }
0x12f8   : > { %4546 = vrot.lane.b32.xlu0 %v4538_v32, %s9064_s2 }
0x12f9   : > { %4526 = vrot.lane.b32.xlu1 %v4518_v16, %s9072_s26 }
0x12fc   : > { %4564 = vrot.lane.b32.xlu0 %v4557_v17, %s9065_s21 }
0x12fd   : > { %4544 = vrot.lane.b32.xlu1 %v4537_v7, %s9064_s2 }
0x1300   : > { %4562 = vrot.lane.b32.xlu0 %v4556_v33, %s9065_s21 }
0x1301   : > { %4566 = vrot.lane.b32.xlu1 %v4558_v42, %s9065_s21 }
0x1304   : > { %4732 = vperm.xlu0 %7014, %v2743_v21  }
0x1305   : > { %4727 = vperm.xlu1 %7013, %v2742_v35  }
0x1346   : > { %v4443_v38 = vpop.permute.xlu0 %4442 }
0x1347   : > { %v4423_v34 = vpop.permute.xlu1 %4422 }
0x134a   : > { %v4483_v49 = vpop.permute.xlu0 %4482 }
0x134b   : > { %v4463_v41 = vpop.permute.xlu1 %4462 }
0x134e   : > { %v4523_v47 = vpop.permute.xlu0 %4522 }
0x134f   : > { %v4503_v15 = vpop.permute.xlu1 %4502 }
0x1352   : > { %v4427_v29 = vpop.permute.xlu0 %4426 }
0x1353   : > { %v8368_v18 = vpop.permute.xlu1 %4542  ;;  %4435 = vst.msk [vmem:[#allocation3 + $0x28] sm:$0xf] %vm1175_vm13, %v4427_v29 }
0x1356   : > { %v4445_v40 = vpop.permute.xlu0 %4444 }
0x1357   : > { %v4425_v0 = vpop.permute.xlu1 %4424  ;;  %v4448_v4 = vsel %vm782_vm4, %v4443_v38, %v4445_v40 }
0x1358   : > { %v4428_v50 = vsel %vm761_vm3, %v4423_v34, %v4425_v0  ;;  %v4429_v36 = vsel %vm761_vm3, %v4425_v0, %v4427_v29  ;;  %4453 = vst [vmem:[#allocation3 + $0x30] sm:$0xf] %v4448_v4 }
0x1359   : > { %4433 = vst [vmem:[#allocation3 + $0x18] sm:$0xf] %v4428_v50  ;;  %4434 = vst [vmem:[#allocation3 + $0x20] sm:$0xf] %v4429_v36  ;;  %v7074_v36 = vld [vmem:[%s9013_s11] ss:$8 sps:$4 sm:$0xff]  }
0x135a   : > { %v4467_v48 = vpop.permute.xlu0 %4466  ;;  %v4589_v53 = vld [vmem:[#allocation3 + $0x28] sm:$0xff] }
0x135b   : > { %v4447_v52 = vpop.permute.xlu1 %4446  ;;  %4475 = vst.msk [vmem:[#allocation3 + $0x58] sm:$0xf] %vm1175_vm13, %v4467_v48  ;;  %4669 = vmatpush1.bf16.msra.mxu1 %v4589_v53  ;;  %v4578_v53 = vld [vmem:[#allocation2 + $0x70] sm:$0xff] }
0x135c   : > { %v4449_v39 = vsel %vm782_vm4, %v4445_v40, %v4447_v52  ;;  %4455 = vst.msk [vmem:[#allocation3 + $0x40] sm:$0xf] %vm1175_vm13, %v4447_v52  ;;  %4670 = vmatprep.subr.bf16.mxu1 %v7131_v45 }
0x135d   : > { %4454 = vst [vmem:[#allocation3 + $0x38] sm:$0xf] %v4449_v39 }
0x135e   : > { %v4485_v54 = vpop.permute.xlu0 %4484 }
0x135f   : > { %v4465_v55 = vpop.permute.xlu1 %4464  ;;  %v4488_v43 = vsel %vm824_vm6, %v4483_v49, %v4485_v54  ;;  %v4590_v23 = vld [vmem:[#allocation3 + $0x30] sm:$0xff] }
0x1360   : > { %v4468_v57 = vsel %vm803_vm5, %v4463_v41, %v4465_v55  ;;  %v4469_v58 = vsel %vm803_vm5, %v4465_v55, %v4467_v48  ;;  %v4588_v61 = vld [vmem:[#allocation3 + $0x20] sm:$0xff]  ;;  %v4587_v20 = vld [vmem:[#allocation3 + $0x18] sm:$0xff]  ;;  %4493 = vst [vmem:[#allocation3 + $0x60] sm:$0xf] %v4488_v43 }
0x1361   : > { %4473 = vst [vmem:[#allocation3 + $0x48] sm:$0xf] %v4468_v57  ;;  %4474 = vst [vmem:[#allocation3 + $0x50] sm:$0xf] %v4469_v58  ;;  %4625 = vmatprep.subr.bf16.mxu0 %v4588_v61  ;;  %v4581_v57 = vld [vmem:[#allocation2 + $0x88] sm:$0xff] }
0x1362   : > { %4626 = vmatpush1.bf16.msra.mxu0 %v4587_v20  ;;  %v4507_v37 = vpop.permute.xlu0 %4506  ;;  %v4595_v6 = vld [vmem:[#allocation3 + $0x58] sm:$0xff] }
0x1363   : > { %v4487_v62 = vpop.permute.xlu1 %4486  ;;  %v4592_v1 = vld [vmem:[#allocation3 + $0x40] sm:$0xff]  ;;  %4515 = vst.msk [vmem:[#allocation3 + $0x88] sm:$0xf] %vm1175_vm13, %v4507_v37 }
0x1364   : > { %v4489_v2 = vsel %vm824_vm6, %v4485_v54, %v4487_v62  ;;  %4495 = vst.msk [vmem:[#allocation3 + $0x70] sm:$0xf] %vm1175_vm13, %v4487_v62  ;;  %4671 = vmatpush1.bf16.msra.mxu1 %v4592_v1  ;;  %v4591_v63 = vld [vmem:[#allocation3 + $0x38] sm:$0xff] }
0x1365   : > { %4494 = vst [vmem:[#allocation3 + $0x68] sm:$0xf] %v4489_v2  ;;  %4627 = vmatprep.subr.bf16.mxu0 %v4591_v63  ;;  %4672 = vmatprep.subr.bf16.mxu1 %v7131_v45 }
0x1366   : > { %4628 = vmatpush1.bf16.msra.mxu0 %v4590_v23  ;;  %v4525_v5 = vpop.permute.xlu0 %4524 }
0x1367   : > { %v4505_v11 = vpop.permute.xlu1 %4504  ;;  %v4528_v14 = vsel %vm866_vm8, %v4523_v47, %v4525_v5  ;;  %v4596_v17 = vld [vmem:[#allocation3 + $0x60] sm:$0xff] }
0x1368   : > { %v4508_v51 = vsel %vm845_vm7, %v4503_v15, %v4505_v11  ;;  %v4509_v24 = vsel %vm845_vm7, %v4505_v11, %v4507_v37  ;;  %4673 = vmatpush1.bf16.msra.mxu1 %v4595_v6  ;;  %v4594_v13 = vld [vmem:[#allocation3 + $0x50] sm:$0xff]  ;;  %v4593_v56 = vld [vmem:[#allocation3 + $0x48] sm:$0xff]  ;;  %4533 = vst [vmem:[#allocation3 + $0x90] sm:$0xf] %v4528_v14 }
0x1369   : > { %4513 = vst [vmem:[#allocation3 + $0x78] sm:$0xf] %v4508_v51  ;;  %4514 = vst [vmem:[#allocation3 + $0x80] sm:$0xf] %v4509_v24  ;;  %4629 = vmatprep.subr.bf16.mxu0 %v4594_v13  ;;  %4674 = vmatprep.subr.bf16.mxu1 %v7131_v45 }
0x136a   : > { %4630 = vmatpush1.bf16.msra.mxu0 %v4593_v56  ;;  %v4547_v8 = vpop.permute.xlu0 %4546  ;;  %v4601_v33 = vld [vmem:[#allocation3 + $0x88] sm:$0xff] }
0x136b   : > { %v4527_v30 = vpop.permute.xlu1 %4526  ;;  %v4598_v31 = vld [vmem:[#allocation3 + $0x70] sm:$0xff]  ;;  %4555 = vst.msk [vmem:[#allocation3 + $0xb8] sm:$0xf] %vm1175_vm13, %v4547_v8 }
0x136c   : > { %v4529_v32 = vsel %vm866_vm8, %v4525_v5, %v4527_v30  ;;  %4535 = vst.msk [vmem:[#allocation3 + $0xa0] sm:$0xf] %vm1175_vm13, %v4527_v30  ;;  %4675 = vmatpush1.bf16.msra.mxu1 %v4598_v31  ;;  %v4597_v16 = vld [vmem:[#allocation3 + $0x68] sm:$0xff] }
0x136d   : > { %4534 = vst [vmem:[#allocation3 + $0x98] sm:$0xf] %v4529_v32  ;;  %4631 = vmatprep.subr.bf16.mxu0 %v4597_v16  ;;  %4676 = vmatprep.subr.bf16.mxu1 %v7131_v45 }
0x136e   : > { %4632 = vmatpush1.bf16.msra.mxu0 %v4596_v17  ;;  %v4565_v7 = vpop.permute.xlu0 %4564 }
0x136f   : > { %v4545_v60 = vpop.permute.xlu1 %4544 }
0x1370   : > { %v4548_v42 = vsel %vm887_vm9, %v8368_v18, %v4545_v60  ;;  %v4549_v21 = vsel %vm887_vm9, %v4545_v60, %v4547_v8  ;;  %4677 = vmatpush1.bf16.msra.mxu1 %v4601_v33  ;;  %v4600_v35 = vld [vmem:[#allocation3 + $0x80] sm:$0xff]  ;;  %v4599_v38 = vld [vmem:[#allocation3 + $0x78] sm:$0xff]  ;;  %v4602_v18 = vld [vmem:[#allocation3 + $0x90] sm:$0xff] }
0x1371   : > { %4553 = vst [vmem:[#allocation3 + $0xa8] sm:$0xf] %v4548_v42  ;;  %4554 = vst [vmem:[#allocation3 + $0xb0] sm:$0xf] %v4549_v21  ;;  %4633 = vmatprep.subr.bf16.mxu0 %v4600_v35  ;;  %4678 = vmatprep.subr.bf16.mxu1 %v7131_v45 }
0x1372   : > { %4634 = vmatpush1.bf16.msra.mxu0 %v4599_v38  ;;  %v4563_v34 = vpop.permute.xlu0 %4562  ;;  %v4607_v40 = vld [vmem:[#allocation3 + $0xb8] sm:$0xff] }
0x1373   : > { %v4567_v49 = vpop.permute.xlu1 %4566  ;;  %v4604_v41 = vld [vmem:[#allocation3 + $0xa0] sm:$0xff]  ;;  %v4568_v47 = vsel %vm9087_vm0, %v4563_v34, %v4565_v7  ;;  %vm9090_vm0 = vcmask 416768  }
0x1374   : > { %v4569_v15 = vsel %vm9088_vm10, %v4565_v7, %v4567_v49  ;;  %4575 = vst.msk [vmem:[#allocation3 + $0xd0] sm:$0xf] %vm1175_vm13, %v4567_v49  ;;  %4679 = vmatpush1.bf16.msra.mxu1 %v4604_v41  ;;  %v4603_v29 = vld [vmem:[#allocation3 + $0x98] sm:$0xff]  ;;  %4573 = vst [vmem:[#allocation3 + $0xc0] sm:$0xf] %v4568_v47 }
0x1375   : > { %4574 = vst [vmem:[#allocation3 + $0xc8] sm:$0xf] %v4569_v15  ;;  %4635 = vmatprep.subr.bf16.mxu0 %v4603_v29  ;;  %4680 = vmatprep.subr.bf16.mxu1 %v7131_v45 }
0x1376   : > { %4636 = vmatpush1.bf16.msra.mxu0 %v4602_v18 }
0x1378   : > { %4681 = vmatpush1.bf16.msra.mxu1 %v4607_v40  ;;  %v4606_v0 = vld [vmem:[#allocation3 + $0xb0] sm:$0xff]  ;;  %v4605_v4 = vld [vmem:[#allocation3 + $0xa8] sm:$0xff] }
0x1379   : > { %4637 = vmatprep.subr.bf16.mxu0 %v4606_v0  ;;  %4682 = vmatprep.subr.bf16.mxu1 %v7131_v45 }
0x137a   : > { %4638 = vmatpush1.bf16.msra.mxu0 %v4605_v4  ;;  %v7077_v4 = vld [vmem:[%s9015_s13 + $0x4] ss:$8 sps:$4 sm:$0xff]  }
0x137b   : > { %v4610_v50 = vld [vmem:[#allocation3 + $0xd0] sm:$0xff]  ;;  %v4608_v52 = vld [vmem:[#allocation3 + $0xc0] sm:$0xff] }
0x137c   : > { %4683 = vmatpush1.bf16.msra.mxu1 %v4610_v50  ;;  %v4609_v48 = vld [vmem:[#allocation3 + $0xc8] sm:$0xff]  ;;  %v4753_v50 = vld [vmem:[%s9020_s18] sm:$0xff] }
0x137d   : > { %4639 = vmatprep.subr.bf16.mxu0 %v4609_v48  ;;  %5083 = vmatprep.subr.bf16.mxu1 %v7131_v45 }
0x137e   : > { %4640 = vmatpush1.bf16.msra.mxu0 %v4608_v52 }
0x137f   : > { %4699 = vmatmul.mubr.bf16.vlgmr.msra.gmra.mrb[84].mxu1 %v7074_v36 }
0x1380   : > { %6949 = vmatprep.mubr.msk.bf16.mxu1 %vm977_vm2, %v7077_v4 }
0x1381   : > { %4656 = vmatmul.mubr.bf16.vlgmr.msra.gmra.mrb[84].mxu0 %v7074_v36 }
0x1382   : > { %6946 = vmatprep.mubr.msk.bf16.mxu0 %vm977_vm2, %v7077_v4 }
0x1383   : > { %v4733_v6 = vpop.permute.xlu0 %4732 }
0x1384   : > { %v4728_v1 = vpop.permute.xlu1 %4727 }
0x1452   : > { %v4700_v39 = vpop.f32.mrb[84].mxu1 }
0x1453   : > { %v4709_v54 = vadd.f32 %v4700_v39, %v4578_v53  ;;  %v4702_v55 = vpop.f32.mrb[85].mxu1 }
0x1454   : > { %v4657_v43 = vpop.f32.mrb[84].mxu0  ;;  %v4703_v58 = vpop.f32.mrb[86].mxu1 }
0x1455   : > { %4715 = vst.msk [vmem:[#allocation2 + $0x70] sm:$0xff] %vm747_vm1, %v4709_v54  ;;  %v4707_v61 = vadd.f32 %v4657_v43, %v8309_v19  ;;  %v4712_v20 = vadd.f32 %v4703_v58, %v4581_v57  ;;  %v4659_v37 = vpop.f32.mrb[85].mxu0  ;;  %v4705_v62 = vpop.f32.mrb[87].mxu1 }
0x1456   : > { %v4708_v2 = vadd.f32 %v4659_v37, %v8312_v9  ;;  %v4661_v63 = vpop.f32.mrb[86].mxu0 }
0x1457   : > { %4718 = vst.msk [vmem:[#allocation2 + $0x88] sm:$0xff] %vm747_vm1, %v4712_v20  ;;  %v4710_v23 = vadd.f32 %v4661_v63, %v8317_v44  ;;  %v4663_v5 = vpop.f32.mrb[87].mxu0  ;;  %v4735_v11 = vadd.f32 %v4728_v1, %v4707_v61 }
0x1458   : > { %v4711_v14 = vadd.f32 %v4663_v5, %v8321_v46  ;;  %v4736_v51 = vadd.f32 %v4728_v1, %v4708_v2 }
0x1459   : > { %v4738_v24 = vadd.f32 %v4733_v6, %v4710_v23  ;;  %v4741_v13 = vmul.f32 0.2, %v4735_v11 }
0x145a   : > { %v4739_v19 = vadd.f32 %v4733_v6, %v4711_v14  ;;  %v4742_v56 = vmul.f32 0.2, %v4736_v51 }
0x145b   : > { %v4744_v8 = vmul.f32 0.2, %v4738_v24  ;;  %v8413_v30 = vadd.f32 %v4741_v13, %v7845_v3 }
0x145c   : > { %v4745_v9 = vmul.f32 0.2, %v4739_v19  ;;  %v8416_v31 = vadd.f32 %v4742_v56, %v7854_v12  ;;  %v4721_v32 = vld [vmem:[#allocation2 + $0x70] sm:$0xff] }
0x145d   : > { %v8419_v44 = vadd.f32 %v4744_v8, %v7848_v59  ;;  %v4737_v16 = vadd.f32 %v4728_v1, %v4721_v32  ;;  %v4759_v7 = vmul.f32 %v7274_v26, %v8413_v30 }
0x145e   : > { %v8422_v46 = vadd.f32 %v4745_v9, %v7851_v10  ;;  %v4724_v17 = vld [vmem:[#allocation2 + $0x88] sm:$0xff]  ;;  %v4760_v12 = vmul.f32 %v7276_v27, %v8416_v31 }
0x145f   : > { %v4762_v3 = vmul.f32 %v7274_v26, %v8419_v44  ;;  %v4740_v60 = vadd.f32 %v4733_v6, %v4724_v17  ;;  %v4743_v33 = vmul.f32 0.2, %v4737_v16 }
0x1460   : > { %v4763_v59 = vmul.f32 %v7276_v27, %v8422_v46 }
0x1461   : > { %v4765_v42 = vpack.c.bf16 %v4762_v3, %v4759_v7  ;;  %v4746_v21 = vmul.f32 0.2, %v4740_v60  ;;  %v8433_v10 = vadd.f32 %v4743_v33, %v7861_v22 }
0x1462   : > { %v4766_v35 = vpack.c.bf16 %v4763_v59, %v4760_v12 }
0x1463   : > { %4771 = vrot.lane.b32.xlu1 %v4765_v42, %s9061_s1  ;;  %v8437_v38 = vadd.f32 %v4746_v21, %v7866_v25  ;;  %v4761_v34 = vmul.f32 %v7278_v28, %v8433_v10 }
0x1464   : > { %4773 = vrot.lane.b32.xlu0 %v4766_v35, %s9061_s1 }
0x1465   : > { %v4764_v49 = vmul.f32 %v7278_v28, %v8437_v38 }
0x1467   : > { %v4767_v41 = vpack.c.bf16 %v4764_v49, %v4761_v34 }
0x1469   : > { %4775 = vrot.lane.b32.xlu1 %v4767_v41, %s9061_s1 }
0x14d5   : > { %v4772_v47 = vpop.permute.xlu1 %4771 }
0x14d6   : > { %4782 = vst.msk [vmem:[#allocation4] sm:$0xff] %vm9089_vm14, %v4772_v47  ;;  %v4774_v22 = vpop.permute.xlu0 %4773  ;;  %vm9091_vm14 = vmmov %vm9088_vm10 }
0x14d7   : > { %v4777_v15 = vsel %vm731_vm15, %v4772_v47, %v4774_v22 }
0x14d8   : > { %4783 = vst [vmem:[#allocation4 + $0x8] sm:$0xff] %v4777_v15  ;;  %4789 = vst [vmem:[#allocation3 + $0x8] sm:$0xff] %v4777_v15  ;;  %5020 = vmatprep.subr.bf16.mxu0 %v4777_v15 }
0x14db   : > { %v4776_v25 = vpop.permute.xlu1 %4775 }
0x14dc   : > { %v4778_v29 = vsel %vm731_vm15, %v4774_v22, %v4776_v25 }
0x14dd   : > { %4784 = vst.msk [vmem:[#allocation4 + $0x10] sm:$0xff] %vm9090_vm0, %v4778_v29  ;;  %v4811_v18 = vld [vmem:[#allocation4] sm:$0xff] }
0x14de   : > { %4817 = vrot.lane.b32.xlu1 %v4811_v18, %s9069_s19  ;;  %4797 = vrot.lane.b32.xlu0 %v4811_v18, %s9062_s25  ;;  %4788 = vst [vmem:[#allocation3] sm:$0xff] %v4811_v18 }
0x14df   : > { %5021 = vmatpush1.bf16.msra.mxu0 %v4811_v18 }
0x14e2   : > { %4857 = vrot.lane.b32.xlu1 %v4811_v18, %s9070_s30  ;;  %4837 = vrot.lane.b32.xlu0 %v4811_v18, %s9071_s20 }
0x14e4   : > { %v4793_v40 = vld [vmem:[#allocation4 + $0x10] sm:$0xff] }
0x14e5   : > { %4790 = vst.msk [vmem:[#allocation3 + $0x10] sm:$0xff] %vm747_vm1, %v4793_v40 }
0x14e6   : > { %4897 = vrot.lane.b32.xlu1 %v4811_v18, %s9072_s26  ;;  %4877 = vrot.lane.b32.xlu0 %v4811_v18, %s9063_s28 }
0x14ea   : > { %4917 = vrot.lane.b32.xlu0 %v4811_v18, %s9064_s2  ;;  %4801 = vrot.lane.b32.xlu1 %v4793_v40, %s9062_s25 }
0x14ec   : > { %v4959_v0 = vld [vmem:[#allocation3 + $0x10] sm:$0xff] }
0x14ed   : > { %5084 = vmatpush1.bf16.msra.mxu1 %v4959_v0 }
0x14ee   : > { %4819 = vrot.lane.b32.xlu1 %v4777_v15, %s9069_s19  ;;  %4799 = vrot.lane.b32.xlu0 %v4777_v15, %s9062_s25 }
0x14ef   : > { %5085 = vmatprep.subr.bf16.mxu1 %v7131_v45 }
0x14f2   : > { %4841 = vrot.lane.b32.xlu1 %v4793_v40, %s9071_s20  ;;  %4821 = vrot.lane.b32.xlu0 %v4793_v40, %s9069_s19 }
0x14f6   : > { %4859 = vrot.lane.b32.xlu1 %v4777_v15, %s9070_s30  ;;  %4839 = vrot.lane.b32.xlu0 %v4777_v15, %s9071_s20 }
0x14fa   : > { %4881 = vrot.lane.b32.xlu1 %v4793_v40, %s9063_s28  ;;  %4861 = vrot.lane.b32.xlu0 %v4793_v40, %s9070_s30 }
0x14fe   : > { %4899 = vrot.lane.b32.xlu1 %v4777_v15, %s9072_s26  ;;  %4879 = vrot.lane.b32.xlu0 %v4777_v15, %s9063_s28 }
0x1502   : > { %4921 = vrot.lane.b32.xlu1 %v4793_v40, %s9064_s2  ;;  %4901 = vrot.lane.b32.xlu0 %v4793_v40, %s9072_s26 }
0x1506   : > { %4939 = vrot.lane.b32.xlu1 %v4777_v15, %s9065_s21  ;;  %4919 = vrot.lane.b32.xlu0 %v4777_v15, %s9064_s2  ;;  %v7079_v15 = vld [vmem:[%s9015_s13] ss:$8 sps:$4 sm:$0xff]  }
0x150a   : > { %4937 = vrot.lane.b32.xlu1 %v4811_v18, %s9065_s21  ;;  %4941 = vrot.lane.b32.xlu0 %v4793_v40, %s9065_s21 }
0x150e   : > { %5163 = vperm.xlu0 %7014, %v4753_v50  }
0x1550   : > { %v4818_v36 = vpop.permute.xlu1 %4817  ;;  %v4798_v48 = vpop.permute.xlu0 %4797 }
0x1554   : > { %v4858_v52 = vpop.permute.xlu1 %4857  ;;  %v4838_v53 = vpop.permute.xlu0 %4837 }
0x1558   : > { %v4898_v39 = vpop.permute.xlu1 %4897  ;;  %v4878_v54 = vpop.permute.xlu0 %4877 }
0x155c   : > { %v4802_v55 = vpop.permute.xlu1 %4801  ;;  %v8483_v43 = vpop.permute.xlu0 %4917 }
0x155d   : > { %4810 = vst.msk [vmem:[#allocation3 + $0x28] sm:$0xff] %vm747_vm1, %v4802_v55 }
0x1560   : > { %v4820_v57 = vpop.permute.xlu1 %4819  ;;  %v4800_v58 = vpop.permute.xlu0 %4799 }
0x1561   : > { %v4823_v61 = vsel %vm782_vm4, %v4818_v36, %v4820_v57  ;;  %v4803_v20 = vsel %vm761_vm3, %v4798_v48, %v4800_v58  ;;  %v4804_v37 = vsel %vm761_vm3, %v4800_v58, %v4802_v55 }
0x1562   : > { %4828 = vst [vmem:[#allocation3 + $0x30] sm:$0xff] %v4823_v61  ;;  %4808 = vst [vmem:[#allocation3 + $0x18] sm:$0xff] %v4803_v20  ;;  %5022 = vmatprep.subr.bf16.mxu0 %v4804_v37 }
0x1563   : > { %4809 = vst [vmem:[#allocation3 + $0x20] sm:$0xff] %v4804_v37  ;;  %5023 = vmatpush1.bf16.msra.mxu0 %v4803_v20 }
0x1564   : > { %v4842_v62 = vpop.permute.xlu1 %4841  ;;  %v4822_v1 = vpop.permute.xlu0 %4821  ;;  %v4962_v2 = vld [vmem:[#allocation3 + $0x28] sm:$0xff] }
0x1565   : > { %4850 = vst.msk [vmem:[#allocation3 + $0x58] sm:$0xff] %vm747_vm1, %v4842_v62  ;;  %v4824_v63 = vsel %vm782_vm4, %v4820_v57, %v4822_v1  ;;  %4830 = vst.msk [vmem:[#allocation3 + $0x40] sm:$0xff] %vm747_vm1, %v4822_v1  ;;  %5086 = vmatpush1.bf16.msra.mxu1 %v4962_v2 }
0x1566   : > { %4829 = vst [vmem:[#allocation3 + $0x38] sm:$0xff] %v4824_v63  ;;  %5087 = vmatprep.subr.bf16.mxu1 %v7131_v45  ;;  %5024 = vmatprep.subr.bf16.mxu0 %v4824_v63 }
0x1567   : > { %5025 = vmatpush1.bf16.msra.mxu0 %v4823_v61 }
0x1568   : > { %v4860_v23 = vpop.permute.xlu1 %4859  ;;  %v4840_v5 = vpop.permute.xlu0 %4839 }
0x1569   : > { %v4863_v11 = vsel %vm824_vm6, %v4858_v52, %v4860_v23  ;;  %v4843_v6 = vsel %vm803_vm5, %v4838_v53, %v4840_v5  ;;  %v4844_v14 = vsel %vm803_vm5, %v4840_v5, %v4842_v62 }
0x156a   : > { %4868 = vst [vmem:[#allocation3 + $0x60] sm:$0xff] %v4863_v11  ;;  %4848 = vst [vmem:[#allocation3 + $0x48] sm:$0xff] %v4843_v6  ;;  %5026 = vmatprep.subr.bf16.mxu0 %v4844_v14 }
0x156b   : > { %4849 = vst [vmem:[#allocation3 + $0x50] sm:$0xff] %v4844_v14  ;;  %5027 = vmatpush1.bf16.msra.mxu0 %v4843_v6 }
0x156c   : > { %v4882_v51 = vpop.permute.xlu1 %4881  ;;  %v4862_v24 = vpop.permute.xlu0 %4861  ;;  %v4965_v13 = vld [vmem:[#allocation3 + $0x40] sm:$0xff]  ;;  %v4968_v9 = vld [vmem:[#allocation3 + $0x58] sm:$0xff] }
0x156d   : > { %4890 = vst.msk [vmem:[#allocation3 + $0x88] sm:$0xff] %vm747_vm1, %v4882_v51  ;;  %v4864_v19 = vsel %vm824_vm6, %v4860_v23, %v4862_v24  ;;  %4870 = vst.msk [vmem:[#allocation3 + $0x70] sm:$0xff] %vm747_vm1, %v4862_v24  ;;  %5088 = vmatpush1.bf16.msra.mxu1 %v4965_v13 }
0x156e   : > { %4869 = vst [vmem:[#allocation3 + $0x68] sm:$0xff] %v4864_v19  ;;  %5089 = vmatprep.subr.bf16.mxu1 %v7131_v45  ;;  %5028 = vmatprep.subr.bf16.mxu0 %v4864_v19 }
0x156f   : > { %5029 = vmatpush1.bf16.msra.mxu0 %v4863_v11 }
0x1570   : > { %v4900_v56 = vpop.permute.xlu1 %4899  ;;  %v4880_v8 = vpop.permute.xlu0 %4879 }
0x1571   : > { %v4903_v32 = vsel %vm866_vm8, %v4898_v39, %v4900_v56  ;;  %v4883_v16 = vsel %vm845_vm7, %v4878_v54, %v4880_v8  ;;  %v4884_v17 = vsel %vm845_vm7, %v4880_v8, %v4882_v51  ;;  %5090 = vmatpush1.bf16.msra.mxu1 %v4968_v9 }
0x1572   : > { %4908 = vst [vmem:[#allocation3 + $0x90] sm:$0xff] %v4903_v32  ;;  %4888 = vst [vmem:[#allocation3 + $0x78] sm:$0xff] %v4883_v16  ;;  %5091 = vmatprep.subr.bf16.mxu1 %v7131_v45  ;;  %5030 = vmatprep.subr.bf16.mxu0 %v4884_v17 }
0x1573   : > { %4889 = vst [vmem:[#allocation3 + $0x80] sm:$0xff] %v4884_v17  ;;  %5031 = vmatpush1.bf16.msra.mxu0 %v4883_v16 }
0x1574   : > { %v4922_v7 = vpop.permute.xlu1 %4921  ;;  %v4902_v3 = vpop.permute.xlu0 %4901  ;;  %v4971_v60 = vld [vmem:[#allocation3 + $0x70] sm:$0xff]  ;;  %v4974_v42 = vld [vmem:[#allocation3 + $0x88] sm:$0xff] }
0x1575   : > { %4930 = vst.msk [vmem:[#allocation3 + $0xb8] sm:$0xff] %vm747_vm1, %v4922_v7  ;;  %v4904_v33 = vsel %vm866_vm8, %v4900_v56, %v4902_v3  ;;  %4910 = vst.msk [vmem:[#allocation3 + $0xa0] sm:$0xff] %vm747_vm1, %v4902_v3  ;;  %5092 = vmatpush1.bf16.msra.mxu1 %v4971_v60 }
0x1576   : > { %4909 = vst [vmem:[#allocation3 + $0x98] sm:$0xff] %v4904_v33  ;;  %5093 = vmatprep.subr.bf16.mxu1 %v7131_v45  ;;  %5032 = vmatprep.subr.bf16.mxu0 %v4904_v33 }
0x1577   : > { %5033 = vmatpush1.bf16.msra.mxu0 %v4903_v32 }
0x1578   : > { %v4940_v12 = vpop.permute.xlu1 %4939  ;;  %v4920_v59 = vpop.permute.xlu0 %4919 }
0x1579   : > { %v4923_v21 = vsel %vm887_vm9, %v8483_v43, %v4920_v59  ;;  %v4924_v35 = vsel %vm887_vm9, %v4920_v59, %v4922_v7  ;;  %5094 = vmatpush1.bf16.msra.mxu1 %v4974_v42 }
0x157a   : > { %4928 = vst [vmem:[#allocation3 + $0xa8] sm:$0xff] %v4923_v21  ;;  %4929 = vst [vmem:[#allocation3 + $0xb0] sm:$0xff] %v4924_v35  ;;  %5095 = vmatprep.subr.bf16.mxu1 %v7131_v45  ;;  %5034 = vmatprep.subr.bf16.mxu0 %v4924_v35 }
0x157b   : > { %5035 = vmatpush1.bf16.msra.mxu0 %v4923_v21 }
0x157c   : > { %v4938_v34 = vpop.permute.xlu1 %4937  ;;  %v4942_v49 = vpop.permute.xlu0 %4941  ;;  %v4977_v41 = vld [vmem:[#allocation3 + $0xa0] sm:$0xff]  ;;  %v4980_v25 = vld [vmem:[#allocation3 + $0xb8] sm:$0xff] }
0x157d   : > { %v4943_v47 = vsel %vm9088_vm10, %v4938_v34, %v4940_v12  ;;  %v4944_v22 = vsel %vm9091_vm14, %v4940_v12, %v4942_v49  ;;  %4950 = vst.msk [vmem:[#allocation3 + $0xd0] sm:$0xff] %vm747_vm1, %v4942_v49  ;;  %5096 = vmatpush1.bf16.msra.mxu1 %v4977_v41 }
0x157e   : > { %4948 = vst [vmem:[#allocation3 + $0xc0] sm:$0xff] %v4943_v47  ;;  %4949 = vst [vmem:[#allocation3 + $0xc8] sm:$0xff] %v4944_v22  ;;  %5097 = vmatprep.subr.bf16.mxu1 %v7131_v45  ;;  %5036 = vmatprep.subr.bf16.mxu0 %v4944_v22  ;;  %v7080_v22 = vld [vmem:[%s9015_s13 + $0x14] ss:$8 sps:$4 sm:$0xff]  }
0x157f   : > { %5037 = vmatpush1.bf16.msra.mxu0 %v4943_v47 }
0x1581   : > { %5098 = vmatpush1.bf16.msra.mxu1 %v4980_v25 }
0x1582   : > { %5099 = vmatprep.subr.bf16.mxu1 %v7131_v45  ;;  %5053 = vmatmul.mubr.bf16.vlgmr.msra.gmra.mrb[88].mxu0 %v7079_v15 }
0x1583   : > { %6947 = vmatprep.mubr.msk.bf16.mxu0 %vm977_vm2, %v7080_v22 }
0x1584   : > { %v4983_v29 = vld [vmem:[#allocation3 + $0xd0] sm:$0xff] }
0x1585   : > { %5100 = vmatpush1.bf16.msra.mxu1 %v4983_v29 }
0x1586   : > { %5508 = vmatprep.subr.bf16.mxu1 %v7131_v45 }
0x1588   : > { %5116 = vmatmul.mubr.bf16.vlgmr.msra.gmra.mrb[88].mxu1 %v7079_v15  ;;  %v7082_v15 = vld [vmem:[%s9015_s13 + $0x10] ss:$8 sps:$4 sm:$0xff]  }
0x1589   : > { %6950 = vmatprep.mubr.msk.bf16.mxu1 %vm977_vm2, %v7080_v22 }
0x158a   : > { %5063 = vmatmul.mubr.bf16.gmra.mrb[92].mxu0 %v7082_v15 }
0x158d   : > { %v5164_v18 = vpop.permute.xlu0 %5163 }
0x1590   : > { %5124 = vmatmul.mubr.bf16.gmra.mrb[92].mxu1 %v7082_v15 }
0x1655   : > { %v5054_v40 = vpop.f32.mrb[88].mxu0 }
0x1656   : > { %v5056_v0 = vpop.f32.mrb[89].mxu0  ;;  %v5166_v4 = vadd.f32 %v5164_v18, %v5054_v40 }
0x1657   : > { %v8521_v50 = vpop.f32.mrb[90].mxu0  ;;  %v5167_v36 = vadd.f32 %v5164_v18, %v5056_v0 }
0x1658   : > { %v8523_v48 = vpop.f32.mrb[91].mxu0  ;;  %vm5169_vm0 = vcmp.ge.f32.partialorder %v5166_v4, 0.0  ;;  %v5172_v52 = vmul.f32 0.2, %v5166_v4 }
0x1659   : > { %vm5170_vm10 = vcmp.ge.f32.partialorder %v5167_v36, 0.0  ;;  %v5173_v53 = vmul.f32 0.2, %v5167_v36 }
0x165a   : > { %v5175_v39 = vsel %vm5169_vm0, %v5166_v4, %v5172_v52  ;;  %v7083_v4 = vld [vmem:[%s9015_s13 + $0x24] ss:$8 sps:$4 sm:$0xff]   ;;  %vm9092_vm0 = vcmask 736256  }
0x165b   : > { %v5117_v54 = vpop.f32.mrb[88].mxu1  ;;  %v5178_v55 = vmul.f32 %v7274_v26, %v5175_v39  ;;  %v5176_v43 = vsel %vm5170_vm10, %v5167_v36, %v5173_v53  ;;  %v7085_v36 = vld [vmem:[%s9015_s13 + $0x20] ss:$8 sps:$4 sm:$0xff]   ;;  %6948 = vmatprep.mubr.msk.bf16.mxu0 %vm977_vm2, %v7083_v4  ;;  %6951 = vmatprep.mubr.msk.bf16.mxu1 %vm977_vm2, %v7083_v4  ;;  %vm9093_vm10 = vmmov %vm9092_vm0 }
0x165c   : > { %5142 = vst.msk [vmem:[#allocation2 + $0x10] sm:$0xff] %vm747_vm1, %v5117_v54  ;;  %v5119_v57 = vpop.f32.mrb[89].mxu1  ;;  %v5179_v58 = vmul.f32 %v7276_v27, %v5176_v43  ;;  %5073 = vmatmul.mubr.bf16.gmra.mrb[96].mxu0 %v7085_v36  ;;  %5132 = vmatmul.mubr.bf16.gmra.mrb[96].mxu1 %v7085_v36  ;;  %v4754_v43 = vld [vmem:[%s9020_s18 + $0x8] sm:$0xff] }
0x165d   : > { %v5120_v61 = vpop.f32.mrb[90].mxu1  ;;  %v5181_v20 = vpack.c.bf16 %v5178_v55, %v5178_v55  ;;  %v7088_v55 = vld [vmem:[%s9016_s14 + $0x4] ss:$8 sps:$4 sm:$0xff]  }
0x165e   : > { %5145 = vst.msk [vmem:[#allocation2 + $0x28] sm:$0xff] %vm747_vm1, %v5120_v61  ;;  %v5122_v37 = vpop.f32.mrb[91].mxu1  ;;  %v5182_v62 = vpack.c.bf16 %v5179_v58, %v5179_v58  ;;  %6961 = vmatprep.mubr.msk.bf16.mxu1 %vm977_vm2, %v7088_v55  ;;  %6958 = vmatprep.mubr.msk.bf16.mxu0 %vm977_vm2, %v7088_v55 }
0x165f   : > { %5187 = vrot.lane.b32.xlu1 %v5181_v20, %s9061_s1 }
0x1660   : > { %5189 = vrot.lane.b32.xlu0 %v5182_v62, %s9061_s1 }
0x1663   : > { %v5160_v1 = vld [vmem:[#allocation2 + $0x10] sm:$0xff] }
0x1664   : > { %v5168_v2 = vadd.f32 %v5164_v18, %v5160_v1 }
0x1666   : > { %vm5171_vm14 = vcmp.ge.f32.partialorder %v5168_v2, 0.0  ;;  %v5174_v63 = vmul.f32 0.2, %v5168_v2 }
0x1668   : > { %v5177_v23 = vsel %vm5171_vm14, %v5168_v2, %v5174_v63 }
0x1669   : > { %v5180_v5 = vmul.f32 %v7278_v28, %v5177_v23 }
0x166b   : > { %v5183_v11 = vpack.c.bf16 %v5180_v5, %v5180_v5 }
0x166d   : > { %5191 = vrot.lane.b32.xlu1 %v5183_v11, %s9061_s1 }
0x16d1   : > { %v5188_v6 = vpop.permute.xlu1 %5187 }
0x16d2   : > { %5198 = vst.msk [vmem:[#allocation4] sm:$0xf] %vm1165_vm11, %v5188_v6  ;;  %v5190_v14 = vpop.permute.xlu0 %5189 }
0x16d3   : > { %v5193_v51 = vsel %vm731_vm15, %v5188_v6, %v5190_v14 }
0x16d4   : > { %5199 = vst [vmem:[#allocation4 + $0x8] sm:$0xf] %v5193_v51 }
0x16d9   : > { %v5227_v24 = vld [vmem:[#allocation4] sm:$0xf] }
0x16da   : > { %v5207_v13 = vld [vmem:[#allocation4] sm:$0xf]  ;;  %5233 = vrot.lane.b32.xlu1 %v5227_v24, %s9069_s19 }
0x16db   : > { %5213 = vrot.lane.b32.xlu0 %v5207_v13, %s9062_s25  ;;  %v5202_v19 = vld [vmem:[#allocation4 + $0x8] sm:$0xf]  ;;  %v5201_v56 = vld [vmem:[#allocation4] sm:$0xf] }
0x16dc   : > { %5205 = vst [vmem:[#allocation3 + $0x8] sm:$0xf] %v5202_v19  ;;  %5204 = vst [vmem:[#allocation3] sm:$0xf] %v5201_v56  ;;  %v5267_v8 = vld [vmem:[#allocation4] sm:$0xf] }
0x16dd   : > { %v5247_v9 = vld [vmem:[#allocation4] sm:$0xf]  ;;  %v5208_v42 = vld [vmem:[#allocation4 + $0x8] sm:$0xf] }
0x16de   : > { %5273 = vrot.lane.b32.xlu1 %v5267_v8, %s9070_s30  ;;  %v5307_v17 = vld [vmem:[#allocation4] sm:$0xf]  ;;  %v5228_v21 = vld [vmem:[#allocation4 + $0x8] sm:$0xf] }
0x16df   : > { %5253 = vrot.lane.b32.xlu0 %v5247_v9, %s9071_s20  ;;  %v5192_v32 = vpop.permute.xlu1 %5191  ;;  %v5287_v7 = vld [vmem:[#allocation4] sm:$0xf]  ;;  %v5248_v41 = vld [vmem:[#allocation4 + $0x8] sm:$0xf] }
0x16e0   : > { %v5194_v16 = vsel %vm731_vm15, %v5190_v14, %v5192_v32  ;;  %v5327_v33 = vld [vmem:[#allocation4] sm:$0xf]  ;;  %v5268_v47 = vld [vmem:[#allocation4 + $0x8] sm:$0xf] }
0x16e1   : > { %5200 = vst.msk [vmem:[#allocation4 + $0x10] sm:$0xf] %vm1168_vm12, %v5194_v16  ;;  %v5288_v18 = vld [vmem:[#allocation4 + $0x8] sm:$0xf]  ;;  %v5347_v57 = vld [vmem:[#allocation4] sm:$0xf] }
0x16e2   : > { %5313 = vrot.lane.b32.xlu1 %v5307_v17, %s9072_s26  ;;  %v5308_v40 = vld [vmem:[#allocation4 + $0x8] sm:$0xf] }
0x16e3   : > { %5293 = vrot.lane.b32.xlu0 %v5287_v7, %s9063_s28  ;;  %v5388_v3 = vld [vmem:[#allocation3 + $0x8] sm:$0xff]  ;;  %v5387_v60 = vld [vmem:[#allocation3] sm:$0xff] }
0x16e4   : > { %5447 = vmatprep.subr.bf16.mxu0 %v5388_v3  ;;  %v5328_v53 = vld [vmem:[#allocation4 + $0x8] sm:$0xf] }
0x16e5   : > { %5448 = vmatpush1.bf16.msra.mxu0 %v5387_v60  ;;  %v5348_v39 = vld [vmem:[#allocation4 + $0x8] sm:$0xf] }
0x16e7   : > { %5333 = vrot.lane.b32.xlu0 %v5327_v33, %s9064_s2 }
0x16e8   : > { %v5209_v12 = vld [vmem:[#allocation4 + $0x10] sm:$0xf] }
0x16e9   : > { %v5203_v59 = vld [vmem:[#allocation4 + $0x10] sm:$0xf]  ;;  %5217 = vrot.lane.b32.xlu1 %v5209_v12, %s9062_s25 }
0x16ea   : > { %5206 = vst.msk [vmem:[#allocation3 + $0x10] sm:$0xf] %vm1175_vm13, %v5203_v59  ;;  %v5229_v35 = vld [vmem:[#allocation4 + $0x10] sm:$0xf] }
0x16eb   : > { %5215 = vrot.lane.b32.xlu0 %v5208_v42, %s9062_s25  ;;  %v5249_v49 = vld [vmem:[#allocation4 + $0x10] sm:$0xf] }
0x16ec   : > { %v5269_v25 = vld [vmem:[#allocation4 + $0x10] sm:$0xf] }
0x16ed   : > { %5235 = vrot.lane.b32.xlu1 %v5228_v21, %s9069_s19  ;;  %v5289_v29 = vld [vmem:[#allocation4 + $0x10] sm:$0xf] }
0x16ee   : > { %v5309_v0 = vld [vmem:[#allocation4 + $0x10] sm:$0xf] }
0x16ef   : > { %5237 = vrot.lane.b32.xlu0 %v5229_v35, %s9069_s19  ;;  %v5329_v52 = vld [vmem:[#allocation4 + $0x10] sm:$0xf] }
0x16f0   : > { %v5349_v54 = vld [vmem:[#allocation4 + $0x10] sm:$0xf] }
0x16f1   : > { %v5389_v34 = vld [vmem:[#allocation3 + $0x10] sm:$0xff]  ;;  %5257 = vrot.lane.b32.xlu1 %v5249_v49, %s9071_s20 }
0x16f2   : > { %5509 = vmatpush1.bf16.msra.mxu1 %v5389_v34 }
0x16f3   : > { %5255 = vrot.lane.b32.xlu0 %v5248_v41, %s9071_s20  ;;  %5510 = vmatprep.subr.bf16.mxu1 %v7131_v45 }
0x16f5   : > { %5275 = vrot.lane.b32.xlu1 %v5268_v47, %s9070_s30 }
0x16f7   : > { %5277 = vrot.lane.b32.xlu0 %v5269_v25, %s9070_s30 }
0x16f9   : > { %5297 = vrot.lane.b32.xlu1 %v5289_v29, %s9063_s28 }
0x16fb   : > { %5295 = vrot.lane.b32.xlu0 %v5288_v18, %s9063_s28 }
0x16fd   : > { %5315 = vrot.lane.b32.xlu1 %v5308_v40, %s9072_s26 }
0x16ff   : > { %5317 = vrot.lane.b32.xlu0 %v5309_v0, %s9072_s26 }
0x1701   : > { %5337 = vrot.lane.b32.xlu1 %v5329_v52, %s9064_s2 }
0x1703   : > { %5335 = vrot.lane.b32.xlu0 %v5328_v53, %s9064_s2 }
0x1705   : > { %5355 = vrot.lane.b32.xlu1 %v5348_v39, %s9065_s21 }
0x1707   : > { %5357 = vrot.lane.b32.xlu0 %v5349_v54, %s9065_s21 }
0x1709   : > { %5353 = vrot.lane.b32.xlu1 %v5347_v57, %s9065_s21 }
0x170b   : > { %5599 = vperm.xlu0 %7014, %v4754_v43  }
0x174c   : > { %v5234_v61 = vpop.permute.xlu1 %5233 }
0x174d   : > { %v5214_v58 = vpop.permute.xlu0 %5213 }
0x1750   : > { %v5274_v37 = vpop.permute.xlu1 %5273 }
0x1751   : > { %v5254_v20 = vpop.permute.xlu0 %5253 }
0x1754   : > { %v5314_v1 = vpop.permute.xlu1 %5313 }
0x1755   : > { %v5294_v62 = vpop.permute.xlu0 %5293 }
0x1759   : > { %v8587_v2 = vpop.permute.xlu0 %5333 }
0x175b   : > { %v5218_v63 = vpop.permute.xlu1 %5217 }
0x175c   : > { %5226 = vst.msk [vmem:[#allocation3 + $0x28] sm:$0xf] %vm1175_vm13, %v5218_v63 }
0x175d   : > { %v5216_v23 = vpop.permute.xlu0 %5215 }
0x175e   : > { %v5219_v5 = vsel %vm761_vm3, %v5214_v58, %v5216_v23  ;;  %v5220_v11 = vsel %vm761_vm3, %v5216_v23, %v5218_v63 }
0x175f   : > { %5224 = vst [vmem:[#allocation3 + $0x18] sm:$0xf] %v5219_v5  ;;  %5225 = vst [vmem:[#allocation3 + $0x20] sm:$0xf] %v5220_v11  ;;  %v5236_v6 = vpop.permute.xlu1 %5235  ;;  %v7086_v11 = vld [vmem:[%s9016_s14] ss:$8 sps:$4 sm:$0xff]  }
0x1760   : > { %v5239_v14 = vsel %vm782_vm4, %v5234_v61, %v5236_v6 }
0x1761   : > { %v5238_v51 = vpop.permute.xlu0 %5237  ;;  %5244 = vst [vmem:[#allocation3 + $0x30] sm:$0xf] %v5239_v14  ;;  %v7089_v14 = vld [vmem:[%s9016_s14 + $0x14] ss:$8 sps:$4 sm:$0xff]  }
0x1762   : > { %v5240_v24 = vsel %vm782_vm4, %v5236_v6, %v5238_v51  ;;  %5246 = vst.msk [vmem:[#allocation3 + $0x40] sm:$0xf] %vm1175_vm13, %v5238_v51 }
0x1763   : > { %5245 = vst [vmem:[#allocation3 + $0x38] sm:$0xf] %v5240_v24  ;;  %v5258_v13 = vpop.permute.xlu1 %5257  ;;  %v5392_v19 = vld [vmem:[#allocation3 + $0x28] sm:$0xff]  ;;  %v5386_v24 = vld [vmem:[%s9016_s14 + $0x20] sm:$0xff] }
0x1764   : > { %5266 = vst.msk [vmem:[#allocation3 + $0x58] sm:$0xf] %vm1175_vm13, %v5258_v13  ;;  %5511 = vmatpush1.bf16.msra.mxu1 %v5392_v19  ;;  %v6957_v19 = vcombine.high %v5386_v24, %v5386_v24 }
0x1765   : > { %v5256_v56 = vpop.permute.xlu0 %5255  ;;  %5512 = vmatprep.subr.bf16.mxu1 %v7131_v45 }
0x1766   : > { %v5259_v8 = vsel %vm803_vm5, %v5254_v20, %v5256_v56  ;;  %v5260_v9 = vsel %vm803_vm5, %v5256_v56, %v5258_v13  ;;  %v5391_v32 = vld [vmem:[#allocation3 + $0x20] sm:$0xff]  ;;  %v5390_v16 = vld [vmem:[#allocation3 + $0x18] sm:$0xff]  ;;  %v6956_v56 = vcombine.low %v5386_v24, %v5386_v24 }
0x1767   : > { %5264 = vst [vmem:[#allocation3 + $0x48] sm:$0xf] %v5259_v8  ;;  %5265 = vst [vmem:[#allocation3 + $0x50] sm:$0xf] %v5260_v9  ;;  %5449 = vmatprep.subr.bf16.mxu0 %v5391_v32  ;;  %v5276_v17 = vpop.permute.xlu1 %5275  ;;  %v7091_v13 = vld [vmem:[%s9016_s14 + $0x10] ss:$8 sps:$4 sm:$0xff]  }
0x1768   : > { %5450 = vmatpush1.bf16.msra.mxu0 %v5390_v16  ;;  %v5279_v7 = vsel %vm824_vm6, %v5274_v37, %v5276_v17  ;;  %v5393_v59 = vld [vmem:[#allocation3 + $0x30] sm:$0xff]  ;;  %v5064_v8 = vpop.f32.mrb[92].mxu0  ;;  %v5125_v32 = vpop.f32.mrb[92].mxu1 }
0x1769   : > { %v5278_v3 = vpop.permute.xlu0 %5277  ;;  %v5395_v60 = vld [vmem:[#allocation3 + $0x40] sm:$0xff]  ;;  %5284 = vst [vmem:[#allocation3 + $0x60] sm:$0xf] %v5279_v7  ;;  %v5066_v9 = vpop.f32.mrb[93].mxu0  ;;  %5148 = vst.msk [vmem:[#allocation2 + $0x40] sm:$0xff] %vm747_vm1, %v5125_v32 }
0x176a   : > { %v5280_v33 = vsel %vm824_vm6, %v5276_v17, %v5278_v3  ;;  %5286 = vst.msk [vmem:[#allocation3 + $0x70] sm:$0xf] %vm1175_vm13, %v5278_v3  ;;  %5513 = vmatpush1.bf16.msra.mxu1 %v5395_v60  ;;  %v5394_v12 = vld [vmem:[#allocation3 + $0x38] sm:$0xff]  ;;  %v5068_v16 = vpop.f32.mrb[94].mxu0  ;;  %v5127_v17 = vpop.f32.mrb[93].mxu1 }
0x176b   : > { %5285 = vst [vmem:[#allocation3 + $0x68] sm:$0xf] %v5280_v33  ;;  %5451 = vmatprep.subr.bf16.mxu0 %v5394_v12  ;;  %5514 = vmatprep.subr.bf16.mxu1 %v7131_v45  ;;  %v5298_v42 = vpop.permute.xlu1 %5297  ;;  %v5398_v21 = vld [vmem:[#allocation3 + $0x58] sm:$0xff]  ;;  %v5070_v7 = vpop.f32.mrb[95].mxu0 }
0x176c   : > { %5452 = vmatpush1.bf16.msra.mxu0 %v5393_v59  ;;  %5306 = vst.msk [vmem:[#allocation3 + $0x88] sm:$0xf] %vm1175_vm13, %v5298_v42  ;;  %v5128_v3 = vpop.f32.mrb[94].mxu1  ;;  %v5074_v33 = vpop.f32.mrb[96].mxu0 }
0x176d   : > { %v5296_v35 = vpop.permute.xlu0 %5295  ;;  %5151 = vst.msk [vmem:[#allocation2 + $0x58] sm:$0xff] %vm747_vm1, %v5128_v3  ;;  %v5130_v60 = vpop.f32.mrb[95].mxu1 }
0x176e   : > { %v5299_v34 = vsel %vm845_vm7, %v5294_v62, %v5296_v35  ;;  %v5300_v49 = vsel %vm845_vm7, %v5296_v35, %v5298_v42  ;;  %5515 = vmatpush1.bf16.msra.mxu1 %v5398_v21  ;;  %v5397_v41 = vld [vmem:[#allocation3 + $0x50] sm:$0xff]  ;;  %v5396_v47 = vld [vmem:[#allocation3 + $0x48] sm:$0xff]  ;;  %v5133_v12 = vpop.f32.mrb[96].mxu1  ;;  %v5076_v59 = vpop.f32.mrb[97].mxu0 }
0x176f   : > { %5304 = vst [vmem:[#allocation3 + $0x78] sm:$0xf] %v5299_v34  ;;  %5305 = vst [vmem:[#allocation3 + $0x80] sm:$0xf] %v5300_v49  ;;  %5453 = vmatprep.subr.bf16.mxu0 %v5397_v41  ;;  %5516 = vmatprep.subr.bf16.mxu1 %v7131_v45  ;;  %v5316_v22 = vpop.permute.xlu1 %5315  ;;  %v5135_v42 = vpop.f32.mrb[97].mxu1  ;;  %v5369_v41 = vld [vmem:[#allocation2 + $0x28] sm:$0xff] }
0x1770   : > { %5454 = vmatpush1.bf16.msra.mxu0 %v5396_v47  ;;  %v5319_v15 = vsel %vm866_vm8, %v5314_v1, %v5316_v22  ;;  %v5399_v0 = vld [vmem:[#allocation3 + $0x60] sm:$0xff]  ;;  %5154 = vst.msk [vmem:[#allocation2 + $0x70] sm:$0xff] %vm747_vm1, %v5133_v12  ;;  %v8641_v21 = vpop.f32.mrb[98].mxu0  ;;  %v5136_v35 = vpop.f32.mrb[98].mxu1 }
0x1771   : > { %v5318_v25 = vpop.permute.xlu0 %5317  ;;  %v5401_v29 = vld [vmem:[#allocation3 + $0x70] sm:$0xff]  ;;  %5324 = vst [vmem:[#allocation3 + $0x90] sm:$0xf] %v5319_v15  ;;  %v8643_v34 = vpop.f32.mrb[99].mxu0  ;;  %5157 = vst.msk [vmem:[#allocation2 + $0x88] sm:$0xff] %vm747_vm1, %v5136_v35 }
0x1772   : > { %v5320_v18 = vsel %vm866_vm8, %v5316_v22, %v5318_v25  ;;  %5326 = vst.msk [vmem:[#allocation3 + $0xa0] sm:$0xf] %vm1175_vm13, %v5318_v25  ;;  %5517 = vmatpush1.bf16.msra.mxu1 %v5401_v29  ;;  %v5400_v40 = vld [vmem:[#allocation3 + $0x68] sm:$0xff]  ;;  %v5138_v49 = vpop.f32.mrb[99].mxu1  ;;  %v5372_v25 = vld [vmem:[#allocation2 + $0x40] sm:$0xff] }
0x1773   : > { %5325 = vst [vmem:[#allocation3 + $0x98] sm:$0xf] %v5320_v18  ;;  %5455 = vmatprep.subr.bf16.mxu0 %v5400_v40  ;;  %5518 = vmatprep.subr.bf16.mxu1 %v7131_v45  ;;  %v5338_v4 = vpop.permute.xlu1 %5337  ;;  %v5404_v36 = vld [vmem:[#allocation3 + $0x88] sm:$0xff] }
0x1774   : > { %5456 = vmatpush1.bf16.msra.mxu0 %v5399_v0  ;;  %5346 = vst.msk [vmem:[#allocation3 + $0xb8] sm:$0xf] %vm1175_vm13, %v5338_v4 }
0x1775   : > { %v5336_v52 = vpop.permute.xlu0 %5335 }
0x1776   : > { %v5339_v53 = vsel %vm887_vm9, %v8587_v2, %v5336_v52  ;;  %v5340_v39 = vsel %vm887_vm9, %v5336_v52, %v5338_v4  ;;  %5519 = vmatpush1.bf16.msra.mxu1 %v5404_v36  ;;  %v5403_v54 = vld [vmem:[#allocation3 + $0x80] sm:$0xff]  ;;  %v5402_v55 = vld [vmem:[#allocation3 + $0x78] sm:$0xff] }
0x1777   : > { %5344 = vst [vmem:[#allocation3 + $0xa8] sm:$0xf] %v5339_v53  ;;  %5345 = vst [vmem:[#allocation3 + $0xb0] sm:$0xf] %v5340_v39  ;;  %5457 = vmatprep.subr.bf16.mxu0 %v5403_v54  ;;  %5520 = vmatprep.subr.bf16.mxu1 %v7131_v45  ;;  %v5356_v43 = vpop.permute.xlu1 %5355 }
0x1778   : > { %5458 = vmatpush1.bf16.msra.mxu0 %v5402_v55  ;;  %v5405_v37 = vld [vmem:[#allocation3 + $0x90] sm:$0xff] }
0x1779   : > { %v5358_v57 = vpop.permute.xlu0 %5357  ;;  %v5407_v58 = vld [vmem:[#allocation3 + $0xa0] sm:$0xff] }
0x177a   : > { %v5360_v61 = vsel %vm9092_vm0, %v5356_v43, %v5358_v57  ;;  %5366 = vst.msk [vmem:[#allocation3 + $0xd0] sm:$0xf] %vm1175_vm13, %v5358_v57  ;;  %5521 = vmatpush1.bf16.msra.mxu1 %v5407_v58  ;;  %v5406_v20 = vld [vmem:[#allocation3 + $0x98] sm:$0xff]  ;;  %v5375_v58 = vld [vmem:[#allocation2 + $0x58] sm:$0xff] }
0x177b   : > { %5365 = vst [vmem:[#allocation3 + $0xc8] sm:$0xf] %v5360_v61  ;;  %5459 = vmatprep.subr.bf16.mxu0 %v5406_v20  ;;  %5522 = vmatprep.subr.bf16.mxu1 %v7131_v45  ;;  %v5354_v62 = vpop.permute.xlu1 %5353  ;;  %v5410_v1 = vld [vmem:[#allocation3 + $0xb8] sm:$0xff] }
0x177c   : > { %5460 = vmatpush1.bf16.msra.mxu0 %v5405_v37  ;;  %v5359_v2 = vsel %vm9093_vm10, %v5354_v62, %v5356_v43 }
0x177d   : > { %5364 = vst [vmem:[#allocation3 + $0xc0] sm:$0xf] %v5359_v2 }
0x177e   : > { %5523 = vmatpush1.bf16.msra.mxu1 %v5410_v1  ;;  %v5409_v63 = vld [vmem:[#allocation3 + $0xb0] sm:$0xff]  ;;  %v5408_v23 = vld [vmem:[#allocation3 + $0xa8] sm:$0xff]  ;;  %v5378_v1 = vld [vmem:[#allocation2 + $0x70] sm:$0xff] }
0x177f   : > { %5461 = vmatprep.subr.bf16.mxu0 %v5409_v63  ;;  %5524 = vmatprep.subr.bf16.mxu1 %v7131_v45 }
0x1780   : > { %5462 = vmatpush1.bf16.msra.mxu0 %v5408_v23 }
0x1781   : > { %v5413_v5 = vld [vmem:[#allocation3 + $0xd0] sm:$0xff] }
0x1782   : > { %5525 = vmatpush1.bf16.msra.mxu1 %v5413_v5  ;;  %v5412_v6 = vld [vmem:[#allocation3 + $0xc8] sm:$0xff] }
0x1783   : > { %5463 = vmatprep.subr.bf16.mxu0 %v5412_v6  ;;  %5923 = vmatprep.subr.bf16.mxu1 %v7131_v45 }
0x1784   : > { %v5411_v51 = vld [vmem:[#allocation3 + $0xc0] sm:$0xff] }
0x1785   : > { %5541 = vmatmul.mubr.bf16.vlgmr.msra.gmra.mrb[100].mxu1 %v7086_v11  ;;  %5464 = vmatpush1.bf16.msra.mxu0 %v5411_v51 }
0x1786   : > { %6962 = vmatprep.mubr.msk.bf16.mxu1 %vm977_vm2, %v7089_v14 }
0x1788   : > { %5480 = vmatmul.mubr.bf16.vlgmr.msra.gmra.mrb[100].mxu0 %v7086_v11 }
0x1789   : > { %6959 = vmatprep.mubr.msk.bf16.mxu0 %vm977_vm2, %v7089_v14 }
0x178a   : > { %v5600_v52 = vpop.permute.xlu0 %5599 }
0x178d   : > { %5549 = vmatmul.mubr.bf16.gmra.mrb[104].mxu1 %v7091_v13 }
0x178e   : > { %6963 = vmatprep.mubr.msk.bf16.mxu1 %vm977_vm2, %v6957_v19 }
0x1790   : > { %5490 = vmatmul.mubr.bf16.gmra.mrb[104].mxu0 %v7091_v13 }
0x1791   : > { %6960 = vmatprep.mubr.msk.bf16.mxu0 %vm977_vm2, %v6957_v19 }
0x1795   : > { %5557 = vmatmul.mubr.bf16.gmra.mrb[108].mxu1 %v6956_v56 }
0x1798   : > { %5500 = vmatmul.mubr.bf16.gmra.mrb[108].mxu0 %v6956_v56 }
0x1858   : > { %v5542_v47 = vpop.f32.mrb[100].mxu1 }
0x1859   : > { %v5566_v22 = vadd.f32 %v5542_v47, %v5369_v41  ;;  %v5544_v15 = vpop.f32.mrb[101].mxu1 }
0x185a   : > { %v5545_v29 = vpop.f32.mrb[102].mxu1 }
0x185b   : > { %5581 = vst.msk [vmem:[#allocation2 + $0x28] sm:$0xff] %vm747_vm1, %v5566_v22  ;;  %v5569_v18 = vadd.f32 %v5545_v29, %v5372_v25  ;;  %v5547_v40 = vpop.f32.mrb[103].mxu1  ;;  %v5481_v0 = vpop.f32.mrb[100].mxu0 }
0x185c   : > { %v5564_v4 = vadd.f32 %v5481_v0, %v8521_v50  ;;  %v5483_v36 = vpop.f32.mrb[101].mxu0 }
0x185d   : > { %5584 = vst.msk [vmem:[#allocation2 + $0x40] sm:$0xff] %vm747_vm1, %v5569_v18  ;;  %v5565_v53 = vadd.f32 %v5483_v36, %v8523_v48  ;;  %v5485_v39 = vpop.f32.mrb[102].mxu0 }
0x185e   : > { %v8650_v54 = vadd.f32 %v5485_v39, %v5064_v8  ;;  %v5487_v55 = vpop.f32.mrb[103].mxu0  ;;  %v5602_v43 = vadd.f32 %v5600_v52, %v5564_v4 }
0x185f   : > { %v8652_v57 = vadd.f32 %v5487_v55, %v5066_v9  ;;  %v5603_v20 = vadd.f32 %v5600_v52, %v5565_v53 }
0x1860   : > { %v5550_v61 = vpop.f32.mrb[104].mxu1  ;;  %vm5605_vm14 = vcmp.ge.f32.partialorder %v5602_v43, 0.0  ;;  %v5608_v50 = vmul.f32 0.2, %v5602_v43 }
0x1861   : > { %v5572_v37 = vadd.f32 %v5550_v61, %v5375_v58  ;;  %v5552_v62 = vpop.f32.mrb[105].mxu1  ;;  %vm5606_vm0 = vcmp.ge.f32.partialorder %v5603_v20, 0.0  ;;  %v5609_v63 = vmul.f32 0.2, %v5603_v20 }
0x1862   : > { %v5553_v2 = vpop.f32.mrb[106].mxu1  ;;  %v5596_v23 = vld [vmem:[#allocation2 + $0x28] sm:$0xff]  ;;  %v5611_v11 = vsel %vm5605_vm14, %v5602_v43, %v5608_v50  ;;  %vm9094_vm14 = vcmask 736256  }
0x1863   : > { %5587 = vst.msk [vmem:[#allocation2 + $0x58] sm:$0xff] %vm747_vm1, %v5572_v37  ;;  %v5575_v48 = vadd.f32 %v5553_v2, %v5378_v1  ;;  %v5555_v5 = vpop.f32.mrb[107].mxu1  ;;  %v5604_v6 = vadd.f32 %v5600_v52, %v5596_v23  ;;  %v5491_v14 = vpop.f32.mrb[104].mxu0  ;;  %v5614_v51 = vmul.f32 %v7274_v26, %v5611_v11  ;;  %v5612_v24 = vsel %vm5606_vm0, %v5603_v20, %v5609_v63  ;;  %vm9095_vm0 = vmmov %vm9094_vm14 }
0x1864   : > { %v8656_v13 = vadd.f32 %v5491_v14, %v5068_v16  ;;  %v5493_v19 = vpop.f32.mrb[105].mxu0  ;;  %v5615_v56 = vmul.f32 %v7276_v27, %v5612_v24  ;;  %v5381_v16 = vld [vmem:[#allocation2 + $0x88] sm:$0xff] }
0x1865   : > { %5590 = vst.msk [vmem:[#allocation2 + $0x70] sm:$0xff] %vm747_vm1, %v5575_v48  ;;  %vm5607_vm10 = vcmp.ge.f32.partialorder %v5604_v6, 0.0  ;;  %v5610_v8 = vmul.f32 0.2, %v5604_v6  ;;  %v8660_v9 = vadd.f32 %v5493_v19, %v5070_v7  ;;  %v5495_v32 = vpop.f32.mrb[106].mxu0  ;;  %v5617_v17 = vpack.c.bf16 %v5614_v51, %v5614_v51 }
0x1866   : > { %v8662_v3 = vadd.f32 %v5495_v32, %v5074_v33  ;;  %v5497_v60 = vpop.f32.mrb[107].mxu0  ;;  %v5618_v12 = vpack.c.bf16 %v5615_v56, %v5615_v56 }
0x1867   : > { %v5613_v42 = vsel %vm5607_vm10, %v5604_v6, %v5610_v8  ;;  %v8664_v35 = vadd.f32 %v5497_v60, %v5076_v59  ;;  %5623 = vrot.lane.b32.xlu1 %v5617_v17, %s9061_s1 }
0x1868   : > { %v5558_v49 = vpop.f32.mrb[108].mxu1  ;;  %v5616_v41 = vmul.f32 %v7278_v28, %v5613_v42  ;;  %5625 = vrot.lane.b32.xlu0 %v5618_v12, %s9061_s1  ;;  %v7096_v42 = vld [vmem:[%s9017_s15 + $0x4] ss:$8 sps:$4 sm:$0xff]  }
0x1869   : > { %v5578_v47 = vadd.f32 %v5558_v49, %v5381_v16  ;;  %v5560_v7 = vpop.f32.mrb[109].mxu1  ;;  %6970 = vmatprep.mubr.msk.bf16.mxu1 %vm977_vm2, %v7096_v42  ;;  %6968 = vmatprep.mubr.msk.bf16.mxu0 %vm977_vm2, %v7096_v42 }
0x186a   : > { %v5619_v22 = vpack.c.bf16 %v5616_v41, %v5616_v41  ;;  %v5561_v15 = vpop.f32.mrb[110].mxu1  ;;  %v4755_v41 = vld [vmem:[%s9020_s18 + $0x10] sm:$0xff] }
0x186b   : > { %5593 = vst.msk [vmem:[#allocation2 + $0x88] sm:$0xff] %vm747_vm1, %v5578_v47  ;;  %v5562_v33 = vpop.f32.mrb[111].mxu1  ;;  %v5501_v25 = vpop.f32.mrb[108].mxu0 }
0x186c   : > { %5627 = vrot.lane.b32.xlu1 %v5619_v22, %s9061_s1  ;;  %v8672_v59 = vadd.f32 %v5501_v25, %v8641_v21  ;;  %v5503_v29 = vpop.f32.mrb[109].mxu0 }
0x186d   : > { %v8675_v18 = vadd.f32 %v5503_v29, %v8643_v34  ;;  %v5505_v40 = vpop.f32.mrb[110].mxu0 }
0x186e   : > { %v5506_v0 = vpop.f32.mrb[111].mxu0 }
0x18d9   : > { %v5624_v4 = vpop.permute.xlu1 %5623 }
0x18da   : > { %5634 = vst.msk [vmem:[#allocation4] sm:$0xf] %vm1165_vm11, %v5624_v4  ;;  %v5626_v36 = vpop.permute.xlu0 %5625 }
0x18db   : > { %v5629_v52 = vsel %vm731_vm15, %v5624_v4, %v5626_v36 }
0x18dc   : > { %5635 = vst [vmem:[#allocation4 + $0x8] sm:$0xf] %v5629_v52 }
0x18de   : > { %v5628_v53 = vpop.permute.xlu1 %5627 }
0x18df   : > { %v5630_v39 = vsel %vm731_vm15, %v5626_v36, %v5628_v53 }
0x18e0   : > { %5636 = vst.msk [vmem:[#allocation4 + $0x10] sm:$0xf] %vm1168_vm12, %v5630_v39 }
0x18e1   : > { %v5663_v21 = vld [vmem:[#allocation4] sm:$0xf] }
0x18e2   : > { %v5643_v55 = vld [vmem:[#allocation4] sm:$0xf]  ;;  %5669 = vrot.lane.b32.xlu1 %v5663_v21, %s9069_s19 }
0x18e3   : > { %5649 = vrot.lane.b32.xlu0 %v5643_v55, %s9062_s25  ;;  %v5638_v34 = vld [vmem:[#allocation4 + $0x8] sm:$0xf]  ;;  %v5637_v43 = vld [vmem:[#allocation4] sm:$0xf] }
0x18e4   : > { %5641 = vst [vmem:[#allocation3 + $0x8] sm:$0xf] %v5638_v34  ;;  %5640 = vst [vmem:[#allocation3] sm:$0xf] %v5637_v43  ;;  %v5703_v58 = vld [vmem:[#allocation4] sm:$0xf] }
0x18e5   : > { %v5683_v61 = vld [vmem:[#allocation4] sm:$0xf]  ;;  %v5664_v48 = vld [vmem:[#allocation4 + $0x8] sm:$0xf] }
0x18e6   : > { %5709 = vrot.lane.b32.xlu1 %v5703_v58, %s9070_s30  ;;  %v5743_v37 = vld [vmem:[#allocation4] sm:$0xf]  ;;  %v5644_v5 = vld [vmem:[#allocation4 + $0x8] sm:$0xf] }
0x18e7   : > { %5689 = vrot.lane.b32.xlu0 %v5683_v61, %s9071_s20  ;;  %v5639_v20 = vld [vmem:[#allocation4 + $0x10] sm:$0xf]  ;;  %v5723_v62 = vld [vmem:[#allocation4] sm:$0xf]  ;;  %v5704_v14 = vld [vmem:[#allocation4 + $0x8] sm:$0xf] }
0x18e8   : > { %5642 = vst.msk [vmem:[#allocation3 + $0x10] sm:$0xf] %vm1175_vm13, %v5639_v20  ;;  %v5763_v2 = vld [vmem:[#allocation4] sm:$0xf]  ;;  %v5645_v63 = vld [vmem:[#allocation4 + $0x10] sm:$0xf] }
0x18e9   : > { %v5685_v11 = vld [vmem:[#allocation4 + $0x10] sm:$0xf]  ;;  %v5684_v51 = vld [vmem:[#allocation4 + $0x8] sm:$0xf]  ;;  %v5783_v16 = vld [vmem:[#allocation4] sm:$0xf] }
0x18ea   : > { %5749 = vrot.lane.b32.xlu1 %v5743_v37, %s9072_s26  ;;  %v5665_v6 = vld [vmem:[#allocation4 + $0x10] sm:$0xf]  ;;  %v5744_v56 = vld [vmem:[#allocation4 + $0x8] sm:$0xf] }
0x18eb   : > { %5729 = vrot.lane.b32.xlu0 %v5723_v62, %s9063_s28  ;;  %v5820_v50 = vld [vmem:[#allocation3 + $0x8] sm:$0xff]  ;;  %v5819_v1 = vld [vmem:[#allocation3] sm:$0xff] }
0x18ec   : > { %5870 = vmatprep.subr.bf16.mxu0 %v5820_v50  ;;  %v5725_v24 = vld [vmem:[#allocation4 + $0x10] sm:$0xf]  ;;  %v5724_v8 = vld [vmem:[#allocation4 + $0x8] sm:$0xf] }
0x18ed   : > { %5871 = vmatpush1.bf16.msra.mxu0 %v5819_v1  ;;  %v5705_v19 = vld [vmem:[#allocation4 + $0x10] sm:$0xf]  ;;  %v5784_v60 = vld [vmem:[#allocation4 + $0x8] sm:$0xf] }
0x18ee   : > { %5653 = vrot.lane.b32.xlu1 %v5645_v63, %s9062_s25  ;;  %v5765_v32 = vld [vmem:[#allocation4 + $0x10] sm:$0xf]  ;;  %v5764_v12 = vld [vmem:[#allocation4 + $0x8] sm:$0xf] }
0x18ef   : > { %5769 = vrot.lane.b32.xlu0 %v5763_v2, %s9064_s2  ;;  %v5821_v23 = vld [vmem:[#allocation3 + $0x10] sm:$0xff]  ;;  %v5745_v17 = vld [vmem:[#allocation4 + $0x10] sm:$0xf] }
0x18f0   : > { %5924 = vmatpush1.bf16.msra.mxu1 %v5821_v23  ;;  %v5785_v49 = vld [vmem:[#allocation4 + $0x10] sm:$0xf] }
0x18f1   : > { %5925 = vmatprep.subr.bf16.mxu1 %v7131_v45 }
0x18f2   : > { %5671 = vrot.lane.b32.xlu1 %v5664_v48, %s9069_s19 }
0x18f3   : > { %5651 = vrot.lane.b32.xlu0 %v5644_v5, %s9062_s25 }
0x18f6   : > { %5693 = vrot.lane.b32.xlu1 %v5685_v11, %s9071_s20 }
0x18f7   : > { %5673 = vrot.lane.b32.xlu0 %v5665_v6, %s9069_s19 }
0x18fa   : > { %5711 = vrot.lane.b32.xlu1 %v5704_v14, %s9070_s30 }
0x18fb   : > { %5691 = vrot.lane.b32.xlu0 %v5684_v51, %s9071_s20 }
0x18fe   : > { %5733 = vrot.lane.b32.xlu1 %v5725_v24, %s9063_s28 }
0x18ff   : > { %5713 = vrot.lane.b32.xlu0 %v5705_v19, %s9070_s30 }
0x1902   : > { %5751 = vrot.lane.b32.xlu1 %v5744_v56, %s9072_s26 }
0x1903   : > { %5731 = vrot.lane.b32.xlu0 %v5724_v8, %s9063_s28 }
0x1906   : > { %5773 = vrot.lane.b32.xlu1 %v5765_v32, %s9064_s2 }
0x1907   : > { %5753 = vrot.lane.b32.xlu0 %v5745_v17, %s9072_s26 }
0x190a   : > { %5791 = vrot.lane.b32.xlu1 %v5784_v60, %s9065_s21 }
0x190b   : > { %5771 = vrot.lane.b32.xlu0 %v5764_v12, %s9064_s2 }
0x190e   : > { %5789 = vrot.lane.b32.xlu1 %v5783_v16, %s9065_s21 }
0x190f   : > { %5793 = vrot.lane.b32.xlu0 %v5785_v49, %s9065_s21 }
0x1913   : > { %6001 = vperm.xlu0 %7014, %v4755_v41  }
0x1954   : > { %v5670_v47 = vpop.permute.xlu1 %5669 }
0x1955   : > { %v5650_v7 = vpop.permute.xlu0 %5649 }
0x1958   : > { %v5710_v22 = vpop.permute.xlu1 %5709 }
0x1959   : > { %v5690_v15 = vpop.permute.xlu0 %5689 }
0x195c   : > { %v5750_v33 = vpop.permute.xlu1 %5749 }
0x195d   : > { %v5730_v25 = vpop.permute.xlu0 %5729 }
0x1960   : > { %v5654_v29 = vpop.permute.xlu1 %5653 }
0x1961   : > { %v8715_v40 = vpop.permute.xlu0 %5769  ;;  %5662 = vst.msk [vmem:[#allocation3 + $0x28] sm:$0xf] %vm1175_vm13, %v5654_v29 }
0x1964   : > { %v5672_v0 = vpop.permute.xlu1 %5671 }
0x1965   : > { %v5652_v4 = vpop.permute.xlu0 %5651  ;;  %v5675_v36 = vsel %vm782_vm4, %v5670_v47, %v5672_v0 }
0x1966   : > { %v5655_v52 = vsel %vm761_vm3, %v5650_v7, %v5652_v4  ;;  %v5656_v53 = vsel %vm761_vm3, %v5652_v4, %v5654_v29  ;;  %5680 = vst [vmem:[#allocation3 + $0x30] sm:$0xf] %v5675_v36 }
0x1967   : > { %5660 = vst [vmem:[#allocation3 + $0x18] sm:$0xf] %v5655_v52  ;;  %5661 = vst [vmem:[#allocation3 + $0x20] sm:$0xf] %v5656_v53 }
0x1968   : > { %v5694_v39 = vpop.permute.xlu1 %5693  ;;  %v5824_v55 = vld [vmem:[#allocation3 + $0x28] sm:$0xff] }
0x1969   : > { %v5674_v21 = vpop.permute.xlu0 %5673  ;;  %5702 = vst.msk [vmem:[#allocation3 + $0x58] sm:$0xf] %vm1175_vm13, %v5694_v39  ;;  %5926 = vmatpush1.bf16.msra.mxu1 %v5824_v55 }
0x196a   : > { %v5676_v34 = vsel %vm782_vm4, %v5672_v0, %v5674_v21  ;;  %5682 = vst.msk [vmem:[#allocation3 + $0x40] sm:$0xf] %vm1175_vm13, %v5674_v21  ;;  %5927 = vmatprep.subr.bf16.mxu1 %v7131_v45 }
0x196b   : > { %5681 = vst [vmem:[#allocation3 + $0x38] sm:$0xf] %v5676_v34  ;;  %v7094_v34 = vld [vmem:[%s9017_s15] ss:$8 sps:$4 sm:$0xff]  }
0x196c   : > { %v5712_v43 = vpop.permute.xlu1 %5711 }
0x196d   : > { %v5692_v58 = vpop.permute.xlu0 %5691  ;;  %v5715_v61 = vsel %vm824_vm6, %v5710_v22, %v5712_v43  ;;  %v5825_v5 = vld [vmem:[#allocation3 + $0x30] sm:$0xff] }
0x196e   : > { %v5695_v20 = vsel %vm803_vm5, %v5690_v15, %v5692_v58  ;;  %v5696_v37 = vsel %vm803_vm5, %v5692_v58, %v5694_v39  ;;  %v5823_v62 = vld [vmem:[#allocation3 + $0x20] sm:$0xff]  ;;  %v5822_v50 = vld [vmem:[#allocation3 + $0x18] sm:$0xff]  ;;  %5720 = vst [vmem:[#allocation3 + $0x60] sm:$0xf] %v5715_v61 }
0x196f   : > { %5700 = vst [vmem:[#allocation3 + $0x48] sm:$0xf] %v5695_v20  ;;  %5701 = vst [vmem:[#allocation3 + $0x50] sm:$0xf] %v5696_v37  ;;  %5872 = vmatprep.subr.bf16.mxu0 %v5823_v62  ;;  %v7097_v61 = vld [vmem:[%s9017_s15 + $0x14] ss:$8 sps:$4 sm:$0xff]  }
0x1970   : > { %5873 = vmatpush1.bf16.msra.mxu0 %v5822_v50  ;;  %v5734_v1 = vpop.permute.xlu1 %5733  ;;  %v5830_v14 = vld [vmem:[#allocation3 + $0x58] sm:$0xff]  ;;  %v7099_v20 = vld [vmem:[%s9017_s15 + $0x10] ss:$8 sps:$4 sm:$0xff]   ;;  %v5805_v37 = vld [vmem:[#allocation2 + $0x40] sm:$0xff] }
0x1971   : > { %v5714_v2 = vpop.permute.xlu0 %5713  ;;  %v5827_v63 = vld [vmem:[#allocation3 + $0x40] sm:$0xff]  ;;  %5742 = vst.msk [vmem:[#allocation3 + $0x88] sm:$0xf] %vm1175_vm13, %v5734_v1 }
0x1972   : > { %v5716_v23 = vsel %vm824_vm6, %v5712_v43, %v5714_v2  ;;  %5722 = vst.msk [vmem:[#allocation3 + $0x70] sm:$0xf] %vm1175_vm13, %v5714_v2  ;;  %5928 = vmatpush1.bf16.msra.mxu1 %v5827_v63  ;;  %v5826_v48 = vld [vmem:[#allocation3 + $0x38] sm:$0xff]  ;;  %v5808_v63 = vld [vmem:[#allocation2 + $0x58] sm:$0xff] }
0x1973   : > { %5721 = vst [vmem:[#allocation3 + $0x68] sm:$0xf] %v5716_v23  ;;  %5874 = vmatprep.subr.bf16.mxu0 %v5826_v48  ;;  %5929 = vmatprep.subr.bf16.mxu1 %v7131_v45 }
0x1974   : > { %5875 = vmatpush1.bf16.msra.mxu0 %v5825_v5  ;;  %v5752_v11 = vpop.permute.xlu1 %5751 }
0x1975   : > { %v5732_v6 = vpop.permute.xlu0 %5731  ;;  %v5755_v51 = vsel %vm866_vm8, %v5750_v33, %v5752_v11  ;;  %v5831_v16 = vld [vmem:[#allocation3 + $0x60] sm:$0xff] }
0x1976   : > { %v5735_v24 = vsel %vm845_vm7, %v5730_v25, %v5732_v6  ;;  %v5736_v19 = vsel %vm845_vm7, %v5732_v6, %v5734_v1  ;;  %5930 = vmatpush1.bf16.msra.mxu1 %v5830_v14  ;;  %v5829_v56 = vld [vmem:[#allocation3 + $0x50] sm:$0xff]  ;;  %v5828_v8 = vld [vmem:[#allocation3 + $0x48] sm:$0xff]  ;;  %5760 = vst [vmem:[#allocation3 + $0x90] sm:$0xf] %v5755_v51 }
0x1977   : > { %5740 = vst [vmem:[#allocation3 + $0x78] sm:$0xf] %v5735_v24  ;;  %5741 = vst [vmem:[#allocation3 + $0x80] sm:$0xf] %v5736_v19  ;;  %5876 = vmatprep.subr.bf16.mxu0 %v5829_v56  ;;  %5931 = vmatprep.subr.bf16.mxu1 %v7131_v45 }
0x1978   : > { %5877 = vmatpush1.bf16.msra.mxu0 %v5828_v8  ;;  %v5774_v32 = vpop.permute.xlu1 %5773  ;;  %v5836_v47 = vld [vmem:[#allocation3 + $0x88] sm:$0xff] }
0x1979   : > { %v5754_v17 = vpop.permute.xlu0 %5753  ;;  %v5833_v60 = vld [vmem:[#allocation3 + $0x70] sm:$0xff]  ;;  %5782 = vst.msk [vmem:[#allocation3 + $0xb8] sm:$0xf] %vm1175_vm13, %v5774_v32 }
0x197a   : > { %v5756_v12 = vsel %vm866_vm8, %v5752_v11, %v5754_v17  ;;  %5762 = vst.msk [vmem:[#allocation3 + $0xa0] sm:$0xf] %vm1175_vm13, %v5754_v17  ;;  %5932 = vmatpush1.bf16.msra.mxu1 %v5833_v60  ;;  %v5832_v42 = vld [vmem:[#allocation3 + $0x68] sm:$0xff]  ;;  %v5811_v60 = vld [vmem:[#allocation2 + $0x70] sm:$0xff] }
0x197b   : > { %5761 = vst [vmem:[#allocation3 + $0x98] sm:$0xf] %v5756_v12  ;;  %5878 = vmatprep.subr.bf16.mxu0 %v5832_v42  ;;  %5933 = vmatprep.subr.bf16.mxu1 %v7131_v45 }
0x197c   : > { %5879 = vmatpush1.bf16.msra.mxu0 %v5831_v16  ;;  %v5792_v49 = vpop.permute.xlu1 %5791 }
0x197d   : > { %v5772_v41 = vpop.permute.xlu0 %5771  ;;  %v5837_v52 = vld [vmem:[#allocation3 + $0x90] sm:$0xff] }
0x197e   : > { %v5775_v7 = vsel %vm887_vm9, %v8715_v40, %v5772_v41  ;;  %v5776_v22 = vsel %vm887_vm9, %v5772_v41, %v5774_v32  ;;  %5934 = vmatpush1.bf16.msra.mxu1 %v5836_v47  ;;  %v5835_v15 = vld [vmem:[#allocation3 + $0x80] sm:$0xff]  ;;  %v5834_v33 = vld [vmem:[#allocation3 + $0x78] sm:$0xff] }
0x197f   : > { %5780 = vst [vmem:[#allocation3 + $0xa8] sm:$0xf] %v5775_v7  ;;  %5781 = vst [vmem:[#allocation3 + $0xb0] sm:$0xf] %v5776_v22  ;;  %5880 = vmatprep.subr.bf16.mxu0 %v5835_v15  ;;  %5935 = vmatprep.subr.bf16.mxu1 %v7131_v45  ;;  %v5814_v47 = vld [vmem:[#allocation2 + $0x88] sm:$0xff] }
0x1980   : > { %5881 = vmatpush1.bf16.msra.mxu0 %v5834_v33  ;;  %v5790_v25 = vpop.permute.xlu1 %5789  ;;  %v5842_v53 = vld [vmem:[#allocation3 + $0xb8] sm:$0xff] }
0x1981   : > { %v5794_v29 = vpop.permute.xlu0 %5793  ;;  %v5839_v0 = vld [vmem:[#allocation3 + $0xa0] sm:$0xff]  ;;  %v5795_v4 = vsel %vm9094_vm14, %v5790_v25, %v5792_v49 }
0x1982   : > { %v5796_v36 = vsel %vm9095_vm0, %v5792_v49, %v5794_v29  ;;  %5802 = vst.msk [vmem:[#allocation3 + $0xd0] sm:$0xf] %vm1175_vm13, %v5794_v29  ;;  %5936 = vmatpush1.bf16.msra.mxu1 %v5839_v0  ;;  %v5838_v40 = vld [vmem:[#allocation3 + $0x98] sm:$0xff]  ;;  %5800 = vst [vmem:[#allocation3 + $0xc0] sm:$0xf] %v5795_v4 }
0x1983   : > { %5801 = vst [vmem:[#allocation3 + $0xc8] sm:$0xf] %v5796_v36  ;;  %5882 = vmatprep.subr.bf16.mxu0 %v5838_v40  ;;  %5937 = vmatprep.subr.bf16.mxu1 %v7131_v45 }
0x1984   : > { %5883 = vmatpush1.bf16.msra.mxu0 %v5837_v52 }
0x1986   : > { %5938 = vmatpush1.bf16.msra.mxu1 %v5842_v53  ;;  %v5841_v39 = vld [vmem:[#allocation3 + $0xb0] sm:$0xff]  ;;  %v5840_v21 = vld [vmem:[#allocation3 + $0xa8] sm:$0xff] }
0x1987   : > { %5884 = vmatprep.subr.bf16.mxu0 %v5841_v39  ;;  %5939 = vmatprep.subr.bf16.mxu1 %v7131_v45 }
0x1988   : > { %5885 = vmatpush1.bf16.msra.mxu0 %v5840_v21 }
0x1989   : > { %v5845_v55 = vld [vmem:[#allocation3 + $0xd0] sm:$0xff]  ;;  %v5843_v58 = vld [vmem:[#allocation3 + $0xc0] sm:$0xff] }
0x198a   : > { %5940 = vmatpush1.bf16.msra.mxu1 %v5845_v55  ;;  %v5844_v43 = vld [vmem:[#allocation3 + $0xc8] sm:$0xff] }
0x198b   : > { %5886 = vmatprep.subr.bf16.mxu0 %v5844_v43  ;;  %6316 = vmatprep.subr.bf16.mxu1 %v7131_v45 }
0x198c   : > { %5887 = vmatpush1.bf16.msra.mxu0 %v5843_v58 }
0x198d   : > { %5956 = vmatmul.mubr.bf16.vlgmr.msra.gmra.mrb[112].mxu1 %v7094_v34 }
0x198e   : > { %6971 = vmatprep.mubr.msk.bf16.mxu1 %vm977_vm2, %v7097_v61 }
0x198f   : > { %5903 = vmatmul.mubr.bf16.vlgmr.msra.gmra.mrb[112].mxu0 %v7094_v34 }
0x1990   : > { %6969 = vmatprep.mubr.msk.bf16.mxu0 %vm977_vm2, %v7097_v61 }
0x1992   : > { %v6002_v14 = vpop.permute.xlu0 %6001 }
0x1995   : > { %5964 = vmatmul.mubr.bf16.gmra.mrb[116].mxu1 %v7099_v20 }
0x1997   : > { %5913 = vmatmul.mubr.bf16.gmra.mrb[116].mxu0 %v7099_v20 }
0x1a60   : > { %v5957_v62 = vpop.f32.mrb[112].mxu1 }
0x1a61   : > { %v5974_v50 = vadd.f32 %v5957_v62, %v5805_v37  ;;  %v5959_v1 = vpop.f32.mrb[113].mxu1 }
0x1a62   : > { %v5904_v2 = vpop.f32.mrb[112].mxu0  ;;  %v5960_v23 = vpop.f32.mrb[114].mxu1 }
0x1a63   : > { %5986 = vst.msk [vmem:[#allocation2 + $0x40] sm:$0xff] %vm747_vm1, %v5974_v50  ;;  %v5972_v48 = vadd.f32 %v5904_v2, %v8650_v54  ;;  %v5977_v5 = vadd.f32 %v5960_v23, %v5808_v63  ;;  %v5906_v11 = vpop.f32.mrb[113].mxu0  ;;  %v5962_v6 = vpop.f32.mrb[115].mxu1 }
0x1a64   : > { %v5973_v51 = vadd.f32 %v5906_v11, %v8652_v57  ;;  %v5908_v24 = vpop.f32.mrb[114].mxu0 }
0x1a65   : > { %5989 = vst.msk [vmem:[#allocation2 + $0x58] sm:$0xff] %vm747_vm1, %v5977_v5  ;;  %v8766_v19 = vadd.f32 %v5908_v24, %v8656_v13  ;;  %v5910_v56 = vpop.f32.mrb[115].mxu0  ;;  %v6004_v8 = vadd.f32 %v6002_v14, %v5972_v48 }
0x1a66   : > { %v8769_v32 = vadd.f32 %v5910_v56, %v8660_v9  ;;  %v6005_v17 = vadd.f32 %v6002_v14, %v5973_v51 }
0x1a67   : > { %vm6007_vm10 = vcmp.ge.f32.partialorder %v6004_v8, 0.0  ;;  %v6010_v54 = vmul.f32 0.2, %v6004_v8 }
0x1a68   : > { %v5965_v12 = vpop.f32.mrb[116].mxu1  ;;  %vm6008_vm14 = vcmp.ge.f32.partialorder %v6005_v17, 0.0  ;;  %v6011_v42 = vmul.f32 0.2, %v6005_v17 }
0x1a69   : > { %v5980_v16 = vadd.f32 %v5965_v12, %v5811_v60  ;;  %v5967_v57 = vpop.f32.mrb[117].mxu1  ;;  %v6013_v49 = vsel %vm6007_vm10, %v6004_v8, %v6010_v54  ;;  %vm9096_vm10 = vcmask 736256  }
0x1a6a   : > { %v5914_v41 = vpop.f32.mrb[116].mxu0  ;;  %v5968_v7 = vpop.f32.mrb[118].mxu1  ;;  %v6016_v13 = vmul.f32 %v7274_v26, %v6013_v49  ;;  %v6014_v22 = vsel %vm6008_vm14, %v6005_v17, %v6011_v42  ;;  %v5998_v15 = vld [vmem:[#allocation2 + $0x40] sm:$0xff]  ;;  %vm9097_vm14 = vmmov %vm9096_vm10 }
0x1a6b   : > { %5992 = vst.msk [vmem:[#allocation2 + $0x70] sm:$0xff] %vm747_vm1, %v5980_v16  ;;  %v8774_v9 = vadd.f32 %v5914_v41, %v8662_v3  ;;  %v5983_v33 = vadd.f32 %v5968_v7, %v5814_v47  ;;  %v5916_v25 = vpop.f32.mrb[117].mxu0  ;;  %v6017_v29 = vmul.f32 %v7276_v27, %v6014_v22  ;;  %v6006_v0 = vadd.f32 %v6002_v14, %v5998_v15  ;;  %v5970_v4 = vpop.f32.mrb[119].mxu1  ;;  %v7102_v22 = vld [vmem:[%s9018_s16 + $0x4] ss:$8 sps:$4 sm:$0xff]  }
0x1a6c   : > { %v8778_v36 = vadd.f32 %v5916_v25, %v8664_v35  ;;  %v5918_v40 = vpop.f32.mrb[118].mxu0  ;;  %v6019_v52 = vpack.c.bf16 %v6016_v13, %v6016_v13  ;;  %6978 = vmatprep.mubr.msk.bf16.mxu1 %vm977_vm2, %v7102_v22  ;;  %6976 = vmatprep.mubr.msk.bf16.mxu0 %vm977_vm2, %v7102_v22  ;;  %v4756_v25 = vld [vmem:[%s9020_s18 + $0x18] sm:$0xff] }
0x1a6d   : > { %5995 = vst.msk [vmem:[#allocation2 + $0x88] sm:$0xff] %vm747_vm1, %v5983_v33  ;;  %v8782_v53 = vadd.f32 %v5918_v40, %v8672_v59  ;;  %v5920_v39 = vpop.f32.mrb[119].mxu0  ;;  %v6020_v21 = vpack.c.bf16 %v6017_v29, %v6017_v29  ;;  %vm6009_vm0 = vcmp.ge.f32.partialorder %v6006_v0, 0.0  ;;  %v6012_v3 = vmul.f32 0.2, %v6006_v0 }
0x1a6e   : > { %v8785_v55 = vadd.f32 %v5920_v39, %v8675_v18  ;;  %6025 = vrot.lane.b32.xlu1 %v6019_v52, %s9061_s1 }
0x1a6f   : > { %6027 = vrot.lane.b32.xlu0 %v6020_v21, %s9061_s1  ;;  %v6015_v35 = vsel %vm6009_vm0, %v6006_v0, %v6012_v3 }
0x1a70   : > { %v6018_v34 = vmul.f32 %v7278_v28, %v6015_v35 }
0x1a72   : > { %v6021_v43 = vpack.c.bf16 %v6018_v34, %v6018_v34 }
0x1a74   : > { %6029 = vrot.lane.b32.xlu1 %v6021_v43, %s9061_s1 }
0x1ae0   : > { %v6026_v58 = vpop.permute.xlu1 %6025 }
0x1ae1   : > { %6036 = vst.msk [vmem:[#allocation4] sm:$0xf] %vm1165_vm11, %v6026_v58  ;;  %v6028_v59 = vpop.permute.xlu0 %6027 }
0x1ae2   : > { %v6031_v61 = vsel %vm731_vm15, %v6026_v58, %v6028_v59 }
0x1ae3   : > { %6037 = vst [vmem:[#allocation4 + $0x8] sm:$0xf] %v6031_v61 }
0x1ae6   : > { %v6030_v20 = vpop.permute.xlu1 %6029 }
0x1ae7   : > { %v6032_v18 = vsel %vm731_vm15, %v6028_v59, %v6030_v20 }
0x1ae8   : > { %6038 = vst.msk [vmem:[#allocation4 + $0x10] sm:$0xf] %vm1168_vm12, %v6032_v18  ;;  %v6065_v37 = vld [vmem:[#allocation4] sm:$0xf] }
0x1ae9   : > { %v6045_v62 = vld [vmem:[#allocation4] sm:$0xf]  ;;  %6071 = vrot.lane.b32.xlu1 %v6065_v37, %s9069_s19 }
0x1aea   : > { %6051 = vrot.lane.b32.xlu0 %v6045_v62, %s9062_s25  ;;  %v6040_v50 = vld [vmem:[#allocation4 + $0x8] sm:$0xf]  ;;  %v6039_v1 = vld [vmem:[#allocation4] sm:$0xf] }
0x1aeb   : > { %6043 = vst [vmem:[#allocation3 + $0x8] sm:$0xf] %v6040_v50  ;;  %6042 = vst [vmem:[#allocation3] sm:$0xf] %v6039_v1  ;;  %v6105_v2 = vld [vmem:[#allocation4] sm:$0xf] }
0x1aec   : > { %v6085_v63 = vld [vmem:[#allocation4] sm:$0xf]  ;;  %v6066_v56 = vld [vmem:[#allocation4 + $0x8] sm:$0xf] }
0x1aed   : > { %6111 = vrot.lane.b32.xlu1 %v6105_v2, %s9070_s30  ;;  %v6145_v48 = vld [vmem:[#allocation4] sm:$0xf]  ;;  %v6046_v8 = vld [vmem:[#allocation4 + $0x8] sm:$0xf] }
0x1aee   : > { %6091 = vrot.lane.b32.xlu0 %v6085_v63, %s9071_s20  ;;  %v6125_v5 = vld [vmem:[#allocation4] sm:$0xf]  ;;  %v6106_v60 = vld [vmem:[#allocation4 + $0x8] sm:$0xf] }
0x1aef   : > { %v6041_v23 = vld [vmem:[#allocation4 + $0x10] sm:$0xf]  ;;  %v6165_v14 = vld [vmem:[#allocation4] sm:$0xf]  ;;  %v6086_v12 = vld [vmem:[#allocation4 + $0x8] sm:$0xf] }
0x1af0   : > { %6044 = vst.msk [vmem:[#allocation3 + $0x10] sm:$0xf] %vm1175_vm13, %v6041_v23  ;;  %v6047_v51 = vld [vmem:[#allocation4 + $0x10] sm:$0xf]  ;;  %v6146_v57 = vld [vmem:[#allocation4 + $0x8] sm:$0xf] }
0x1af1   : > { %6151 = vrot.lane.b32.xlu1 %v6145_v48, %s9072_s26  ;;  %v6087_v17 = vld [vmem:[#allocation4 + $0x10] sm:$0xf]  ;;  %v6126_v49 = vld [vmem:[#allocation4 + $0x8] sm:$0xf]  ;;  %v6185_v15 = vld [vmem:[#allocation4] sm:$0xf] }
0x1af2   : > { %6131 = vrot.lane.b32.xlu0 %v6125_v5, %s9063_s28  ;;  %v6218_v11 = vld [vmem:[#allocation3 + $0x8] sm:$0xff]  ;;  %v6217_v6 = vld [vmem:[#allocation3] sm:$0xff] }
0x1af3   : > { %6265 = vmatprep.subr.bf16.mxu0 %v6218_v11  ;;  %v6067_v54 = vld [vmem:[#allocation4 + $0x10] sm:$0xf]  ;;  %v6186_v7 = vld [vmem:[#allocation4 + $0x8] sm:$0xf] }
0x1af4   : > { %6266 = vmatpush1.bf16.msra.mxu0 %v6217_v6  ;;  %v6127_v42 = vld [vmem:[#allocation4 + $0x10] sm:$0xf]  ;;  %v6166_v13 = vld [vmem:[#allocation4 + $0x8] sm:$0xf] }
0x1af5   : > { %6055 = vrot.lane.b32.xlu1 %v6047_v51, %s9062_s25  ;;  %v6107_v16 = vld [vmem:[#allocation4 + $0x10] sm:$0xf] }
0x1af6   : > { %6171 = vrot.lane.b32.xlu0 %v6165_v14, %s9064_s2  ;;  %v6167_v41 = vld [vmem:[#allocation4 + $0x10] sm:$0xf] }
0x1af7   : > { %v6219_v24 = vld [vmem:[#allocation3 + $0x10] sm:$0xff]  ;;  %v6147_v47 = vld [vmem:[#allocation4 + $0x10] sm:$0xf] }
0x1af8   : > { %6317 = vmatpush1.bf16.msra.mxu1 %v6219_v24  ;;  %v6187_v33 = vld [vmem:[#allocation4 + $0x10] sm:$0xf] }
0x1af9   : > { %6073 = vrot.lane.b32.xlu1 %v6066_v56, %s9069_s19  ;;  %6318 = vmatprep.subr.bf16.mxu1 %v7131_v45 }
0x1afa   : > { %6053 = vrot.lane.b32.xlu0 %v6046_v8, %s9062_s25 }
0x1afd   : > { %6095 = vrot.lane.b32.xlu1 %v6087_v17, %s9071_s20 }
0x1afe   : > { %6075 = vrot.lane.b32.xlu0 %v6067_v54, %s9069_s19 }
0x1b01   : > { %6113 = vrot.lane.b32.xlu1 %v6106_v60, %s9070_s30 }
0x1b02   : > { %6093 = vrot.lane.b32.xlu0 %v6086_v12, %s9071_s20 }
0x1b05   : > { %6135 = vrot.lane.b32.xlu1 %v6127_v42, %s9063_s28 }
0x1b06   : > { %6115 = vrot.lane.b32.xlu0 %v6107_v16, %s9070_s30 }
0x1b09   : > { %6153 = vrot.lane.b32.xlu1 %v6146_v57, %s9072_s26 }
0x1b0a   : > { %6133 = vrot.lane.b32.xlu0 %v6126_v49, %s9063_s28 }
0x1b0d   : > { %6175 = vrot.lane.b32.xlu1 %v6167_v41, %s9064_s2 }
0x1b0e   : > { %6155 = vrot.lane.b32.xlu0 %v6147_v47, %s9072_s26 }
0x1b11   : > { %6193 = vrot.lane.b32.xlu1 %v6186_v7, %s9065_s21 }
0x1b12   : > { %6173 = vrot.lane.b32.xlu0 %v6166_v13, %s9064_s2 }
0x1b15   : > { %6191 = vrot.lane.b32.xlu1 %v6185_v15, %s9065_s21 }
0x1b16   : > { %6195 = vrot.lane.b32.xlu0 %v6187_v33, %s9065_s21 }
0x1b1a   : > { %6387 = vperm.xlu0 %7014, %v4756_v25  }
0x1b5b   : > { %v6072_v29 = vpop.permute.xlu1 %6071 }
0x1b5c   : > { %v6052_v0 = vpop.permute.xlu0 %6051 }
0x1b5f   : > { %v6112_v4 = vpop.permute.xlu1 %6111 }
0x1b60   : > { %v6092_v40 = vpop.permute.xlu0 %6091 }
0x1b63   : > { %v6152_v52 = vpop.permute.xlu1 %6151 }
0x1b64   : > { %v6132_v39 = vpop.permute.xlu0 %6131 }
0x1b67   : > { %v6056_v21 = vpop.permute.xlu1 %6055 }
0x1b68   : > { %v8829_v3 = vpop.permute.xlu0 %6171  ;;  %6064 = vst.msk [vmem:[#allocation3 + $0x28] sm:$0xf] %vm1175_vm13, %v6056_v21 }
0x1b6b   : > { %v6074_v35 = vpop.permute.xlu1 %6073 }
0x1b6c   : > { %v6054_v34 = vpop.permute.xlu0 %6053  ;;  %v6077_v43 = vsel %vm782_vm4, %v6072_v29, %v6074_v35 }
0x1b6d   : > { %v6057_v58 = vsel %vm761_vm3, %v6052_v0, %v6054_v34  ;;  %v6058_v59 = vsel %vm761_vm3, %v6054_v34, %v6056_v21  ;;  %6082 = vst [vmem:[#allocation3 + $0x30] sm:$0xf] %v6077_v43 }
0x1b6e   : > { %6062 = vst [vmem:[#allocation3 + $0x18] sm:$0xf] %v6057_v58  ;;  %6063 = vst [vmem:[#allocation3 + $0x20] sm:$0xf] %v6058_v59 }
0x1b6f   : > { %v6096_v61 = vpop.permute.xlu1 %6095  ;;  %v6222_v18 = vld [vmem:[#allocation3 + $0x28] sm:$0xff] }
0x1b70   : > { %v6076_v20 = vpop.permute.xlu0 %6075  ;;  %6104 = vst.msk [vmem:[#allocation3 + $0x58] sm:$0xf] %vm1175_vm13, %v6096_v61  ;;  %6319 = vmatpush1.bf16.msra.mxu1 %v6222_v18  ;;  %v7100_v18 = vld [vmem:[%s9018_s16] ss:$8 sps:$4 sm:$0xff]  }
0x1b71   : > { %v6078_v37 = vsel %vm782_vm4, %v6074_v35, %v6076_v20  ;;  %6084 = vst.msk [vmem:[#allocation3 + $0x40] sm:$0xf] %vm1175_vm13, %v6076_v20  ;;  %6320 = vmatprep.subr.bf16.mxu1 %v7131_v45 }
0x1b72   : > { %6083 = vst [vmem:[#allocation3 + $0x38] sm:$0xf] %v6078_v37 }
0x1b73   : > { %v6114_v62 = vpop.permute.xlu1 %6113 }
0x1b74   : > { %v6094_v50 = vpop.permute.xlu0 %6093  ;;  %v6117_v1 = vsel %vm824_vm6, %v6112_v4, %v6114_v62  ;;  %v6223_v24 = vld [vmem:[#allocation3 + $0x30] sm:$0xff] }
0x1b75   : > { %v6097_v2 = vsel %vm803_vm5, %v6092_v40, %v6094_v50  ;;  %v6098_v63 = vsel %vm803_vm5, %v6094_v50, %v6096_v61  ;;  %v6221_v23 = vld [vmem:[#allocation3 + $0x20] sm:$0xff]  ;;  %v6220_v48 = vld [vmem:[#allocation3 + $0x18] sm:$0xff]  ;;  %6122 = vst [vmem:[#allocation3 + $0x60] sm:$0xf] %v6117_v1 }
0x1b76   : > { %6102 = vst [vmem:[#allocation3 + $0x48] sm:$0xf] %v6097_v2  ;;  %6103 = vst [vmem:[#allocation3 + $0x50] sm:$0xf] %v6098_v63  ;;  %6267 = vmatprep.subr.bf16.mxu0 %v6221_v23  ;;  %v6216_v61 = vld [vmem:[%s9018_s16 + $0x10] sm:$0xff]  ;;  %v6207_v2 = vld [vmem:[#allocation2 + $0x58] sm:$0xff] }
0x1b77   : > { %6268 = vmatpush1.bf16.msra.mxu0 %v6220_v48  ;;  %v6136_v5 = vpop.permute.xlu1 %6135  ;;  %v6228_v17 = vld [vmem:[#allocation3 + $0x58] sm:$0xff]  ;;  %v6975_v50 = vcombine.high %v6216_v61, %v6216_v61  ;;  %v6974_v1 = vcombine.low %v6216_v61, %v6216_v61 }
0x1b78   : > { %v6116_v11 = vpop.permute.xlu0 %6115  ;;  %v6225_v6 = vld [vmem:[#allocation3 + $0x40] sm:$0xff]  ;;  %6144 = vst.msk [vmem:[#allocation3 + $0x88] sm:$0xf] %vm1175_vm13, %v6136_v5 }
0x1b79   : > { %v6118_v14 = vsel %vm824_vm6, %v6114_v62, %v6116_v11  ;;  %6124 = vst.msk [vmem:[#allocation3 + $0x70] sm:$0xf] %vm1175_vm13, %v6116_v11  ;;  %6321 = vmatpush1.bf16.msra.mxu1 %v6225_v6  ;;  %v6224_v51 = vld [vmem:[#allocation3 + $0x38] sm:$0xff]  ;;  %v6210_v11 = vld [vmem:[#allocation2 + $0x70] sm:$0xff] }
0x1b7a   : > { %6123 = vst [vmem:[#allocation3 + $0x68] sm:$0xf] %v6118_v14  ;;  %6269 = vmatprep.subr.bf16.mxu0 %v6224_v51  ;;  %6322 = vmatprep.subr.bf16.mxu1 %v7131_v45 }
0x1b7b   : > { %6270 = vmatpush1.bf16.msra.mxu0 %v6223_v24  ;;  %v6154_v56 = vpop.permute.xlu1 %6153 }
0x1b7c   : > { %v6134_v8 = vpop.permute.xlu0 %6133  ;;  %v6157_v54 = vsel %vm866_vm8, %v6152_v52, %v6154_v56  ;;  %v6229_v13 = vld [vmem:[#allocation3 + $0x60] sm:$0xff] }
0x1b7d   : > { %v6137_v60 = vsel %vm845_vm7, %v6132_v39, %v6134_v8  ;;  %v6138_v12 = vsel %vm845_vm7, %v6134_v8, %v6136_v5  ;;  %6323 = vmatpush1.bf16.msra.mxu1 %v6228_v17  ;;  %v6227_v42 = vld [vmem:[#allocation3 + $0x50] sm:$0xff]  ;;  %v6226_v16 = vld [vmem:[#allocation3 + $0x48] sm:$0xff]  ;;  %6162 = vst [vmem:[#allocation3 + $0x90] sm:$0xf] %v6157_v54 }
0x1b7e   : > { %6142 = vst [vmem:[#allocation3 + $0x78] sm:$0xf] %v6137_v60  ;;  %6143 = vst [vmem:[#allocation3 + $0x80] sm:$0xf] %v6138_v12  ;;  %6271 = vmatprep.subr.bf16.mxu0 %v6227_v42  ;;  %6324 = vmatprep.subr.bf16.mxu1 %v7131_v45 }
0x1b7f   : > { %6272 = vmatpush1.bf16.msra.mxu0 %v6226_v16  ;;  %v6176_v57 = vpop.permute.xlu1 %6175  ;;  %v6234_v33 = vld [vmem:[#allocation3 + $0x88] sm:$0xff] }
0x1b80   : > { %v6156_v49 = vpop.permute.xlu0 %6155  ;;  %v6231_v41 = vld [vmem:[#allocation3 + $0x70] sm:$0xff]  ;;  %6184 = vst.msk [vmem:[#allocation3 + $0xb8] sm:$0xf] %vm1175_vm13, %v6176_v57 }
0x1b81   : > { %v6158_v47 = vsel %vm866_vm8, %v6154_v56, %v6156_v49  ;;  %6164 = vst.msk [vmem:[#allocation3 + $0xa0] sm:$0xf] %vm1175_vm13, %v6156_v49  ;;  %6325 = vmatpush1.bf16.msra.mxu1 %v6231_v41  ;;  %v6230_v7 = vld [vmem:[#allocation3 + $0x68] sm:$0xff]  ;;  %v6213_v49 = vld [vmem:[#allocation2 + $0x88] sm:$0xff] }
0x1b82   : > { %6163 = vst [vmem:[#allocation3 + $0x98] sm:$0xf] %v6158_v47  ;;  %6273 = vmatprep.subr.bf16.mxu0 %v6230_v7  ;;  %6326 = vmatprep.subr.bf16.mxu1 %v7131_v45 }
0x1b83   : > { %6274 = vmatpush1.bf16.msra.mxu0 %v6229_v13  ;;  %v6194_v22 = vpop.permute.xlu1 %6193 }
0x1b84   : > { %v6174_v15 = vpop.permute.xlu0 %6173  ;;  %v6235_v34 = vld [vmem:[#allocation3 + $0x90] sm:$0xff] }
0x1b85   : > { %v6177_v25 = vsel %vm887_vm9, %v8829_v3, %v6174_v15  ;;  %v6178_v29 = vsel %vm887_vm9, %v6174_v15, %v6176_v57  ;;  %6327 = vmatpush1.bf16.msra.mxu1 %v6234_v33  ;;  %v6233_v0 = vld [vmem:[#allocation3 + $0x80] sm:$0xff]  ;;  %v6232_v4 = vld [vmem:[#allocation3 + $0x78] sm:$0xff] }
0x1b86   : > { %6182 = vst [vmem:[#allocation3 + $0xa8] sm:$0xf] %v6177_v25  ;;  %6183 = vst [vmem:[#allocation3 + $0xb0] sm:$0xf] %v6178_v29  ;;  %6275 = vmatprep.subr.bf16.mxu0 %v6233_v0  ;;  %6328 = vmatprep.subr.bf16.mxu1 %v7131_v45 }
0x1b87   : > { %6276 = vmatpush1.bf16.msra.mxu0 %v6232_v4  ;;  %v6192_v40 = vpop.permute.xlu1 %6191  ;;  %v6240_v43 = vld [vmem:[#allocation3 + $0xb8] sm:$0xff] }
0x1b88   : > { %v6196_v52 = vpop.permute.xlu0 %6195  ;;  %v6237_v39 = vld [vmem:[#allocation3 + $0xa0] sm:$0xff]  ;;  %v6197_v21 = vsel %vm9096_vm10, %v6192_v40, %v6194_v22 }
0x1b89   : > { %v6198_v35 = vsel %vm9097_vm14, %v6194_v22, %v6196_v52  ;;  %6204 = vst.msk [vmem:[#allocation3 + $0xd0] sm:$0xf] %vm1175_vm13, %v6196_v52  ;;  %6329 = vmatpush1.bf16.msra.mxu1 %v6237_v39  ;;  %v6236_v3 = vld [vmem:[#allocation3 + $0x98] sm:$0xff]  ;;  %6202 = vst [vmem:[#allocation3 + $0xc0] sm:$0xf] %v6197_v21 }
0x1b8a   : > { %6203 = vst [vmem:[#allocation3 + $0xc8] sm:$0xf] %v6198_v35  ;;  %6277 = vmatprep.subr.bf16.mxu0 %v6236_v3  ;;  %6330 = vmatprep.subr.bf16.mxu1 %v7131_v45 }
0x1b8b   : > { %6278 = vmatpush1.bf16.msra.mxu0 %v6235_v34 }
0x1b8d   : > { %6331 = vmatpush1.bf16.msra.mxu1 %v6240_v43  ;;  %v6239_v58 = vld [vmem:[#allocation3 + $0xb0] sm:$0xff]  ;;  %v6238_v59 = vld [vmem:[#allocation3 + $0xa8] sm:$0xff] }
0x1b8e   : > { %6279 = vmatprep.subr.bf16.mxu0 %v6239_v58  ;;  %6332 = vmatprep.subr.bf16.mxu1 %v7131_v45 }
0x1b8f   : > { %6280 = vmatpush1.bf16.msra.mxu0 %v6238_v59 }
0x1b90   : > { %v6243_v20 = vld [vmem:[#allocation3 + $0xd0] sm:$0xff]  ;;  %v6241_v62 = vld [vmem:[#allocation3 + $0xc0] sm:$0xff] }
0x1b91   : > { %6333 = vmatpush1.bf16.msra.mxu1 %v6243_v20  ;;  %v6242_v37 = vld [vmem:[#allocation3 + $0xc8] sm:$0xff] }
0x1b92   : > { %6281 = vmatprep.subr.bf16.mxu0 %v6242_v37  ;;  %6681 = vmatprep.subr.bf16.mxu1 %v7131_v45 }
0x1b93   : > { %6282 = vmatpush1.bf16.msra.mxu0 %v6241_v62 }
0x1b94   : > { %6349 = vmatmul.mubr.bf16.vlgmr.msra.gmra.mrb[120].mxu1 %v7100_v18 }
0x1b95   : > { %6979 = vmatprep.mubr.msk.bf16.mxu1 %vm977_vm2, %v6975_v50 }
0x1b96   : > { %6298 = vmatmul.mubr.bf16.vlgmr.msra.gmra.mrb[120].mxu0 %v7100_v18 }
0x1b97   : > { %6977 = vmatprep.mubr.msk.bf16.mxu0 %vm977_vm2, %v6975_v50 }
0x1b99   : > { %v6388_v8 = vpop.permute.xlu0 %6387 }
0x1b9c   : > { %6357 = vmatmul.mubr.bf16.gmra.mrb[124].mxu1 %v6974_v1 }
0x1b9e   : > { %6308 = vmatmul.mubr.bf16.gmra.mrb[124].mxu0 %v6974_v1 }
0x1c67   : > { %v6350_v63 = vpop.f32.mrb[120].mxu1 }
0x1c68   : > { %v6366_v23 = vadd.f32 %v6350_v63, %v6207_v2  ;;  %v6352_v48 = vpop.f32.mrb[121].mxu1 }
0x1c69   : > { %v6299_v5 = vpop.f32.mrb[120].mxu0  ;;  %v6353_v6 = vpop.f32.mrb[122].mxu1 }
0x1c6a   : > { %6375 = vst.msk [vmem:[#allocation2 + $0x58] sm:$0xff] %vm747_vm1, %v6366_v23  ;;  %v6364_v14 = vadd.f32 %v6299_v5, %v8766_v19  ;;  %v6369_v51 = vadd.f32 %v6353_v6, %v6210_v11  ;;  %v6301_v24 = vpop.f32.mrb[121].mxu0  ;;  %v6355_v56 = vpop.f32.mrb[123].mxu1 }
0x1c6b   : > { %v6365_v17 = vadd.f32 %v6301_v24, %v8769_v32  ;;  %v6303_v54 = vpop.f32.mrb[122].mxu0 }
0x1c6c   : > { %6378 = vst.msk [vmem:[#allocation2 + $0x70] sm:$0xff] %vm747_vm1, %v6369_v51  ;;  %v8877_v60 = vadd.f32 %v6303_v54, %v8774_v9  ;;  %v6305_v12 = vpop.f32.mrb[123].mxu0  ;;  %v6390_v42 = vadd.f32 %v6388_v8, %v6364_v14 }
0x1c6d   : > { %v8880_v16 = vadd.f32 %v6305_v12, %v8778_v36  ;;  %v6391_v57 = vadd.f32 %v6388_v8, %v6365_v17 }
0x1c6e   : > { %vm6393_vm0 = vcmp.ge.f32.partialorder %v6390_v42, 0.0  ;;  %v6396_v19 = vmul.f32 0.2, %v6390_v42 }
0x1c6f   : > { %v6358_v41 = vpop.f32.mrb[124].mxu1  ;;  %vm6394_vm10 = vcmp.ge.f32.partialorder %v6391_v57, 0.0  ;;  %v6397_v47 = vmul.f32 0.2, %v6391_v57 }
0x1c70   : > { %v6372_v7 = vadd.f32 %v6358_v41, %v6213_v49  ;;  %v6399_v32 = vsel %vm6393_vm0, %v6390_v42, %v6396_v19  ;;  %v6360_v13 = vpop.f32.mrb[125].mxu1 }
0x1c71   : > { %v6309_v22 = vpop.f32.mrb[124].mxu0  ;;  %v6402_v15 = vmul.f32 %v7274_v26, %v6399_v32  ;;  %v6400_v9 = vsel %vm6394_vm10, %v6391_v57, %v6397_v47  ;;  %v6384_v33 = vld [vmem:[#allocation2 + $0x58] sm:$0xff]  ;;  %v6361_v25 = vpop.f32.mrb[126].mxu1 }
0x1c72   : > { %6381 = vst.msk [vmem:[#allocation2 + $0x88] sm:$0xff] %vm747_vm1, %v6372_v7  ;;  %v8885_v36 = vadd.f32 %v6309_v22, %v8782_v53  ;;  %v6311_v29 = vpop.f32.mrb[125].mxu0  ;;  %v6403_v0 = vmul.f32 %v7276_v27, %v6400_v9  ;;  %v6392_v4 = vadd.f32 %v6388_v8, %v6384_v33  ;;  %v6362_v40 = vpop.f32.mrb[127].mxu1  ;;  %v7107_v7 = vld [vmem:[%s9019_s17 + $0x4] ss:$8 sps:$4 sm:$0xff]  }
0x1c73   : > { %v8889_v52 = vadd.f32 %v6311_v29, %v8785_v55  ;;  %v6405_v39 = vpack.c.bf16 %v6402_v15, %v6402_v15  ;;  %v6313_v21 = vpop.f32.mrb[126].mxu0  ;;  %6983 = vmatprep.mubr.msk.bf16.mxu1 %vm977_vm2, %v7107_v7  ;;  %6982 = vmatprep.mubr.msk.bf16.mxu0 %vm977_vm2, %v7107_v7  ;;  %v4758_v22 = vld [vmem:[%s9020_s18 + $0x28] sm:$0xff]  ;;  %v4757_v15 = vld [vmem:[%s9020_s18 + $0x20] sm:$0xff] }
0x1c74   : > { %v6406_v35 = vpack.c.bf16 %v6403_v0, %v6403_v0  ;;  %vm6395_vm14 = vcmp.ge.f32.partialorder %v6392_v4, 0.0  ;;  %v6398_v26 = vmul.f32 0.2, %v6392_v4  ;;  %v6314_v3 = vpop.f32.mrb[127].mxu0 }
0x1c75   : > { %6411 = vrot.lane.b32.xlu1 %v6405_v39, %s9061_s1 }
0x1c76   : > { %6413 = vrot.lane.b32.xlu0 %v6406_v35, %s9061_s1  ;;  %v6401_v53 = vsel %vm6395_vm14, %v6392_v4, %v6398_v26 }
0x1c77   : > { %v6404_v34 = vmul.f32 %v7278_v28, %v6401_v53 }
0x1c79   : > { %v6407_v43 = vpack.c.bf16 %v6404_v34, %v6404_v34 }
0x1c7b   : > { %6415 = vrot.lane.b32.xlu1 %v6407_v43, %s9061_s1 }
0x1ce7   : > { %v6412_v27 = vpop.permute.xlu1 %6411 }
0x1ce8   : > { %6422 = vst.msk [vmem:[#allocation4] sm:$0xf] %vm1165_vm11, %v6412_v27  ;;  %v6414_v55 = vpop.permute.xlu0 %6413 }
0x1ce9   : > { %v6417_v58 = vsel %vm731_vm15, %v6412_v27, %v6414_v55 }
0x1cea   : > { %6423 = vst [vmem:[#allocation4 + $0x8] sm:$0xf] %v6417_v58 }
0x1ced   : > { %v6416_v59 = vpop.permute.xlu1 %6415 }
0x1cee   : > { %v6418_v61 = vsel %vm731_vm15, %v6414_v55, %v6416_v59  ;;  %vm9098_vm15 = vcmask 736256  }
0x1cef   : > { %6424 = vst.msk [vmem:[#allocation4 + $0x10] sm:$0xf] %vm1168_vm12, %v6418_v61  ;;  %v6451_v20 = vld [vmem:[#allocation4] sm:$0xf]  ;;  %vm9099_vm2 = vmmov %vm9098_vm15 }
0x1cf0   : > { %v6431_v18 = vld [vmem:[#allocation4] sm:$0xf]  ;;  %6457 = vrot.lane.b32.xlu1 %v6451_v20, %s9069_s19 }
0x1cf1   : > { %6437 = vrot.lane.b32.xlu0 %v6431_v18, %s9062_s25  ;;  %v6426_v28 = vld [vmem:[#allocation4 + $0x8] sm:$0xf]  ;;  %v6425_v37 = vld [vmem:[#allocation4] sm:$0xf] }
0x1cf2   : > { %6429 = vst [vmem:[#allocation3 + $0x8] sm:$0xf] %v6426_v28  ;;  %6428 = vst [vmem:[#allocation3] sm:$0xf] %v6425_v37  ;;  %v6491_v62 = vld [vmem:[#allocation4] sm:$0xf] }
0x1cf3   : > { %v6471_v50 = vld [vmem:[#allocation4] sm:$0xf]  ;;  %v6452_v14 = vld [vmem:[#allocation4 + $0x8] sm:$0xf] }
0x1cf4   : > { %6497 = vrot.lane.b32.xlu1 %v6491_v62, %s9070_s30  ;;  %v6531_v2 = vld [vmem:[#allocation4] sm:$0xf]  ;;  %v6432_v51 = vld [vmem:[#allocation4 + $0x8] sm:$0xf] }
0x1cf5   : > { %6477 = vrot.lane.b32.xlu0 %v6471_v50, %s9071_s20  ;;  %v6511_v63 = vld [vmem:[#allocation4] sm:$0xf]  ;;  %v6492_v8 = vld [vmem:[#allocation4 + $0x8] sm:$0xf] }
0x1cf6   : > { %v6427_v1 = vld [vmem:[#allocation4 + $0x10] sm:$0xf]  ;;  %v6551_v5 = vld [vmem:[#allocation4] sm:$0xf]  ;;  %v6472_v17 = vld [vmem:[#allocation4 + $0x8] sm:$0xf] }
0x1cf7   : > { %6430 = vst.msk [vmem:[#allocation3 + $0x10] sm:$0xf] %vm1175_vm13, %v6427_v1  ;;  %v6433_v11 = vld [vmem:[#allocation4 + $0x10] sm:$0xf]  ;;  %v6532_v42 = vld [vmem:[#allocation4 + $0x8] sm:$0xf] }
0x1cf8   : > { %6537 = vrot.lane.b32.xlu1 %v6531_v2, %s9072_s26  ;;  %v6473_v24 = vld [vmem:[#allocation4 + $0x10] sm:$0xf]  ;;  %v6512_v57 = vld [vmem:[#allocation4 + $0x8] sm:$0xf]  ;;  %v6571_v32 = vld [vmem:[#allocation4] sm:$0xf] }
0x1cf9   : > { %6517 = vrot.lane.b32.xlu0 %v6511_v63, %s9063_s28  ;;  %v6600_v23 = vld [vmem:[#allocation3 + $0x8] sm:$0xff]  ;;  %v6599_v48 = vld [vmem:[#allocation3] sm:$0xff] }
0x1cfa   : > { %6638 = vmatprep.subr.bf16.mxu0 %v6600_v23  ;;  %v6453_v56 = vld [vmem:[#allocation4 + $0x10] sm:$0xf]  ;;  %v6572_v41 = vld [vmem:[#allocation4 + $0x8] sm:$0xf] }
0x1cfb   : > { %6639 = vmatpush1.bf16.msra.mxu0 %v6599_v48  ;;  %v6513_v54 = vld [vmem:[#allocation4 + $0x10] sm:$0xf]  ;;  %v6552_v47 = vld [vmem:[#allocation4 + $0x8] sm:$0xf] }
0x1cfc   : > { %6441 = vrot.lane.b32.xlu1 %v6433_v11, %s9062_s25  ;;  %v6493_v12 = vld [vmem:[#allocation4 + $0x10] sm:$0xf] }
0x1cfd   : > { %6557 = vrot.lane.b32.xlu0 %v6551_v5, %s9064_s2  ;;  %v6553_v19 = vld [vmem:[#allocation4 + $0x10] sm:$0xf] }
0x1cfe   : > { %v6601_v6 = vld [vmem:[#allocation3 + $0x10] sm:$0xff]  ;;  %v6533_v49 = vld [vmem:[#allocation4 + $0x10] sm:$0xf] }
0x1cff   : > { %6682 = vmatpush1.bf16.msra.mxu1 %v6601_v6  ;;  %v6573_v13 = vld [vmem:[#allocation4 + $0x10] sm:$0xf] }
0x1d00   : > { %6459 = vrot.lane.b32.xlu1 %v6452_v14, %s9069_s19  ;;  %6683 = vmatprep.subr.bf16.mxu1 %v7131_v45 }
0x1d01   : > { %6439 = vrot.lane.b32.xlu0 %v6432_v51, %s9062_s25 }
0x1d04   : > { %6481 = vrot.lane.b32.xlu1 %v6473_v24, %s9071_s20 }
0x1d05   : > { %6461 = vrot.lane.b32.xlu0 %v6453_v56, %s9069_s19 }
0x1d08   : > { %6499 = vrot.lane.b32.xlu1 %v6492_v8, %s9070_s30 }
0x1d09   : > { %6479 = vrot.lane.b32.xlu0 %v6472_v17, %s9071_s20 }
0x1d0c   : > { %6521 = vrot.lane.b32.xlu1 %v6513_v54, %s9063_s28 }
0x1d0d   : > { %6501 = vrot.lane.b32.xlu0 %v6493_v12, %s9070_s30 }
0x1d10   : > { %6539 = vrot.lane.b32.xlu1 %v6532_v42, %s9072_s26 }
0x1d11   : > { %6519 = vrot.lane.b32.xlu0 %v6512_v57, %s9063_s28 }
0x1d14   : > { %6561 = vrot.lane.b32.xlu1 %v6553_v19, %s9064_s2 }
0x1d15   : > { %6541 = vrot.lane.b32.xlu0 %v6533_v49, %s9072_s26 }
0x1d18   : > { %6579 = vrot.lane.b32.xlu1 %v6572_v41, %s9065_s21 }
0x1d19   : > { %6559 = vrot.lane.b32.xlu0 %v6552_v47, %s9064_s2 }
0x1d1c   : > { %6577 = vrot.lane.b32.xlu1 %v6571_v32, %s9065_s21 }
0x1d1d   : > { %6581 = vrot.lane.b32.xlu0 %v6573_v13, %s9065_s21 }
0x1d20   : > { %6747 = vperm.xlu1 %7013, %v4758_v22  }
0x1d21   : > { %6742 = vperm.xlu0 %7014, %v4757_v15  }
0x1d62   : > { %v6458_v9 = vpop.permute.xlu1 %6457 }
0x1d63   : > { %v6438_v33 = vpop.permute.xlu0 %6437 }
0x1d66   : > { %v6498_v25 = vpop.permute.xlu1 %6497 }
0x1d67   : > { %v6478_v29 = vpop.permute.xlu0 %6477 }
0x1d6a   : > { %v6538_v0 = vpop.permute.xlu1 %6537 }
0x1d6b   : > { %v6518_v4 = vpop.permute.xlu0 %6517 }
0x1d6e   : > { %v6442_v40 = vpop.permute.xlu1 %6441 }
0x1d6f   : > { %v8936_v39 = vpop.permute.xlu0 %6557  ;;  %6450 = vst.msk [vmem:[#allocation3 + $0x28] sm:$0xf] %vm1175_vm13, %v6442_v40 }
0x1d72   : > { %v6460_v21 = vpop.permute.xlu1 %6459 }
0x1d73   : > { %v6440_v35 = vpop.permute.xlu0 %6439  ;;  %v6463_v26 = vsel %vm782_vm4, %v6458_v9, %v6460_v21 }
0x1d74   : > { %v6443_v3 = vsel %vm761_vm3, %v6438_v33, %v6440_v35  ;;  %v6444_v53 = vsel %vm761_vm3, %v6440_v35, %v6442_v40  ;;  %6468 = vst [vmem:[#allocation3 + $0x30] sm:$0xf] %v6463_v26  ;;  %v7105_v35 = vld [vmem:[%s9019_s17] ss:$8 sps:$4 sm:$0xff]  }
0x1d75   : > { %6448 = vst [vmem:[#allocation3 + $0x18] sm:$0xf] %v6443_v3  ;;  %6449 = vst [vmem:[#allocation3 + $0x20] sm:$0xf] %v6444_v53  ;;  %v6593_v53 = vld [vmem:[#allocation2 + $0x70] sm:$0xff] }
0x1d76   : > { %v6482_v34 = vpop.permute.xlu1 %6481  ;;  %v6604_v27 = vld [vmem:[#allocation3 + $0x28] sm:$0xff] }
0x1d77   : > { %v6462_v43 = vpop.permute.xlu0 %6461  ;;  %6490 = vst.msk [vmem:[#allocation3 + $0x58] sm:$0xf] %vm1175_vm13, %v6482_v34  ;;  %6684 = vmatpush1.bf16.msra.mxu1 %v6604_v27 }
0x1d78   : > { %v6464_v55 = vsel %vm782_vm4, %v6460_v21, %v6462_v43  ;;  %6470 = vst.msk [vmem:[#allocation3 + $0x40] sm:$0xf] %vm1175_vm13, %v6462_v43  ;;  %6685 = vmatprep.subr.bf16.mxu1 %v7131_v45 }
0x1d79   : > { %6469 = vst [vmem:[#allocation3 + $0x38] sm:$0xf] %v6464_v55 }
0x1d7a   : > { %v6500_v58 = vpop.permute.xlu1 %6499 }
0x1d7b   : > { %v6480_v59 = vpop.permute.xlu0 %6479  ;;  %v6503_v61 = vsel %vm824_vm6, %v6498_v25, %v6500_v58  ;;  %v6605_v23 = vld [vmem:[#allocation3 + $0x30] sm:$0xff] }
0x1d7c   : > { %v6483_v20 = vsel %vm803_vm5, %v6478_v29, %v6480_v59  ;;  %v6484_v18 = vsel %vm803_vm5, %v6480_v59, %v6482_v34  ;;  %v6603_v28 = vld [vmem:[#allocation3 + $0x20] sm:$0xff]  ;;  %v6602_v37 = vld [vmem:[#allocation3 + $0x18] sm:$0xff]  ;;  %6508 = vst [vmem:[#allocation3 + $0x60] sm:$0xf] %v6503_v61 }
0x1d7d   : > { %6488 = vst [vmem:[#allocation3 + $0x48] sm:$0xf] %v6483_v20  ;;  %6489 = vst [vmem:[#allocation3 + $0x50] sm:$0xf] %v6484_v18  ;;  %6640 = vmatprep.subr.bf16.mxu0 %v6603_v28 }
0x1d7e   : > { %6641 = vmatpush1.bf16.msra.mxu0 %v6602_v37  ;;  %v6522_v62 = vpop.permute.xlu1 %6521  ;;  %v6610_v11 = vld [vmem:[#allocation3 + $0x58] sm:$0xff] }
0x1d7f   : > { %v6502_v50 = vpop.permute.xlu0 %6501  ;;  %v6607_v1 = vld [vmem:[#allocation3 + $0x40] sm:$0xff]  ;;  %6530 = vst.msk [vmem:[#allocation3 + $0x88] sm:$0xf] %vm1175_vm13, %v6522_v62 }
0x1d80   : > { %v6504_v2 = vsel %vm824_vm6, %v6500_v58, %v6502_v50  ;;  %6510 = vst.msk [vmem:[#allocation3 + $0x70] sm:$0xf] %vm1175_vm13, %v6502_v50  ;;  %6686 = vmatpush1.bf16.msra.mxu1 %v6607_v1  ;;  %v6606_v63 = vld [vmem:[#allocation3 + $0x38] sm:$0xff] }
0x1d81   : > { %6509 = vst [vmem:[#allocation3 + $0x68] sm:$0xf] %v6504_v2  ;;  %6642 = vmatprep.subr.bf16.mxu0 %v6606_v63  ;;  %6687 = vmatprep.subr.bf16.mxu1 %v7131_v45  ;;  %v6596_v58 = vld [vmem:[#allocation2 + $0x88] sm:$0xff] }
0x1d82   : > { %6643 = vmatpush1.bf16.msra.mxu0 %v6605_v23  ;;  %v6540_v48 = vpop.permute.xlu1 %6539 }
0x1d83   : > { %v6520_v5 = vpop.permute.xlu0 %6519  ;;  %v6543_v6 = vsel %vm866_vm8, %v6538_v0, %v6540_v48  ;;  %v6611_v57 = vld [vmem:[#allocation3 + $0x60] sm:$0xff] }
0x1d84   : > { %v6523_v14 = vsel %vm845_vm7, %v6518_v4, %v6520_v5  ;;  %v6524_v51 = vsel %vm845_vm7, %v6520_v5, %v6522_v62  ;;  %6688 = vmatpush1.bf16.msra.mxu1 %v6610_v11  ;;  %v6609_v24 = vld [vmem:[#allocation3 + $0x50] sm:$0xff]  ;;  %v6608_v56 = vld [vmem:[#allocation3 + $0x48] sm:$0xff]  ;;  %6548 = vst [vmem:[#allocation3 + $0x90] sm:$0xf] %v6543_v6 }
0x1d85   : > { %6528 = vst [vmem:[#allocation3 + $0x78] sm:$0xf] %v6523_v14  ;;  %6529 = vst [vmem:[#allocation3 + $0x80] sm:$0xf] %v6524_v51  ;;  %6644 = vmatprep.subr.bf16.mxu0 %v6609_v24  ;;  %6689 = vmatprep.subr.bf16.mxu1 %v7131_v45 }
0x1d86   : > { %6645 = vmatpush1.bf16.msra.mxu0 %v6608_v56  ;;  %v6562_v8 = vpop.permute.xlu1 %6561  ;;  %v6616_v41 = vld [vmem:[#allocation3 + $0x88] sm:$0xff] }
0x1d87   : > { %v6542_v17 = vpop.permute.xlu0 %6541  ;;  %v6613_v54 = vld [vmem:[#allocation3 + $0x70] sm:$0xff]  ;;  %6570 = vst.msk [vmem:[#allocation3 + $0xb8] sm:$0xf] %vm1175_vm13, %v6562_v8 }
0x1d88   : > { %v6544_v12 = vsel %vm866_vm8, %v6540_v48, %v6542_v17  ;;  %6550 = vst.msk [vmem:[#allocation3 + $0xa0] sm:$0xf] %vm1175_vm13, %v6542_v17  ;;  %6690 = vmatpush1.bf16.msra.mxu1 %v6613_v54  ;;  %v6612_v42 = vld [vmem:[#allocation3 + $0x68] sm:$0xff] }
0x1d89   : > { %6549 = vst [vmem:[#allocation3 + $0x98] sm:$0xf] %v6544_v12  ;;  %6646 = vmatprep.subr.bf16.mxu0 %v6612_v42  ;;  %6691 = vmatprep.subr.bf16.mxu1 %v7131_v45 }
0x1d8a   : > { %6647 = vmatpush1.bf16.msra.mxu0 %v6611_v57  ;;  %v6580_v19 = vpop.permute.xlu1 %6579 }
0x1d8b   : > { %v6560_v49 = vpop.permute.xlu0 %6559  ;;  %v6617_v0 = vld [vmem:[#allocation3 + $0x90] sm:$0xff] }
0x1d8c   : > { %v6563_v47 = vsel %vm887_vm9, %v8936_v39, %v6560_v49  ;;  %v6564_v7 = vsel %vm887_vm9, %v6560_v49, %v6562_v8  ;;  %6692 = vmatpush1.bf16.msra.mxu1 %v6616_v41  ;;  %v6615_v32 = vld [vmem:[#allocation3 + $0x80] sm:$0xff]  ;;  %v6614_v13 = vld [vmem:[#allocation3 + $0x78] sm:$0xff] }
0x1d8d   : > { %6568 = vst [vmem:[#allocation3 + $0xa8] sm:$0xf] %v6563_v47  ;;  %6569 = vst [vmem:[#allocation3 + $0xb0] sm:$0xf] %v6564_v7  ;;  %6648 = vmatprep.subr.bf16.mxu0 %v6615_v32  ;;  %6693 = vmatprep.subr.bf16.mxu1 %v7131_v45  ;;  %v7115_v49 = vld [vmem:[%s7258_s23 + $0x8] sm:$0xff]  ;;  %v7116_v32 = vld [vmem:[%s7258_s23 + $0x18] sm:$0xff] }
0x1d8e   : > { %6649 = vmatpush1.bf16.msra.mxu0 %v6614_v13  ;;  %v6578_v22 = vpop.permute.xlu1 %6577  ;;  %v6622_v4 = vld [vmem:[#allocation3 + $0xb8] sm:$0xff]  ;;  %v7117_v13 = vld [vmem:[%s7258_s23 + $0x20] sm:$0xff] }
0x1d8f   : > { %v6582_v15 = vpop.permute.xlu0 %6581  ;;  %v6619_v9 = vld [vmem:[#allocation3 + $0xa0] sm:$0xff]  ;;  %v6583_v33 = vsel %vm9098_vm15, %v6578_v22, %v6580_v19 }
0x1d90   : > { %v6584_v25 = vsel %vm9099_vm2, %v6580_v19, %v6582_v15  ;;  %6590 = vst.msk [vmem:[#allocation3 + $0xd0] sm:$0xf] %vm1175_vm13, %v6582_v15  ;;  %6694 = vmatpush1.bf16.msra.mxu1 %v6619_v9  ;;  %v6618_v29 = vld [vmem:[#allocation3 + $0x98] sm:$0xff]  ;;  %6588 = vst [vmem:[#allocation3 + $0xc0] sm:$0xf] %v6583_v33  ;;  %v7118_v33 = vld [vmem:[%s7258_s23 + $0x10] sm:$0xff] }
0x1d91   : > { %6589 = vst [vmem:[#allocation3 + $0xc8] sm:$0xf] %v6584_v25  ;;  %6650 = vmatprep.subr.bf16.mxu0 %v6618_v29  ;;  %6695 = vmatprep.subr.bf16.mxu1 %v7131_v45 }
0x1d92   : > { %6651 = vmatpush1.bf16.msra.mxu0 %v6617_v0 }
0x1d94   : > { %6696 = vmatpush1.bf16.msra.mxu1 %v6622_v4  ;;  %v6621_v40 = vld [vmem:[#allocation3 + $0xb0] sm:$0xff]  ;;  %v6620_v39 = vld [vmem:[#allocation3 + $0xa8] sm:$0xff] }
0x1d95   : > { %6652 = vmatprep.subr.bf16.mxu0 %v6621_v40  ;;  %6697 = vmatprep.subr.bf16.mxu1 %v7131_v45 }
0x1d96   : > { %6653 = vmatpush1.bf16.msra.mxu0 %v6620_v39 }
0x1d97   : > { %v6625_v21 = vld [vmem:[#allocation3 + $0xd0] sm:$0xff]  ;;  %v6623_v3 = vld [vmem:[#allocation3 + $0xc0] sm:$0xff] }
0x1d98   : > { %6698 = vmatpush1.bf16.msra.mxu1 %v6625_v21  ;;  %v6624_v26 = vld [vmem:[#allocation3 + $0xc8] sm:$0xff] }
0x1d99   : > { %6654 = vmatprep.subr.bf16.mxu0 %v6624_v26 }
0x1d9a   : > { %6655 = vmatpush1.bf16.msra.mxu0 %v6623_v3 }
0x1d9b   : > { %6714 = vmatmul.mubr.bf16.vlgmr.msra.gmra.mrb[128].mxu1 %v7105_v35 }
0x1d9d   : > { %6671 = vmatmul.mubr.bf16.vlgmr.msra.gmra.mrb[128].mxu0 %v7105_v35 }
0x1d9f   : > { %v6748_v63 = vpop.permute.xlu1 %6747 }
0x1da0   : > { %v6743_v28 = vpop.permute.xlu0 %6742 }
0x1e6e   : > { %v6715_v34 = vpop.f32.mrb[128].mxu1 }
0x1e6f   : > { %v6724_v43 = vadd.f32 %v6715_v34, %v6593_v53  ;;  %v6717_v27 = vpop.f32.mrb[129].mxu1 }
0x1e70   : > { %v6672_v55 = vpop.f32.mrb[128].mxu0  ;;  %v6718_v45 = vpop.f32.mrb[130].mxu1 }
0x1e71   : > { %6730 = vst.msk [vmem:[#allocation2 + $0x70] sm:$0xff] %vm747_vm1, %v6724_v43  ;;  %v6722_v59 = vadd.f32 %v6672_v55, %v8877_v60  ;;  %v6727_v61 = vadd.f32 %v6718_v45, %v6596_v58  ;;  %v6674_v20 = vpop.f32.mrb[129].mxu0  ;;  %v6720_v18 = vpop.f32.mrb[131].mxu1 }
0x1e72   : > { %v6723_v37 = vadd.f32 %v6674_v20, %v8880_v16  ;;  %v6676_v62 = vpop.f32.mrb[130].mxu0 }
0x1e73   : > { %v6750_v50 = vadd.f32 %v6743_v28, %v6722_v59  ;;  %6733 = vst.msk [vmem:[#allocation2 + $0x88] sm:$0xff] %vm747_vm1, %v6727_v61  ;;  %v6725_v1 = vadd.f32 %v6676_v62, %v8885_v36  ;;  %v6678_v2 = vpop.f32.mrb[131].mxu0 }
0x1e74   : > { %v6751_v23 = vadd.f32 %v6743_v28, %v6723_v37  ;;  %v6726_v48 = vadd.f32 %v6678_v2, %v8889_v52 }
0x1e75   : > { %v6756_v5 = vmul.f32 0.2, %v6750_v50  ;;  %v6753_v60 = vadd.f32 %v6748_v63, %v6725_v1 }
0x1e76   : > { %v6757_v11 = vmul.f32 0.2, %v6751_v23  ;;  %v6754_v6 = vadd.f32 %v6748_v63, %v6726_v48 }
0x1e77   : > { %v6762_v14 = vadd.f32 %v6756_v5, %v8413_v30  ;;  %v6759_v16 = vmul.f32 0.2, %v6753_v60  ;;  %v7114_v30 = vld [vmem:[%s7258_s23] sm:$0xff] }
0x1e78   : > { %v6736_v51 = vld [vmem:[#allocation2 + $0x70] sm:$0xff]  ;;  %v6763_v24 = vadd.f32 %v6757_v11, %v8416_v31  ;;  %v6760_v56 = vmul.f32 0.2, %v6754_v6 }
0x1e79   : > { %v6752_v36 = vadd.f32 %v6743_v28, %v6736_v51  ;;  %v6768_v8 = vmul.f32 0.2, %v6762_v14  ;;  %v6765_v17 = vadd.f32 %v6759_v16, %v8419_v44 }
0x1e7a   : > { %v6739_v52 = vld [vmem:[#allocation2 + $0x88] sm:$0xff]  ;;  %v6769_v54 = vmul.f32 0.2, %v6763_v24  ;;  %v6766_v12 = vadd.f32 %v6760_v56, %v8422_v46 }
0x1e7b   : > { %v6758_v42 = vmul.f32 0.2, %v6752_v36  ;;  %v6774_v57 = vadd.f32 %v7114_v30, %v6768_v8  ;;  %v6755_v19 = vadd.f32 %v6748_v63, %v6739_v52  ;;  %v6771_v31 = vmul.f32 0.2, %v6765_v17 }
0x1e7c   : > { %v6775_v41 = vadd.f32 %v7115_v49, %v6769_v54  ;;  %v6772_v47 = vmul.f32 0.2, %v6766_v12 }
0x1e7d   : > { %v6764_v44 = vadd.f32 %v6758_v42, %v8433_v10  ;;  %6780 = vst [vmem:[%s7263_s3] sm:$0xff] %v6774_v57  ;;  %v6761_v7 = vmul.f32 0.2, %v6755_v19  ;;  %v6777_v46 = vadd.f32 %v7116_v32, %v6771_v31  ;;  %v7119_v10 = vld [vmem:[%s7258_s23 + $0x28] sm:$0xff] }
0x1e7e   : > { %6781 = vst [vmem:[%s7263_s3 + $0x8] sm:$0xff] %v6775_v41  ;;  %v6778_v22 = vadd.f32 %v7117_v13, %v6772_v47 }
0x1e7f   : > { %v6770_v15 = vmul.f32 0.2, %v6764_v44  ;;  %v6767_v9 = vadd.f32 %v6761_v7, %v8437_v38  ;;  %6783 = vst [vmem:[%s7263_s3 + $0x18] sm:$0xff] %v6777_v46 }
0x1e80   : > { %6784 = vst [vmem:[%s7263_s3 + $0x20] sm:$0xff] %v6778_v22 }
0x1e81   : > { %v6776_v25 = vadd.f32 %v7118_v33, %v6770_v15  ;;  %v6773_v29 = vmul.f32 0.2, %v6767_v9 }
0x1e83   : > { %6782 = vst.msk [vmem:[%s7263_s3 + $0x10] sm:$0xff] %vm747_vm1, %v6776_v25  ;;  %v6779_v0 = vadd.f32 %v7119_v10, %v6773_v29 }
0x1e85   : > { %6785 = vst.msk [vmem:[%s7263_s3 + $0x28] sm:$0xff] %vm747_vm1, %v6779_v0 }
0x1e86 PF: > { %s9100_s26 = sld [smem:[#allocation5_spill]] }
0x1e8c   : > { %s29_s0 = sadd.s32 1, %s9100_s26  }
0x1e8d   : > { %p26_p5 = scmp.ge.s32.totalorder %s29_s0, 4  }
0x1e8f   :  { %28 = sbr.rel (!%p26_p5) target bundleno = 7 (0x7), region = 130 }

</bundles_post_ra>
